<compile_context>
chip_gen: v6e
topology: v6e:2x2x1
jax: 0.10.0
libtpu: 0.0.40
codegen_flags: <defaults>
</compile_context>

<pallas_src>
import numpy as np
import jax
import jax.numpy as jnp
from jax.experimental import pallas as pl
from jax.experimental.pallas import tpu as pltpu


# ----------------------------------------------------------------------------
# Model configuration
# ----------------------------------------------------------------------------
IN_CHANNELS = 4
IMG_SIZE = 16
HIDDEN_DIMS = [4, 8, 16]       # hidden_dims[0] == in_channels (config implies)
LATENT_DIM = 8
BATCH = 2

LEAKY_SLOPE = 0.01             # nn.LeakyReLU() default
BN_EPS = 1e-5                  # nn.BatchNorm2d default

_TAPS = [(dh, dw) for dh in (-1, 0, 1) for dw in (-1, 0, 1)]   # 3x3 tap offsets

# packed-weight layer slots (each layer owns 9 taps of 16 lanes in wpack)
L_ENC1, L_ENC2, L_DEC1, L_DEC2, L_FINT, L_FINC = range(6)
# packed per-channel vector columns (conv bias, BN gamma, BN beta per layer)
(V_E1B, V_E1G, V_E1BE,
 V_E2B, V_E2G, V_E2BE,
 V_D1B, V_D1G, V_D1BE,
 V_D2B, V_D2G, V_D2BE,
 V_FTB, V_FTG, V_FTBE,
 V_FCB) = range(16)

MASK8_OFF = BATCH * IMG_SIZE * IMG_SIZE       # lane offset of the 8x8 masks (512)


# ----------------------------------------------------------------------------
# Constant index / mask matrices (built once with numpy)
# ----------------------------------------------------------------------------
def _downsample_matrix(n, h, w):
    """S[(n,h,w), (n,ho,wo)] = 1 where h = 2*ho, w = 2*wo (stride-2 selection)."""
    ho, wo = h // 2, w // 2
    s = np.zeros((n * h * w, n * ho * wo), np.float32)
    for b in range(n):
        for i in range(ho):
            for j in range(wo):
                s[b * h * w + (2 * i) * w + 2 * j, b * ho * wo + i * wo + j] = 1.0
    return s


def _tap_masks(n, h, w):
    """[9, n*h*w] validity masks (pad=1) for 3x3 taps on an (h, w) grid."""
    m = np.zeros((9, n * h * w), np.float32)
    idx = np.arange(n * h * w)
    hh = (idx // w) % h
    ww = idx % w
    for t, (dh, dw) in enumerate(_TAPS):
        ok = (hh + dh >= 0) & (hh + dh < h) & (ww + dw >= 0) & (ww + dw < w)
        m[t] = ok.astype(np.float32)
    return m


# ----------------------------------------------------------------------------
# Weight layout conversion (PyTorch-native layouts -> packed per-tap matrices)
# ----------------------------------------------------------------------------
def _conv_taps(w_oihw):
    """Conv2d weight [Cout, Cin, 3, 3] (correlation) -> [9, Cout, Cin]."""
    return jnp.stack([w_oihw[:, :, dh + 1, dw + 1] for dh, dw in _TAPS], axis=0)


def _convT_taps(w_iohw):
    """ConvTranspose2d weight [Cin, Cout, 3, 3] -> [9, Cout, Cin].

    Exact ConvTranspose2d semantics: kernel spatially flipped and channel axes
    swapped relative to a correlation conv on the zero-inserted (dilated) input.
    """
    return jnp.stack(
        [jnp.transpose(w_iohw[:, :, 1 - dh, 1 - dw], (1, 0)) for dh, dw in _TAPS],
        axis=0)


def _pack_tap_weights(tap_ws):
    """list of [9, cout, cin] -> [16, len*9*16] lane-packed weight table.

    Tap (layer l, tap t) lives at lanes [(l*9+t)*16, (l*9+t)*16 + cin),
    sublanes [0, cout).  One operand / one DMA for all six conv layers.
    """
    blocks = []
    for w in tap_ws:
        _, cout, cin = w.shape
        wp = jnp.zeros((9, 16, 16), jnp.float32).at[:, :cout, :cin].set(w)
        blocks.append(jnp.transpose(wp, (1, 0, 2)).reshape(16, 9 * 16))
    return jnp.concatenate(blocks, axis=1)


def _pack_channel_vecs(vs):
    """list of per-channel vectors -> [16, len(vs)] zero-padded column table."""
    cols = []
    for v in vs:
        v = jnp.asarray(v, jnp.float32).reshape(-1)
        cols.append(jnp.zeros((16,), jnp.float32).at[: v.shape[0]].set(v))
    return jnp.stack(cols, axis=1)


# ----------------------------------------------------------------------------
# The fused kernel
# ----------------------------------------------------------------------------
def _vae_kernel(
    # inputs ------------------------------------------------------------------
    x_ref, eps_ref,
    maskpack_ref,                           # [9, 640]  (16x16 masks | 8x8 masks)
    sd1_ref, sd2_ref, su1_ref, su2_ref,     # stride-2 selection matrices
    prt_ref, pr_ref, maskc_ref,             # flatten / unflatten constants
    wpack_ref,                              # [16, 864] packed conv tap weights
    vecs_ref,                               # [16, 16]  packed bias/gamma/beta
    wcat_ref, bcat_ref, wdec_ref, bdec_ref, # fc_mu|fc_var and decoder_input
    # outputs -----------------------------------------------------------------
    recon_ref, z_ref, mu_ref, logvar_ref,
    # scratch -----------------------------------------------------------------
    pad16_ref, pad8_ref, d0_ref,
):
    f32 = jnp.float32
    hd = HIDDEN_DIMS
    hwb = (IMG_SIZE // 4) ** 2                 # bottleneck spatial positions (16)

    def vec(col, c):
        """Packed per-channel vector -> [c, 1] column (broadcasts over lanes)."""
        return vecs_ref[0:c, col:col + 1]

    def conv3x3(act, layer, cin, cout, gh, gw, pad_ref, mask_off):
        """Stride-1, zero-pad-1 3x3 'conv' on act: [cin, N*gh*gw].

        Weights come from the packed table; the activation is copied into a
        zero-padded VMEM scratch so every tap is a cheap shifted window read;
        row/image wraps are zeroed with the precomputed boundary masks.
        """
        m = BATCH * gh * gw
        halo = gw + 1                          # max |flat shift| of a tap
        pad_ref[0:cin, halo:halo + m] = act
        acc = jnp.zeros((cout, m), f32)
        for t, (dh, dw) in enumerate(_TAPS):
            delta = dh * gw + dw
            off = (layer * 9 + t) * 16
            w_t = wpack_ref[0:cout, off:off + cin]
            shifted = pad_ref[0:cin, halo + delta:halo + delta + m]
            if (dh, dw) == (0, 0):
                # centre tap never crosses a boundary -> mask is all-ones, skip it
                acc = acc + jnp.dot(w_t, shifted, preferred_element_type=f32)
            elif cin <= cout:
                shifted = shifted * maskpack_ref[t:t + 1, mask_off:mask_off + m]
                acc = acc + jnp.dot(w_t, shifted, preferred_element_type=f32)
            else:
                # mask depends only on the output position -> apply on the
                # smaller (cout) side of the matmul
                acc = acc + maskpack_ref[t:t + 1, mask_off:mask_off + m] * jnp.dot(
                    w_t, shifted, preferred_element_type=f32)
        return acc

    def bn_lrelu(x, gcol, bcol, c):
        """BatchNorm2d (training-mode batch stats, single pass) + LeakyReLU."""
        mean = jnp.mean(x, axis=1, keepdims=True)
        msq = jnp.mean(x * x, axis=1, keepdims=True)
        var = jnp.maximum(msq - mean * mean, 0.0)
        y = (x - mean) * jax.lax.rsqrt(var + BN_EPS) * vec(gcol, c) + vec(bcol, c)
        return jnp.where(y >= 0.0, y, LEAKY_SLOPE * y)

    # zero the padded scratch buffers once (halo columns stay zero afterwards)
    pad16_ref[...] = jnp.zeros(pad16_ref.shape, f32)
    pad8_ref[...] = jnp.zeros(pad8_ref.shape, f32)

    # ---------------- encoder -------------------------------------------------
    # Conv2d(4->8, k3 s2 p1) + BN + LeakyReLU
    h = conv3x3(x_ref[...], L_ENC1, hd[0], hd[1], IMG_SIZE, IMG_SIZE, pad16_ref, 0)
    h = jnp.dot(h, sd1_ref[...], preferred_element_type=f32) + vec(V_E1B, hd[1])
    e1 = bn_lrelu(h, V_E1G, V_E1BE, hd[1])                    # [8, N*64]

    # Conv2d(8->16, k3 s2 p1) + BN + LeakyReLU
    h = conv3x3(e1, L_ENC2, hd[1], hd[2], IMG_SIZE // 2, IMG_SIZE // 2,
                pad8_ref, MASK8_OFF)
    h = jnp.dot(h, sd2_ref[...], preferred_element_type=f32) + vec(V_E2B, hd[2])
    e2 = bn_lrelu(h, V_E2G, V_E2BE, hd[2])                    # [16, N*16]

    # ---------------- latent heads + reparameterize + decoder input ----------
    prt = prt_ref[...]
    pr = pr_ref[...]
    maskc = maskc_ref[...]
    wcat = wcat_ref[...]
    bcat = bcat_ref[...]
    wdec = wdec_ref[...]
    bdec = bdec_ref[...]
    for n in range(BATCH):
        e2_n = e2[:, n * hwb:(n + 1) * hwb]                   # [16, 16] (c, hw)
        # NCHW flatten:  flat[k] = e2_n[k // 16, k % 16]
        expand = jnp.dot(e2_n, prt, preferred_element_type=f32)          # [16, 256]
        flat_n = jnp.sum(expand * maskc, axis=0, keepdims=True)          # [1, 256]
        # fc_mu and fc_var fused into one matmul
        head = jnp.dot(flat_n, wcat, preferred_element_type=f32) + bcat  # [1, 16]
        mu_n = head[:, 0:LATENT_DIM]
        lv_n = head[:, LATENT_DIM:2 * LATENT_DIM]
        z_n = eps_ref[n:n + 1, :] * jnp.exp(0.5 * lv_n) + mu_n
        mu_ref[n:n + 1, :] = mu_n
        logvar_ref[n:n + 1, :] = lv_n
        z_ref[n:n + 1, :] = z_n
        # decoder input Linear, then view(-1, C, 4, 4) back into [C, hw] layout
        d0flat = jnp.dot(z_n, wdec, preferred_element_type=f32) + bdec   # [1, 256]
        d0_n = jnp.dot(d0flat * maskc, pr, preferred_element_type=f32)   # [16, 16]
        d0_ref[:, n * hwb:(n + 1) * hwb] = d0_n

    d0 = d0_ref[...]                                          # [16, N*16]

    # ---------------- decoder -------------------------------------------------
    # ConvTranspose2d(16->8, k3 s2 p1 outpad1) + BN + LeakyReLU
    up = jnp.dot(d0, su1_ref[...], preferred_element_type=f32)           # [16, N*64]
    h = conv3x3(up, L_DEC1, hd[2], hd[1], IMG_SIZE // 2, IMG_SIZE // 2,
                pad8_ref, MASK8_OFF) + vec(V_D1B, hd[1])
    d1 = bn_lrelu(h, V_D1G, V_D1BE, hd[1])                    # [8, N*64]

    # ConvTranspose2d(8->4, k3 s2 p1 outpad1) + BN + LeakyReLU
    up = jnp.dot(d1, su2_ref[...], preferred_element_type=f32)           # [8, N*256]
    h = conv3x3(up, L_DEC2, hd[1], hd[0], IMG_SIZE, IMG_SIZE,
                pad16_ref, 0) + vec(V_D2B, hd[0])
    d2 = bn_lrelu(h, V_D2G, V_D2BE, hd[0])                    # [4, N*256]

    # ---------------- final layer ---------------------------------------------
    # ConvTranspose2d(4->4, k3 s1 p1) + BN + LeakyReLU
    h = conv3x3(d2, L_FINT, hd[0], hd[0], IMG_SIZE, IMG_SIZE,
                pad16_ref, 0) + vec(V_FTB, hd[0])
    f1 = bn_lrelu(h, V_FTG, V_FTBE, hd[0])

    # Conv2d(4->in_channels, k3 s1 p1) + Tanh   (lane-dense [4, 512] store)
    h = conv3x3(f1, L_FINC, hd[0], IN_CHANNELS, IMG_SIZE, IMG_SIZE,
                pad16_ref, 0) + vec(V_FCB, IN_CHANNELS)
    recon_ref[...] = jnp.tanh(h)


# ----------------------------------------------------------------------------
# Parameters (PyTorch-native layouts, deterministic synthetic init)
# ----------------------------------------------------------------------------
def init_params(key):
    """Conv2d: [Cout,Cin,3,3]; ConvTranspose2d: [Cin,Cout,3,3]; Linear: [out,in]."""
    def nrm(k, shape, scale=0.05):
        return scale * jax.random.normal(k, shape, dtype=jnp.float32)

    hd = HIDDEN_DIMS
    feat = hd[2] * (IMG_SIZE // 4) ** 2
    ks = jax.random.split(key, 9)
    z = lambda n: jnp.zeros((n,), jnp.float32)
    o = lambda n: jnp.ones((n,), jnp.float32)
    p = {}
    p["enc1_w"] = nrm(ks[0], (hd[1], hd[0], 3, 3)); p["enc1_b"] = z(hd[1])
    p["enc1_g"] = o(hd[1]); p["enc1_be"] = z(hd[1])
    p["enc2_w"] = nrm(ks[1], (hd[2], hd[1], 3, 3)); p["enc2_b"] = z(hd[2])
    p["enc2_g"] = o(hd[2]); p["enc2_be"] = z(hd[2])
    p["fc_mu_w"] = nrm(ks[2], (LATENT_DIM, feat)); p["fc_mu_b"] = z(LATENT_DIM)
    p["fc_var_w"] = nrm(ks[3], (LATENT_DIM, feat)); p["fc_var_b"] = z(LATENT_DIM)
    p["fc_dec_w"] = nrm(ks[4], (feat, LATENT_DIM)); p["fc_dec_b"] = z(feat)
    p["dec1_w"] = nrm(ks[5], (hd[2], hd[1], 3, 3)); p["dec1_b"] = z(hd[1])
    p["dec1_g"] = o(hd[1]); p["dec1_be"] = z(hd[1])
    p["dec2_w"] = nrm(ks[6], (hd[1], hd[0], 3, 3)); p["dec2_b"] = z(hd[0])
    p["dec2_g"] = o(hd[0]); p["dec2_be"] = z(hd[0])
    p["fin_t_w"] = nrm(ks[7], (hd[0], hd[0], 3, 3)); p["fin_t_b"] = z(hd[0])
    p["fin_g"] = o(hd[0]); p["fin_be"] = z(hd[0])
    p["fin_c_w"] = nrm(ks[8], (IN_CHANNELS, hd[0], 3, 3)); p["fin_c_b"] = z(IN_CHANNELS)
    return p


def prepare_inputs(params):
    """One-time conversion of params + constant index matrices into the kernel
    operand list (everything after x and eps).  Small operands are packed into
    shared tables so the kernel prologue issues far fewer HBM->VMEM copies."""
    hd = HIDDEN_DIMS
    hwb = (IMG_SIZE // 4) ** 2                  # 16 bottleneck positions
    feat = hd[2] * hwb                          # 256

    mask16 = _tap_masks(BATCH, IMG_SIZE, IMG_SIZE)                    # [9, 512]
    mask8 = _tap_masks(BATCH, IMG_SIZE // 2, IMG_SIZE // 2)           # [9, 128]
    maskpack = jnp.asarray(np.concatenate([mask16, mask8], axis=1))   # [9, 640]

    sd1_np = _downsample_matrix(BATCH, IMG_SIZE, IMG_SIZE)            # [512, 128]
    sd2_np = _downsample_matrix(BATCH, IMG_SIZE // 2, IMG_SIZE // 2)  # [128, 32]
    sd1, sd2 = jnp.asarray(sd1_np), jnp.asarray(sd2_np)
    su1, su2 = jnp.asarray(sd2_np.T), jnp.asarray(sd1_np.T)           # zero-insert upsample

    k = np.arange(feat)
    prt_np = (k[None, :] % hwb == np.arange(hwb)[:, None]).astype(np.float32)   # [16, 256]
    maskc_np = (k[None, :] // hwb == np.arange(hd[2])[:, None]).astype(np.float32)
    prt, pr, maskc = jnp.asarray(prt_np), jnp.asarray(prt_np.T), jnp.asarray(maskc_np)

    # packed conv tap weights: order must match L_ENC1 .. L_FINC
    wpack = _pack_tap_weights([
        _conv_taps(params["enc1_w"]),
        _conv_taps(params["enc2_w"]),
        _convT_taps(params["dec1_w"]),
        _convT_taps(params["dec2_w"]),
        _convT_taps(params["fin_t_w"]),
        _conv_taps(params["fin_c_w"]),
    ])                                                                # [16, 864]

    # packed per-channel vectors: order must match V_E1B .. V_FCB
    vecs = _pack_channel_vecs([
        params["enc1_b"], params["enc1_g"], params["enc1_be"],
        params["enc2_b"], params["enc2_g"], params["enc2_be"],
        params["dec1_b"], params["dec1_g"], params["dec1_be"],
        params["dec2_b"], params["dec2_g"], params["dec2_be"],
        params["fin_t_b"], params["fin_g"], params["fin_be"],
        params["fin_c_b"],
    ])                                                                # [16, 16]

    row = lambda a: jnp.asarray(a, jnp.float32).reshape(1, -1)
    wcat = jnp.concatenate([params["fc_mu_w"].T, params["fc_var_w"].T], axis=1)  # [256, 16]
    bcat = row(jnp.concatenate([params["fc_mu_b"], params["fc_var_b"]]))
    wdec = params["fc_dec_w"].T                                                  # [8, 256]
    bdec = row(params["fc_dec_b"])

    return [maskpack, sd1, sd2, su1, su2, prt, pr, maskc,
            wpack, vecs, wcat, bcat, wdec, bdec]


# ----------------------------------------------------------------------------
# Forward pass wrapper
# ----------------------------------------------------------------------------
def vae_forward(prepared, x_nchw, eps):
    """Returns [recon(NCHW), input(NCHW), z, mu, log_var] — matches VAE.forward."""
    m16 = BATCH * IMG_SIZE * IMG_SIZE                 # 512
    m8 = BATCH * (IMG_SIZE // 2) ** 2                 # 128
    mb = BATCH * (IMG_SIZE // 4) ** 2                 # 32

    # NCHW -> [C, N*H*W]  (channels on sublanes, batch*spatial on lanes)
    x2 = jnp.transpose(x_nchw, (1, 0, 2, 3)).reshape(IN_CHANNELS, m16).astype(jnp.float32)
    operands = [x2, eps.astype(jnp.float32)] + list(prepared)

    vmem = pl.BlockSpec(memory_space=pltpu.MemorySpace.VMEM)
    recon2, z, mu, logvar = pl.pallas_call(
        _vae_kernel,
        out_shape=(
            jax.ShapeDtypeStruct((IN_CHANNELS, m16), jnp.float32),
            jax.ShapeDtypeStruct((BATCH, LATENT_DIM), jnp.float32),
            jax.ShapeDtypeStruct((BATCH, LATENT_DIM), jnp.float32),
            jax.ShapeDtypeStruct((BATCH, LATENT_DIM), jnp.float32),
        ),
        in_specs=[vmem] * len(operands),
        out_specs=(vmem, vmem, vmem, vmem),
        scratch_shapes=[
            # zero-padded activation buffers (halo = W+1 on each side)
            pltpu.VMEM((HIDDEN_DIMS[1], m16 + 2 * (IMG_SIZE + 1)), jnp.float32),
            pltpu.VMEM((HIDDEN_DIMS[2], m8 + 2 * (IMG_SIZE // 2 + 1)), jnp.float32),
            # decoder-input assembly buffer
            pltpu.VMEM((HIDDEN_DIMS[2], mb), jnp.float32),
        ],
        cost_estimate=pl.CostEstimate(
            flops=5_000_000, transcendentals=2_500, bytes_accessed=700_000),
    )(*operands)

    recon = recon2.reshape(IN_CHANNELS, BATCH, IMG_SIZE, IMG_SIZE).transpose(1, 0, 2, 3)
    return [recon, x_nchw, z, mu, logvar]


# TODO(synk): BatchNorm running-stats update (eval mode) is not modelled; the
# kernel applies training-mode batch statistics like the module's default forward.

if __name__ == "__main__":
    key = jax.random.PRNGKey(0)
    k_param, k_x, k_eps = jax.random.split(key, 3)

    params = init_params(k_param)
    prepared = prepare_inputs(params)
    x = jax.random.normal(k_x, (BATCH, IN_CHANNELS, IMG_SIZE, IMG_SIZE), dtype=jnp.float32)
    eps = jax.random.normal(k_eps, (BATCH, LATENT_DIM), dtype=jnp.float32)

    fwd = jax.jit(vae_forward)
    outs = fwd(prepared, x, eps)
    outs = jax.block_until_ready(outs)

    recon, inp, z, mu, log_var = outs
    assert recon.shape == (BATCH, IN_CHANNELS, IMG_SIZE, IMG_SIZE)
    assert z.shape == (BATCH, LATENT_DIM)
    assert mu.shape == (BATCH, LATENT_DIM) and log_var.shape == (BATCH, LATENT_DIM)
    for t in (recon, z, mu, log_var):
        assert bool(jnp.all(jnp.isfinite(t)))
    print("KERNEL_OK")
</pallas_src>

<mosaic_0001>
module attributes {stable_mosaic.version = 11 : i64} {
  func.func @_vae_kernel(%arg0: memref<4x512xf32, #tpu.memory_space<vmem>>, %arg1: memref<2x8xf32, #tpu.memory_space<vmem>>, %arg2: memref<9x640xf32, #tpu.memory_space<vmem>>, %arg3: memref<512x128xf32, #tpu.memory_space<vmem>>, %arg4: memref<128x32xf32, #tpu.memory_space<vmem>>, %arg5: memref<32x128xf32, #tpu.memory_space<vmem>>, %arg6: memref<128x512xf32, #tpu.memory_space<vmem>>, %arg7: memref<16x256xf32, #tpu.memory_space<vmem>>, %arg8: memref<256x16xf32, #tpu.memory_space<vmem>>, %arg9: memref<16x256xf32, #tpu.memory_space<vmem>>, %arg10: memref<16x864xf32, #tpu.memory_space<vmem>>, %arg11: memref<16x16xf32, #tpu.memory_space<vmem>>, %arg12: memref<256x16xf32, #tpu.memory_space<vmem>>, %arg13: memref<1x16xf32, #tpu.memory_space<vmem>>, %arg14: memref<8x256xf32, #tpu.memory_space<vmem>>, %arg15: memref<1x256xf32, #tpu.memory_space<vmem>>, %arg16: memref<4x512xf32, #tpu.memory_space<vmem>>, %arg17: memref<2x8xf32, #tpu.memory_space<vmem>>, %arg18: memref<2x8xf32, #tpu.memory_space<vmem>>, %arg19: memref<2x8xf32, #tpu.memory_space<vmem>>, %arg20: memref<8x546xf32, #tpu.memory_space<vmem>>, %arg21: memref<16x146xf32, #tpu.memory_space<vmem>>, %arg22: memref<16x32xf32, #tpu.memory_space<vmem>>) attributes {dimension_semantics = [], scalar_prefetch = 0 : i64, scratch_operands = 3 : i64, tpu.core_type = #tpu.core_type<tc>} {
    %cst = arith.constant 0.000000e+00 : f32
    %0 = vector.broadcast %cst : f32 to vector<8x546xf32>
    %c0 = arith.constant 0 : index
    %c0_0 = arith.constant 0 : index
    %1 = vector.load %arg20[%c0, %c0_0] : memref<8x546xf32, #tpu.memory_space<vmem>>, vector<8x546xf32>
    tpu.vector_store %arg20[%c0, %c0_0], %0 {strides = array<i32>} : memref<8x546xf32, #tpu.memory_space<vmem>>, vector<8x546xf32>,
    %cst_1 = arith.constant 0.000000e+00 : f32
    %2 = vector.broadcast %cst_1 : f32 to vector<16x146xf32>
    %c0_2 = arith.constant 0 : index
    %c0_3 = arith.constant 0 : index
    %3 = vector.load %arg21[%c0_2, %c0_3] : memref<16x146xf32, #tpu.memory_space<vmem>>, vector<16x146xf32>
    tpu.vector_store %arg21[%c0_2, %c0_3], %2 {strides = array<i32>} : memref<16x146xf32, #tpu.memory_space<vmem>>, vector<16x146xf32>,
    %c0_4 = arith.constant 0 : index
    %c0_5 = arith.constant 0 : index
    %4 = vector.load %arg0[%c0_4, %c0_5] : memref<4x512xf32, #tpu.memory_space<vmem>>, vector<4x512xf32>
    %c0_6 = arith.constant 0 : index
    %c17 = arith.constant 17 : index
    %5 = vector.load %arg20[%c0_6, %c17] : memref<8x546xf32, #tpu.memory_space<vmem>>, vector<4x512xf32>
    tpu.vector_store %arg20[%c0_6, %c17], %4 {strides = array<i32>} : memref<8x546xf32, #tpu.memory_space<vmem>>, vector<4x512xf32>,
    %cst_7 = arith.constant 0.000000e+00 : f32
    %6 = vector.broadcast %cst_7 : f32 to vector<8x512xf32>
    %c0_8 = arith.constant 0 : index
    %c0_9 = arith.constant 0 : index
    %7 = vector.load %arg10[%c0_8, %c0_9] : memref<16x864xf32, #tpu.memory_space<vmem>>, vector<8x4xf32>
    %c0_10 = arith.constant 0 : index
    %c0_11 = arith.constant 0 : index
    %8 = vector.load %arg20[%c0_10, %c0_11] : memref<8x546xf32, #tpu.memory_space<vmem>>, vector<4x512xf32>
    %c0_12 = arith.constant 0 : index
    %c0_13 = arith.constant 0 : index
    %9 = vector.load %arg2[%c0_12, %c0_13] : memref<9x640xf32, #tpu.memory_space<vmem>>, vector<1x512xf32>
    %10 = vector.broadcast %9 : vector<1x512xf32> to vector<4x512xf32>
    %11 = arith.mulf %8, %10 : vector<4x512xf32>
    %cst_14 = arith.constant dense<0.000000e+00> : vector<8x512xf32>
    %12 = tpu.matmul %7, %11, %cst_14 {dimension_numbers = #tpu.dot_dimension_numbers<[1], [0], [0], [1], [0, 0, 1, 1], [], []>} : vector<8x4xf32>, vector<4x512xf32>, vector<8x512xf32> -> vector<8x512xf32>
    %13 = arith.addf %6, %12 : vector<8x512xf32>
    %c0_15 = arith.constant 0 : index
    %c16 = arith.constant 16 : index
    %14 = vector.load %arg10[%c0_15, %c16] : memref<16x864xf32, #tpu.memory_space<vmem>>, vector<8x4xf32>
    %c0_16 = arith.constant 0 : index
    %c1 = arith.constant 1 : index
    %15 = vector.load %arg20[%c0_16, %c1] : memref<8x546xf32, #tpu.memory_space<vmem>>, vector<4x512xf32>
    %c1_17 = arith.constant 1 : index
    %c0_18 = arith.constant 0 : index
    %16 = vector.load %arg2[%c1_17, %c0_18] : memref<9x640xf32, #tpu.memory_space<vmem>>, vector<1x512xf32>
    %17 = vector.broadcast %16 : vector<1x512xf32> to vector<4x512xf32>
    %18 = arith.mulf %15, %17 : vector<4x512xf32>
    %cst_19 = arith.constant dense<0.000000e+00> : vector<8x512xf32>
    %19 = tpu.matmul %14, %18, %cst_19 {dimension_numbers = #tpu.dot_dimension_numbers<[1], [0], [0], [1], [0, 0, 1, 1], [], []>} : vector<8x4xf32>, vector<4x512xf32>, vector<8x512xf32> -> vector<8x512xf32>
    %20 = arith.addf %13, %19 : vector<8x512xf32>
    %c0_20 = arith.constant 0 : index
    %c32 = arith.constant 32 : index
    %21 = vector.load %arg10[%c0_20, %c32] : memref<16x864xf32, #tpu.memory_space<vmem>>, vector<8x4xf32>
    %c0_21 = arith.constant 0 : index
    %c2 = arith.constant 2 : index
    %22 = vector.load %arg20[%c0_21, %c2] : memref<8x546xf32, #tpu.memory_space<vmem>>, vector<4x512xf32>
    %c2_22 = arith.constant 2 : index
    %c0_23 = arith.constant 0 : index
    %23 = vector.load %arg2[%c2_22, %c0_23] : memref<9x640xf32, #tpu.memory_space<vmem>>, vector<1x512xf32>
    %24 = vector.broadcast %23 : vector<1x512xf32> to vector<4x512xf32>
    %25 = arith.mulf %22, %24 : vector<4x512xf32>
    %cst_24 = arith.constant dense<0.000000e+00> : vector<8x512xf32>
    %26 = tpu.matmul %21, %25, %cst_24 {dimension_numbers = #tpu.dot_dimension_numbers<[1], [0], [0], [1], [0, 0, 1, 1], [], []>} : vector<8x4xf32>, vector<4x512xf32>, vector<8x512xf32> -> vector<8x512xf32>
    %27 = arith.addf %20, %26 : vector<8x512xf32>
    %c0_25 = arith.constant 0 : index
    %c48 = arith.constant 48 : index
    %28 = vector.load %arg10[%c0_25, %c48] : memref<16x864xf32, #tpu.memory_space<vmem>>, vector<8x4xf32>
    %c0_26 = arith.constant 0 : index
    %c16_27 = arith.constant 16 : index
    %29 = vector.load %arg20[%c0_26, %c16_27] : memref<8x546xf32, #tpu.memory_space<vmem>>, vector<4x512xf32>
    %c3 = arith.constant 3 : index
    %c0_28 = arith.constant 0 : index
    %30 = vector.load %arg2[%c3, %c0_28] : memref<9x640xf32, #tpu.memory_space<vmem>>, vector<1x512xf32>
    %31 = vector.broadcast %30 : vector<1x512xf32> to vector<4x512xf32>
    %32 = arith.mulf %29, %31 : vector<4x512xf32>
    %cst_29 = arith.constant dense<0.000000e+00> : vector<8x512xf32>
    %33 = tpu.matmul %28, %32, %cst_29 {dimension_numbers = #tpu.dot_dimension_numbers<[1], [0], [0], [1], [0, 0, 1, 1], [], []>} : vector<8x4xf32>, vector<4x512xf32>, vector<8x512xf32> -> vector<8x512xf32>
    %34 = arith.addf %27, %33 : vector<8x512xf32>
    %c0_30 = arith.constant 0 : index
    %c64 = arith.constant 64 : index
    %35 = vector.load %arg10[%c0_30, %c64] : memref<16x864xf32, #tpu.memory_space<vmem>>, vector<8x4xf32>
    %c0_31 = arith.constant 0 : index
    %c17_32 = arith.constant 17 : index
    %36 = vector.load %arg20[%c0_31, %c17_32] : memref<8x546xf32, #tpu.memory_space<vmem>>, vector<4x512xf32>
    %cst_33 = arith.constant dense<0.000000e+00> : vector<8x512xf32>
    %37 = tpu.matmul %35, %36, %cst_33 {dimension_numbers = #tpu.dot_dimension_numbers<[1], [0], [0], [1], [0, 0, 1, 1], [], []>} : vector<8x4xf32>, vector<4x512xf32>, vector<8x512xf32> -> vector<8x512xf32>
    %38 = arith.addf %34, %37 : vector<8x512xf32>
    %c0_34 = arith.constant 0 : index
    %c80 = arith.constant 80 : index
    %39 = vector.load %arg10[%c0_34, %c80] : memref<16x864xf32, #tpu.memory_space<vmem>>, vector<8x4xf32>
    %c0_35 = arith.constant 0 : index
    %c18 = arith.constant 18 : index
    %40 = vector.load %arg20[%c0_35, %c18] : memref<8x546xf32, #tpu.memory_space<vmem>>, vector<4x512xf32>
    %c5 = arith.constant 5 : index
    %c0_36 = arith.constant 0 : index
    %41 = vector.load %arg2[%c5, %c0_36] : memref<9x640xf32, #tpu.memory_space<vmem>>, vector<1x512xf32>
    %42 = vector.broadcast %41 : vector<1x512xf32> to vector<4x512xf32>
    %43 = arith.mulf %40, %42 : vector<4x512xf32>
    %cst_37 = arith.constant dense<0.000000e+00> : vector<8x512xf32>
    %44 = tpu.matmul %39, %43, %cst_37 {dimension_numbers = #tpu.dot_dimension_numbers<[1], [0], [0], [1], [0, 0, 1, 1], [], []>} : vector<8x4xf32>, vector<4x512xf32>, vector<8x512xf32> -> vector<8x512xf32>
    %45 = arith.addf %38, %44 : vector<8x512xf32>
    %c0_38 = arith.constant 0 : index
    %c96 = arith.constant 96 : index
    %46 = vector.load %arg10[%c0_38, %c96] : memref<16x864xf32, #tpu.memory_space<vmem>>, vector<8x4xf32>
    %c0_39 = arith.constant 0 : index
    %c32_40 = arith.constant 32 : index
    %47 = vector.load %arg20[%c0_39, %c32_40] : memref<8x546xf32, #tpu.memory_space<vmem>>, vector<4x512xf32>
    %c6 = arith.constant 6 : index
    %c0_41 = arith.constant 0 : index
    %48 = vector.load %arg2[%c6, %c0_41] : memref<9x640xf32, #tpu.memory_space<vmem>>, vector<1x512xf32>
    %49 = vector.broadcast %48 : vector<1x512xf32> to vector<4x512xf32>
    %50 = arith.mulf %47, %49 : vector<4x512xf32>
    %cst_42 = arith.constant dense<0.000000e+00> : vector<8x512xf32>
    %51 = tpu.matmul %46, %50, %cst_42 {dimension_numbers = #tpu.dot_dimension_numbers<[1], [0], [0], [1], [0, 0, 1, 1], [], []>} : vector<8x4xf32>, vector<4x512xf32>, vector<8x512xf32> -> vector<8x512xf32>
    %52 = arith.addf %45, %51 : vector<8x512xf32>
    %c0_43 = arith.constant 0 : index
    %c112 = arith.constant 112 : index
    %53 = vector.load %arg10[%c0_43, %c112] : memref<16x864xf32, #tpu.memory_space<vmem>>, vector<8x4xf32>
    %c0_44 = arith.constant 0 : index
    %c33 = arith.constant 33 : index
    %54 = vector.load %arg20[%c0_44, %c33] : memref<8x546xf32, #tpu.memory_space<vmem>>, vector<4x512xf32>
    %c7 = arith.constant 7 : index
    %c0_45 = arith.constant 0 : index
    %55 = vector.load %arg2[%c7, %c0_45] : memref<9x640xf32, #tpu.memory_space<vmem>>, vector<1x512xf32>
    %56 = vector.broadcast %55 : vector<1x512xf32> to vector<4x512xf32>
    %57 = arith.mulf %54, %56 : vector<4x512xf32>
    %cst_46 = arith.constant dense<0.000000e+00> : vector<8x512xf32>
    %58 = tpu.matmul %53, %57, %cst_46 {dimension_numbers = #tpu.dot_dimension_numbers<[1], [0], [0], [1], [0, 0, 1, 1], [], []>} : vector<8x4xf32>, vector<4x512xf32>, vector<8x512xf32> -> vector<8x512xf32>
    %59 = arith.addf %52, %58 : vector<8x512xf32>
    %c0_47 = arith.constant 0 : index
    %c128 = arith.constant 128 : index
    %60 = vector.load %arg10[%c0_47, %c128] : memref<16x864xf32, #tpu.memory_space<vmem>>, vector<8x4xf32>
    %c0_48 = arith.constant 0 : index
    %c34 = arith.constant 34 : index
    %61 = vector.load %arg20[%c0_48, %c34] : memref<8x546xf32, #tpu.memory_space<vmem>>, vector<4x512xf32>
    %c8 = arith.constant 8 : index
    %c0_49 = arith.constant 0 : index
    %62 = vector.load %arg2[%c8, %c0_49] : memref<9x640xf32, #tpu.memory_space<vmem>>, vector<1x512xf32>
    %63 = vector.broadcast %62 : vector<1x512xf32> to vector<4x512xf32>
    %64 = arith.mulf %61, %63 : vector<4x512xf32>
    %cst_50 = arith.constant dense<0.000000e+00> : vector<8x512xf32>
    %65 = tpu.matmul %60, %64, %cst_50 {dimension_numbers = #tpu.dot_dimension_numbers<[1], [0], [0], [1], [0, 0, 1, 1], [], []>} : vector<8x4xf32>, vector<4x512xf32>, vector<8x512xf32> -> vector<8x512xf32>
    %66 = arith.addf %59, %65 : vector<8x512xf32>
    %c0_51 = arith.constant 0 : index
    %c0_52 = arith.constant 0 : index
    %67 = vector.load %arg3[%c0_51, %c0_52] : memref<512x128xf32, #tpu.memory_space<vmem>>, vector<512x128xf32>
    %cst_53 = arith.constant dense<0.000000e+00> : vector<8x128xf32>
    %68 = tpu.matmul %66, %67, %cst_53 {dimension_numbers = #tpu.dot_dimension_numbers<[1], [0], [0], [1], [0, 0, 1, 1], [], []>} : vector<8x512xf32>, vector<512x128xf32>, vector<8x128xf32> -> vector<8x128xf32>
    %c0_54 = arith.constant 0 : index
    %c0_55 = arith.constant 0 : index
    %69 = vector.load %arg11[%c0_54, %c0_55] : memref<16x16xf32, #tpu.memory_space<vmem>>, vector<8x1xf32>
    %70 = vector.broadcast %69 : vector<8x1xf32> to vector<8x128xf32>
    %71 = arith.addf %68, %70 : vector<8x128xf32>
    %cst_56 = arith.constant dense<0.000000e+00> : vector<8xf32>
    %72 = vector.multi_reduction <add>, %71, %cst_56 [1] : vector<8x128xf32> to vector<8xf32>
    %73 = vector.shape_cast %72 : vector<8xf32> to vector<8x1xf32>
    %cst_57 = arith.constant 1.280000e+02 : f32
    %74 = vector.broadcast %cst_57 : f32 to vector<8x1xf32>
    %75 = arith.divf %73, %74 : vector<8x1xf32>
    %76 = arith.mulf %71, %71 : vector<8x128xf32>
    %cst_58 = arith.constant dense<0.000000e+00> : vector<8xf32>
    %77 = vector.multi_reduction <add>, %76, %cst_58 [1] : vector<8x128xf32> to vector<8xf32>
    %78 = vector.shape_cast %77 : vector<8xf32> to vector<8x1xf32>
    %cst_59 = arith.constant 1.280000e+02 : f32
    %79 = vector.broadcast %cst_59 : f32 to vector<8x1xf32>
    %80 = arith.divf %78, %79 : vector<8x1xf32>
    %81 = arith.mulf %75, %75 : vector<8x1xf32>
    %82 = arith.subf %80, %81 : vector<8x1xf32>
    %cst_60 = arith.constant 0.000000e+00 : f32
    %83 = vector.broadcast %cst_60 : f32 to vector<8x1xf32>
    %84 = arith.maximumf %82, %83 : vector<8x1xf32>
    %85 = vector.broadcast %75 : vector<8x1xf32> to vector<8x128xf32>
    %86 = arith.subf %71, %85 : vector<8x128xf32>
    %cst_61 = arith.constant 9.99999974E-6 : f32
    %87 = vector.broadcast %cst_61 : f32 to vector<8x1xf32>
    %88 = arith.addf %84, %87 : vector<8x1xf32>
    %89 = math.rsqrt %88 : vector<8x1xf32>
    %90 = vector.broadcast %89 : vector<8x1xf32> to vector<8x128xf32>
    %91 = arith.mulf %86, %90 : vector<8x128xf32>
    %c0_62 = arith.constant 0 : index
    %c1_63 = arith.constant 1 : index
    %92 = vector.load %arg11[%c0_62, %c1_63] : memref<16x16xf32, #tpu.memory_space<vmem>>, vector<8x1xf32>
    %93 = vector.broadcast %92 : vector<8x1xf32> to vector<8x128xf32>
    %94 = arith.mulf %91, %93 : vector<8x128xf32>
    %c0_64 = arith.constant 0 : index
    %c2_65 = arith.constant 2 : index
    %95 = vector.load %arg11[%c0_64, %c2_65] : memref<16x16xf32, #tpu.memory_space<vmem>>, vector<8x1xf32>
    %96 = vector.broadcast %95 : vector<8x1xf32> to vector<8x128xf32>
    %97 = arith.addf %94, %96 : vector<8x128xf32>
    %cst_66 = arith.constant 0.000000e+00 : f32
    %98 = vector.broadcast %cst_66 : f32 to vector<8x128xf32>
    %99 = arith.cmpf oge, %97, %98 : vector<8x128xf32>
    %cst_67 = arith.constant 0.00999999977 : f32
    %100 = vector.broadcast %cst_67 : f32 to vector<8x128xf32>
    %101 = arith.mulf %100, %97 : vector<8x128xf32>
    %102 = arith.select %99, %97, %101 : vector<8x128xi1>, vector<8x128xf32>
    %c0_68 = arith.constant 0 : index
    %c9 = arith.constant 9 : index
    %103 = vector.load %arg21[%c0_68, %c9] : memref<16x146xf32, #tpu.memory_space<vmem>>, vector<8x128xf32>
    tpu.vector_store %arg21[%c0_68, %c9], %102 {strides = array<i32>} : memref<16x146xf32, #tpu.memory_space<vmem>>, vector<8x128xf32>,
    %cst_69 = arith.constant 0.000000e+00 : f32
    %104 = vector.broadcast %cst_69 : f32 to vector<16x128xf32>
    %c0_70 = arith.constant 0 : index
    %c144 = arith.constant 144 : index
    %105 = vector.load %arg10[%c0_70, %c144] : memref<16x864xf32, #tpu.memory_space<vmem>>, vector<16x8xf32>
    %c0_71 = arith.constant 0 : index
    %c0_72 = arith.constant 0 : index
    %106 = vector.load %arg21[%c0_71, %c0_72] : memref<16x146xf32, #tpu.memory_space<vmem>>, vector<8x128xf32>
    %c0_73 = arith.constant 0 : index
    %c512 = arith.constant 512 : index
    %107 = vector.load %arg2[%c0_73, %c512] : memref<9x640xf32, #tpu.memory_space<vmem>>, vector<1x128xf32>
    %108 = vector.broadcast %107 : vector<1x128xf32> to vector<8x128xf32>
    %109 = arith.mulf %106, %108 : vector<8x128xf32>
    %cst_74 = arith.constant dense<0.000000e+00> : vector<16x128xf32>
    %110 = tpu.matmul %105, %109, %cst_74 {dimension_numbers = #tpu.dot_dimension_numbers<[1], [0], [0], [1], [0, 0, 1, 1], [], []>} : vector<16x8xf32>, vector<8x128xf32>, vector<16x128xf32> -> vector<16x128xf32>
    %111 = arith.addf %104, %110 : vector<16x128xf32>
    %c0_75 = arith.constant 0 : index
    %c160 = arith.constant 160 : index
    %112 = vector.load %arg10[%c0_75, %c160] : memref<16x864xf32, #tpu.memory_space<vmem>>, vector<16x8xf32>
    %c0_76 = arith.constant 0 : index
    %c1_77 = arith.constant 1 : index
    %113 = vector.load %arg21[%c0_76, %c1_77] : memref<16x146xf32, #tpu.memory_space<vmem>>, vector<8x128xf32>
    %c1_78 = arith.constant 1 : index
    %c512_79 = arith.constant 512 : index
    %114 = vector.load %arg2[%c1_78, %c512_79] : memref<9x640xf32, #tpu.memory_space<vmem>>, vector<1x128xf32>
    %115 = vector.broadcast %114 : vector<1x128xf32> to vector<8x128xf32>
    %116 = arith.mulf %113, %115 : vector<8x128xf32>
    %cst_80 = arith.constant dense<0.000000e+00> : vector<16x128xf32>
    %117 = tpu.matmul %112, %116, %cst_80 {dimension_numbers = #tpu.dot_dimension_numbers<[1], [0], [0], [1], [0, 0, 1, 1], [], []>} : vector<16x8xf32>, vector<8x128xf32>, vector<16x128xf32> -> vector<16x128xf32>
    %118 = arith.addf %111, %117 : vector<16x128xf32>
    %c0_81 = arith.constant 0 : index
    %c176 = arith.constant 176 : index
    %119 = vector.load %arg10[%c0_81, %c176] : memref<16x864xf32, #tpu.memory_space<vmem>>, vector<16x8xf32>
    %c0_82 = arith.constant 0 : index
    %c2_83 = arith.constant 2 : index
    %120 = vector.load %arg21[%c0_82, %c2_83] : memref<16x146xf32, #tpu.memory_space<vmem>>, vector<8x128xf32>
    %c2_84 = arith.constant 2 : index
    %c512_85 = arith.constant 512 : index
    %121 = vector.load %arg2[%c2_84, %c512_85] : memref<9x640xf32, #tpu.memory_space<vmem>>, vector<1x128xf32>
    %122 = vector.broadcast %121 : vector<1x128xf32> to vector<8x128xf32>
    %123 = arith.mulf %120, %122 : vector<8x128xf32>
    %cst_86 = arith.constant dense<0.000000e+00> : vector<16x128xf32>
    %124 = tpu.matmul %119, %123, %cst_86 {dimension_numbers = #tpu.dot_dimension_numbers<[1], [0], [0], [1], [0, 0, 1, 1], [], []>} : vector<16x8xf32>, vector<8x128xf32>, vector<16x128xf32> -> vector<16x128xf32>
    %125 = arith.addf %118, %124 : vector<16x128xf32>
    %c0_87 = arith.constant 0 : index
    %c192 = arith.constant 192 : index
    %126 = vector.load %arg10[%c0_87, %c192] : memref<16x864xf32, #tpu.memory_space<vmem>>, vector<16x8xf32>
    %c0_88 = arith.constant 0 : index
    %c8_89 = arith.constant 8 : index
    %127 = vector.load %arg21[%c0_88, %c8_89] : memref<16x146xf32, #tpu.memory_space<vmem>>, vector<8x128xf32>
    %c3_90 = arith.constant 3 : index
    %c512_91 = arith.constant 512 : index
    %128 = vector.load %arg2[%c3_90, %c512_91] : memref<9x640xf32, #tpu.memory_space<vmem>>, vector<1x128xf32>
    %129 = vector.broadcast %128 : vector<1x128xf32> to vector<8x128xf32>
    %130 = arith.mulf %127, %129 : vector<8x128xf32>
    %cst_92 = arith.constant dense<0.000000e+00> : vector<16x128xf32>
    %131 = tpu.matmul %126, %130, %cst_92 {dimension_numbers = #tpu.dot_dimension_numbers<[1], [0], [0], [1], [0, 0, 1, 1], [], []>} : vector<16x8xf32>, vector<8x128xf32>, vector<16x128xf32> -> vector<16x128xf32>
    %132 = arith.addf %125, %131 : vector<16x128xf32>
    %c0_93 = arith.constant 0 : index
    %c208 = arith.constant 208 : index
    %133 = vector.load %arg10[%c0_93, %c208] : memref<16x864xf32, #tpu.memory_space<vmem>>, vector<16x8xf32>
    %c0_94 = arith.constant 0 : index
    %c9_95 = arith.constant 9 : index
    %134 = vector.load %arg21[%c0_94, %c9_95] : memref<16x146xf32, #tpu.memory_space<vmem>>, vector<8x128xf32>
    %cst_96 = arith.constant dense<0.000000e+00> : vector<16x128xf32>
    %135 = tpu.matmul %133, %134, %cst_96 {dimension_numbers = #tpu.dot_dimension_numbers<[1], [0], [0], [1], [0, 0, 1, 1], [], []>} : vector<16x8xf32>, vector<8x128xf32>, vector<16x128xf32> -> vector<16x128xf32>
    %136 = arith.addf %132, %135 : vector<16x128xf32>
    %c0_97 = arith.constant 0 : index
    %c224 = arith.constant 224 : index
    %137 = vector.load %arg10[%c0_97, %c224] : memref<16x864xf32, #tpu.memory_space<vmem>>, vector<16x8xf32>
    %c0_98 = arith.constant 0 : index
    %c10 = arith.constant 10 : index
    %138 = vector.load %arg21[%c0_98, %c10] : memref<16x146xf32, #tpu.memory_space<vmem>>, vector<8x128xf32>
    %c5_99 = arith.constant 5 : index
    %c512_100 = arith.constant 512 : index
    %139 = vector.load %arg2[%c5_99, %c512_100] : memref<9x640xf32, #tpu.memory_space<vmem>>, vector<1x128xf32>
    %140 = vector.broadcast %139 : vector<1x128xf32> to vector<8x128xf32>
    %141 = arith.mulf %138, %140 : vector<8x128xf32>
    %cst_101 = arith.constant dense<0.000000e+00> : vector<16x128xf32>
    %142 = tpu.matmul %137, %141, %cst_101 {dimension_numbers = #tpu.dot_dimension_numbers<[1], [0], [0], [1], [0, 0, 1, 1], [], []>} : vector<16x8xf32>, vector<8x128xf32>, vector<16x128xf32> -> vector<16x128xf32>
    %143 = arith.addf %136, %142 : vector<16x128xf32>
    %c0_102 = arith.constant 0 : index
    %c240 = arith.constant 240 : index
    %144 = vector.load %arg10[%c0_102, %c240] : memref<16x864xf32, #tpu.memory_space<vmem>>, vector<16x8xf32>
    %c0_103 = arith.constant 0 : index
    %c16_104 = arith.constant 16 : index
    %145 = vector.load %arg21[%c0_103, %c16_104] : memref<16x146xf32, #tpu.memory_space<vmem>>, vector<8x128xf32>
    %c6_105 = arith.constant 6 : index
    %c512_106 = arith.constant 512 : index
    %146 = vector.load %arg2[%c6_105, %c512_106] : memref<9x640xf32, #tpu.memory_space<vmem>>, vector<1x128xf32>
    %147 = vector.broadcast %146 : vector<1x128xf32> to vector<8x128xf32>
    %148 = arith.mulf %145, %147 : vector<8x128xf32>
    %cst_107 = arith.constant dense<0.000000e+00> : vector<16x128xf32>
    %149 = tpu.matmul %144, %148, %cst_107 {dimension_numbers = #tpu.dot_dimension_numbers<[1], [0], [0], [1], [0, 0, 1, 1], [], []>} : vector<16x8xf32>, vector<8x128xf32>, vector<16x128xf32> -> vector<16x128xf32>
    %150 = arith.addf %143, %149 : vector<16x128xf32>
    %c0_108 = arith.constant 0 : index
    %c256 = arith.constant 256 : index
    %151 = vector.load %arg10[%c0_108, %c256] : memref<16x864xf32, #tpu.memory_space<vmem>>, vector<16x8xf32>
    %c0_109 = arith.constant 0 : index
    %c17_110 = arith.constant 17 : index
    %152 = vector.load %arg21[%c0_109, %c17_110] : memref<16x146xf32, #tpu.memory_space<vmem>>, vector<8x128xf32>
    %c7_111 = arith.constant 7 : index
    %c512_112 = arith.constant 512 : index
    %153 = vector.load %arg2[%c7_111, %c512_112] : memref<9x640xf32, #tpu.memory_space<vmem>>, vector<1x128xf32>
    %154 = vector.broadcast %153 : vector<1x128xf32> to vector<8x128xf32>
    %155 = arith.mulf %152, %154 : vector<8x128xf32>
    %cst_113 = arith.constant dense<0.000000e+00> : vector<16x128xf32>
    %156 = tpu.matmul %151, %155, %cst_113 {dimension_numbers = #tpu.dot_dimension_numbers<[1], [0], [0], [1], [0, 0, 1, 1], [], []>} : vector<16x8xf32>, vector<8x128xf32>, vector<16x128xf32> -> vector<16x128xf32>
    %157 = arith.addf %150, %156 : vector<16x128xf32>
    %c0_114 = arith.constant 0 : index
    %c272 = arith.constant 272 : index
    %158 = vector.load %arg10[%c0_114, %c272] : memref<16x864xf32, #tpu.memory_space<vmem>>, vector<16x8xf32>
    %c0_115 = arith.constant 0 : index
    %c18_116 = arith.constant 18 : index
    %159 = vector.load %arg21[%c0_115, %c18_116] : memref<16x146xf32, #tpu.memory_space<vmem>>, vector<8x128xf32>
    %c8_117 = arith.constant 8 : index
    %c512_118 = arith.constant 512 : index
    %160 = vector.load %arg2[%c8_117, %c512_118] : memref<9x640xf32, #tpu.memory_space<vmem>>, vector<1x128xf32>
    %161 = vector.broadcast %160 : vector<1x128xf32> to vector<8x128xf32>
    %162 = arith.mulf %159, %161 : vector<8x128xf32>
    %cst_119 = arith.constant dense<0.000000e+00> : vector<16x128xf32>
    %163 = tpu.matmul %158, %162, %cst_119 {dimension_numbers = #tpu.dot_dimension_numbers<[1], [0], [0], [1], [0, 0, 1, 1], [], []>} : vector<16x8xf32>, vector<8x128xf32>, vector<16x128xf32> -> vector<16x128xf32>
    %164 = arith.addf %157, %163 : vector<16x128xf32>
    %c0_120 = arith.constant 0 : index
    %c0_121 = arith.constant 0 : index
    %165 = vector.load %arg4[%c0_120, %c0_121] : memref<128x32xf32, #tpu.memory_space<vmem>>, vector<128x32xf32>
    %cst_122 = arith.constant dense<0.000000e+00> : vector<16x32xf32>
    %166 = tpu.matmul %164, %165, %cst_122 {dimension_numbers = #tpu.dot_dimension_numbers<[1], [0], [0], [1], [0, 0, 1, 1], [], []>} : vector<16x128xf32>, vector<128x32xf32>, vector<16x32xf32> -> vector<16x32xf32>
    %c0_123 = arith.constant 0 : index
    %c3_124 = arith.constant 3 : index
    %167 = vector.load %arg11[%c0_123, %c3_124] : memref<16x16xf32, #tpu.memory_space<vmem>>, vector<16x1xf32>
    %168 = vector.broadcast %167 : vector<16x1xf32> to vector<16x32xf32>
    %169 = arith.addf %166, %168 : vector<16x32xf32>
    %cst_125 = arith.constant dense<0.000000e+00> : vector<16xf32>
    %170 = vector.multi_reduction <add>, %169, %cst_125 [1] : vector<16x32xf32> to vector<16xf32>
    %171 = vector.shape_cast %170 : vector<16xf32> to vector<16x1xf32>
    %cst_126 = arith.constant 3.200000e+01 : f32
    %172 = vector.broadcast %cst_126 : f32 to vector<16x1xf32>
    %173 = arith.divf %171, %172 : vector<16x1xf32>
    %174 = arith.mulf %169, %169 : vector<16x32xf32>
    %cst_127 = arith.constant dense<0.000000e+00> : vector<16xf32>
    %175 = vector.multi_reduction <add>, %174, %cst_127 [1] : vector<16x32xf32> to vector<16xf32>
    %176 = vector.shape_cast %175 : vector<16xf32> to vector<16x1xf32>
    %cst_128 = arith.constant 3.200000e+01 : f32
    %177 = vector.broadcast %cst_128 : f32 to vector<16x1xf32>
    %178 = arith.divf %176, %177 : vector<16x1xf32>
    %179 = arith.mulf %173, %173 : vector<16x1xf32>
    %180 = arith.subf %178, %179 : vector<16x1xf32>
    %cst_129 = arith.constant 0.000000e+00 : f32
    %181 = vector.broadcast %cst_129 : f32 to vector<16x1xf32>
    %182 = arith.maximumf %180, %181 : vector<16x1xf32>
    %183 = vector.broadcast %173 : vector<16x1xf32> to vector<16x32xf32>
    %184 = arith.subf %169, %183 : vector<16x32xf32>
    %cst_130 = arith.constant 9.99999974E-6 : f32
    %185 = vector.broadcast %cst_130 : f32 to vector<16x1xf32>
    %186 = arith.addf %182, %185 : vector<16x1xf32>
    %187 = math.rsqrt %186 : vector<16x1xf32>
    %188 = vector.broadcast %187 : vector<16x1xf32> to vector<16x32xf32>
    %189 = arith.mulf %184, %188 : vector<16x32xf32>
    %c0_131 = arith.constant 0 : index
    %c4 = arith.constant 4 : index
    %190 = vector.load %arg11[%c0_131, %c4] : memref<16x16xf32, #tpu.memory_space<vmem>>, vector<16x1xf32>
    %191 = vector.broadcast %190 : vector<16x1xf32> to vector<16x32xf32>
    %192 = arith.mulf %189, %191 : vector<16x32xf32>
    %c0_132 = arith.constant 0 : index
    %c5_133 = arith.constant 5 : index
    %193 = vector.load %arg11[%c0_132, %c5_133] : memref<16x16xf32, #tpu.memory_space<vmem>>, vector<16x1xf32>
    %194 = vector.broadcast %193 : vector<16x1xf32> to vector<16x32xf32>
    %195 = arith.addf %192, %194 : vector<16x32xf32>
    %cst_134 = arith.constant 0.000000e+00 : f32
    %196 = vector.broadcast %cst_134 : f32 to vector<16x32xf32>
    %197 = arith.cmpf oge, %195, %196 : vector<16x32xf32>
    %cst_135 = arith.constant 0.00999999977 : f32
    %198 = vector.broadcast %cst_135 : f32 to vector<16x32xf32>
    %199 = arith.mulf %198, %195 : vector<16x32xf32>
    %200 = arith.select %197, %195, %199 : vector<16x32xi1>, vector<16x32xf32>
    %c0_136 = arith.constant 0 : index
    %c0_137 = arith.constant 0 : index
    %201 = vector.load %arg7[%c0_136, %c0_137] : memref<16x256xf32, #tpu.memory_space<vmem>>, vector<16x256xf32>
    %c0_138 = arith.constant 0 : index
    %c0_139 = arith.constant 0 : index
    %202 = vector.load %arg8[%c0_138, %c0_139] : memref<256x16xf32, #tpu.memory_space<vmem>>, vector<256x16xf32>
    %c0_140 = arith.constant 0 : index
    %c0_141 = arith.constant 0 : index
    %203 = vector.load %arg9[%c0_140, %c0_141] : memref<16x256xf32, #tpu.memory_space<vmem>>, vector<16x256xf32>
    %c0_142 = arith.constant 0 : index
    %c0_143 = arith.constant 0 : index
    %204 = vector.load %arg12[%c0_142, %c0_143] : memref<256x16xf32, #tpu.memory_space<vmem>>, vector<256x16xf32>
    %c0_144 = arith.constant 0 : index
    %c0_145 = arith.constant 0 : index
    %205 = vector.load %arg13[%c0_144, %c0_145] : memref<1x16xf32, #tpu.memory_space<vmem>>, vector<1x16xf32>
    %c0_146 = arith.constant 0 : index
    %c0_147 = arith.constant 0 : index
    %206 = vector.load %arg14[%c0_146, %c0_147] : memref<8x256xf32, #tpu.memory_space<vmem>>, vector<8x256xf32>
    %c0_148 = arith.constant 0 : index
    %c0_149 = arith.constant 0 : index
    %207 = vector.load %arg15[%c0_148, %c0_149] : memref<1x256xf32, #tpu.memory_space<vmem>>, vector<1x256xf32>
    %208 = vector.extract_strided_slice %200 {offsets = [0, 0], sizes = [16, 16], strides = [1, 1]} : vector<16x32xf32> to vector<16x16xf32>
    %cst_150 = arith.constant dense<0.000000e+00> : vector<16x256xf32>
    %209 = tpu.matmul %208, %201, %cst_150 {dimension_numbers = #tpu.dot_dimension_numbers<[1], [0], [0], [1], [0, 0, 1, 1], [], []>} : vector<16x16xf32>, vector<16x256xf32>, vector<16x256xf32> -> vector<16x256xf32>
    %210 = arith.mulf %209, %203 : vector<16x256xf32>
    %cst_151 = arith.constant dense<0.000000e+00> : vector<256xf32>
    %211 = vector.multi_reduction <add>, %210, %cst_151 [0] : vector<16x256xf32> to vector<256xf32>
    %212 = vector.shape_cast %211 : vector<256xf32> to vector<1x256xf32>
    %cst_152 = arith.constant dense<0.000000e+00> : vector<1x16xf32>
    %213 = tpu.matmul %212, %204, %cst_152 {dimension_numbers = #tpu.dot_dimension_numbers<[1], [0], [0], [1], [0, 0, 1, 1], [], []>} : vector<1x256xf32>, vector<256x16xf32>, vector<1x16xf32> -> vector<1x16xf32>
    %214 = arith.addf %213, %205 : vector<1x16xf32>
    %215 = vector.extract_strided_slice %214 {offsets = [0, 0], sizes = [1, 8], strides = [1, 1]} : vector<1x16xf32> to vector<1x8xf32>
    %216 = vector.extract_strided_slice %214 {offsets = [0, 8], sizes = [1, 8], strides = [1, 1]} : vector<1x16xf32> to vector<1x8xf32>
    %c0_153 = arith.constant 0 : index
    %c0_154 = arith.constant 0 : index
    %217 = vector.load %arg1[%c0_153, %c0_154] : memref<2x8xf32, #tpu.memory_space<vmem>>, vector<1x8xf32>
    %cst_155 = arith.constant 5.000000e-01 : f32
    %218 = vector.broadcast %cst_155 : f32 to vector<1x8xf32>
    %219 = arith.mulf %218, %216 : vector<1x8xf32>
    %220 = math.exp %219 : vector<1x8xf32>
    %221 = arith.mulf %217, %220 : vector<1x8xf32>
    %222 = arith.addf %221, %215 : vector<1x8xf32>
    %c0_156 = arith.constant 0 : index
    %c0_157 = arith.constant 0 : index
    %223 = vector.load %arg18[%c0_156, %c0_157] : memref<2x8xf32, #tpu.memory_space<vmem>>, vector<1x8xf32>
    tpu.vector_store %arg18[%c0_156, %c0_157], %215 {strides = array<i32>} : memref<2x8xf32, #tpu.memory_space<vmem>>, vector<1x8xf32>,
    %c0_158 = arith.constant 0 : index
    %c0_159 = arith.constant 0 : index
    %224 = vector.load %arg19[%c0_158, %c0_159] : memref<2x8xf32, #tpu.memory_space<vmem>>, vector<1x8xf32>
    tpu.vector_store %arg19[%c0_158, %c0_159], %216 {strides = array<i32>} : memref<2x8xf32, #tpu.memory_space<vmem>>, vector<1x8xf32>,
    %c0_160 = arith.constant 0 : index
    %c0_161 = arith.constant 0 : index
    %225 = vector.load %arg17[%c0_160, %c0_161] : memref<2x8xf32, #tpu.memory_space<vmem>>, vector<1x8xf32>
    tpu.vector_store %arg17[%c0_160, %c0_161], %222 {strides = array<i32>} : memref<2x8xf32, #tpu.memory_space<vmem>>, vector<1x8xf32>,
    %cst_162 = arith.constant dense<0.000000e+00> : vector<1x256xf32>
    %226 = tpu.matmul %222, %206, %cst_162 {dimension_numbers = #tpu.dot_dimension_numbers<[1], [0], [0], [1], [0, 0, 1, 1], [], []>} : vector<1x8xf32>, vector<8x256xf32>, vector<1x256xf32> -> vector<1x256xf32>
    %227 = arith.addf %226, %207 : vector<1x256xf32>
    %228 = vector.broadcast %227 : vector<1x256xf32> to vector<16x256xf32>
    %229 = arith.mulf %228, %203 : vector<16x256xf32>
    %cst_163 = arith.constant dense<0.000000e+00> : vector<16x16xf32>
    %230 = tpu.matmul %229, %202, %cst_163 {dimension_numbers = #tpu.dot_dimension_numbers<[1], [0], [0], [1], [0, 0, 1, 1], [], []>} : vector<16x256xf32>, vector<256x16xf32>, vector<16x16xf32> -> vector<16x16xf32>
    %c0_164 = arith.constant 0 : index
    %c0_165 = arith.constant 0 : index
    %231 = vector.load %arg22[%c0_164, %c0_165] : memref<16x32xf32, #tpu.memory_space<vmem>>, vector<16x16xf32>
    tpu.vector_store %arg22[%c0_164, %c0_165], %230 {strides = array<i32>} : memref<16x32xf32, #tpu.memory_space<vmem>>, vector<16x16xf32>,
    %232 = vector.extract_strided_slice %200 {offsets = [0, 16], sizes = [16, 16], strides = [1, 1]} : vector<16x32xf32> to vector<16x16xf32>
    %cst_166 = arith.constant dense<0.000000e+00> : vector<16x256xf32>
    %233 = tpu.matmul %232, %201, %cst_166 {dimension_numbers = #tpu.dot_dimension_numbers<[1], [0], [0], [1], [0, 0, 1, 1], [], []>} : vector<16x16xf32>, vector<16x256xf32>, vector<16x256xf32> -> vector<16x256xf32>
    %234 = arith.mulf %233, %203 : vector<16x256xf32>
    %cst_167 = arith.constant dense<0.000000e+00> : vector<256xf32>
    %235 = vector.multi_reduction <add>, %234, %cst_167 [0] : vector<16x256xf32> to vector<256xf32>
    %236 = vector.shape_cast %235 : vector<256xf32> to vector<1x256xf32>
    %cst_168 = arith.constant dense<0.000000e+00> : vector<1x16xf32>
    %237 = tpu.matmul %236, %204, %cst_168 {dimension_numbers = #tpu.dot_dimension_numbers<[1], [0], [0], [1], [0, 0, 1, 1], [], []>} : vector<1x256xf32>, vector<256x16xf32>, vector<1x16xf32> -> vector<1x16xf32>
    %238 = arith.addf %237, %205 : vector<1x16xf32>
    %239 = vector.extract_strided_slice %238 {offsets = [0, 0], sizes = [1, 8], strides = [1, 1]} : vector<1x16xf32> to vector<1x8xf32>
    %240 = vector.extract_strided_slice %238 {offsets = [0, 8], sizes = [1, 8], strides = [1, 1]} : vector<1x16xf32> to vector<1x8xf32>
    %c1_169 = arith.constant 1 : index
    %c0_170 = arith.constant 0 : index
    %241 = vector.load %arg1[%c1_169, %c0_170] : memref<2x8xf32, #tpu.memory_space<vmem>>, vector<1x8xf32>
    %cst_171 = arith.constant 5.000000e-01 : f32
    %242 = vector.broadcast %cst_171 : f32 to vector<1x8xf32>
    %243 = arith.mulf %242, %240 : vector<1x8xf32>
    %244 = math.exp %243 : vector<1x8xf32>
    %245 = arith.mulf %241, %244 : vector<1x8xf32>
    %246 = arith.addf %245, %239 : vector<1x8xf32>
    %c1_172 = arith.constant 1 : index
    %c0_173 = arith.constant 0 : index
    %247 = vector.load %arg18[%c1_172, %c0_173] : memref<2x8xf32, #tpu.memory_space<vmem>>, vector<1x8xf32>
    tpu.vector_store %arg18[%c1_172, %c0_173], %239 {strides = array<i32>} : memref<2x8xf32, #tpu.memory_space<vmem>>, vector<1x8xf32>,
    %c1_174 = arith.constant 1 : index
    %c0_175 = arith.constant 0 : index
    %248 = vector.load %arg19[%c1_174, %c0_175] : memref<2x8xf32, #tpu.memory_space<vmem>>, vector<1x8xf32>
    tpu.vector_store %arg19[%c1_174, %c0_175], %240 {strides = array<i32>} : memref<2x8xf32, #tpu.memory_space<vmem>>, vector<1x8xf32>,
    %c1_176 = arith.constant 1 : index
    %c0_177 = arith.constant 0 : index
    %249 = vector.load %arg17[%c1_176, %c0_177] : memref<2x8xf32, #tpu.memory_space<vmem>>, vector<1x8xf32>
    tpu.vector_store %arg17[%c1_176, %c0_177], %246 {strides = array<i32>} : memref<2x8xf32, #tpu.memory_space<vmem>>, vector<1x8xf32>,
    %cst_178 = arith.constant dense<0.000000e+00> : vector<1x256xf32>
    %250 = tpu.matmul %246, %206, %cst_178 {dimension_numbers = #tpu.dot_dimension_numbers<[1], [0], [0], [1], [0, 0, 1, 1], [], []>} : vector<1x8xf32>, vector<8x256xf32>, vector<1x256xf32> -> vector<1x256xf32>
    %251 = arith.addf %250, %207 : vector<1x256xf32>
    %252 = vector.broadcast %251 : vector<1x256xf32> to vector<16x256xf32>
    %253 = arith.mulf %252, %203 : vector<16x256xf32>
    %cst_179 = arith.constant dense<0.000000e+00> : vector<16x16xf32>
    %254 = tpu.matmul %253, %202, %cst_179 {dimension_numbers = #tpu.dot_dimension_numbers<[1], [0], [0], [1], [0, 0, 1, 1], [], []>} : vector<16x256xf32>, vector<256x16xf32>, vector<16x16xf32> -> vector<16x16xf32>
    %c0_180 = arith.constant 0 : index
    %c16_181 = arith.constant 16 : index
    %255 = vector.load %arg22[%c0_180, %c16_181] : memref<16x32xf32, #tpu.memory_space<vmem>>, vector<16x16xf32>
    tpu.vector_store %arg22[%c0_180, %c16_181], %254 {strides = array<i32>} : memref<16x32xf32, #tpu.memory_space<vmem>>, vector<16x16xf32>,
    %c0_182 = arith.constant 0 : index
    %c0_183 = arith.constant 0 : index
    %256 = vector.load %arg22[%c0_182, %c0_183] : memref<16x32xf32, #tpu.memory_space<vmem>>, vector<16x32xf32>
    %c0_184 = arith.constant 0 : index
    %c0_185 = arith.constant 0 : index
    %257 = vector.load %arg5[%c0_184, %c0_185] : memref<32x128xf32, #tpu.memory_space<vmem>>, vector<32x128xf32>
    %cst_186 = arith.constant dense<0.000000e+00> : vector<16x128xf32>
    %258 = tpu.matmul %256, %257, %cst_186 {dimension_numbers = #tpu.dot_dimension_numbers<[1], [0], [0], [1], [0, 0, 1, 1], [], []>} : vector<16x32xf32>, vector<32x128xf32>, vector<16x128xf32> -> vector<16x128xf32>
    %c0_187 = arith.constant 0 : index
    %c9_188 = arith.constant 9 : index
    %259 = vector.load %arg21[%c0_187, %c9_188] : memref<16x146xf32, #tpu.memory_space<vmem>>, vector<16x128xf32>
    tpu.vector_store %arg21[%c0_187, %c9_188], %258 {strides = array<i32>} : memref<16x146xf32, #tpu.memory_space<vmem>>, vector<16x128xf32>,
    %cst_189 = arith.constant 0.000000e+00 : f32
    %260 = vector.broadcast %cst_189 : f32 to vector<8x128xf32>
    %c0_190 = arith.constant 0 : index
    %c288 = arith.constant 288 : index
    %261 = vector.load %arg10[%c0_190, %c288] : memref<16x864xf32, #tpu.memory_space<vmem>>, vector<8x16xf32>
    %c0_191 = arith.constant 0 : index
    %c0_192 = arith.constant 0 : index
    %262 = vector.load %arg21[%c0_191, %c0_192] : memref<16x146xf32, #tpu.memory_space<vmem>>, vector<16x128xf32>
    %c0_193 = arith.constant 0 : index
    %c512_194 = arith.constant 512 : index
    %263 = vector.load %arg2[%c0_193, %c512_194] : memref<9x640xf32, #tpu.memory_space<vmem>>, vector<1x128xf32>
    %cst_195 = arith.constant dense<0.000000e+00> : vector<8x128xf32>
    %264 = tpu.matmul %261, %262, %cst_195 {dimension_numbers = #tpu.dot_dimension_numbers<[1], [0], [0], [1], [0, 0, 1, 1], [], []>} : vector<8x16xf32>, vector<16x128xf32>, vector<8x128xf32> -> vector<8x128xf32>
    %265 = vector.broadcast %263 : vector<1x128xf32> to vector<8x128xf32>
    %266 = arith.mulf %265, %264 : vector<8x128xf32>
    %267 = arith.addf %260, %266 : vector<8x128xf32>
    %c0_196 = arith.constant 0 : index
    %c304 = arith.constant 304 : index
    %268 = vector.load %arg10[%c0_196, %c304] : memref<16x864xf32, #tpu.memory_space<vmem>>, vector<8x16xf32>
    %c0_197 = arith.constant 0 : index
    %c1_198 = arith.constant 1 : index
    %269 = vector.load %arg21[%c0_197, %c1_198] : memref<16x146xf32, #tpu.memory_space<vmem>>, vector<16x128xf32>
    %c1_199 = arith.constant 1 : index
    %c512_200 = arith.constant 512 : index
    %270 = vector.load %arg2[%c1_199, %c512_200] : memref<9x640xf32, #tpu.memory_space<vmem>>, vector<1x128xf32>
    %cst_201 = arith.constant dense<0.000000e+00> : vector<8x128xf32>
    %271 = tpu.matmul %268, %269, %cst_201 {dimension_numbers = #tpu.dot_dimension_numbers<[1], [0], [0], [1], [0, 0, 1, 1], [], []>} : vector<8x16xf32>, vector<16x128xf32>, vector<8x128xf32> -> vector<8x128xf32>
    %272 = vector.broadcast %270 : vector<1x128xf32> to vector<8x128xf32>
    %273 = arith.mulf %272, %271 : vector<8x128xf32>
    %274 = arith.addf %267, %273 : vector<8x128xf32>
    %c0_202 = arith.constant 0 : index
    %c320 = arith.constant 320 : index
    %275 = vector.load %arg10[%c0_202, %c320] : memref<16x864xf32, #tpu.memory_space<vmem>>, vector<8x16xf32>
    %c0_203 = arith.constant 0 : index
    %c2_204 = arith.constant 2 : index
    %276 = vector.load %arg21[%c0_203, %c2_204] : memref<16x146xf32, #tpu.memory_space<vmem>>, vector<16x128xf32>
    %c2_205 = arith.constant 2 : index
    %c512_206 = arith.constant 512 : index
    %277 = vector.load %arg2[%c2_205, %c512_206] : memref<9x640xf32, #tpu.memory_space<vmem>>, vector<1x128xf32>
    %cst_207 = arith.constant dense<0.000000e+00> : vector<8x128xf32>
    %278 = tpu.matmul %275, %276, %cst_207 {dimension_numbers = #tpu.dot_dimension_numbers<[1], [0], [0], [1], [0, 0, 1, 1], [], []>} : vector<8x16xf32>, vector<16x128xf32>, vector<8x128xf32> -> vector<8x128xf32>
    %279 = vector.broadcast %277 : vector<1x128xf32> to vector<8x128xf32>
    %280 = arith.mulf %279, %278 : vector<8x128xf32>
    %281 = arith.addf %274, %280 : vector<8x128xf32>
    %c0_208 = arith.constant 0 : index
    %c336 = arith.constant 336 : index
    %282 = vector.load %arg10[%c0_208, %c336] : memref<16x864xf32, #tpu.memory_space<vmem>>, vector<8x16xf32>
    %c0_209 = arith.constant 0 : index
    %c8_210 = arith.constant 8 : index
    %283 = vector.load %arg21[%c0_209, %c8_210] : memref<16x146xf32, #tpu.memory_space<vmem>>, vector<16x128xf32>
    %c3_211 = arith.constant 3 : index
    %c512_212 = arith.constant 512 : index
    %284 = vector.load %arg2[%c3_211, %c512_212] : memref<9x640xf32, #tpu.memory_space<vmem>>, vector<1x128xf32>
    %cst_213 = arith.constant dense<0.000000e+00> : vector<8x128xf32>
    %285 = tpu.matmul %282, %283, %cst_213 {dimension_numbers = #tpu.dot_dimension_numbers<[1], [0], [0], [1], [0, 0, 1, 1], [], []>} : vector<8x16xf32>, vector<16x128xf32>, vector<8x128xf32> -> vector<8x128xf32>
    %286 = vector.broadcast %284 : vector<1x128xf32> to vector<8x128xf32>
    %287 = arith.mulf %286, %285 : vector<8x128xf32>
    %288 = arith.addf %281, %287 : vector<8x128xf32>
    %c0_214 = arith.constant 0 : index
    %c352 = arith.constant 352 : index
    %289 = vector.load %arg10[%c0_214, %c352] : memref<16x864xf32, #tpu.memory_space<vmem>>, vector<8x16xf32>
    %c0_215 = arith.constant 0 : index
    %c9_216 = arith.constant 9 : index
    %290 = vector.load %arg21[%c0_215, %c9_216] : memref<16x146xf32, #tpu.memory_space<vmem>>, vector<16x128xf32>
    %cst_217 = arith.constant dense<0.000000e+00> : vector<8x128xf32>
    %291 = tpu.matmul %289, %290, %cst_217 {dimension_numbers = #tpu.dot_dimension_numbers<[1], [0], [0], [1], [0, 0, 1, 1], [], []>} : vector<8x16xf32>, vector<16x128xf32>, vector<8x128xf32> -> vector<8x128xf32>
    %292 = arith.addf %288, %291 : vector<8x128xf32>
    %c0_218 = arith.constant 0 : index
    %c368 = arith.constant 368 : index
    %293 = vector.load %arg10[%c0_218, %c368] : memref<16x864xf32, #tpu.memory_space<vmem>>, vector<8x16xf32>
    %c0_219 = arith.constant 0 : index
    %c10_220 = arith.constant 10 : index
    %294 = vector.load %arg21[%c0_219, %c10_220] : memref<16x146xf32, #tpu.memory_space<vmem>>, vector<16x128xf32>
    %c5_221 = arith.constant 5 : index
    %c512_222 = arith.constant 512 : index
    %295 = vector.load %arg2[%c5_221, %c512_222] : memref<9x640xf32, #tpu.memory_space<vmem>>, vector<1x128xf32>
    %cst_223 = arith.constant dense<0.000000e+00> : vector<8x128xf32>
    %296 = tpu.matmul %293, %294, %cst_223 {dimension_numbers = #tpu.dot_dimension_numbers<[1], [0], [0], [1], [0, 0, 1, 1], [], []>} : vector<8x16xf32>, vector<16x128xf32>, vector<8x128xf32> -> vector<8x128xf32>
    %297 = vector.broadcast %295 : vector<1x128xf32> to vector<8x128xf32>
    %298 = arith.mulf %297, %296 : vector<8x128xf32>
    %299 = arith.addf %292, %298 : vector<8x128xf32>
    %c0_224 = arith.constant 0 : index
    %c384 = arith.constant 384 : index
    %300 = vector.load %arg10[%c0_224, %c384] : memref<16x864xf32, #tpu.memory_space<vmem>>, vector<8x16xf32>
    %c0_225 = arith.constant 0 : index
    %c16_226 = arith.constant 16 : index
    %301 = vector.load %arg21[%c0_225, %c16_226] : memref<16x146xf32, #tpu.memory_space<vmem>>, vector<16x128xf32>
    %c6_227 = arith.constant 6 : index
    %c512_228 = arith.constant 512 : index
    %302 = vector.load %arg2[%c6_227, %c512_228] : memref<9x640xf32, #tpu.memory_space<vmem>>, vector<1x128xf32>
    %cst_229 = arith.constant dense<0.000000e+00> : vector<8x128xf32>
    %303 = tpu.matmul %300, %301, %cst_229 {dimension_numbers = #tpu.dot_dimension_numbers<[1], [0], [0], [1], [0, 0, 1, 1], [], []>} : vector<8x16xf32>, vector<16x128xf32>, vector<8x128xf32> -> vector<8x128xf32>
    %304 = vector.broadcast %302 : vector<1x128xf32> to vector<8x128xf32>
    %305 = arith.mulf %304, %303 : vector<8x128xf32>
    %306 = arith.addf %299, %305 : vector<8x128xf32>
    %c0_230 = arith.constant 0 : index
    %c400 = arith.constant 400 : index
    %307 = vector.load %arg10[%c0_230, %c400] : memref<16x864xf32, #tpu.memory_space<vmem>>, vector<8x16xf32>
    %c0_231 = arith.constant 0 : index
    %c17_232 = arith.constant 17 : index
    %308 = vector.load %arg21[%c0_231, %c17_232] : memref<16x146xf32, #tpu.memory_space<vmem>>, vector<16x128xf32>
    %c7_233 = arith.constant 7 : index
    %c512_234 = arith.constant 512 : index
    %309 = vector.load %arg2[%c7_233, %c512_234] : memref<9x640xf32, #tpu.memory_space<vmem>>, vector<1x128xf32>
    %cst_235 = arith.constant dense<0.000000e+00> : vector<8x128xf32>
    %310 = tpu.matmul %307, %308, %cst_235 {dimension_numbers = #tpu.dot_dimension_numbers<[1], [0], [0], [1], [0, 0, 1, 1], [], []>} : vector<8x16xf32>, vector<16x128xf32>, vector<8x128xf32> -> vector<8x128xf32>
    %311 = vector.broadcast %309 : vector<1x128xf32> to vector<8x128xf32>
    %312 = arith.mulf %311, %310 : vector<8x128xf32>
    %313 = arith.addf %306, %312 : vector<8x128xf32>
    %c0_236 = arith.constant 0 : index
    %c416 = arith.constant 416 : index
    %314 = vector.load %arg10[%c0_236, %c416] : memref<16x864xf32, #tpu.memory_space<vmem>>, vector<8x16xf32>
    %c0_237 = arith.constant 0 : index
    %c18_238 = arith.constant 18 : index
    %315 = vector.load %arg21[%c0_237, %c18_238] : memref<16x146xf32, #tpu.memory_space<vmem>>, vector<16x128xf32>
    %c8_239 = arith.constant 8 : index
    %c512_240 = arith.constant 512 : index
    %316 = vector.load %arg2[%c8_239, %c512_240] : memref<9x640xf32, #tpu.memory_space<vmem>>, vector<1x128xf32>
    %cst_241 = arith.constant dense<0.000000e+00> : vector<8x128xf32>
    %317 = tpu.matmul %314, %315, %cst_241 {dimension_numbers = #tpu.dot_dimension_numbers<[1], [0], [0], [1], [0, 0, 1, 1], [], []>} : vector<8x16xf32>, vector<16x128xf32>, vector<8x128xf32> -> vector<8x128xf32>
    %318 = vector.broadcast %316 : vector<1x128xf32> to vector<8x128xf32>
    %319 = arith.mulf %318, %317 : vector<8x128xf32>
    %320 = arith.addf %313, %319 : vector<8x128xf32>
    %c0_242 = arith.constant 0 : index
    %c6_243 = arith.constant 6 : index
    %321 = vector.load %arg11[%c0_242, %c6_243] : memref<16x16xf32, #tpu.memory_space<vmem>>, vector<8x1xf32>
    %322 = vector.broadcast %321 : vector<8x1xf32> to vector<8x128xf32>
    %323 = arith.addf %320, %322 : vector<8x128xf32>
    %cst_244 = arith.constant dense<0.000000e+00> : vector<8xf32>
    %324 = vector.multi_reduction <add>, %323, %cst_244 [1] : vector<8x128xf32> to vector<8xf32>
    %325 = vector.shape_cast %324 : vector<8xf32> to vector<8x1xf32>
    %cst_245 = arith.constant 1.280000e+02 : f32
    %326 = vector.broadcast %cst_245 : f32 to vector<8x1xf32>
    %327 = arith.divf %325, %326 : vector<8x1xf32>
    %328 = arith.mulf %323, %323 : vector<8x128xf32>
    %cst_246 = arith.constant dense<0.000000e+00> : vector<8xf32>
    %329 = vector.multi_reduction <add>, %328, %cst_246 [1] : vector<8x128xf32> to vector<8xf32>
    %330 = vector.shape_cast %329 : vector<8xf32> to vector<8x1xf32>
    %cst_247 = arith.constant 1.280000e+02 : f32
    %331 = vector.broadcast %cst_247 : f32 to vector<8x1xf32>
    %332 = arith.divf %330, %331 : vector<8x1xf32>
    %333 = arith.mulf %327, %327 : vector<8x1xf32>
    %334 = arith.subf %332, %333 : vector<8x1xf32>
    %cst_248 = arith.constant 0.000000e+00 : f32
    %335 = vector.broadcast %cst_248 : f32 to vector<8x1xf32>
    %336 = arith.maximumf %334, %335 : vector<8x1xf32>
    %337 = vector.broadcast %327 : vector<8x1xf32> to vector<8x128xf32>
    %338 = arith.subf %323, %337 : vector<8x128xf32>
    %cst_249 = arith.constant 9.99999974E-6 : f32
    %339 = vector.broadcast %cst_249 : f32 to vector<8x1xf32>
    %340 = arith.addf %336, %339 : vector<8x1xf32>
    %341 = math.rsqrt %340 : vector<8x1xf32>
    %342 = vector.broadcast %341 : vector<8x1xf32> to vector<8x128xf32>
    %343 = arith.mulf %338, %342 : vector<8x128xf32>
    %c0_250 = arith.constant 0 : index
    %c7_251 = arith.constant 7 : index
    %344 = vector.load %arg11[%c0_250, %c7_251] : memref<16x16xf32, #tpu.memory_space<vmem>>, vector<8x1xf32>
    %345 = vector.broadcast %344 : vector<8x1xf32> to vector<8x128xf32>
    %346 = arith.mulf %343, %345 : vector<8x128xf32>
    %c0_252 = arith.constant 0 : index
    %c8_253 = arith.constant 8 : index
    %347 = vector.load %arg11[%c0_252, %c8_253] : memref<16x16xf32, #tpu.memory_space<vmem>>, vector<8x1xf32>
    %348 = vector.broadcast %347 : vector<8x1xf32> to vector<8x128xf32>
    %349 = arith.addf %346, %348 : vector<8x128xf32>
    %cst_254 = arith.constant 0.000000e+00 : f32
    %350 = vector.broadcast %cst_254 : f32 to vector<8x128xf32>
    %351 = arith.cmpf oge, %349, %350 : vector<8x128xf32>
    %cst_255 = arith.constant 0.00999999977 : f32
    %352 = vector.broadcast %cst_255 : f32 to vector<8x128xf32>
    %353 = arith.mulf %352, %349 : vector<8x128xf32>
    %354 = arith.select %351, %349, %353 : vector<8x128xi1>, vector<8x128xf32>
    %c0_256 = arith.constant 0 : index
    %c0_257 = arith.constant 0 : index
    %355 = vector.load %arg6[%c0_256, %c0_257] : memref<128x512xf32, #tpu.memory_space<vmem>>, vector<128x512xf32>
    %cst_258 = arith.constant dense<0.000000e+00> : vector<8x512xf32>
    %356 = tpu.matmul %354, %355, %cst_258 {dimension_numbers = #tpu.dot_dimension_numbers<[1], [0], [0], [1], [0, 0, 1, 1], [], []>} : vector<8x128xf32>, vector<128x512xf32>, vector<8x512xf32> -> vector<8x512xf32>
    %c0_259 = arith.constant 0 : index
    %c17_260 = arith.constant 17 : index
    %357 = vector.load %arg20[%c0_259, %c17_260] : memref<8x546xf32, #tpu.memory_space<vmem>>, vector<8x512xf32>
    tpu.vector_store %arg20[%c0_259, %c17_260], %356 {strides = array<i32>} : memref<8x546xf32, #tpu.memory_space<vmem>>, vector<8x512xf32>,
    %cst_261 = arith.constant 0.000000e+00 : f32
    %358 = vector.broadcast %cst_261 : f32 to vector<4x512xf32>
    %c0_262 = arith.constant 0 : index
    %c432 = arith.constant 432 : index
    %359 = vector.load %arg10[%c0_262, %c432] : memref<16x864xf32, #tpu.memory_space<vmem>>, vector<4x8xf32>
    %c0_263 = arith.constant 0 : index
    %c0_264 = arith.constant 0 : index
    %360 = vector.load %arg20[%c0_263, %c0_264] : memref<8x546xf32, #tpu.memory_space<vmem>>, vector<8x512xf32>
    %c0_265 = arith.constant 0 : index
    %c0_266 = arith.constant 0 : index
    %361 = vector.load %arg2[%c0_265, %c0_266] : memref<9x640xf32, #tpu.memory_space<vmem>>, vector<1x512xf32>
    %cst_267 = arith.constant dense<0.000000e+00> : vector<4x512xf32>
    %362 = tpu.matmul %359, %360, %cst_267 {dimension_numbers = #tpu.dot_dimension_numbers<[1], [0], [0], [1], [0, 0, 1, 1], [], []>} : vector<4x8xf32>, vector<8x512xf32>, vector<4x512xf32> -> vector<4x512xf32>
    %363 = vector.broadcast %361 : vector<1x512xf32> to vector<4x512xf32>
    %364 = arith.mulf %363, %362 : vector<4x512xf32>
    %365 = arith.addf %358, %364 : vector<4x512xf32>
    %c0_268 = arith.constant 0 : index
    %c448 = arith.constant 448 : index
    %366 = vector.load %arg10[%c0_268, %c448] : memref<16x864xf32, #tpu.memory_space<vmem>>, vector<4x8xf32>
    %c0_269 = arith.constant 0 : index
    %c1_270 = arith.constant 1 : index
    %367 = vector.load %arg20[%c0_269, %c1_270] : memref<8x546xf32, #tpu.memory_space<vmem>>, vector<8x512xf32>
    %c1_271 = arith.constant 1 : index
    %c0_272 = arith.constant 0 : index
    %368 = vector.load %arg2[%c1_271, %c0_272] : memref<9x640xf32, #tpu.memory_space<vmem>>, vector<1x512xf32>
    %cst_273 = arith.constant dense<0.000000e+00> : vector<4x512xf32>
    %369 = tpu.matmul %366, %367, %cst_273 {dimension_numbers = #tpu.dot_dimension_numbers<[1], [0], [0], [1], [0, 0, 1, 1], [], []>} : vector<4x8xf32>, vector<8x512xf32>, vector<4x512xf32> -> vector<4x512xf32>
    %370 = vector.broadcast %368 : vector<1x512xf32> to vector<4x512xf32>
    %371 = arith.mulf %370, %369 : vector<4x512xf32>
    %372 = arith.addf %365, %371 : vector<4x512xf32>
    %c0_274 = arith.constant 0 : index
    %c464 = arith.constant 464 : index
    %373 = vector.load %arg10[%c0_274, %c464] : memref<16x864xf32, #tpu.memory_space<vmem>>, vector<4x8xf32>
    %c0_275 = arith.constant 0 : index
    %c2_276 = arith.constant 2 : index
    %374 = vector.load %arg20[%c0_275, %c2_276] : memref<8x546xf32, #tpu.memory_space<vmem>>, vector<8x512xf32>
    %c2_277 = arith.constant 2 : index
    %c0_278 = arith.constant 0 : index
    %375 = vector.load %arg2[%c2_277, %c0_278] : memref<9x640xf32, #tpu.memory_space<vmem>>, vector<1x512xf32>
    %cst_279 = arith.constant dense<0.000000e+00> : vector<4x512xf32>
    %376 = tpu.matmul %373, %374, %cst_279 {dimension_numbers = #tpu.dot_dimension_numbers<[1], [0], [0], [1], [0, 0, 1, 1], [], []>} : vector<4x8xf32>, vector<8x512xf32>, vector<4x512xf32> -> vector<4x512xf32>
    %377 = vector.broadcast %375 : vector<1x512xf32> to vector<4x512xf32>
    %378 = arith.mulf %377, %376 : vector<4x512xf32>
    %379 = arith.addf %372, %378 : vector<4x512xf32>
    %c0_280 = arith.constant 0 : index
    %c480 = arith.constant 480 : index
    %380 = vector.load %arg10[%c0_280, %c480] : memref<16x864xf32, #tpu.memory_space<vmem>>, vector<4x8xf32>
    %c0_281 = arith.constant 0 : index
    %c16_282 = arith.constant 16 : index
    %381 = vector.load %arg20[%c0_281, %c16_282] : memref<8x546xf32, #tpu.memory_space<vmem>>, vector<8x512xf32>
    %c3_283 = arith.constant 3 : index
    %c0_284 = arith.constant 0 : index
    %382 = vector.load %arg2[%c3_283, %c0_284] : memref<9x640xf32, #tpu.memory_space<vmem>>, vector<1x512xf32>
    %cst_285 = arith.constant dense<0.000000e+00> : vector<4x512xf32>
    %383 = tpu.matmul %380, %381, %cst_285 {dimension_numbers = #tpu.dot_dimension_numbers<[1], [0], [0], [1], [0, 0, 1, 1], [], []>} : vector<4x8xf32>, vector<8x512xf32>, vector<4x512xf32> -> vector<4x512xf32>
    %384 = vector.broadcast %382 : vector<1x512xf32> to vector<4x512xf32>
    %385 = arith.mulf %384, %383 : vector<4x512xf32>
    %386 = arith.addf %379, %385 : vector<4x512xf32>
    %c0_286 = arith.constant 0 : index
    %c496 = arith.constant 496 : index
    %387 = vector.load %arg10[%c0_286, %c496] : memref<16x864xf32, #tpu.memory_space<vmem>>, vector<4x8xf32>
    %c0_287 = arith.constant 0 : index
    %c17_288 = arith.constant 17 : index
    %388 = vector.load %arg20[%c0_287, %c17_288] : memref<8x546xf32, #tpu.memory_space<vmem>>, vector<8x512xf32>
    %cst_289 = arith.constant dense<0.000000e+00> : vector<4x512xf32>
    %389 = tpu.matmul %387, %388, %cst_289 {dimension_numbers = #tpu.dot_dimension_numbers<[1], [0], [0], [1], [0, 0, 1, 1], [], []>} : vector<4x8xf32>, vector<8x512xf32>, vector<4x512xf32> -> vector<4x512xf32>
    %390 = arith.addf %386, %389 : vector<4x512xf32>
    %c0_290 = arith.constant 0 : index
    %c512_291 = arith.constant 512 : index
    %391 = vector.load %arg10[%c0_290, %c512_291] : memref<16x864xf32, #tpu.memory_space<vmem>>, vector<4x8xf32>
    %c0_292 = arith.constant 0 : index
    %c18_293 = arith.constant 18 : index
    %392 = vector.load %arg20[%c0_292, %c18_293] : memref<8x546xf32, #tpu.memory_space<vmem>>, vector<8x512xf32>
    %c5_294 = arith.constant 5 : index
    %c0_295 = arith.constant 0 : index
    %393 = vector.load %arg2[%c5_294, %c0_295] : memref<9x640xf32, #tpu.memory_space<vmem>>, vector<1x512xf32>
    %cst_296 = arith.constant dense<0.000000e+00> : vector<4x512xf32>
    %394 = tpu.matmul %391, %392, %cst_296 {dimension_numbers = #tpu.dot_dimension_numbers<[1], [0], [0], [1], [0, 0, 1, 1], [], []>} : vector<4x8xf32>, vector<8x512xf32>, vector<4x512xf32> -> vector<4x512xf32>
    %395 = vector.broadcast %393 : vector<1x512xf32> to vector<4x512xf32>
    %396 = arith.mulf %395, %394 : vector<4x512xf32>
    %397 = arith.addf %390, %396 : vector<4x512xf32>
    %c0_297 = arith.constant 0 : index
    %c528 = arith.constant 528 : index
    %398 = vector.load %arg10[%c0_297, %c528] : memref<16x864xf32, #tpu.memory_space<vmem>>, vector<4x8xf32>
    %c0_298 = arith.constant 0 : index
    %c32_299 = arith.constant 32 : index
    %399 = vector.load %arg20[%c0_298, %c32_299] : memref<8x546xf32, #tpu.memory_space<vmem>>, vector<8x512xf32>
    %c6_300 = arith.constant 6 : index
    %c0_301 = arith.constant 0 : index
    %400 = vector.load %arg2[%c6_300, %c0_301] : memref<9x640xf32, #tpu.memory_space<vmem>>, vector<1x512xf32>
    %cst_302 = arith.constant dense<0.000000e+00> : vector<4x512xf32>
    %401 = tpu.matmul %398, %399, %cst_302 {dimension_numbers = #tpu.dot_dimension_numbers<[1], [0], [0], [1], [0, 0, 1, 1], [], []>} : vector<4x8xf32>, vector<8x512xf32>, vector<4x512xf32> -> vector<4x512xf32>
    %402 = vector.broadcast %400 : vector<1x512xf32> to vector<4x512xf32>
    %403 = arith.mulf %402, %401 : vector<4x512xf32>
    %404 = arith.addf %397, %403 : vector<4x512xf32>
    %c0_303 = arith.constant 0 : index
    %c544 = arith.constant 544 : index
    %405 = vector.load %arg10[%c0_303, %c544] : memref<16x864xf32, #tpu.memory_space<vmem>>, vector<4x8xf32>
    %c0_304 = arith.constant 0 : index
    %c33_305 = arith.constant 33 : index
    %406 = vector.load %arg20[%c0_304, %c33_305] : memref<8x546xf32, #tpu.memory_space<vmem>>, vector<8x512xf32>
    %c7_306 = arith.constant 7 : index
    %c0_307 = arith.constant 0 : index
    %407 = vector.load %arg2[%c7_306, %c0_307] : memref<9x640xf32, #tpu.memory_space<vmem>>, vector<1x512xf32>
    %cst_308 = arith.constant dense<0.000000e+00> : vector<4x512xf32>
    %408 = tpu.matmul %405, %406, %cst_308 {dimension_numbers = #tpu.dot_dimension_numbers<[1], [0], [0], [1], [0, 0, 1, 1], [], []>} : vector<4x8xf32>, vector<8x512xf32>, vector<4x512xf32> -> vector<4x512xf32>
    %409 = vector.broadcast %407 : vector<1x512xf32> to vector<4x512xf32>
    %410 = arith.mulf %409, %408 : vector<4x512xf32>
    %411 = arith.addf %404, %410 : vector<4x512xf32>
    %c0_309 = arith.constant 0 : index
    %c560 = arith.constant 560 : index
    %412 = vector.load %arg10[%c0_309, %c560] : memref<16x864xf32, #tpu.memory_space<vmem>>, vector<4x8xf32>
    %c0_310 = arith.constant 0 : index
    %c34_311 = arith.constant 34 : index
    %413 = vector.load %arg20[%c0_310, %c34_311] : memref<8x546xf32, #tpu.memory_space<vmem>>, vector<8x512xf32>
    %c8_312 = arith.constant 8 : index
    %c0_313 = arith.constant 0 : index
    %414 = vector.load %arg2[%c8_312, %c0_313] : memref<9x640xf32, #tpu.memory_space<vmem>>, vector<1x512xf32>
    %cst_314 = arith.constant dense<0.000000e+00> : vector<4x512xf32>
    %415 = tpu.matmul %412, %413, %cst_314 {dimension_numbers = #tpu.dot_dimension_numbers<[1], [0], [0], [1], [0, 0, 1, 1], [], []>} : vector<4x8xf32>, vector<8x512xf32>, vector<4x512xf32> -> vector<4x512xf32>
    %416 = vector.broadcast %414 : vector<1x512xf32> to vector<4x512xf32>
    %417 = arith.mulf %416, %415 : vector<4x512xf32>
    %418 = arith.addf %411, %417 : vector<4x512xf32>
    %c0_315 = arith.constant 0 : index
    %c9_316 = arith.constant 9 : index
    %419 = vector.load %arg11[%c0_315, %c9_316] : memref<16x16xf32, #tpu.memory_space<vmem>>, vector<4x1xf32>
    %420 = vector.broadcast %419 : vector<4x1xf32> to vector<4x512xf32>
    %421 = arith.addf %418, %420 : vector<4x512xf32>
    %cst_317 = arith.constant dense<0.000000e+00> : vector<4xf32>
    %422 = vector.multi_reduction <add>, %421, %cst_317 [1] : vector<4x512xf32> to vector<4xf32>
    %423 = vector.shape_cast %422 : vector<4xf32> to vector<4x1xf32>
    %cst_318 = arith.constant 5.120000e+02 : f32
    %424 = vector.broadcast %cst_318 : f32 to vector<4x1xf32>
    %425 = arith.divf %423, %424 : vector<4x1xf32>
    %426 = arith.mulf %421, %421 : vector<4x512xf32>
    %cst_319 = arith.constant dense<0.000000e+00> : vector<4xf32>
    %427 = vector.multi_reduction <add>, %426, %cst_319 [1] : vector<4x512xf32> to vector<4xf32>
    %428 = vector.shape_cast %427 : vector<4xf32> to vector<4x1xf32>
    %cst_320 = arith.constant 5.120000e+02 : f32
    %429 = vector.broadcast %cst_320 : f32 to vector<4x1xf32>
    %430 = arith.divf %428, %429 : vector<4x1xf32>
    %431 = arith.mulf %425, %425 : vector<4x1xf32>
    %432 = arith.subf %430, %431 : vector<4x1xf32>
    %cst_321 = arith.constant 0.000000e+00 : f32
    %433 = vector.broadcast %cst_321 : f32 to vector<4x1xf32>
    %434 = arith.maximumf %432, %433 : vector<4x1xf32>
    %435 = vector.broadcast %425 : vector<4x1xf32> to vector<4x512xf32>
    %436 = arith.subf %421, %435 : vector<4x512xf32>
    %cst_322 = arith.constant 9.99999974E-6 : f32
    %437 = vector.broadcast %cst_322 : f32 to vector<4x1xf32>
    %438 = arith.addf %434, %437 : vector<4x1xf32>
    %439 = math.rsqrt %438 : vector<4x1xf32>
    %440 = vector.broadcast %439 : vector<4x1xf32> to vector<4x512xf32>
    %441 = arith.mulf %436, %440 : vector<4x512xf32>
    %c0_323 = arith.constant 0 : index
    %c10_324 = arith.constant 10 : index
    %442 = vector.load %arg11[%c0_323, %c10_324] : memref<16x16xf32, #tpu.memory_space<vmem>>, vector<4x1xf32>
    %443 = vector.broadcast %442 : vector<4x1xf32> to vector<4x512xf32>
    %444 = arith.mulf %441, %443 : vector<4x512xf32>
    %c0_325 = arith.constant 0 : index
    %c11 = arith.constant 11 : index
    %445 = vector.load %arg11[%c0_325, %c11] : memref<16x16xf32, #tpu.memory_space<vmem>>, vector<4x1xf32>
    %446 = vector.broadcast %445 : vector<4x1xf32> to vector<4x512xf32>
    %447 = arith.addf %444, %446 : vector<4x512xf32>
    %cst_326 = arith.constant 0.000000e+00 : f32
    %448 = vector.broadcast %cst_326 : f32 to vector<4x512xf32>
    %449 = arith.cmpf oge, %447, %448 : vector<4x512xf32>
    %cst_327 = arith.constant 0.00999999977 : f32
    %450 = vector.broadcast %cst_327 : f32 to vector<4x512xf32>
    %451 = arith.mulf %450, %447 : vector<4x512xf32>
    %452 = arith.select %449, %447, %451 : vector<4x512xi1>, vector<4x512xf32>
    %c0_328 = arith.constant 0 : index
    %c17_329 = arith.constant 17 : index
    %453 = vector.load %arg20[%c0_328, %c17_329] : memref<8x546xf32, #tpu.memory_space<vmem>>, vector<4x512xf32>
    tpu.vector_store %arg20[%c0_328, %c17_329], %452 {strides = array<i32>} : memref<8x546xf32, #tpu.memory_space<vmem>>, vector<4x512xf32>,
    %cst_330 = arith.constant 0.000000e+00 : f32
    %454 = vector.broadcast %cst_330 : f32 to vector<4x512xf32>
    %c0_331 = arith.constant 0 : index
    %c576 = arith.constant 576 : index
    %455 = vector.load %arg10[%c0_331, %c576] : memref<16x864xf32, #tpu.memory_space<vmem>>, vector<4x4xf32>
    %c0_332 = arith.constant 0 : index
    %c0_333 = arith.constant 0 : index
    %456 = vector.load %arg20[%c0_332, %c0_333] : memref<8x546xf32, #tpu.memory_space<vmem>>, vector<4x512xf32>
    %c0_334 = arith.constant 0 : index
    %c0_335 = arith.constant 0 : index
    %457 = vector.load %arg2[%c0_334, %c0_335] : memref<9x640xf32, #tpu.memory_space<vmem>>, vector<1x512xf32>
    %458 = vector.broadcast %457 : vector<1x512xf32> to vector<4x512xf32>
    %459 = arith.mulf %456, %458 : vector<4x512xf32>
    %cst_336 = arith.constant dense<0.000000e+00> : vector<4x512xf32>
    %460 = tpu.matmul %455, %459, %cst_336 {dimension_numbers = #tpu.dot_dimension_numbers<[1], [0], [0], [1], [0, 0, 1, 1], [], []>} : vector<4x4xf32>, vector<4x512xf32>, vector<4x512xf32> -> vector<4x512xf32>
    %461 = arith.addf %454, %460 : vector<4x512xf32>
    %c0_337 = arith.constant 0 : index
    %c592 = arith.constant 592 : index
    %462 = vector.load %arg10[%c0_337, %c592] : memref<16x864xf32, #tpu.memory_space<vmem>>, vector<4x4xf32>
    %c0_338 = arith.constant 0 : index
    %c1_339 = arith.constant 1 : index
    %463 = vector.load %arg20[%c0_338, %c1_339] : memref<8x546xf32, #tpu.memory_space<vmem>>, vector<4x512xf32>
    %c1_340 = arith.constant 1 : index
    %c0_341 = arith.constant 0 : index
    %464 = vector.load %arg2[%c1_340, %c0_341] : memref<9x640xf32, #tpu.memory_space<vmem>>, vector<1x512xf32>
    %465 = vector.broadcast %464 : vector<1x512xf32> to vector<4x512xf32>
    %466 = arith.mulf %463, %465 : vector<4x512xf32>
    %cst_342 = arith.constant dense<0.000000e+00> : vector<4x512xf32>
    %467 = tpu.matmul %462, %466, %cst_342 {dimension_numbers = #tpu.dot_dimension_numbers<[1], [0], [0], [1], [0, 0, 1, 1], [], []>} : vector<4x4xf32>, vector<4x512xf32>, vector<4x512xf32> -> vector<4x512xf32>
    %468 = arith.addf %461, %467 : vector<4x512xf32>
    %c0_343 = arith.constant 0 : index
    %c608 = arith.constant 608 : index
    %469 = vector.load %arg10[%c0_343, %c608] : memref<16x864xf32, #tpu.memory_space<vmem>>, vector<4x4xf32>
    %c0_344 = arith.constant 0 : index
    %c2_345 = arith.constant 2 : index
    %470 = vector.load %arg20[%c0_344, %c2_345] : memref<8x546xf32, #tpu.memory_space<vmem>>, vector<4x512xf32>
    %c2_346 = arith.constant 2 : index
    %c0_347 = arith.constant 0 : index
    %471 = vector.load %arg2[%c2_346, %c0_347] : memref<9x640xf32, #tpu.memory_space<vmem>>, vector<1x512xf32>
    %472 = vector.broadcast %471 : vector<1x512xf32> to vector<4x512xf32>
    %473 = arith.mulf %470, %472 : vector<4x512xf32>
    %cst_348 = arith.constant dense<0.000000e+00> : vector<4x512xf32>
    %474 = tpu.matmul %469, %473, %cst_348 {dimension_numbers = #tpu.dot_dimension_numbers<[1], [0], [0], [1], [0, 0, 1, 1], [], []>} : vector<4x4xf32>, vector<4x512xf32>, vector<4x512xf32> -> vector<4x512xf32>
    %475 = arith.addf %468, %474 : vector<4x512xf32>
    %c0_349 = arith.constant 0 : index
    %c624 = arith.constant 624 : index
    %476 = vector.load %arg10[%c0_349, %c624] : memref<16x864xf32, #tpu.memory_space<vmem>>, vector<4x4xf32>
    %c0_350 = arith.constant 0 : index
    %c16_351 = arith.constant 16 : index
    %477 = vector.load %arg20[%c0_350, %c16_351] : memref<8x546xf32, #tpu.memory_space<vmem>>, vector<4x512xf32>
    %c3_352 = arith.constant 3 : index
    %c0_353 = arith.constant 0 : index
    %478 = vector.load %arg2[%c3_352, %c0_353] : memref<9x640xf32, #tpu.memory_space<vmem>>, vector<1x512xf32>
    %479 = vector.broadcast %478 : vector<1x512xf32> to vector<4x512xf32>
    %480 = arith.mulf %477, %479 : vector<4x512xf32>
    %cst_354 = arith.constant dense<0.000000e+00> : vector<4x512xf32>
    %481 = tpu.matmul %476, %480, %cst_354 {dimension_numbers = #tpu.dot_dimension_numbers<[1], [0], [0], [1], [0, 0, 1, 1], [], []>} : vector<4x4xf32>, vector<4x512xf32>, vector<4x512xf32> -> vector<4x512xf32>
    %482 = arith.addf %475, %481 : vector<4x512xf32>
    %c0_355 = arith.constant 0 : index
    %c640 = arith.constant 640 : index
    %483 = vector.load %arg10[%c0_355, %c640] : memref<16x864xf32, #tpu.memory_space<vmem>>, vector<4x4xf32>
    %c0_356 = arith.constant 0 : index
    %c17_357 = arith.constant 17 : index
    %484 = vector.load %arg20[%c0_356, %c17_357] : memref<8x546xf32, #tpu.memory_space<vmem>>, vector<4x512xf32>
    %cst_358 = arith.constant dense<0.000000e+00> : vector<4x512xf32>
    %485 = tpu.matmul %483, %484, %cst_358 {dimension_numbers = #tpu.dot_dimension_numbers<[1], [0], [0], [1], [0, 0, 1, 1], [], []>} : vector<4x4xf32>, vector<4x512xf32>, vector<4x512xf32> -> vector<4x512xf32>
    %486 = arith.addf %482, %485 : vector<4x512xf32>
    %c0_359 = arith.constant 0 : index
    %c656 = arith.constant 656 : index
    %487 = vector.load %arg10[%c0_359, %c656] : memref<16x864xf32, #tpu.memory_space<vmem>>, vector<4x4xf32>
    %c0_360 = arith.constant 0 : index
    %c18_361 = arith.constant 18 : index
    %488 = vector.load %arg20[%c0_360, %c18_361] : memref<8x546xf32, #tpu.memory_space<vmem>>, vector<4x512xf32>
    %c5_362 = arith.constant 5 : index
    %c0_363 = arith.constant 0 : index
    %489 = vector.load %arg2[%c5_362, %c0_363] : memref<9x640xf32, #tpu.memory_space<vmem>>, vector<1x512xf32>
    %490 = vector.broadcast %489 : vector<1x512xf32> to vector<4x512xf32>
    %491 = arith.mulf %488, %490 : vector<4x512xf32>
    %cst_364 = arith.constant dense<0.000000e+00> : vector<4x512xf32>
    %492 = tpu.matmul %487, %491, %cst_364 {dimension_numbers = #tpu.dot_dimension_numbers<[1], [0], [0], [1], [0, 0, 1, 1], [], []>} : vector<4x4xf32>, vector<4x512xf32>, vector<4x512xf32> -> vector<4x512xf32>
    %493 = arith.addf %486, %492 : vector<4x512xf32>
    %c0_365 = arith.constant 0 : index
    %c672 = arith.constant 672 : index
    %494 = vector.load %arg10[%c0_365, %c672] : memref<16x864xf32, #tpu.memory_space<vmem>>, vector<4x4xf32>
    %c0_366 = arith.constant 0 : index
    %c32_367 = arith.constant 32 : index
    %495 = vector.load %arg20[%c0_366, %c32_367] : memref<8x546xf32, #tpu.memory_space<vmem>>, vector<4x512xf32>
    %c6_368 = arith.constant 6 : index
    %c0_369 = arith.constant 0 : index
    %496 = vector.load %arg2[%c6_368, %c0_369] : memref<9x640xf32, #tpu.memory_space<vmem>>, vector<1x512xf32>
    %497 = vector.broadcast %496 : vector<1x512xf32> to vector<4x512xf32>
    %498 = arith.mulf %495, %497 : vector<4x512xf32>
    %cst_370 = arith.constant dense<0.000000e+00> : vector<4x512xf32>
    %499 = tpu.matmul %494, %498, %cst_370 {dimension_numbers = #tpu.dot_dimension_numbers<[1], [0], [0], [1], [0, 0, 1, 1], [], []>} : vector<4x4xf32>, vector<4x512xf32>, vector<4x512xf32> -> vector<4x512xf32>
    %500 = arith.addf %493, %499 : vector<4x512xf32>
    %c0_371 = arith.constant 0 : index
    %c688 = arith.constant 688 : index
    %501 = vector.load %arg10[%c0_371, %c688] : memref<16x864xf32, #tpu.memory_space<vmem>>, vector<4x4xf32>
    %c0_372 = arith.constant 0 : index
    %c33_373 = arith.constant 33 : index
    %502 = vector.load %arg20[%c0_372, %c33_373] : memref<8x546xf32, #tpu.memory_space<vmem>>, vector<4x512xf32>
    %c7_374 = arith.constant 7 : index
    %c0_375 = arith.constant 0 : index
    %503 = vector.load %arg2[%c7_374, %c0_375] : memref<9x640xf32, #tpu.memory_space<vmem>>, vector<1x512xf32>
    %504 = vector.broadcast %503 : vector<1x512xf32> to vector<4x512xf32>
    %505 = arith.mulf %502, %504 : vector<4x512xf32>
    %cst_376 = arith.constant dense<0.000000e+00> : vector<4x512xf32>
    %506 = tpu.matmul %501, %505, %cst_376 {dimension_numbers = #tpu.dot_dimension_numbers<[1], [0], [0], [1], [0, 0, 1, 1], [], []>} : vector<4x4xf32>, vector<4x512xf32>, vector<4x512xf32> -> vector<4x512xf32>
    %507 = arith.addf %500, %506 : vector<4x512xf32>
    %c0_377 = arith.constant 0 : index
    %c704 = arith.constant 704 : index
    %508 = vector.load %arg10[%c0_377, %c704] : memref<16x864xf32, #tpu.memory_space<vmem>>, vector<4x4xf32>
    %c0_378 = arith.constant 0 : index
    %c34_379 = arith.constant 34 : index
    %509 = vector.load %arg20[%c0_378, %c34_379] : memref<8x546xf32, #tpu.memory_space<vmem>>, vector<4x512xf32>
    %c8_380 = arith.constant 8 : index
    %c0_381 = arith.constant 0 : index
    %510 = vector.load %arg2[%c8_380, %c0_381] : memref<9x640xf32, #tpu.memory_space<vmem>>, vector<1x512xf32>
    %511 = vector.broadcast %510 : vector<1x512xf32> to vector<4x512xf32>
    %512 = arith.mulf %509, %511 : vector<4x512xf32>
    %cst_382 = arith.constant dense<0.000000e+00> : vector<4x512xf32>
    %513 = tpu.matmul %508, %512, %cst_382 {dimension_numbers = #tpu.dot_dimension_numbers<[1], [0], [0], [1], [0, 0, 1, 1], [], []>} : vector<4x4xf32>, vector<4x512xf32>, vector<4x512xf32> -> vector<4x512xf32>
    %514 = arith.addf %507, %513 : vector<4x512xf32>
    %c0_383 = arith.constant 0 : index
    %c12 = arith.constant 12 : index
    %515 = vector.load %arg11[%c0_383, %c12] : memref<16x16xf32, #tpu.memory_space<vmem>>, vector<4x1xf32>
    %516 = vector.broadcast %515 : vector<4x1xf32> to vector<4x512xf32>
    %517 = arith.addf %514, %516 : vector<4x512xf32>
    %cst_384 = arith.constant dense<0.000000e+00> : vector<4xf32>
    %518 = vector.multi_reduction <add>, %517, %cst_384 [1] : vector<4x512xf32> to vector<4xf32>
    %519 = vector.shape_cast %518 : vector<4xf32> to vector<4x1xf32>
    %cst_385 = arith.constant 5.120000e+02 : f32
    %520 = vector.broadcast %cst_385 : f32 to vector<4x1xf32>
    %521 = arith.divf %519, %520 : vector<4x1xf32>
    %522 = arith.mulf %517, %517 : vector<4x512xf32>
    %cst_386 = arith.constant dense<0.000000e+00> : vector<4xf32>
    %523 = vector.multi_reduction <add>, %522, %cst_386 [1] : vector<4x512xf32> to vector<4xf32>
    %524 = vector.shape_cast %523 : vector<4xf32> to vector<4x1xf32>
    %cst_387 = arith.constant 5.120000e+02 : f32
    %525 = vector.broadcast %cst_387 : f32 to vector<4x1xf32>
    %526 = arith.divf %524, %525 : vector<4x1xf32>
    %527 = arith.mulf %521, %521 : vector<4x1xf32>
    %528 = arith.subf %526, %527 : vector<4x1xf32>
    %cst_388 = arith.constant 0.000000e+00 : f32
    %529 = vector.broadcast %cst_388 : f32 to vector<4x1xf32>
    %530 = arith.maximumf %528, %529 : vector<4x1xf32>
    %531 = vector.broadcast %521 : vector<4x1xf32> to vector<4x512xf32>
    %532 = arith.subf %517, %531 : vector<4x512xf32>
    %cst_389 = arith.constant 9.99999974E-6 : f32
    %533 = vector.broadcast %cst_389 : f32 to vector<4x1xf32>
    %534 = arith.addf %530, %533 : vector<4x1xf32>
    %535 = math.rsqrt %534 : vector<4x1xf32>
    %536 = vector.broadcast %535 : vector<4x1xf32> to vector<4x512xf32>
    %537 = arith.mulf %532, %536 : vector<4x512xf32>
    %c0_390 = arith.constant 0 : index
    %c13 = arith.constant 13 : index
    %538 = vector.load %arg11[%c0_390, %c13] : memref<16x16xf32, #tpu.memory_space<vmem>>, vector<4x1xf32>
    %539 = vector.broadcast %538 : vector<4x1xf32> to vector<4x512xf32>
    %540 = arith.mulf %537, %539 : vector<4x512xf32>
    %c0_391 = arith.constant 0 : index
    %c14 = arith.constant 14 : index
    %541 = vector.load %arg11[%c0_391, %c14] : memref<16x16xf32, #tpu.memory_space<vmem>>, vector<4x1xf32>
    %542 = vector.broadcast %541 : vector<4x1xf32> to vector<4x512xf32>
    %543 = arith.addf %540, %542 : vector<4x512xf32>
    %cst_392 = arith.constant 0.000000e+00 : f32
    %544 = vector.broadcast %cst_392 : f32 to vector<4x512xf32>
    %545 = arith.cmpf oge, %543, %544 : vector<4x512xf32>
    %cst_393 = arith.constant 0.00999999977 : f32
    %546 = vector.broadcast %cst_393 : f32 to vector<4x512xf32>
    %547 = arith.mulf %546, %543 : vector<4x512xf32>
    %548 = arith.select %545, %543, %547 : vector<4x512xi1>, vector<4x512xf32>
    %c0_394 = arith.constant 0 : index
    %c17_395 = arith.constant 17 : index
    %549 = vector.load %arg20[%c0_394, %c17_395] : memref<8x546xf32, #tpu.memory_space<vmem>>, vector<4x512xf32>
    tpu.vector_store %arg20[%c0_394, %c17_395], %548 {strides = array<i32>} : memref<8x546xf32, #tpu.memory_space<vmem>>, vector<4x512xf32>,
    %cst_396 = arith.constant 0.000000e+00 : f32
    %550 = vector.broadcast %cst_396 : f32 to vector<4x512xf32>
    %c0_397 = arith.constant 0 : index
    %c720 = arith.constant 720 : index
    %551 = vector.load %arg10[%c0_397, %c720] : memref<16x864xf32, #tpu.memory_space<vmem>>, vector<4x4xf32>
    %c0_398 = arith.constant 0 : index
    %c0_399 = arith.constant 0 : index
    %552 = vector.load %arg20[%c0_398, %c0_399] : memref<8x546xf32, #tpu.memory_space<vmem>>, vector<4x512xf32>
    %c0_400 = arith.constant 0 : index
    %c0_401 = arith.constant 0 : index
    %553 = vector.load %arg2[%c0_400, %c0_401] : memref<9x640xf32, #tpu.memory_space<vmem>>, vector<1x512xf32>
    %554 = vector.broadcast %553 : vector<1x512xf32> to vector<4x512xf32>
    %555 = arith.mulf %552, %554 : vector<4x512xf32>
    %cst_402 = arith.constant dense<0.000000e+00> : vector<4x512xf32>
    %556 = tpu.matmul %551, %555, %cst_402 {dimension_numbers = #tpu.dot_dimension_numbers<[1], [0], [0], [1], [0, 0, 1, 1], [], []>} : vector<4x4xf32>, vector<4x512xf32>, vector<4x512xf32> -> vector<4x512xf32>
    %557 = arith.addf %550, %556 : vector<4x512xf32>
    %c0_403 = arith.constant 0 : index
    %c736 = arith.constant 736 : index
    %558 = vector.load %arg10[%c0_403, %c736] : memref<16x864xf32, #tpu.memory_space<vmem>>, vector<4x4xf32>
    %c0_404 = arith.constant 0 : index
    %c1_405 = arith.constant 1 : index
    %559 = vector.load %arg20[%c0_404, %c1_405] : memref<8x546xf32, #tpu.memory_space<vmem>>, vector<4x512xf32>
    %c1_406 = arith.constant 1 : index
    %c0_407 = arith.constant 0 : index
    %560 = vector.load %arg2[%c1_406, %c0_407] : memref<9x640xf32, #tpu.memory_space<vmem>>, vector<1x512xf32>
    %561 = vector.broadcast %560 : vector<1x512xf32> to vector<4x512xf32>
    %562 = arith.mulf %559, %561 : vector<4x512xf32>
    %cst_408 = arith.constant dense<0.000000e+00> : vector<4x512xf32>
    %563 = tpu.matmul %558, %562, %cst_408 {dimension_numbers = #tpu.dot_dimension_numbers<[1], [0], [0], [1], [0, 0, 1, 1], [], []>} : vector<4x4xf32>, vector<4x512xf32>, vector<4x512xf32> -> vector<4x512xf32>
    %564 = arith.addf %557, %563 : vector<4x512xf32>
    %c0_409 = arith.constant 0 : index
    %c752 = arith.constant 752 : index
    %565 = vector.load %arg10[%c0_409, %c752] : memref<16x864xf32, #tpu.memory_space<vmem>>, vector<4x4xf32>
    %c0_410 = arith.constant 0 : index
    %c2_411 = arith.constant 2 : index
    %566 = vector.load %arg20[%c0_410, %c2_411] : memref<8x546xf32, #tpu.memory_space<vmem>>, vector<4x512xf32>
    %c2_412 = arith.constant 2 : index
    %c0_413 = arith.constant 0 : index
    %567 = vector.load %arg2[%c2_412, %c0_413] : memref<9x640xf32, #tpu.memory_space<vmem>>, vector<1x512xf32>
    %568 = vector.broadcast %567 : vector<1x512xf32> to vector<4x512xf32>
    %569 = arith.mulf %566, %568 : vector<4x512xf32>
    %cst_414 = arith.constant dense<0.000000e+00> : vector<4x512xf32>
    %570 = tpu.matmul %565, %569, %cst_414 {dimension_numbers = #tpu.dot_dimension_numbers<[1], [0], [0], [1], [0, 0, 1, 1], [], []>} : vector<4x4xf32>, vector<4x512xf32>, vector<4x512xf32> -> vector<4x512xf32>
    %571 = arith.addf %564, %570 : vector<4x512xf32>
    %c0_415 = arith.constant 0 : index
    %c768 = arith.constant 768 : index
    %572 = vector.load %arg10[%c0_415, %c768] : memref<16x864xf32, #tpu.memory_space<vmem>>, vector<4x4xf32>
    %c0_416 = arith.constant 0 : index
    %c16_417 = arith.constant 16 : index
    %573 = vector.load %arg20[%c0_416, %c16_417] : memref<8x546xf32, #tpu.memory_space<vmem>>, vector<4x512xf32>
    %c3_418 = arith.constant 3 : index
    %c0_419 = arith.constant 0 : index
    %574 = vector.load %arg2[%c3_418, %c0_419] : memref<9x640xf32, #tpu.memory_space<vmem>>, vector<1x512xf32>
    %575 = vector.broadcast %574 : vector<1x512xf32> to vector<4x512xf32>
    %576 = arith.mulf %573, %575 : vector<4x512xf32>
    %cst_420 = arith.constant dense<0.000000e+00> : vector<4x512xf32>
    %577 = tpu.matmul %572, %576, %cst_420 {dimension_numbers = #tpu.dot_dimension_numbers<[1], [0], [0], [1], [0, 0, 1, 1], [], []>} : vector<4x4xf32>, vector<4x512xf32>, vector<4x512xf32> -> vector<4x512xf32>
    %578 = arith.addf %571, %577 : vector<4x512xf32>
    %c0_421 = arith.constant 0 : index
    %c784 = arith.constant 784 : index
    %579 = vector.load %arg10[%c0_421, %c784] : memref<16x864xf32, #tpu.memory_space<vmem>>, vector<4x4xf32>
    %c0_422 = arith.constant 0 : index
    %c17_423 = arith.constant 17 : index
    %580 = vector.load %arg20[%c0_422, %c17_423] : memref<8x546xf32, #tpu.memory_space<vmem>>, vector<4x512xf32>
    %cst_424 = arith.constant dense<0.000000e+00> : vector<4x512xf32>
    %581 = tpu.matmul %579, %580, %cst_424 {dimension_numbers = #tpu.dot_dimension_numbers<[1], [0], [0], [1], [0, 0, 1, 1], [], []>} : vector<4x4xf32>, vector<4x512xf32>, vector<4x512xf32> -> vector<4x512xf32>
    %582 = arith.addf %578, %581 : vector<4x512xf32>
    %c0_425 = arith.constant 0 : index
    %c800 = arith.constant 800 : index
    %583 = vector.load %arg10[%c0_425, %c800] : memref<16x864xf32, #tpu.memory_space<vmem>>, vector<4x4xf32>
    %c0_426 = arith.constant 0 : index
    %c18_427 = arith.constant 18 : index
    %584 = vector.load %arg20[%c0_426, %c18_427] : memref<8x546xf32, #tpu.memory_space<vmem>>, vector<4x512xf32>
    %c5_428 = arith.constant 5 : index
    %c0_429 = arith.constant 0 : index
    %585 = vector.load %arg2[%c5_428, %c0_429] : memref<9x640xf32, #tpu.memory_space<vmem>>, vector<1x512xf32>
    %586 = vector.broadcast %585 : vector<1x512xf32> to vector<4x512xf32>
    %587 = arith.mulf %584, %586 : vector<4x512xf32>
    %cst_430 = arith.constant dense<0.000000e+00> : vector<4x512xf32>
    %588 = tpu.matmul %583, %587, %cst_430 {dimension_numbers = #tpu.dot_dimension_numbers<[1], [0], [0], [1], [0, 0, 1, 1], [], []>} : vector<4x4xf32>, vector<4x512xf32>, vector<4x512xf32> -> vector<4x512xf32>
    %589 = arith.addf %582, %588 : vector<4x512xf32>
    %c0_431 = arith.constant 0 : index
    %c816 = arith.constant 816 : index
    %590 = vector.load %arg10[%c0_431, %c816] : memref<16x864xf32, #tpu.memory_space<vmem>>, vector<4x4xf32>
    %c0_432 = arith.constant 0 : index
    %c32_433 = arith.constant 32 : index
    %591 = vector.load %arg20[%c0_432, %c32_433] : memref<8x546xf32, #tpu.memory_space<vmem>>, vector<4x512xf32>
    %c6_434 = arith.constant 6 : index
    %c0_435 = arith.constant 0 : index
    %592 = vector.load %arg2[%c6_434, %c0_435] : memref<9x640xf32, #tpu.memory_space<vmem>>, vector<1x512xf32>
    %593 = vector.broadcast %592 : vector<1x512xf32> to vector<4x512xf32>
    %594 = arith.mulf %591, %593 : vector<4x512xf32>
    %cst_436 = arith.constant dense<0.000000e+00> : vector<4x512xf32>
    %595 = tpu.matmul %590, %594, %cst_436 {dimension_numbers = #tpu.dot_dimension_numbers<[1], [0], [0], [1], [0, 0, 1, 1], [], []>} : vector<4x4xf32>, vector<4x512xf32>, vector<4x512xf32> -> vector<4x512xf32>
    %596 = arith.addf %589, %595 : vector<4x512xf32>
    %c0_437 = arith.constant 0 : index
    %c832 = arith.constant 832 : index
    %597 = vector.load %arg10[%c0_437, %c832] : memref<16x864xf32, #tpu.memory_space<vmem>>, vector<4x4xf32>
    %c0_438 = arith.constant 0 : index
    %c33_439 = arith.constant 33 : index
    %598 = vector.load %arg20[%c0_438, %c33_439] : memref<8x546xf32, #tpu.memory_space<vmem>>, vector<4x512xf32>
    %c7_440 = arith.constant 7 : index
    %c0_441 = arith.constant 0 : index
    %599 = vector.load %arg2[%c7_440, %c0_441] : memref<9x640xf32, #tpu.memory_space<vmem>>, vector<1x512xf32>
    %600 = vector.broadcast %599 : vector<1x512xf32> to vector<4x512xf32>
    %601 = arith.mulf %598, %600 : vector<4x512xf32>
    %cst_442 = arith.constant dense<0.000000e+00> : vector<4x512xf32>
    %602 = tpu.matmul %597, %601, %cst_442 {dimension_numbers = #tpu.dot_dimension_numbers<[1], [0], [0], [1], [0, 0, 1, 1], [], []>} : vector<4x4xf32>, vector<4x512xf32>, vector<4x512xf32> -> vector<4x512xf32>
    %603 = arith.addf %596, %602 : vector<4x512xf32>
    %c0_443 = arith.constant 0 : index
    %c848 = arith.constant 848 : index
    %604 = vector.load %arg10[%c0_443, %c848] : memref<16x864xf32, #tpu.memory_space<vmem>>, vector<4x4xf32>
    %c0_444 = arith.constant 0 : index
    %c34_445 = arith.constant 34 : index
    %605 = vector.load %arg20[%c0_444, %c34_445] : memref<8x546xf32, #tpu.memory_space<vmem>>, vector<4x512xf32>
    %c8_446 = arith.constant 8 : index
    %c0_447 = arith.constant 0 : index
    %606 = vector.load %arg2[%c8_446, %c0_447] : memref<9x640xf32, #tpu.memory_space<vmem>>, vector<1x512xf32>
    %607 = vector.broadcast %606 : vector<1x512xf32> to vector<4x512xf32>
    %608 = arith.mulf %605, %607 : vector<4x512xf32>
    %cst_448 = arith.constant dense<0.000000e+00> : vector<4x512xf32>
    %609 = tpu.matmul %604, %608, %cst_448 {dimension_numbers = #tpu.dot_dimension_numbers<[1], [0], [0], [1], [0, 0, 1, 1], [], []>} : vector<4x4xf32>, vector<4x512xf32>, vector<4x512xf32> -> vector<4x512xf32>
    %610 = arith.addf %603, %609 : vector<4x512xf32>
    %c0_449 = arith.constant 0 : index
    %c15 = arith.constant 15 : index
    %611 = vector.load %arg11[%c0_449, %c15] : memref<16x16xf32, #tpu.memory_space<vmem>>, vector<4x1xf32>
    %612 = vector.broadcast %611 : vector<4x1xf32> to vector<4x512xf32>
    %613 = arith.addf %610, %612 : vector<4x512xf32>
    %614 = math.tanh %613 : vector<4x512xf32>
    %c0_450 = arith.constant 0 : index
    %c0_451 = arith.constant 0 : index
    %615 = vector.load %arg16[%c0_450, %c0_451] : memref<4x512xf32, #tpu.memory_space<vmem>>, vector<4x512xf32>
    tpu.vector_store %arg16[%c0_450, %c0_451], %614 {strides = array<i32>} : memref<4x512xf32, #tpu.memory_space<vmem>>, vector<4x512xf32>,
    return
  }
}

</mosaic_0001>

<bundles_post_ra>
// kernel: vae_forward.1
= control target key start
LH: loop header
LB: loop body
LE: loop exit
PB: predicated region body
PF: predicated region fallthrough
CT: control target
= control target key end

     0   :  { %s14885_s0 = inlined_call_operand.vmem [shape: f32[4,512], index: 0, kind: input, shape index: {}]   ;;  %s14886_s1 = inlined_call_operand.vmem [shape: f32[2,8], index: 1, kind: input, shape index: {}]   ;;  %s14887_s2 = inlined_call_operand.vmem [shape: f32[9,640], index: 2, kind: input, shape index: {}]   ;;  %s14888_s3 = inlined_call_operand.vmem [shape: f32[512,128], index: 3, kind: input, shape index: {}]   ;;  %s14889_s4 = inlined_call_operand.vmem [shape: f32[128,32], index: 4, kind: input, shape index: {}]   ;;  %s14890_s5 = inlined_call_operand.vmem [shape: f32[32,128], index: 5, kind: input, shape index: {}]   ;;  %s14891_s6 = inlined_call_operand.hbm [shape: f32[128,512], index: 6, kind: input, shape index: {}]   ;;  %s14892_s7 = inlined_call_operand.vmem [shape: f32[16,256], index: 7, kind: input, shape index: {}]   ;;  %s14893_s8 = inlined_call_operand.vmem [shape: f32[256,16], index: 8, kind: input, shape index: {}]   ;;  %s14894_s9 = inlined_call_operand.vmem [shape: f32[16,256], index: 9, kind: input, shape index: {}]   ;;  %s14895_s10 = inlined_call_operand.vmem [shape: f32[16,864], index: 10, kind: input, shape index: {}]   ;;  %s14896_s11 = inlined_call_operand.vmem [shape: f32[16,16], index: 11, kind: input, shape index: {}]   ;;  %s14897_s12 = inlined_call_operand.vmem [shape: f32[256,16], index: 12, kind: input, shape index: {}]   ;;  %s14898_s13 = inlined_call_operand.vmem [shape: f32[1,16], index: 13, kind: input, shape index: {}]   ;;  %s14899_s14 = inlined_call_operand.vmem [shape: f32[8,256], index: 14, kind: input, shape index: {}]   ;;  %s14900_s15 = inlined_call_operand.vmem [shape: f32[1,256], index: 15, kind: input, shape index: {}]   ;;  %s14901_s16 = inlined_call_operand.vmem [shape: f32[4,512], index: 16, kind: output, shape index: {0}]   ;;  %s14902_s17 = inlined_call_operand.hbm [shape: f32[2,8], index: 17, kind: output, shape index: {1}]   ;;  %s14903_s18 = inlined_call_operand.hbm [shape: f32[2,8], index: 18, kind: output, shape index: {2}]   ;;  %s14904_s19 = inlined_call_operand.hbm [shape: f32[2,8], index: 19, kind: output, shape index: {3}]  }
   0x1   :  { %14971 = sst [smem:[#allocation16_spill]] %s14885_s0 }
   0x2   :  { %14972 = sst [smem:[#allocation17_spill]] %s14886_s1 }
   0x3   :  { %14973 = sst [smem:[#allocation18_spill]] %s14887_s2 }
   0x4   :  { %14974 = sst [smem:[#allocation19_spill]] %s14888_s3 }
   0x5   :  { %14975 = sst [smem:[#allocation20_spill]] %s14901_s16 }
   0x6   :  { %14976 = sst [smem:[#allocation21_spill]] %s14902_s17 }
   0x7   :  { %14977 = sst [smem:[#allocation22_spill]] %s14903_s18 }
   0x8   :  { %14978 = sst [smem:[#allocation23_spill]] %s14904_s19 }
   0x9   :  { %25 = vsyncpa [#allocation6], 0 }
   0xa   :  { %26 = vsyncpa [#allocation7], 0 }
   0xb   :  { %27 = vsyncpa [#allocation10], 0  ;;  %s11882_s0 = smov [#allocation5]  }
   0xc   :  { %s45_s30 = sshll.u32 %s11882_s0, 4  ;;  %s46_s30 = int_to_ptr.vmem [resolvable:$true] %s45_s30 }
   0xd   :  { %s11804_s20 = scalar_lea.vmem %s46_s30, 8192  ;;  %p11809_p1 = scmp.lt.s32.totalorder %s46_s30, %s46_s30 }
   0xe   :  { %p11805_p0 = scmp.ne.s32.totalorder %s46_s30, %s11804_s20  ;;  %p11810_p2 = scmp.lt.s32.totalorder %s11804_s20, %s11804_s20 }
  0x10   :  { %p11811_p3 = por %p11810_p2, %p11809_p1 }
  0x12   :  { %p11812_p4 = pnand %p11811_p3, %p11805_p0 }
  0x14   :  { %11815 = shalt.err (!%p11812_p4)
}
  0x15   :  { %s11883_s21 = smov 512   ;;  %s14937_s1 = smov 32  }
  0x16   :  { %51 = dma.hbm_to_vmem [thread:$0]  %s14891_s6, 8192, %s46_s30, [#allocation6], %s11883_s21, %s11883_s21, %s14937_s1  }
  0x17   :  { %11876 = dma.done.wait [#allocation6], 8192  }
  0x18   :  { %11877 = vsyncadd [#allocation6], 4294959104  ;;  %v121_v0 = vlaneseq  ;;  %v11885_v1 = vmov 0.0   ;;  %vm14921_vm0 = vcmask 277504   ;;  %s14979_s24 = sld [smem:[#allocation16_spill]]  ;;  %s14944_s26 = smov 17  }
  0x19   :  { %73 = vst [vmem:[#allocation2] sm:$0xff] %v11885_v1  ;;  %74 = vst [vmem:[#allocation2 + $0x8] sm:$0xff] %v11885_v1  ;;  %357 = vmatprep.mubr.f32.mxu1 %v11885_v1  ;;  %286 = vmatprep.mubr.f32.mxu0 %v11885_v1  ;;  %s14980_s29 = sld [smem:[#allocation18_spill]]  ;;  %s14933_s0 = smov 1   ;;  %vm14923_vm1 = vcmask 146432   ;;  %v12146_v46 = vld [vmem:[%s14895_s10] sm:$0xff] }
  0x1a   :  { %75 = vst [vmem:[#allocation2 + $0x10] sm:$0xff] %v11885_v1  ;;  %76 = vst [vmem:[#allocation2 + $0x18] sm:$0xff] %v11885_v1  ;;  %v122_v2 = vshrl.u32 %v121_v0, 7  ;;  %s14931_s21 = smov 2   ;;  %s14935_s6 = smov 16   ;;  %vm14963_vm2 = vcmask 1043592  }
  0x1b   :  { %79 = vst [vmem:[#allocation3] sm:$0xff] %v11885_v1  ;;  %82 = vst [vmem:[#allocation3 + $0x10] sm:$0xff] %v11885_v1  ;;  %s14915_s25 = smov 18   ;;  %s14911_s20 = smov 33   ;;  %vm98_vm3 = vcmask 138240   ;;  %vm14956_vm4 = vcmask 134144  }
  0x1c   :  { %78 = vst.msk [vmem:[#allocation2 + $0x20] sm:$0xff] %vm14921_vm0, %v11885_v1  ;;  %v12052_v7 = vsub.s32 0, %v122_v2  ;;  %v12054_v8 = vsub.s32 1, %v122_v2  ;;  %v12063_v12 = vsub.s32 3, %v122_v2  ;;  %v12065_v13 = vsub.s32 2, %v122_v2  ;;  %s14909_s23 = smov 34  }
  0x1d   :  { %81 = vst.msk [vmem:[#allocation3 + $0x8] sm:$0xff] %vm14923_vm1, %v11885_v1  ;;  %83 = vst.msk [vmem:[#allocation3 + $0x18] sm:$0xff] %vm14923_vm1, %v11885_v1  ;;  %s14948_s27 = smov 112   ;;  %s14950_s28 = smov 96   ;;  %vm14955_vm5 = vcmask 7168   ;;  %vm14924_vm6 = vcmask 15360  }
  0x1e   :  { %v85_v3 = vld [vmem:[%s14979_s24 + $0x8] sm:$0xff]  ;;  %v84_v4 = vld [vmem:[%s14979_s24] sm:$0xff]  ;;  %14981 = vst [vmem:[#allocation15_spill] sm:$0xff] %v12063_v12  ;;  %s14946_s30 = smov 80   ;;  %s14941_s22 = smov 64   ;;  %vm766_vm7 = vcmask 130048  }
  0x1f   :  { %94 = vrot.lane.b32.xlu1 %v85_v3, %s14944_s26  ;;  %v89_v5 = vcombine.high %v85_v3, %v85_v3  ;;  %90 = vrot.lane.b32.xlu0 %v84_v4, %s14944_s26  ;;  %v88_v6 = vcombine.high %v84_v4, %v84_v4  ;;  %v11010_v9 = vld [vmem:[%s14980_s29 + $0x1] ss:$8 sm:$0xf]  ;;  %v11023_v16 = vld [vmem:[%s14980_s29 + $0x2] ss:$8 sm:$0xf] }
  0x20   :  { %v156_v10 = vrot.slane %v11010_v9, %v12054_v8  ;;  %v152_v11 = vrot.slane %v11010_v9, %v12052_v7  ;;  %v164_v14 = vrot.slane %v11010_v9, %v12063_v12  ;;  %v160_v15 = vrot.slane %v11010_v9, %v12065_v13  ;;  %v11030_v21 = vld [vmem:[%s14980_s29 + $0x3] ss:$8 sm:$0xf]  ;;  %v11043_v26 = vld [vmem:[%s14980_s29 + $0x5] ss:$8 sm:$0xf] }
  0x21   :  { %v530_v17 = vrot.slane %v11023_v16, %v12054_v8  ;;  %v526_v18 = vrot.slane %v11023_v16, %v12052_v7  ;;  %v538_v19 = vrot.slane %v11023_v16, %v12063_v12  ;;  %v534_v20 = vrot.slane %v11023_v16, %v12065_v13  ;;  %v11050_v31 = vld [vmem:[%s14980_s29 + $0x6] ss:$8 sm:$0xf]  ;;  %v11057_v36 = vld [vmem:[%s14980_s29 + $0x7] ss:$8 sm:$0xf] }
  0x22   :  { %v749_v22 = vrot.slane %v11030_v21, %v12054_v8  ;;  %v745_v23 = vrot.slane %v11030_v21, %v12052_v7  ;;  %v757_v24 = vrot.slane %v11030_v21, %v12063_v12  ;;  %v753_v25 = vrot.slane %v11030_v21, %v12065_v13  ;;  %v11064_v41 = vld [vmem:[%s14980_s29 + $0x28] ss:$8 sm:$0xf]  ;;  %s14939_s2 = smov 48   ;;  %s14913_s24 = smov 111  }
  0x23   :  { %96 = vrot.lane.b32.xlu1 %v89_v5, %s14944_s26  ;;  %92 = vrot.lane.b32.xlu0 %v88_v6, %s14944_s26  ;;  %v1146_v27 = vrot.slane %v11043_v26, %v12054_v8  ;;  %v1142_v28 = vrot.slane %v11043_v26, %v12052_v7  ;;  %v1154_v29 = vrot.slane %v11043_v26, %v12063_v12  ;;  %s14929_s3 = smov 127   ;;  %vm1381_vm8 = vcmask 261120   ;;  %s14991_s16 = smov 112  }
  0x24   :  { %v1150_v30 = vrot.slane %v11043_v26, %v12065_v13  ;;  %v1364_v32 = vrot.slane %v11050_v31, %v12054_v8  ;;  %v1360_v33 = vrot.slane %v11050_v31, %v12052_v7  ;;  %v1372_v34 = vrot.slane %v11050_v31, %v12063_v12  ;;  %s14997_s18 = smov 120   ;;  %s15026_s17 = smov 1  }
  0x25   :  { %v1368_v35 = vrot.slane %v11050_v31, %v12065_v13  ;;  %v1583_v37 = vrot.slane %v11057_v36, %v12054_v8  ;;  %v1579_v38 = vrot.slane %v11057_v36, %v12052_v7  ;;  %v1591_v39 = vrot.slane %v11057_v36, %v12063_v12 }
  0x26   :  { %v1587_v40 = vrot.slane %v11057_v36, %v12065_v13  ;;  %v1803_v42 = vrot.slane %v11064_v41, %v12054_v8  ;;  %v1799_v43 = vrot.slane %v11064_v41, %v12052_v7  ;;  %v1811_v44 = vrot.slane %v11064_v41, %v12063_v12 }
  0x27   :  { %167 = vrot.lane.b32.xlu1 %v156_v10, %s14933_s0  ;;  %165 = vrot.lane.b32.xlu0 %v152_v11, %s14933_s0  ;;  %v1807_v45 = vrot.slane %v11064_v41, %v12065_v13  ;;  %vm14922_vm9 = vcmask 269312   ;;  %vm205_vm10 = vcmask 1039360   ;;  %vm14964_vm11 = vcmask 1043456  }
  0x28   :  { %vm14943_vm12 = vcmask 31744   ;;  %vm578_vm13 = vcmask 1031168   ;;  %vm797_vm14 = vcmask 916480   ;;  %vm975_vm15 = vcmask 908288  }
  0x2b   :  { %171 = vrot.lane.b32.xlu1 %v164_v14, %s14933_s0  ;;  %169 = vrot.lane.b32.xlu0 %v160_v15, %s14933_s0  ;;  %s14986_s0 = smov 16  }
  0x2f   :  { %541 = vrot.lane.b32.xlu1 %v530_v17, %s14931_s21  ;;  %539 = vrot.lane.b32.xlu0 %v526_v18, %s14931_s21 }
  0x33   :  { %545 = vrot.lane.b32.xlu1 %v538_v19, %s14931_s21  ;;  %543 = vrot.lane.b32.xlu0 %v534_v20, %s14931_s21  ;;  %s14952_s21 = smov 9  }
  0x37   :  { %760 = vrot.lane.b32.xlu1 %v749_v22, %s14935_s6  ;;  %758 = vrot.lane.b32.xlu0 %v745_v23, %s14935_s6 }
  0x3b   :  { %764 = vrot.lane.b32.xlu1 %v757_v24, %s14935_s6  ;;  %762 = vrot.lane.b32.xlu0 %v753_v25, %s14935_s6 }
  0x3f   :  { %1157 = vrot.lane.b32.xlu1 %v1146_v27, %s14915_s25  ;;  %1155 = vrot.lane.b32.xlu0 %v1142_v28, %s14915_s25 }
  0x43   :  { %1161 = vrot.lane.b32.xlu1 %v1154_v29, %s14915_s25  ;;  %1159 = vrot.lane.b32.xlu0 %v1150_v30, %s14915_s25  ;;  %s14917_s25 = smov 94  }
  0x47   :  { %1375 = vrot.lane.b32.xlu1 %v1364_v32, %s14937_s1  ;;  %1373 = vrot.lane.b32.xlu0 %v1360_v33, %s14937_s1 }
  0x4b   :  { %1379 = vrot.lane.b32.xlu1 %v1372_v34, %s14937_s1  ;;  %1377 = vrot.lane.b32.xlu0 %v1368_v35, %s14937_s1 }
  0x4f   :  { %1594 = vrot.lane.b32.xlu1 %v1583_v37, %s14911_s20  ;;  %1592 = vrot.lane.b32.xlu0 %v1579_v38, %s14911_s20 }
  0x53   :  { %1598 = vrot.lane.b32.xlu1 %v1591_v39, %s14911_s20  ;;  %1596 = vrot.lane.b32.xlu0 %v1587_v40, %s14911_s20  ;;  %s14925_s20 = smov 110  }
  0x57   :  { %1814 = vrot.lane.b32.xlu1 %v1803_v42, %s14909_s23  ;;  %1812 = vrot.lane.b32.xlu0 %v1799_v43, %s14909_s23 }
  0x5b   :  { %1818 = vrot.lane.b32.xlu1 %v1811_v44, %s14909_s23  ;;  %1816 = vrot.lane.b32.xlu0 %v1807_v45, %s14909_s23  ;;  %s14927_s23 = smov 126  }
  0x5f   :  { %188 = vrot.lane.b32.xlu1 %v12146_v46, %s14948_s27 }
  0x63   :  { %561 = vrot.lane.b32.xlu1 %v12146_v46, %s14950_s28 }
  0x67   :  { %780 = vrot.lane.b32.xlu1 %v12146_v46, %s14946_s30 }
  0x6b   :  { %958 = vrot.lane.b32.xlu1 %v12146_v46, %s14941_s22  ;;  %s14987_s22 = smov 1  }
  0x6f   :  { %1176 = vrot.lane.b32.xlu1 %v12146_v46, %s14939_s2  ;;  %s14959_s2 = smov 119  }
  0x73   :  { %1395 = vrot.lane.b32.xlu1 %v12146_v46, %s14937_s1  ;;  %s11909_s1 = smov 10  }
  0x91   :  { %v95_v47 = vpop.permute.xlu1 %94  ;;  %v91_v48 = vpop.permute.xlu0 %90 }
  0x92   :  { %108 = vst.msk [vmem:[#allocation2] sm:$0xf] %vm14963_vm2, %v91_v48  ;;  %vm2657_vm2 = vcmask 973824  }
  0x95   :  { %v97_v49 = vpop.permute.xlu1 %96  ;;  %v93_v50 = vpop.permute.xlu0 %92 }
  0x96   :  { %v101_v51 = vsel %vm98_vm3, %v95_v47, %v97_v49  ;;  %113 = vst.msk [vmem:[#allocation2 + $0x20] sm:$0xf] %vm14956_vm4, %v97_v49  ;;  %v99_v52 = vsel %vm98_vm3, %v91_v48, %v93_v50  ;;  %v100_v53 = vsel %vm98_vm3, %v93_v50, %v95_v47  ;;  %vm2254_vm4 = vcmask 72704  }
  0x97   :  { %111 = vst [vmem:[#allocation2 + $0x18] sm:$0xf] %v101_v51  ;;  %109 = vst [vmem:[#allocation2 + $0x8] sm:$0xf] %v99_v52 }
  0x98   :  { %110 = vst [vmem:[#allocation2 + $0x10] sm:$0xf] %v100_v53 }
  0x99   :  { %v12165_v54 = vpop.permute.xlu1 %167  ;;  %v12167_v55 = vpop.permute.xlu0 %165  ;;  %v12169_v56 = vld [vmem:[#allocation2] sm:$0xf] }
  0x9a   :  { %965 = vrot.lane.b32.xlu0 %v12169_v56, %s14913_s24  ;;  %v182_v57 = vmul.f32 %v12167_v55, %v12169_v56 }
  0x9d   :  { %v12175_v58 = vpop.permute.xlu1 %171  ;;  %v170_v59 = vpop.permute.xlu0 %169  ;;  %v12210_v16 = vld [vmem:[#allocation2 + $0x20] sm:$0xf] }
  0x9e   :  { %195 = vrot.lane.b32.xlu0 %v182_v57, %s14929_s3  ;;  %v175_v63 = vsel %vm14955_vm5, %v12165_v54, %v170_v59  ;;  %v12190_v2 = vld [vmem:[#allocation2 + $0x18] sm:$0xf]  ;;  %v176_v6 = vsel %vm14955_vm5, %v170_v59, %v12175_v58  ;;  %v12245_v39 = vld [vmem:[#allocation2 + $0x8] sm:$0xf]  ;;  %v186_v42 = vmul.f32 %v12175_v58, %v12210_v16 }
  0x9f   :  { %v12178_v60 = vld [vmem:[#allocation2 + $0x10] sm:$0xf]  ;;  %v185_v11 = vmul.f32 %v176_v6, %v12190_v2  ;;  %v174_v6 = vsel %vm14955_vm5, %v12167_v55, %v12165_v54  ;;  %vm2252_vm5 = vcmask 1047624  }
  0xa0   :  { %969 = vrot.lane.b32.xlu1 %v12178_v60, %s14913_s24  ;;  %v184_v5 = vmul.f32 %v175_v63, %v12178_v60 }
  0xa1   :  { %v12182_v61 = vpop.permute.xlu1 %541  ;;  %v12184_v62 = vpop.permute.xlu0 %539 }
  0xa2   :  { %v556_v0 = vmul.f32 %v12184_v62, %v12169_v56 }
  0xa4   :  { %971 = vrot.lane.b32.xlu1 %v12190_v2, %s14913_s24  ;;  %568 = vrot.lane.b32.xlu0 %v556_v0, %s14927_s23 }
  0xa5   :  { %v546_v3 = vpop.permute.xlu1 %545  ;;  %v544_v4 = vpop.permute.xlu0 %543 }
  0xa6   :  { %v549_v14 = vsel %vm14924_vm6, %v12182_v61, %v544_v4  ;;  %v550_v20 = vsel %vm14924_vm6, %v544_v4, %v546_v3  ;;  %v560_v47 = vmul.f32 %v546_v3, %v12210_v16 }
  0xa7   :  { %v558_v19 = vmul.f32 %v549_v14, %v12178_v60  ;;  %v559_v23 = vmul.f32 %v550_v20, %v12190_v2  ;;  %v183_v14 = vmul.f32 %v174_v6, %v12245_v39 }
  0xa8   :  { %199 = vrot.lane.b32.xlu1 %v184_v5, %s14929_s3 }
  0xa9   :  { %v12199_v9 = vpop.permute.xlu1 %760  ;;  %v12201_v10 = vpop.permute.xlu0 %758 }
  0xaa   :  { %v775_v15 = vmul.f32 %v12201_v10, %v12169_v56  ;;  %v767_v55 = vsel %vm766_vm7, %v12201_v10, %v12199_v9 }
  0xac   :  { %201 = vrot.lane.b32.xlu1 %v185_v11, %s14929_s3  ;;  %787 = vrot.lane.b32.xlu0 %v775_v15, %s14948_s27  ;;  %v548_v15 = vsel %vm14924_vm6, %v12184_v62, %v12182_v61  ;;  %v776_v62 = vmul.f32 %v767_v55, %v12245_v39  ;;  %vm14965_vm6 = vcmask 769024  }
  0xad   :  { %v765_v17 = vpop.permute.xlu1 %764  ;;  %v763_v18 = vpop.permute.xlu0 %762  ;;  %v557_v54 = vmul.f32 %v548_v15, %v12245_v39 }
  0xae   :  { %v768_v24 = vsel %vm766_vm7, %v12199_v9, %v763_v18  ;;  %v769_v29 = vsel %vm766_vm7, %v763_v18, %v765_v17  ;;  %v779_v51 = vmul.f32 %v765_v17, %v12210_v16 }
  0xaf   :  { %v777_v28 = vmul.f32 %v768_v24, %v12178_v60  ;;  %v778_v32 = vmul.f32 %v769_v29, %v12190_v2 }
  0xb0   :  { %572 = vrot.lane.b32.xlu1 %v558_v19, %s14927_s23  ;;  %973 = vrot.lane.b32.xlu0 %v12210_v16, %s14913_s24 }
  0xb1   :  { %v12217_v21 = vpop.permute.xlu1 %1157  ;;  %v12219_v22 = vpop.permute.xlu0 %1155 }
  0xb2   :  { %v1171_v25 = vmul.f32 %v12219_v22, %v12169_v56  ;;  %v1163_v20 = vsel %vm14923_vm1, %v12219_v22, %v12217_v21 }
  0xb4   :  { %574 = vrot.lane.b32.xlu1 %v559_v23, %s14927_s23  ;;  %1183 = vrot.lane.b32.xlu0 %v1171_v25, %s14925_s20  ;;  %v1172_v23 = vmul.f32 %v1163_v20, %v12245_v39 }
  0xb5   :  { %v1162_v26 = vpop.permute.xlu1 %1161  ;;  %v1160_v27 = vpop.permute.xlu0 %1159 }
  0xb6   :  { %v1164_v33 = vsel %vm14923_vm1, %v12217_v21, %v1160_v27  ;;  %v1165_v37 = vsel %vm14923_vm1, %v1160_v27, %v1162_v26  ;;  %v1175_v59 = vmul.f32 %v1162_v26, %v12210_v16  ;;  %vm14966_vm1 = vcmask 777216  }
  0xb7   :  { %v1173_v36 = vmul.f32 %v1164_v33, %v12178_v60  ;;  %v1174_v41 = vmul.f32 %v1165_v37, %v12190_v2 }
  0xb8   :  { %791 = vrot.lane.b32.xlu1 %v777_v28, %s14948_s27 }
  0xb9   :  { %v12231_v30 = vpop.permute.xlu1 %1375  ;;  %v12233_v31 = vpop.permute.xlu0 %1373 }
  0xba   :  { %v1390_v34 = vmul.f32 %v12233_v31, %v12169_v56  ;;  %v1382_v9 = vsel %vm1381_vm8, %v12233_v31, %v12231_v30 }
  0xbb   :  { %v1391_v10 = vmul.f32 %v1382_v9, %v12245_v39 }
  0xbc   :  { %793 = vrot.lane.b32.xlu1 %v778_v32, %s14948_s27  ;;  %1402 = vrot.lane.b32.xlu0 %v1390_v34, %s14950_s28 }
  0xbd   :  { %v1378_v35 = vpop.permute.xlu0 %1377  ;;  %v1380_v38 = vpop.permute.xlu1 %1379 }
  0xbe   :  { %v1383_v43 = vsel %vm1381_vm8, %v12231_v30, %v1378_v35  ;;  %v1384_v48 = vsel %vm1381_vm8, %v1378_v35, %v1380_v38  ;;  %v1394_v4 = vmul.f32 %v1380_v38, %v12210_v16 }
  0xbf   :  { %v1392_v45 = vmul.f32 %v1383_v43, %v12178_v60  ;;  %v1393_v50 = vmul.f32 %v1384_v48, %v12190_v2 }
  0xc0   :  { %1187 = vrot.lane.b32.xlu1 %v1173_v36, %s14925_s20  ;;  %967 = vrot.lane.b32.xlu0 %v12245_v39, %s14913_s24  ;;  %s14919_s24 = smov 95  }
  0xc1   :  { %v1593_v40 = vpop.permute.xlu0 %1592  ;;  %v1595_v44 = vpop.permute.xlu1 %1594 }
  0xc2   :  { %v1601_v24 = vsel %vm14922_vm9, %v1593_v40, %v1595_v44  ;;  %v1609_v25 = vmul.f32 %v1593_v40, %v12169_v56 }
  0xc3   :  { %v1610_v21 = vmul.f32 %v1601_v24, %v12245_v39 }
  0xc4   :  { %1189 = vrot.lane.b32.xlu1 %v1174_v41, %s14925_s20  ;;  %203 = vrot.lane.b32.xlu0 %v186_v42, %s14929_s3 }
  0xc5   :  { %v1597_v49 = vpop.permute.xlu0 %1596  ;;  %v1599_v53 = vpop.permute.xlu1 %1598 }
  0xc6   :  { %v1602_v52 = vsel %vm14922_vm9, %v1595_v44, %v1597_v49  ;;  %v1603_v63 = vsel %vm14922_vm9, %v1597_v49, %v1599_v53  ;;  %v1613_v26 = vmul.f32 %v1599_v53, %v12210_v16  ;;  %v12359_v53 = vld [vmem:[%s14980_s29] ss:$8 sm:$0xf]  ;;  %vm14967_vm9 = vcmask 785408  }
  0xc7   :  { %v1611_v58 = vmul.f32 %v1602_v52, %v12178_v60  ;;  %v1612_v3 = vmul.f32 %v1603_v63, %v12190_v2  ;;  %v128_v20 = vrot.slane %v12359_v53, %v12054_v8 }
  0xc8   :  { %1406 = vrot.lane.b32.xlu1 %v1392_v45, %s14950_s28  ;;  %576 = vrot.lane.b32.xlu0 %v560_v47, %s14927_s23 }
  0xc9   :  { %v1813_v57 = vpop.permute.xlu0 %1812  ;;  %v1815_v0 = vpop.permute.xlu1 %1814 }
  0xca   :  { %v1820_v27 = vsel %vm14921_vm0, %v1813_v57, %v1815_v0  ;;  %v1828_v31 = vmul.f32 %v1813_v57, %v12169_v56  ;;  %v136_v57 = vrot.slane %v12359_v53, %v12063_v12 }
  0xcb   :  { %v1829_v29 = vmul.f32 %v1820_v27, %v12245_v39  ;;  %v142_v27 = vmul.f32 %v128_v20, %v12245_v39 }
  0xcc   :  { %1408 = vrot.lane.b32.xlu1 %v1393_v50, %s14950_s28  ;;  %795 = vrot.lane.b32.xlu0 %v779_v51, %s14948_s27 }
  0xcd   :  { %v1817_v5 = vpop.permute.xlu0 %1816  ;;  %v1819_v17 = vpop.permute.xlu1 %1818 }
  0xce   :  { %v1821_v11 = vsel %vm14921_vm0, %v1815_v0, %v1817_v5  ;;  %v1822_v19 = vsel %vm14921_vm0, %v1817_v5, %v1819_v17  ;;  %v1832_v32 = vmul.f32 %v1819_v17, %v12210_v16  ;;  %vm1193_vm0 = vcmask 900096  }
  0xcf   :  { %v1830_v18 = vmul.f32 %v1821_v11, %v12178_v60  ;;  %v1831_v61 = vmul.f32 %v1822_v19, %v12190_v2 }
  0xd0   :  { %1625 = vrot.lane.b32.xlu1 %v1611_v58, %s14919_s24  ;;  %1191 = vrot.lane.b32.xlu0 %v1175_v59, %s14925_s20  ;;  %v132_v58 = vrot.slane %v12359_v53, %v12065_v13 }
  0xd1   :  { %v12311_v22 = vpop.permute.xlu1 %188 }
  0xd2   :  { %v143_v5 = vmul.f32 %v132_v58, %v12178_v60  ;;  %v12508_v58 = vld [vmem:[%s14895_s10 + $0x8] sm:$0xff] }
  0xd4   :  { %1627 = vrot.lane.b32.xlu1 %v1612_v3, %s14919_s24  ;;  %1410 = vrot.lane.b32.xlu0 %v1394_v4, %s14950_s28  ;;  %v144_v4 = vmul.f32 %v136_v57, %v12190_v2 }
  0xd5   :  { %v12317_v28 = vpop.permute.xlu1 %561 }
  0xd8   :  { %1614 = vrot.lane.b32.xlu1 %v12146_v46, %s14935_s6  ;;  %197 = vrot.lane.b32.xlu0 %v183_v14, %s14929_s3  ;;  %s14985_s3 = smov 32   ;;  %s14995_s6 = smov 111  }
  0xd9   :  { %v12322_v30 = vpop.permute.xlu1 %780 }
  0xdc   :  { %1842 = vrot.lane.b32.xlu1 %v1830_v18, %s14917_s25  ;;  %570 = vrot.lane.b32.xlu0 %v557_v54, %s14927_s23  ;;  %s14984_s23 = smov 48  }
  0xdd   :  { %v12327_v33 = vpop.permute.xlu1 %958 }
  0xe0   :  { %1844 = vrot.lane.b32.xlu1 %v1831_v61, %s14917_s25  ;;  %789 = vrot.lane.b32.xlu0 %v776_v62, %s14948_s27 }
  0xe1   :  { %v12330_v34 = vpop.permute.xlu1 %1176 }
  0xe4   :  { %1185 = vrot.lane.b32.xlu0 %v1172_v23, %s14925_s20  ;;  %v124_v23 = vrot.slane %v12359_v53, %v12052_v7  ;;  %s14982_s20 = sld [smem:[#allocation19_spill]] }
  0xe5   :  { %v12332_v35 = vpop.permute.xlu1 %1395 }
  0xe8   :  { %1404 = vrot.lane.b32.xlu0 %v1391_v10, %s14950_s28 }
  0xea   :  { %v2036_v20 = vld [vmem:[%s14982_s20 + $0xd0] sm:$0xff] }
  0xec   :  { %1623 = vrot.lane.b32.xlu0 %v1610_v21, %s14919_s24 }
  0xf0   :  { %1621 = vrot.lane.b32.xlu0 %v1609_v25, %s14919_s24 }
  0xf4   :  { %1629 = vrot.lane.b32.xlu0 %v1613_v26, %s14919_s24  ;;  %s14983_s24 = smov 64  }
  0xf8   :  { %1840 = vrot.lane.b32.xlu0 %v1829_v29, %s14917_s25  ;;  %v141_v29 = vmul.f32 %v124_v23, %v12169_v56  ;;  %v2055_v23 = vld [vmem:[%s14982_s20 + $0x168] sm:$0xff] }
  0xfc   :  { %1838 = vrot.lane.b32.xlu0 %v1828_v31, %s14917_s25 }
 0x100   :  { %1846 = vrot.lane.b32.xlu0 %v1832_v32, %s14917_s25  ;;  %s14988_s25 = smov 2  }
 0x10c   :  { %v12334_v36 = vpop.permute.xlu0 %965 }
 0x110   :  { %v12338_v40 = vpop.permute.xlu0 %195 }
 0x112   :  { %v12336_v37 = vpop.permute.xlu1 %969 }
 0x116   :  { %v972_v38 = vpop.permute.xlu1 %971  ;;  %v12342_v42 = vpop.permute.xlu0 %568 }
 0x117   :  { %v978_v55 = vsel %vm975_vm15, %v12336_v37, %v972_v38 }
 0x11a   :  { %v12340_v41 = vpop.permute.xlu1 %199 }
 0x11e   :  { %v202_v16 = vpop.permute.xlu1 %201  ;;  %v12344_v43 = vpop.permute.xlu0 %787 }
 0x11f   :  { %v208_v3 = vsel %vm205_vm10, %v12340_v41, %v202_v16 }
 0x122   :  { %v12346_v44 = vpop.permute.xlu1 %572  ;;  %v974_v45 = vpop.permute.xlu0 %973 }
 0x123   :  { %v979_v19 = vsel %vm975_vm15, %v972_v38, %v974_v45 }
 0x126   :  { %v575_v47 = vpop.permute.xlu1 %574  ;;  %v12348_v48 = vpop.permute.xlu0 %1183 }
 0x127   :  { %v581_v2 = vsel %vm578_vm13, %v12346_v44, %v575_v47 }
 0x12a   :  { %v12350_v49 = vpop.permute.xlu1 %791 }
 0x12e   :  { %v12352_v50 = vpop.permute.xlu0 %1402  ;;  %v794_v51 = vpop.permute.xlu1 %793 }
 0x12f   :  { %v800_v17 = vsel %vm797_vm14, %v12350_v49, %v794_v51 }
 0x132   :  { %v12354_v52 = vpop.permute.xlu0 %967  ;;  %v12366_v0 = vpop.permute.xlu1 %1187 }
 0x136   :  { %v204_v59 = vpop.permute.xlu0 %203  ;;  %v1190_v60 = vpop.permute.xlu1 %1189 }
 0x137   :  { %v209_v63 = vsel %vm205_vm10, %v202_v16, %v204_v59  ;;  %v1196_v9 = vsel %vm1193_vm0, %v12366_v0, %v1190_v60  ;;  %v976_v16 = vsel %vm975_vm15, %v12334_v36, %v12354_v52 }
 0x138   :  { %11014 = vmatprep.subr.msk.mxu1 %vm14964_vm11, %v209_v63 }
 0x139   :  { %11015 = vmatpush1.msk.msra.mxu1 %vm14964_vm11, %v208_v3 }
 0x13a   :  { %11016 = vmatmul.mubr.msk.f32.vlgmr.msra.gmra.mxu1 %vm14943_vm12, %v12311_v22  ;;  %11020 = vmatprep.subr.msk.mxu1 %vm14964_vm11, %v144_v4  ;;  %v577_v6 = vpop.permute.xlu0 %576  ;;  %v12396_v54 = vpop.permute.xlu1 %1406  ;;  %v2041_v4 = vld [vmem:[%s14982_s20 + $0xf8] sm:$0xff] }
 0x13b   :  { %v582_v11 = vsel %vm578_vm13, %v575_v47, %v577_v6  ;;  %11021 = vmatpush1.msk.msra.mxu1 %vm14964_vm11, %v143_v5  ;;  %513 = vmatprep.mubr.f32.mxu1 %v11885_v1  ;;  %v2025_v5 = vld [vmem:[%s14982_s20 + $0x78] sm:$0xff]  ;;  %v2040_v6 = vld [vmem:[%s14982_s20 + $0xf0] sm:$0xff] }
 0x13c   :  { %11027 = vmatprep.subr.msk.mxu1 %vm14964_vm11, %v582_v11  ;;  %v2024_v11 = vld [vmem:[%s14982_s20 + $0x70] sm:$0xff] }
 0x13e   :  { %11022 = vmatmul.mubr.msk.f32.vlgmr.msra.gmra.mxu1 %vm14943_vm12, %v12146_v46  ;;  %v796_v14 = vpop.permute.xlu0 %795  ;;  %v1409_v10 = vpop.permute.xlu1 %1408 }
 0x13f   :  { %11028 = vmatpush1.msk.msra.mxu1 %vm14964_vm11, %v581_v2  ;;  %v801_v15 = vsel %vm797_vm14, %v794_v51, %v796_v14  ;;  %728 = vmatprep.mubr.f32.mxu1 %v11885_v1  ;;  %v1415_v32 = vsel %vm14967_vm9, %v12396_v54, %v1409_v10  ;;  %v2039_v2 = vld [vmem:[%s14982_s20 + $0xe8] sm:$0xff]  ;;  %v2073_v14 = vld [vmem:[%s14982_s20 + $0x1f8] sm:$0xff] }
 0x140   :  { %11034 = vmatprep.subr.msk.mxu1 %vm14964_vm11, %v801_v15  ;;  %v2038_v15 = vld [vmem:[%s14982_s20 + $0xe0] sm:$0xff] }
 0x142   :  { %11029 = vmatmul.mubr.msk.f32.vlgmr.msra.gmra.mxu1 %vm14943_vm12, %v12317_v28  ;;  %v1192_v18 = vpop.permute.xlu0 %1191 }
 0x143   :  { %11035 = vmatpush1.msk.msra.mxu1 %vm14964_vm11, %v800_v17  ;;  %947 = vmatprep.mubr.f32.mxu1 %v11885_v1  ;;  %v1197_v62 = vsel %vm1193_vm0, %v1190_v60, %v1192_v18  ;;  %v2023_v60 = vld [vmem:[%s14982_s20 + $0x68] sm:$0xff]  ;;  %v2057_v17 = vld [vmem:[%s14982_s20 + $0x178] sm:$0xff]  ;;  %v2022_v18 = vld [vmem:[%s14982_s20 + $0x60] sm:$0xff] }
 0x144   :  { %11040 = vmatprep.subr.msk.mxu1 %vm14964_vm11, %v979_v19  ;;  %v2072_v19 = vld [vmem:[%s14982_s20 + $0x1f0] sm:$0xff] }
 0x146   :  { %11036 = vmatmul.mubr.msk.f32.vlgmr.msra.gmra.mxu1 %vm14943_vm12, %v12322_v30  ;;  %v1411_v61 = vpop.permute.xlu0 %1410 }
 0x147   :  { %11041 = vmatpush1.msk.msra.mxu1 %vm14964_vm11, %v978_v55  ;;  %1125 = vmatprep.mubr.f32.mxu1 %v11885_v1  ;;  %v1416_v21 = vsel %vm14967_vm9, %v1409_v10, %v1411_v61  ;;  %v2056_v55 = vld [vmem:[%s14982_s20 + $0x170] sm:$0xff]  ;;  %v2021_v61 = vld [vmem:[%s14982_s20 + $0x58] sm:$0xff]  ;;  %v2070_v10 = vld [vmem:[%s14982_s20 + $0x1e0] sm:$0xff] }
 0x148   :  { %11047 = vmatprep.subr.msk.mxu1 %vm14964_vm11, %v1197_v62  ;;  %v2071_v62 = vld [vmem:[%s14982_s20 + $0x1e8] sm:$0xff] }
 0x14a   :  { %11042 = vmatmul.mubr.msk.f32.vlgmr.msra.gmra.mxu1 %vm14943_vm12, %v12327_v33  ;;  %v198_v24 = vpop.permute.xlu0 %197 }
 0x14b   :  { %11048 = vmatpush1.msk.msra.mxu1 %vm14964_vm11, %v1196_v9  ;;  %v207_v25 = vsel %vm205_vm10, %v198_v24, %v12340_v41  ;;  %v206_v26 = vsel %vm205_vm10, %v12338_v40, %v198_v24  ;;  %1343 = vmatprep.mubr.f32.mxu1 %v11885_v1  ;;  %v2020_v9 = vld [vmem:[%s14982_s20 + $0x50] sm:$0xff]  ;;  %v2035_v24 = vld [vmem:[%s14982_s20 + $0xc8] sm:$0xff] }
 0x14c   :  { %11054 = vmatprep.subr.msk.mxu1 %vm14964_vm11, %v1416_v21  ;;  %11011 = vmatprep.subr.msk.mxu0 %vm14964_vm11, %v207_v25  ;;  %v2054_v21 = vld [vmem:[%s14982_s20 + $0x160] sm:$0xff]  ;;  %v2019_v25 = vld [vmem:[%s14982_s20 + $0x48] sm:$0xff] }
 0x14d   :  { %11012 = vmatpush1.msk.msra.mxu0 %vm14964_vm11, %v206_v26  ;;  %v2069_v26 = vld [vmem:[%s14982_s20 + $0x1d8] sm:$0xff] }
 0x14e   :  { %11013 = vmatmul.mubr.msk.f32.vlgmr.msra.gmra.mxu0 %vm14943_vm12, %v12311_v22  ;;  %11017 = vmatprep.subr.msk.mxu0 %vm14964_vm11, %v142_v27  ;;  %v571_v31 = vpop.permute.xlu0 %570  ;;  %v2034_v27 = vld [vmem:[%s14982_s20 + $0xc0] sm:$0xff] }
 0x14f   :  { %11049 = vmatmul.mubr.msk.f32.vlgmr.msra.gmra.mxu1 %vm14943_vm12, %v12330_v34  ;;  %11018 = vmatpush1.msk.msra.mxu0 %vm14964_vm11, %v141_v29  ;;  %v580_v39 = vsel %vm578_vm13, %v571_v31, %v12346_v44  ;;  %v579_v56 = vsel %vm578_vm13, %v12342_v42, %v571_v31  ;;  %v1626_v42 = vpop.permute.xlu1 %1625  ;;  %v2053_v29 = vld [vmem:[%s14982_s20 + $0x158] sm:$0xff]  ;;  %v2018_v31 = vld [vmem:[%s14982_s20 + $0x40] sm:$0xff] }
 0x150   :  { %11055 = vmatpush1.msk.msra.mxu1 %vm14964_vm11, %v1415_v32  ;;  %11024 = vmatprep.subr.msk.mxu0 %vm14964_vm11, %v580_v39  ;;  %v2068_v32 = vld [vmem:[%s14982_s20 + $0x1d0] sm:$0xff]  ;;  %v2033_v39 = vld [vmem:[%s14982_s20 + $0xb8] sm:$0xff] }
 0x151   :  { %442 = vmatprep.mubr.f32.mxu0 %v11885_v1  ;;  %1562 = vmatprep.mubr.f32.mxu1 %v11885_v1 }
 0x152   :  { %v790_v22 = vpop.permute.xlu0 %789  ;;  %11019 = vmatmul.mubr.msk.f32.vlgmr.msra.gmra.mxu0 %vm14943_vm12, %v12146_v46  ;;  %v977_v46 = vsel %vm975_vm15, %v12354_v52, %v12336_v37 }
 0x153   :  { %11056 = vmatmul.mubr.msk.f32.vlgmr.msra.gmra.mxu1 %vm14943_vm12, %v12332_v35  ;;  %11025 = vmatpush1.msk.msra.mxu0 %vm14964_vm11, %v579_v56  ;;  %v799_v38 = vsel %vm797_vm14, %v790_v22, %v12350_v49  ;;  %v798_v40 = vsel %vm797_vm14, %v12344_v43, %v790_v22  ;;  %v1628_v37 = vpop.permute.xlu1 %1627  ;;  %v2052_v56 = vld [vmem:[%s14982_s20 + $0x150] sm:$0xff]  ;;  %v2017_v22 = vld [vmem:[%s14982_s20 + $0x38] sm:$0xff] }
 0x154   :  { %11031 = vmatprep.subr.msk.mxu0 %vm14964_vm11, %v799_v38  ;;  %657 = vmatprep.mubr.f32.mxu0 %v11885_v1  ;;  %v2067_v38 = vld [vmem:[%s14982_s20 + $0x1c8] sm:$0xff] }
 0x155   :  { %1781 = vmatprep.mubr.f32.mxu1 %v11885_v1 }
 0x156   :  { %v1186_v41 = vpop.permute.xlu0 %1185  ;;  %11026 = vmatmul.mubr.msk.f32.vlgmr.msra.gmra.mxu0 %vm14943_vm12, %v12317_v28 }
 0x157   :  { %11032 = vmatpush1.msk.msra.mxu0 %vm14964_vm11, %v798_v40  ;;  %876 = vmatprep.mubr.f32.mxu0 %v11885_v1  ;;  %v1195_v28 = vsel %vm1193_vm0, %v1186_v41, %v12366_v0  ;;  %v1194_v44 = vsel %vm1193_vm0, %v12348_v48, %v1186_v41  ;;  %v1615_v48 = vpop.permute.xlu1 %1614  ;;  %v2032_v40 = vld [vmem:[%s14982_s20 + $0xb0] sm:$0xff]  ;;  %v2051_v41 = vld [vmem:[%s14982_s20 + $0x148] sm:$0xff] }
 0x158   :  { %11037 = vmatprep.subr.msk.mxu0 %vm14964_vm11, %v977_v46  ;;  %v2016_v46 = vld [vmem:[%s14982_s20 + $0x30] sm:$0xff] }
 0x15a   :  { %v1405_v43 = vpop.permute.xlu0 %1404  ;;  %11033 = vmatmul.mubr.msk.f32.vlgmr.msra.gmra.mxu0 %vm14943_vm12, %v12322_v30 }
 0x15b   :  { %11038 = vmatpush1.msk.msra.mxu0 %vm14964_vm11, %v976_v16  ;;  %1054 = vmatprep.mubr.f32.mxu0 %v11885_v1  ;;  %v1414_v30 = vsel %vm14967_vm9, %v1405_v43, %v12396_v54  ;;  %v1413_v36 = vsel %vm14967_vm9, %v12352_v50, %v1405_v43  ;;  %v1843_v52 = vpop.permute.xlu1 %1842  ;;  %v2037_v54 = vld [vmem:[%s14982_s20 + $0xd8] sm:$0xff]  ;;  %v2031_v16 = vld [vmem:[%s14982_s20 + $0xa8] sm:$0xff]  ;;  %v2050_v43 = vld [vmem:[%s14982_s20 + $0x140] sm:$0xff] }
 0x15c   :  { %11044 = vmatprep.subr.msk.mxu0 %vm14964_vm11, %v1195_v28  ;;  %v2015_v28 = vld [vmem:[%s14982_s20 + $0x28] sm:$0xff] }
 0x15e   :  { %v1624_v45 = vpop.permute.xlu0 %1623  ;;  %11039 = vmatmul.mubr.msk.f32.vlgmr.msra.gmra.mxu0 %vm14943_vm12, %v12327_v33 }
 0x15f   :  { %11045 = vmatpush1.msk.msra.mxu0 %vm14964_vm11, %v1194_v44  ;;  %1272 = vmatprep.mubr.f32.mxu0 %v11885_v1  ;;  %v1633_v33 = vsel %vm14966_vm1, %v1624_v45, %v1626_v42  ;;  %v1845_v63 = vpop.permute.xlu1 %1844  ;;  %v2030_v44 = vld [vmem:[%s14982_s20 + $0xa0] sm:$0xff] }
 0x160   :  { %11051 = vmatprep.subr.msk.mxu0 %vm14964_vm11, %v1414_v30  ;;  %v2014_v30 = vld [vmem:[%s14982_s20 + $0x20] sm:$0xff] }
 0x162   :  { %v1622_v47 = vpop.permute.xlu0 %1621  ;;  %11046 = vmatmul.mubr.msk.f32.vlgmr.msra.gmra.mxu0 %vm14943_vm12, %v12330_v34  ;;  %v1634_v34 = vsel %vm14966_vm1, %v1626_v42, %v1628_v37  ;;  %v2066_v42 = vld [vmem:[%s14982_s20 + $0x1c0] sm:$0xff] }
 0x163   :  { %11052 = vmatpush1.msk.msra.mxu0 %vm14964_vm11, %v1413_v36  ;;  %1491 = vmatprep.mubr.f32.mxu0 %v11885_v1  ;;  %v1632_v49 = vsel %vm14966_vm1, %v1622_v47, %v1624_v45  ;;  %v2049_v45 = vld [vmem:[%s14982_s20 + $0x138] sm:$0xff]  ;;  %v2064_v36 = vld [vmem:[%s14982_s20 + $0x1b0] sm:$0xff] }
 0x164   :  { %11058 = vmatprep.subr.msk.mxu0 %vm14964_vm11, %v1633_v33  ;;  %v2029_v47 = vld [vmem:[%s14982_s20 + $0x98] sm:$0xff]  ;;  %v2048_v33 = vld [vmem:[%s14982_s20 + $0x130] sm:$0xff] }
 0x166   :  { %v1630_v51 = vpop.permute.xlu0 %1629  ;;  %11053 = vmatmul.mubr.msk.f32.vlgmr.msra.gmra.mxu0 %vm14943_vm12, %v12332_v35 }
 0x167   :  { %v1635_v50 = vsel %vm14966_vm1, %v1628_v37, %v1630_v51  ;;  %11059 = vmatpush1.msk.msra.mxu0 %vm14964_vm11, %v1632_v49  ;;  %1710 = vmatprep.mubr.f32.mxu0 %v11885_v1  ;;  %v2065_v37 = vld [vmem:[%s14982_s20 + $0x1b8] sm:$0xff]  ;;  %v2063_v49 = vld [vmem:[%s14982_s20 + $0x1a8] sm:$0xff]  ;;  %v2028_v51 = vld [vmem:[%s14982_s20 + $0x90] sm:$0xff] }
 0x168   :  { %11061 = vmatprep.subr.msk.mxu1 %vm14964_vm11, %v1635_v50  ;;  %v2047_v50 = vld [vmem:[%s14982_s20 + $0x128] sm:$0xff] }
 0x169   :  { %11062 = vmatpush1.msk.msra.mxu1 %vm14964_vm11, %v1634_v34  ;;  %v2012_v34 = vld [vmem:[%s14982_s20 + $0x10] sm:$0xff] }
 0x16a   :  { %11063 = vmatmul.mubr.msk.f32.vlgmr.msra.gmra.mxu1 %vm14943_vm12, %v1615_v48  ;;  %v1841_v53 = vpop.permute.xlu0 %1840  ;;  %11060 = vmatmul.mubr.msk.f32.vlgmr.msra.gmra.mxu0 %vm14943_vm12, %v1615_v48  ;;  %v2013_v48 = vld [vmem:[%s14982_s20 + $0x18] sm:$0xff] }
 0x16b   :  { %v1850_v35 = vsel %vm14965_vm6, %v1841_v53, %v1843_v52  ;;  %1928 = vmatprep.mubr.f32.mxu0 %v11885_v1  ;;  %1999 = vmatprep.mubr.f32.mxu1 %v11885_v1  ;;  %v1851_v1 = vsel %vm14965_vm6, %v1843_v52, %v1845_v63  ;;  %v2062_v52 = vld [vmem:[%s14982_s20 + $0x1a0] sm:$0xff] }
 0x16c   :  { %11065 = vmatprep.subr.msk.mxu0 %vm14964_vm11, %v1850_v35  ;;  %v2046_v35 = vld [vmem:[%s14982_s20 + $0x120] sm:$0xff] }
 0x16e   :  { %v1839_v57 = vpop.permute.xlu0 %1838 }
 0x16f   :  { %v1849_v59 = vsel %vm14965_vm6, %v1839_v57, %v1841_v53  ;;  %v2027_v53 = vld [vmem:[%s14982_s20 + $0x88] sm:$0xff] }
 0x170   :  { %11066 = vmatpush1.msk.msra.mxu0 %vm14964_vm11, %v1849_v59  ;;  %v2011_v57 = vld [vmem:[%s14982_s20 + $0x8] sm:$0xff]  ;;  %v2061_v59 = vld [vmem:[%s14982_s20 + $0x198] sm:$0xff] }
 0x171   :  { %11067 = vmatmul.mubr.msk.f32.vlgmr.msra.gmra.mxu0 %vm14943_vm12, %v12508_v58  ;;  %11253 = vmatprep.subr.mxu0 %v2041_v4  ;;  %v2044_v4 = vld [vmem:[%s14982_s20 + $0x110] sm:$0xff] }
 0x172   :  { %v1847_v0 = vpop.permute.xlu0 %1846  ;;  %11254 = vmatpush3.msra.mxu0 %v2025_v5  ;;  %v2059_v5 = vld [vmem:[%s14982_s20 + $0x188] sm:$0xff] }
 0x173   :  { %v1852_v3 = vsel %vm14965_vm6, %v1845_v63, %v1847_v0  ;;  %11255 = vmatprep.subr.mxu0 %v2040_v6  ;;  %v2026_v63 = vld [vmem:[%s14982_s20 + $0x80] sm:$0xff]  ;;  %v2045_v0 = vld [vmem:[%s14982_s20 + $0x118] sm:$0xff]  ;;  %v2043_v6 = vld [vmem:[%s14982_s20 + $0x108] sm:$0xff]  ;;  %vm2758_vm6 = vcmask 965632  }
 0x174   :  { %11068 = vmatprep.subr.msk.mxu1 %vm14964_vm11, %v1852_v3  ;;  %11256 = vmatpush3.msra.mxu0 %v2024_v11  ;;  %v2010_v3 = vld [vmem:[%s14982_s20] sm:$0xff] }
 0x175   :  { %11069 = vmatpush1.msk.msra.mxu1 %vm14964_vm11, %v1851_v1  ;;  %11257 = vmatprep.subr.mxu0 %v2039_v2  ;;  %v2060_v1 = vld [vmem:[%s14982_s20 + $0x190] sm:$0xff]  ;;  %v2058_v11 = vld [vmem:[%s14982_s20 + $0x180] sm:$0xff]  ;;  %vm2563_vm11 = vcmask 982016  }
 0x176   :  { %11070 = vmatmul.mubr.msk.f32.vlgmr.msra.gmra.mxu1 %vm14943_vm12, %v12508_v58  ;;  %11258 = vmatpush3.msra.mxu0 %v2023_v60  ;;  %v2042_v2 = vld [vmem:[%s14982_s20 + $0x100] sm:$0xff]  ;;  %s14993_s20 = smov 127  }
 0x177   :  { %11288 = vmatprep.subr.mxu1 %v2073_v14  ;;  %11259 = vmatprep.subr.mxu0 %v2038_v15  ;;  %v12715_v60 = vld [vmem:[%s14896_s11] sm:$0xff]  ;;  %v11904_v14 = vmov 0  }
 0x178   :  { %11289 = vmatpush3.msra.mxu1 %v2057_v17  ;;  %11260 = vmatpush3.msra.mxu0 %v2022_v18 }
 0x179   :  { %11290 = vmatprep.subr.mxu1 %v2072_v19  ;;  %11261 = vmatprep.subr.mxu0 %v2037_v54 }
 0x17a   :  { %11291 = vmatpush3.msra.mxu1 %v2056_v55  ;;  %11262 = vmatpush3.msra.mxu0 %v2021_v61 }
 0x17b   :  { %11292 = vmatprep.subr.mxu1 %v2071_v62  ;;  %11263 = vmatprep.subr.mxu0 %v2036_v20 }
 0x17c   :  { %11293 = vmatpush3.msra.mxu1 %v2055_v23  ;;  %11264 = vmatpush3.msra.mxu0 %v2020_v9 }
 0x17d   :  { %11294 = vmatprep.subr.mxu1 %v2070_v10  ;;  %11265 = vmatprep.subr.mxu0 %v2035_v24 }
 0x17e   :  { %11295 = vmatpush3.msra.mxu1 %v2054_v21  ;;  %11266 = vmatpush3.msra.mxu0 %v2019_v25 }
 0x17f   :  { %11296 = vmatprep.subr.mxu1 %v2069_v26  ;;  %11267 = vmatprep.subr.mxu0 %v2034_v27 }
 0x180   :  { %11297 = vmatpush3.msra.mxu1 %v2053_v29  ;;  %11268 = vmatpush3.msra.mxu0 %v2018_v31 }
 0x181   :  { %11298 = vmatprep.subr.mxu1 %v2068_v32  ;;  %11269 = vmatprep.subr.mxu0 %v2033_v39 }
 0x182   :  { %11299 = vmatpush3.msra.mxu1 %v2052_v56  ;;  %11270 = vmatpush3.msra.mxu0 %v2017_v22 }
 0x183   :  { %11300 = vmatprep.subr.mxu1 %v2067_v38  ;;  %11271 = vmatprep.subr.mxu0 %v2032_v40 }
 0x184   :  { %11301 = vmatpush3.msra.mxu1 %v2051_v41  ;;  %11272 = vmatpush3.msra.mxu0 %v2016_v46 }
 0x185   :  { %11302 = vmatprep.subr.mxu1 %v2066_v42  ;;  %11273 = vmatprep.subr.mxu0 %v2031_v16 }
 0x186   :  { %11303 = vmatpush3.msra.mxu1 %v2050_v43  ;;  %11274 = vmatpush3.msra.mxu0 %v2015_v28 }
 0x187   :  { %11304 = vmatprep.subr.mxu1 %v2065_v37  ;;  %11275 = vmatprep.subr.mxu0 %v2030_v44 }
 0x188   :  { %11305 = vmatpush3.msra.mxu1 %v2049_v45  ;;  %11276 = vmatpush3.msra.mxu0 %v2014_v30 }
 0x189   :  { %11306 = vmatprep.subr.mxu1 %v2064_v36  ;;  %11277 = vmatprep.subr.mxu0 %v2029_v47 }
 0x18a   :  { %11307 = vmatpush3.msra.mxu1 %v2048_v33  ;;  %11278 = vmatpush3.msra.mxu0 %v2013_v48 }
 0x18b   :  { %11308 = vmatprep.subr.mxu1 %v2063_v49  ;;  %11279 = vmatprep.subr.mxu0 %v2028_v51 }
 0x18c   :  { %11309 = vmatpush3.msra.mxu1 %v2047_v50  ;;  %11280 = vmatpush3.msra.mxu0 %v2012_v34 }
 0x18d   :  { %11310 = vmatprep.subr.mxu1 %v2062_v52  ;;  %11281 = vmatprep.subr.mxu0 %v2027_v53 }
 0x18e   :  { %11311 = vmatpush3.msra.mxu1 %v2046_v35  ;;  %11282 = vmatpush3.msra.mxu0 %v2011_v57 }
 0x18f   :  { %11312 = vmatprep.subr.mxu1 %v2061_v59  ;;  %11283 = vmatprep.subr.mxu0 %v2026_v63 }
 0x190   :  { %11313 = vmatpush3.msra.mxu1 %v2045_v0  ;;  %11284 = vmatpush3.msra.mxu0 %v2010_v3 }
 0x191   :  { %11314 = vmatprep.subr.mxu1 %v2060_v1  ;;  %11749 = vset.pattern.permute.xlu1 %v11904_v14 }
 0x192   :  { %11315 = vmatpush3.msra.mxu1 %v2044_v4  ;;  %2077 = vperm.xlu1 %11749, %v12715_v60  }
 0x193   :  { %11316 = vmatprep.subr.mxu1 %v2059_v5 }
 0x194   :  { %11317 = vmatpush3.msra.mxu1 %v2043_v6 }
 0x195   :  { %11318 = vmatprep.subr.mxu1 %v2058_v11 }
 0x196   :  { %11319 = vmatpush3.msra.mxu1 %v2042_v2 }
 0x1fa   :  { %v359_v15 = vpop.f32.mrf.mxu1 }
 0x1fc   :  { %v361_v17 = vpop.f32.mrf.mxu1 }
 0x1fe   :  { %v515_v18 = vpop.f32.mrf.mxu1 }
 0x1ff   :  { %v516_v36 = vadd.f32 %v515_v18, %v359_v15 }
 0x200   :  { %v517_v19 = vpop.f32.mrf.mxu1 }
 0x201   :  { %v518_v44 = vadd.f32 %v517_v19, %v361_v17 }
 0x202   :  { %v730_v54 = vpop.f32.mrf.mxu1 }
 0x203   :  { %v737_v49 = vadd.f32 %v730_v54, %v516_v36 }
 0x204   :  { %v732_v55 = vpop.f32.mrf.mxu1 }
 0x205   :  { %v738_v33 = vadd.f32 %v732_v55, %v518_v44 }
 0x206   :  { %v949_v20 = vpop.f32.mrf.mxu1 }
 0x207   :  { %v956_v35 = vadd.f32 %v949_v20, %v737_v49 }
 0x208   :  { %v951_v10 = vpop.f32.mrf.mxu1 }
 0x209   :  { %v957_v34 = vadd.f32 %v951_v10, %v738_v33  ;;  %v11906_v10 = vmov 2  }
 0x20a   :  { %v1127_v25 = vpop.f32.mrf.mxu1  ;;  %11751 = vset.pattern.permute.xlu1 %v11906_v10 }
 0x20b   :  { %v1134_v1 = vadd.f32 %v1127_v25, %v956_v35 }
 0x20c   :  { %v1129_v29 = vpop.f32.mrf.mxu1 }
 0x20d   :  { %v1135_v63 = vadd.f32 %v1129_v29, %v957_v34  ;;  %v2741_v34 = vld [vmem:[%s14980_s29 + $0x25] ss:$0 sm:$0xff] }
 0x20e   :  { %v288_v61 = vpop.f32.mrf.mxu0 }
 0x20f   :  { %v1345_v39 = vpop.f32.mrf.mxu1 }
 0x210   :  { %v290_v62 = vpop.f32.mrf.mxu0  ;;  %v1352_v2 = vadd.f32 %v1345_v39, %v1134_v1  ;;  %v2259_v1 = vld [vmem:[%s14980_s29 + $0x20] ss:$0 sm:$0xff] }
 0x211   :  { %v1347_v38 = vpop.f32.mrf.mxu1 }
 0x212   :  { %v444_v23 = vpop.f32.mrf.mxu0  ;;  %v1353_v5 = vadd.f32 %v1347_v38, %v1135_v63 }
 0x213   :  { %v445_v46 = vadd.f32 %v444_v23, %v288_v61  ;;  %v1564_v28 = vpop.f32.mrf.mxu1 }
 0x214   :  { %v446_v9 = vpop.f32.mrf.mxu0  ;;  %v1571_v19 = vadd.f32 %v1564_v28, %v1352_v2 }
 0x215   :  { %v447_v40 = vadd.f32 %v446_v9, %v290_v62  ;;  %v1566_v51 = vpop.f32.mrf.mxu1  ;;  %v11905_v9 = vmov 1  }
 0x216   :  { %v659_v24 = vpop.f32.mrf.mxu0  ;;  %v1572_v17 = vadd.f32 %v1566_v51, %v1353_v5  ;;  %11750 = vset.pattern.permute.xlu0 %v11905_v9  ;;  %v2446_v51 = vld [vmem:[%s14980_s29 + $0x22] ss:$0 sm:$0xff] }
 0x217   :  { %v735_v43 = vadd.f32 %v659_v24, %v445_v46 }
 0x218   :  { %v661_v21 = vpop.f32.mrf.mxu0 }
 0x219   :  { %v736_v42 = vadd.f32 %v661_v21, %v447_v40 }
 0x21a   :  { %v878_v26 = vpop.f32.mrf.mxu0 }
 0x21b   :  { %v954_v45 = vadd.f32 %v878_v26, %v735_v43  ;;  %v2078_v26 = vpop.permute.xlu1 %2077 }
 0x21c   :  { %v880_v27 = vpop.f32.mrf.mxu0 }
 0x21d   :  { %v955_v37 = vadd.f32 %v880_v27, %v736_v42 }
 0x21e   :  { %v1056_v31 = vpop.f32.mrf.mxu0 }
 0x21f   :  { %v1132_v48 = vadd.f32 %v1056_v31, %v954_v45 }
 0x220   :  { %v1058_v32 = vpop.f32.mrf.mxu0 }
 0x221   :  { %v1133_v47 = vadd.f32 %v1058_v32, %v955_v37 }
 0x222   :  { %v1274_v56 = vpop.f32.mrf.mxu0 }
 0x223   :  { %v1350_v52 = vadd.f32 %v1274_v56, %v1132_v48 }
 0x224   :  { %v1276_v22 = vpop.f32.mrf.mxu0 }
 0x225   :  { %v1351_v50 = vadd.f32 %v1276_v22, %v1133_v47  ;;  %v2944_v22 = vld [vmem:[%s14980_s29 + $0x27] ss:$0 sm:$0xff] }
 0x226   :  { %v1493_v41 = vpop.f32.mrf.mxu0 }
 0x227   :  { %v1569_v0 = vadd.f32 %v1493_v41, %v1350_v52  ;;  %v2842_v52 = vld [vmem:[%s14980_s29 + $0x26] ss:$0 sm:$0xff] }
 0x228   :  { %v1495_v16 = vpop.f32.mrf.mxu0 }
 0x229   :  { %v1570_v57 = vadd.f32 %v1495_v16, %v1351_v50  ;;  %v2546_v50 = vld [vmem:[%s14980_s29 + $0x23] ss:$0 sm:$0xff] }
 0x22a   :  { %v1712_v30 = vpop.f32.mrf.mxu0  ;;  %v1783_v59 = vpop.f32.mrf.mxu1 }
 0x22b   :  { %v1788_v6 = vadd.f32 %v1712_v30, %v1569_v0  ;;  %v1790_v61 = vadd.f32 %v1783_v59, %v1571_v19 }
 0x22c   :  { %v1714_v53 = vpop.f32.mrf.mxu0  ;;  %v1785_v14 = vpop.f32.mrf.mxu1 }
 0x22d   :  { %v1789_v4 = vadd.f32 %v1714_v53, %v1570_v57  ;;  %v1791_v55 = vadd.f32 %v1785_v14, %v1572_v17  ;;  %v3042_v53 = vld [vmem:[%s14980_s29 + $0x48] ss:$0 sm:$0xff]  ;;  %v2257_v57 = vld [vmem:[%s14895_s10 + $0x40] sm:$0xff] }
 0x231   :  { %v1930_v3 = vpop.f32.mrf.mxu0 }
 0x232   :  { %v2006_v18 = vadd.f32 %v1930_v3, %v1788_v6 }
 0x233   :  { %v1932_v11 = vpop.f32.mrf.mxu0 }
 0x234   :  { %v2007_v15 = vadd.f32 %v1932_v11, %v1789_v4 }
 0x236   :  { %v2001_v54 = vpop.f32.mrf.mxu1  ;;  %2144 = vmatprep.mubr.f32.mxu0 %v2007_v15 }
 0x237   :  { %2145 = vmatmul.mubr.f32.vlgmr.msra.gmra.mxu0 %v2006_v18  ;;  %v2008_v23 = vadd.f32 %v2001_v54, %v1790_v61 }
 0x238   :  { %v2003_v62 = vpop.f32.mrf.mxu1 }
 0x239   :  { %v2009_v20 = vadd.f32 %v2003_v62, %v1791_v55 }
 0x23b   :  { %2214 = vmatprep.mubr.f32.mxu1 %v2009_v20 }
 0x23c   :  { %2215 = vmatmul.mubr.f32.vlgmr.msra.gmra.mxu1 %v2008_v23 }
 0x2f7   :  { %v11285_v24 = vpop.f32.mrf.mxu0 }
 0x2f9   :  { %v11286_v21 = vpop.f32.mrf.mxu0 }
 0x2fa   :  { %v11287_v25 = vadd.f32 %v11286_v21, %v11285_v24 }
 0x2fc   :  { %v11320_v27 = vpop.f32.mrf.mxu1  ;;  %v2147_v31 = vadd.f32 %v11287_v25, %v2078_v26 }
 0x2fe   :  { %v11321_v29 = vpop.f32.mrf.mxu1 }
 0x2ff   :  { %v11322_v32 = vadd.f32 %v11321_v29, %v11320_v27 }
 0x301   :  { %v2217_v39 = vadd.f32 %v11322_v32, %v2147_v31 }
 0x303   :  { %2220 = vadd.xlane.f32.xlu0 %v2217_v39  ;;  %v2224_v56 = vmul.f32 %v2217_v39, %v2217_v39 }
 0x305   :  { %2225 = vadd.xlane.f32.xlu1 %v2224_v56  ;;  %v2943_v56 = vld [vmem:[%s14895_s10 + $0x48] sm:$0xff] }
 0x316   :  { %2241 = vperm.xlu1 %11751, %v12715_v60  }
 0x319   :  { %2236 = vperm.xlu0 %11750, %v12715_v60  }
 0x31d   :  { %2946 = vrot.lane.b32.xlu0 %v2944_v22, %s14944_s26  ;;  %s14989_s26 = smov 18  }
 0x321   :  { %2271 = vrot.lane.b32.xlu0 %v12508_v58, %s14950_s28  ;;  %s14990_s28 = smov 96  }
 0x325   :  { %2363 = vrot.lane.b32.xlu0 %v12508_v58, %s14948_s27  ;;  %s11908_s27 = smov 8  }
 0x329   :  { %2453 = vrot.lane.b32.xlu0 %v12508_v58, %s14946_s30  ;;  %s14961_s30 = smov 120  }
 0x32d   :  { %2553 = vrot.lane.b32.xlu0 %v12508_v58, %s14983_s24 }
 0x331   :  { %2647 = vrot.lane.b32.xlu0 %v12508_v58, %s14984_s23 }
 0x335   :  { %2748 = vrot.lane.b32.xlu0 %v12508_v58, %s14985_s3 }
 0x339   :  { %2849 = vrot.lane.b32.xlu0 %v12508_v58, %s14986_s0  ;;  %v2262_v58 = vld [vmem:[%s14980_s29 + $0x21] ss:$0 sm:$0xff] }
 0x38c   :  { %v2221_v38 = vpop.xlane.xlu0 %2220 }
 0x38d   :  { %v2223_v40 = vmul.f32 0.0078125, %v2221_v38 }
 0x38e   :  { %v2226_v41 = vpop.xlane.xlu1 %2225 }
 0x38f   :  { %v2228_v46 = vmul.f32 %v2223_v40, %v2223_v40  ;;  %v2227_v42 = vmul.f32 0.0078125, %v2226_v41  ;;  %v2231_v37 = vsub.f32 %v2217_v39, %v2223_v40  ;;  %v2942_v39 = vld [vmem:[%s14895_s10 + $0x10] sm:$0xff] }
 0x391   :  { %v2229_v16 = vsub.f32 %v2227_v42, %v2228_v46 }
 0x392   :  { %v2242_v36 = vpop.permute.xlu1 %2241 }
 0x393   :  { %v2230_v43 = vmax.f32 %v2229_v16, 0.0 }
 0x394   :  { %v2237_v45 = vpop.permute.xlu0 %2236 }
 0x395   :  { %v2232_v28 = vadd.f32 1e-05, %v2230_v43 }
 0x397   :  { %11770 = vrsqrt.f32 %v2232_v28 }
 0x398   :  { %v2947_v35 = vpop.permute.xlu0 %2946 }
 0x39c   :  { %v2272_v59 = vpop.permute.xlu0 %2271 }
 0x3a0   :  { %v2364_v63 = vpop.permute.xlu0 %2363 }
 0x3a4   :  { %v11771_v44 = vpop.eup %11770  ;;  %v2454_v9 = vpop.permute.xlu0 %2453 }
 0x3a5   :  { %v2234_v30 = vmul.f32 %v11771_v44, %v2231_v37 }
 0x3a7   :  { %v2239_v47 = vmul.f32 %v2237_v45, %v2234_v30 }
 0x3a8   :  { %v2554_v26 = vpop.permute.xlu0 %2553 }
 0x3a9   :  { %v2244_v33 = vadd.f32 %v2242_v36, %v2239_v47 }
 0x3ab   :  { %vm2245_vm12 = vcmp.ge.f32.partialorder %v2244_v33, 0.0  ;;  %v2246_v48 = vmul.f32 0.01, %v2244_v33 }
 0x3ac   :  { %v2648_v40 = vpop.permute.xlu0 %2647 }
 0x3ad   :  { %v2247_v49 = vsel %vm2245_vm12, %v2244_v33, %v2246_v48  ;;  %vm2283_vm12 = vcmask 64512  }
 0x3ae   :  { %2249 = vrot.lane.b32.xlu1 %v2247_v49, %s14952_s21  ;;  %11549 = vmatprep.mubr.msk.f32.mxu0 %vm2283_vm12, %v2272_v59  ;;  %s14992_s21 = smov 80  }
 0x3af   :  { %11554 = vmatprep.mubr.msk.f32.mxu1 %vm2283_vm12, %v2364_v63 }
 0x3b0   :  { %v2749_v46 = vpop.permute.xlu0 %2748 }
 0x3b2   :  { %2264 = vrot.lane.b32.xlu1 %v2262_v58, %s14987_s22 }
 0x3b4   :  { %v2850_v16 = vpop.permute.xlu0 %2849 }
 0x3b6   :  { %2448 = vrot.lane.b32.xlu1 %v2446_v51, %s14988_s25  ;;  %s15000_s25 = smov 119  }
 0x3ba   :  { %2548 = vrot.lane.b32.xlu1 %v2546_v50, %s11908_s27  ;;  %s14994_s27 = smov 126  }
 0x3be   :  { %2743 = vrot.lane.b32.xlu1 %v2741_v34, %s11909_s1  ;;  %s14957_s1 = smov 118  }
 0x3c2   :  { %2844 = vrot.lane.b32.xlu1 %v2842_v52, %s14986_s0 }
 0x3c6   :  { %3044 = vrot.lane.b32.xlu1 %v3042_v53, %s14989_s26  ;;  %s15028_s26 = smov 18  }
 0x3ca   :  { %2273 = vrot.lane.b32.xlu1 %v2257_v57, %s14990_s28 }
 0x3ce   :  { %2365 = vrot.lane.b32.xlu1 %v2257_v57, %s14991_s16 }
 0x3d2   :  { %2455 = vrot.lane.b32.xlu1 %v2257_v57, %s14992_s21 }
 0x3d6   :  { %2555 = vrot.lane.b32.xlu1 %v2257_v57, %s14983_s24 }
 0x3da   :  { %2649 = vrot.lane.b32.xlu1 %v2257_v57, %s14984_s23 }
 0x3de   :  { %2750 = vrot.lane.b32.xlu1 %v2257_v57, %s14985_s3 }
 0x3e2   :  { %2851 = vrot.lane.b32.xlu1 %v2257_v57, %s14986_s0 }
 0x420   :  { %v2250_v0 = vpop.permute.xlu1 %2249 }
 0x421   :  { %2253 = vst.msk [vmem:[#allocation3] sm:$0xff] %vm2252_vm5, %v2250_v0 }
 0x422   :  { %2255 = vst.msk [vmem:[#allocation3 + $0x8] sm:$0xff] %vm2254_vm4, %v2250_v0 }
 0x424   :  { %v2265_v3 = vpop.permute.xlu1 %2264 }
 0x428   :  { %v2258_v4 = vld [vmem:[#allocation3] sm:$0xff]  ;;  %v2449_v6 = vpop.permute.xlu1 %2448 }
 0x429   :  { %v2261_v5 = vld [vmem:[#allocation3 + $0x8] sm:$0xff]  ;;  %2653 = vrot.lane.b32.xlu1 %v2258_v4, %s14959_s2  ;;  %v2260_v11 = vmul.f32 %v2259_v1, %v2258_v4  ;;  %v2267_v2 = vmul.f32 %v2265_v3, %v2258_v4  ;;  %v2451_v18 = vmul.f32 %v2449_v6, %v2258_v4  ;;  %v2949_v27 = vmul.f32 %v2947_v35, %v2258_v4 }
 0x42a   :  { %2655 = vrot.lane.b32.xlu0 %v2261_v5, %s14959_s2  ;;  %v2268_v14 = vmul.f32 %v2265_v3, %v2261_v5  ;;  %v2452_v17 = vmul.f32 %v2449_v6, %v2261_v5  ;;  %v2950_v25 = vmul.f32 %v2947_v35, %v2261_v5  ;;  %s15003_s2 = smov 95  }
 0x42b   :  { %11552 = vmatprep.subr.mxu1 %v2260_v11 }
 0x42c   :  { %v2549_v15 = vpop.permute.xlu1 %2548  ;;  %11553 = vmatpush3.msra.mxu1 %v2260_v11  ;;  %v12826_v11 = vld [vmem:[#allocation3 + $0x10] sm:$0xff] }
 0x42d   :  { %2279 = vrot.lane.b32.xlu1 %v2268_v14, %s14993_s20  ;;  %v2552_v54 = vmul.f32 %v2549_v15, %v2261_v5  ;;  %v2551_v55 = vmul.f32 %v2549_v15, %v2258_v4  ;;  %v3156_v14 = vld [vmem:[%s14889_s4 + $0x70] sm:$0xff]  ;;  %v3155_v15 = vld [vmem:[%s14889_s4 + $0x68] sm:$0xff] }
 0x42e   :  { %2277 = vrot.lane.b32.xlu0 %v2267_v2, %s14993_s20  ;;  %v3157_v2 = vld [vmem:[%s14889_s4 + $0x78] sm:$0xff] }
 0x430   :  { %v2744_v19 = vpop.permute.xlu1 %2743 }
 0x431   :  { %2459 = vrot.lane.b32.xlu1 %v2451_v18, %s14994_s27  ;;  %v2747_v62 = vmul.f32 %v2744_v19, %v2261_v5  ;;  %v2746_v20 = vmul.f32 %v2744_v19, %v2258_v4  ;;  %v3153_v18 = vld [vmem:[%s14889_s4 + $0x58] sm:$0xff]  ;;  %v3152_v19 = vld [vmem:[%s14889_s4 + $0x50] sm:$0xff] }
 0x432   :  { %2461 = vrot.lane.b32.xlu0 %v2452_v17, %s14994_s27  ;;  %v3154_v17 = vld [vmem:[%s14889_s4 + $0x60] sm:$0xff] }
 0x434   :  { %v2845_v61 = vpop.permute.xlu1 %2844 }
 0x435   :  { %2559 = vrot.lane.b32.xlu1 %v2551_v55, %s14961_s30  ;;  %v2848_v10 = vmul.f32 %v2845_v61, %v2261_v5  ;;  %v2847_v24 = vmul.f32 %v2845_v61, %v2258_v4  ;;  %v3150_v55 = vld [vmem:[%s14889_s4 + $0x40] sm:$0xff]  ;;  %v3149_v61 = vld [vmem:[%s14889_s4 + $0x38] sm:$0xff] }
 0x436   :  { %2561 = vrot.lane.b32.xlu0 %v2552_v54, %s14961_s30  ;;  %v3151_v54 = vld [vmem:[%s14889_s4 + $0x48] sm:$0xff]  ;;  %s15004_s30 = smov 94  }
 0x438   :  { %v3045_v23 = vpop.permute.xlu1 %3044 }
 0x439   :  { %2754 = vrot.lane.b32.xlu1 %v2746_v20, %s14957_s1  ;;  %v3047_v31 = vmul.f32 %v3045_v23, %v2258_v4  ;;  %v3048_v32 = vmul.f32 %v3045_v23, %v2261_v5  ;;  %v3147_v20 = vld [vmem:[%s14889_s4 + $0x28] sm:$0xff]  ;;  %v3146_v23 = vld [vmem:[%s14889_s4 + $0x20] sm:$0xff] }
 0x43a   :  { %2756 = vrot.lane.b32.xlu0 %v2747_v62, %s14957_s1  ;;  %s14996_s1 = smov 110   ;;  %v3148_v62 = vld [vmem:[%s14889_s4 + $0x30] sm:$0xff] }
 0x43c   :  { %v2274_v21 = vpop.permute.xlu1 %2273 }
 0x43d   :  { %2855 = vrot.lane.b32.xlu1 %v2847_v24, %s14991_s16  ;;  %v3143_v24 = vld [vmem:[%s14889_s4 + $0x8] sm:$0xff] }
 0x43e   :  { %2857 = vrot.lane.b32.xlu0 %v2848_v10, %s14991_s16  ;;  %v3144_v10 = vld [vmem:[%s14889_s4 + $0x10] sm:$0xff] }
 0x440   :  { %v2366_v29 = vpop.permute.xlu1 %2365 }
 0x441   :  { %11555 = vmatmul.mubr.msk.f32.vlgmr.msra.gmra.mxu1 %vm2283_vm12, %v2366_v29  ;;  %2953 = vrot.lane.b32.xlu1 %v2949_v27, %s14995_s6 }
 0x442   :  { %2955 = vrot.lane.b32.xlu0 %v2950_v25, %s14995_s6  ;;  %11564 = vmatprep.mubr.msk.f32.mxu1 %vm2283_vm12, %v2554_v26  ;;  %v12880_v25 = vld [vmem:[%s14896_s11 + $0x8] sm:$0xff]  ;;  %v11913_v26 = vmov 3  }
 0x443   :  { %11753 = vset.pattern.permute.xlu1 %v11913_v26  ;;  %11752 = vset.pattern.permute.xlu0 %v11913_v26 }
 0x444   :  { %v2456_v22 = vpop.permute.xlu1 %2455 }
 0x445   :  { %3057 = vrot.lane.b32.xlu1 %v3048_v32, %s14996_s1 }
 0x446   :  { %3055 = vrot.lane.b32.xlu0 %v3047_v31, %s14996_s1 }
 0x448   :  { %v2556_v38 = vpop.permute.xlu1 %2555 }
 0x449   :  { %3051 = vrot.lane.b32.xlu1 %v2943_v56, %s14991_s16 }
 0x44a   :  { %3049 = vrot.lane.b32.xlu0 %v2942_v39, %s14991_s16 }
 0x44c   :  { %v2650_v41 = vpop.permute.xlu1 %2649 }
 0x44d   :  { %3167 = vperm.xlu1 %11753, %v12880_v25  }
 0x44e   :  { %3162 = vperm.xlu0 %11752, %v12715_v60  }
 0x450   :  { %v2751_v42 = vpop.permute.xlu1 %2750 }
 0x454   :  { %v2852_v43 = vpop.permute.xlu1 %2851 }
 0x49b   :  { %v2654_v37 = vpop.permute.xlu1 %2653 }
 0x49c   :  { %v2656_v28 = vpop.permute.xlu0 %2655 }
 0x49d   :  { %v2658_v49 = vsel %vm2657_vm2, %v2654_v37, %v2656_v28 }
 0x49f   :  { %v2280_v45 = vpop.permute.xlu1 %2279 }
 0x4a0   :  { %v2278_v44 = vpop.permute.xlu0 %2277 }
 0x4a1   :  { %v2281_v30 = vsel %vm205_vm10, %v2278_v44, %v2280_v45 }
 0x4a2   :  { %11547 = vmatprep.subr.mxu0 %v2281_v30 }
 0x4a3   :  { %11548 = vmatpush3.msra.mxu0 %v2281_v30  ;;  %v2460_v47 = vpop.permute.xlu1 %2459 }
 0x4a4   :  { %v2462_v36 = vpop.permute.xlu0 %2461  ;;  %11550 = vmatmul.mubr.msk.f32.vlgmr.msra.gmra.mxu0 %vm2283_vm12, %v2274_v21  ;;  %v3142_v21 = vld [vmem:[%s14889_s4] sm:$0xff] }
 0x4a5   :  { %11559 = vmatprep.mubr.msk.f32.mxu0 %vm2283_vm12, %v2454_v9  ;;  %v2463_v33 = vsel %vm578_vm13, %v2460_v47, %v2462_v36  ;;  %v3145_v9 = vld [vmem:[%s14889_s4 + $0x18] sm:$0xff]  ;;  %s15002_s4 = smov 17  }
 0x4a6   :  { %11557 = vmatprep.subr.mxu0 %v2463_v33 }
 0x4a7   :  { %11558 = vmatpush3.msra.mxu0 %v2463_v33  ;;  %v2560_v58 = vpop.permute.xlu1 %2559 }
 0x4a8   :  { %v2562_v48 = vpop.permute.xlu0 %2561  ;;  %11560 = vmatmul.mubr.msk.f32.vlgmr.msra.gmra.mxu0 %vm2283_vm12, %v2456_v22  ;;  %11567 = vmatprep.subr.mxu0 %v2658_v49 }
 0x4a9   :  { %11568 = vmatpush3.msra.mxu0 %v2658_v49  ;;  %11569 = vmatprep.mubr.msk.f32.mxu0 %vm2283_vm12, %v2648_v40  ;;  %v2564_v51 = vsel %vm2563_vm11, %v2560_v58, %v2562_v48 }
 0x4aa   :  { %11562 = vmatprep.subr.mxu1 %v2564_v51 }
 0x4ab   :  { %11563 = vmatpush3.msra.mxu1 %v2564_v51  ;;  %v2755_v34 = vpop.permute.xlu1 %2754 }
 0x4ac   :  { %v2757_v50 = vpop.permute.xlu0 %2756  ;;  %11565 = vmatmul.mubr.msk.f32.vlgmr.msra.gmra.mxu1 %vm2283_vm12, %v2556_v38  ;;  %11570 = vmatmul.mubr.msk.f32.vlgmr.msra.gmra.mxu0 %vm2283_vm12, %v2650_v41 }
 0x4ad   :  { %11574 = vmatprep.mubr.msk.f32.mxu1 %vm2283_vm12, %v2749_v46  ;;  %11579 = vmatprep.mubr.msk.f32.mxu0 %vm2283_vm12, %v2850_v16  ;;  %v2759_v52 = vsel %vm2758_vm6, %v2755_v34, %v2757_v50 }
 0x4ae   :  { %11572 = vmatprep.subr.mxu1 %v2759_v52 }
 0x4af   :  { %11573 = vmatpush3.msra.mxu1 %v2759_v52  ;;  %v2856_v35 = vpop.permute.xlu1 %2855 }
 0x4b0   :  { %v2858_v53 = vpop.permute.xlu0 %2857  ;;  %11575 = vmatmul.mubr.msk.f32.vlgmr.msra.gmra.mxu1 %vm2283_vm12, %v2751_v42 }
 0x4b1   :  { %v2859_v57 = vsel %vm797_vm14, %v2856_v35, %v2858_v53  ;;  %11584 = vmatprep.mubr.msk.f32.mxu1 %vm2283_vm12, %v2942_v39 }
 0x4b2   :  { %11577 = vmatprep.subr.mxu0 %v2859_v57 }
 0x4b3   :  { %11578 = vmatpush3.msra.mxu0 %v2859_v57  ;;  %v2954_v63 = vpop.permute.xlu1 %2953 }
 0x4b4   :  { %v2956_v59 = vpop.permute.xlu0 %2955  ;;  %11580 = vmatmul.mubr.msk.f32.vlgmr.msra.gmra.mxu0 %vm2283_vm12, %v2852_v43 }
 0x4b5   :  { %v2957_v0 = vsel %vm975_vm15, %v2954_v63, %v2956_v59 }
 0x4b6   :  { %11582 = vmatprep.subr.mxu1 %v2957_v0 }
 0x4b7   :  { %11583 = vmatpush3.msra.mxu1 %v2957_v0  ;;  %v3058_v1 = vpop.permute.xlu1 %3057  ;;  %v11914_v0 = vmov 5  }
 0x4b8   :  { %v3056_v3 = vpop.permute.xlu0 %3055  ;;  %11585 = vmatmul.mubr.msk.f32.vlgmr.msra.gmra.mxu1 %vm2283_vm12, %v2943_v56  ;;  %11592 = vmatprep.subr.mxu1 %v3157_v2 }
 0x4b9   :  { %v3059_v4 = vsel %vm1193_vm0, %v3056_v3, %v3058_v1  ;;  %11593 = vmatpush3.msra.mxu1 %v3157_v2  ;;  %11755 = vset.pattern.permute.xlu1 %v11914_v0  ;;  %v11915_v3 = vmov 4  }
 0x4ba   :  { %11587 = vmatprep.subr.mxu0 %v3059_v4  ;;  %11594 = vmatprep.subr.mxu1 %v3156_v14 }
 0x4bb   :  { %11588 = vmatpush3.msra.mxu0 %v3059_v4  ;;  %v3052_v6 = vpop.permute.xlu1 %3051  ;;  %11595 = vmatpush3.msra.mxu1 %v3156_v14 }
 0x4bc   :  { %v3050_v5 = vpop.permute.xlu0 %3049  ;;  %11596 = vmatprep.subr.mxu1 %v3155_v15  ;;  %11754 = vset.pattern.permute.xlu0 %v11915_v3 }
 0x4bd   :  { %11589 = vmatprep.mubr.msk.f32.mxu0 %vm2283_vm12, %v3050_v5  ;;  %11597 = vmatpush3.msra.mxu1 %v3155_v15 }
 0x4be   :  { %11590 = vmatmul.mubr.msk.f32.vlgmr.msra.gmra.mxu0 %vm2283_vm12, %v3052_v6  ;;  %11598 = vmatprep.subr.mxu1 %v3154_v17 }
 0x4bf   :  { %3450 = vmatprep.mubr.f32.mxu0 %v12826_v11  ;;  %11599 = vmatpush3.msra.mxu1 %v3154_v17 }
 0x4c0   :  { %11600 = vmatprep.subr.mxu1 %v3153_v18 }
 0x4c1   :  { %11601 = vmatpush3.msra.mxu1 %v3153_v18 }
 0x4c2   :  { %11602 = vmatprep.subr.mxu1 %v3152_v19 }
 0x4c3   :  { %11603 = vmatpush3.msra.mxu1 %v3152_v19 }
 0x4c4   :  { %11604 = vmatprep.subr.mxu1 %v3151_v54 }
 0x4c5   :  { %11605 = vmatpush3.msra.mxu1 %v3151_v54 }
 0x4c6   :  { %11606 = vmatprep.subr.mxu1 %v3150_v55 }
 0x4c7   :  { %11607 = vmatpush3.msra.mxu1 %v3150_v55 }
 0x4c8   :  { %11608 = vmatprep.subr.mxu1 %v3149_v61  ;;  %v3168_v1 = vpop.permute.xlu1 %3167 }
 0x4c9   :  { %11609 = vmatpush3.msra.mxu1 %v3149_v61  ;;  %v3163_v5 = vpop.permute.xlu0 %3162  ;;  %v12896_v61 = vld [vmem:[%s14892_s7 + $0x18] sm:$0xff] }
 0x4ca   :  { %11610 = vmatprep.subr.mxu1 %v3148_v62  ;;  %3414 = vmatprep.subr.mxu0 %v12896_v61 }
 0x4cb   :  { %11611 = vmatpush3.msra.mxu1 %v3148_v62  ;;  %v12902_v62 = vld [vmem:[%s14892_s7 + $0x10] sm:$0xff] }
 0x4cc   :  { %11612 = vmatprep.subr.mxu1 %v3147_v20  ;;  %3415 = vmatpush1.msra.mxu0 %v12902_v62 }
 0x4cd   :  { %11613 = vmatpush3.msra.mxu1 %v3147_v20  ;;  %v12913_v20 = vld [vmem:[%s14892_s7] sm:$0xff] }
 0x4ce   :  { %11614 = vmatprep.subr.mxu1 %v3146_v23 }
 0x4cf   :  { %11615 = vmatpush3.msra.mxu1 %v3146_v23 }
 0x4d0   :  { %11616 = vmatprep.subr.mxu1 %v3145_v9 }
 0x4d1   :  { %11617 = vmatpush3.msra.mxu1 %v3145_v9 }
 0x4d2   :  { %11618 = vmatprep.subr.mxu1 %v3144_v10 }
 0x4d3   :  { %11619 = vmatpush3.msra.mxu1 %v3144_v10 }
 0x4d4   :  { %11620 = vmatprep.subr.mxu1 %v3143_v24 }
 0x4d5   :  { %11621 = vmatpush3.msra.mxu1 %v3143_v24 }
 0x4d6   :  { %11622 = vmatprep.subr.mxu1 %v3142_v21 }
 0x4d7   :  { %11623 = vmatpush3.msra.mxu1 %v3142_v21 }
 0x501   :  { %v11556_v29 = vpop.f32.mrf.mxu1 }
 0x503   :  { %v2437_v39 = vpop.f32.mrf.mxu1 }
 0x564   :  { %v11551_v27 = vpop.f32.mrf.mxu0 }
 0x565   :  { %v2443_v41 = vadd.f32 %v11556_v29, %v11551_v27 }
 0x566   :  { %v2354_v31 = vpop.f32.mrf.mxu0 }
 0x567   :  { %v2438_v38 = vadd.f32 %v2437_v39, %v2354_v31 }
 0x568   :  { %v11561_v32 = vpop.f32.mrf.mxu0 }
 0x569   :  { %v2545_v16 = vadd.f32 %v11561_v32, %v2443_v41 }
 0x56a   :  { %v2535_v56 = vpop.f32.mrf.mxu0 }
 0x56b   :  { %v2544_v42 = vadd.f32 %v2535_v56, %v2438_v38 }
 0x56c   :  { %v11566_v22 = vpop.f32.mrf.mxu1  ;;  %v11571_v46 = vpop.f32.mrf.mxu0 }
 0x56d   :  { %v2646_v37 = vadd.f32 %v11566_v22, %v2545_v16 }
 0x56e   :  { %v2636_v40 = vpop.f32.mrf.mxu1  ;;  %v2730_v44 = vpop.f32.mrf.mxu0 }
 0x56f   :  { %v2645_v43 = vadd.f32 %v2636_v40, %v2544_v42  ;;  %v2740_v47 = vadd.f32 %v11571_v46, %v2646_v37 }
 0x570   :  { %v11576_v28 = vpop.f32.mrf.mxu1 }
 0x571   :  { %v2739_v30 = vadd.f32 %v2730_v44, %v2645_v43  ;;  %v2841_v58 = vadd.f32 %v11576_v28, %v2740_v47  ;;  %v12920_v28 = vld [vmem:[%s14897_s12 + $0xf8] sm:$0xff] }
 0x572   :  { %v2831_v36 = vpop.f32.mrf.mxu1 }
 0x573   :  { %v2840_v49 = vadd.f32 %v2831_v36, %v2739_v30 }
 0x574   :  { %v11581_v45 = vpop.f32.mrf.mxu0 }
 0x575   :  { %v2941_v34 = vadd.f32 %v11581_v45, %v2841_v58 }
 0x576   :  { %v2931_v48 = vpop.f32.mrf.mxu0 }
 0x577   :  { %v2940_v50 = vadd.f32 %v2931_v48, %v2840_v49 }
 0x578   :  { %v11586_v33 = vpop.f32.mrf.mxu1 }
 0x579   :  { %v3041_v35 = vadd.f32 %v11586_v33, %v2941_v34 }
 0x57a   :  { %v3031_v51 = vpop.f32.mrf.mxu1 }
 0x57b   :  { %v3040_v53 = vadd.f32 %v3031_v51, %v2940_v50  ;;  %v12926_v51 = vld [vmem:[%s14897_s12 + $0x78] sm:$0xff] }
 0x57e   :  { %v11591_v52 = vpop.f32.mrf.mxu0 }
 0x57f   :  { %v3141_v63 = vadd.f32 %v11591_v52, %v3041_v35  ;;  %v12931_v52 = vld [vmem:[%s14897_s12 + $0xf0] sm:$0xff]  ;;  %v12946_v35 = vld [vmem:[%s14897_s12 + $0xe8] sm:$0xff] }
 0x580   :  { %v3131_v57 = vpop.f32.mrf.mxu0 }
 0x581   :  { %v3140_v59 = vadd.f32 %v3131_v57, %v3040_v53  ;;  %v12938_v53 = vld [vmem:[%s14897_s12 + $0x70] sm:$0xff] }
 0x583   :  { %11624 = vmatprep.mubr.f32.mxu1 %v3140_v59  ;;  %v12952_v59 = vld [vmem:[%s14897_s12 + $0x68] sm:$0xff] }
 0x584   :  { %11625 = vmatmul.mubr.f32.vlgmr.msra.gmra.mxu1 %v3141_v63  ;;  %v12959_v63 = vld [vmem:[%s14897_s12 + $0xe0] sm:$0xff] }
 0x585   :  { %3647 = vmatprep.mubr.f32.mxu1 %v12826_v11 }
 0x644   :  { %v11626_v4 = vpop.f32.mrf.mxu1 }
 0x645   :  { %v3242_v6 = vadd.f32 %v11626_v4, %v3168_v1  ;;  %v12978_v1 = vld [vmem:[%s14897_s12 + $0x58] sm:$0xff]  ;;  %v12985_v4 = vld [vmem:[%s14897_s12 + $0xd0] sm:$0xff] }
 0x646   :  { %v3236_v2 = vpop.f32.mrf.mxu1 }
 0x647   :  { %v3237_v14 = vadd.f32 %v3236_v2, %v3163_v5  ;;  %v3248_v15 = vsel %vm1381_vm8, %v3242_v6, 0.0  ;;  %v3255_v19 = vmul.f32 %v3242_v6, %v3242_v6  ;;  %v12990_v5 = vld [vmem:[%s14897_s12 + $0x50] sm:$0xff]  ;;  %v13003_v2 = vld [vmem:[%s14897_s12 + $0x48] sm:$0xff] }
 0x648   :  { %3249 = vadd.xlane.f32.xlu0 %v3248_v15  ;;  %v13015_v15 = vld [vmem:[%s14897_s12 + $0x40] sm:$0xff] }
 0x649   :  { %v3245_v17 = vsel %vm1381_vm8, %v3237_v14, 0.0  ;;  %v3254_v18 = vmul.f32 %v3237_v14, %v3237_v14  ;;  %v3259_v55 = vsel %vm1381_vm8, %v3255_v19, 0.0  ;;  %v13033_v19 = vld [vmem:[%s14897_s12 + $0xb0] sm:$0xff] }
 0x64a   :  { %3246 = vadd.xlane.f32.xlu1 %v3245_v17  ;;  %v13021_v17 = vld [vmem:[%s14897_s12 + $0xb8] sm:$0xff] }
 0x64b   :  { %v3256_v54 = vsel %vm1381_vm8, %v3254_v18, 0.0  ;;  %v13027_v18 = vld [vmem:[%s14897_s12 + $0x38] sm:$0xff] }
 0x64c   :  { %3257 = vadd.xlane.f32.xlu0 %v3256_v54  ;;  %v13039_v54 = vld [vmem:[%s14897_s12 + $0x30] sm:$0xff] }
 0x64e   :  { %3260 = vadd.xlane.f32.xlu1 %v3259_v55  ;;  %v13045_v55 = vld [vmem:[%s14897_s12 + $0xa8] sm:$0xff] }
 0x65f   :  { %3289 = vperm.xlu1 %11755, %v12715_v60  }
 0x662   :  { %3279 = vperm.xlu0 %11754, %v12715_v60   ;;  %v12908_v60 = vld [vmem:[%s14892_s7 + $0x8] sm:$0xff] }
 0x663   :  { %11756 = vset.pattern.permute.xlu1 %v11915_v3  ;;  %3416 = vmatprep.subr.mxu0 %v12908_v60  ;;  %v12973_v3 = vld [vmem:[%s14897_s12 + $0xd8] sm:$0xff] }
 0x664   :  { %3283 = vperm.xlu1 %11756, %v12880_v25   ;;  %3417 = vmatpush1.msra.mxu0 %v12913_v20 }
 0x665   :  { %11368 = vmatprep.subr.mxu0 %v12920_v28 }
 0x668   :  { %11757 = vset.pattern.permute.xlu1 %v11914_v0  ;;  %v12965_v0 = vld [vmem:[%s14897_s12 + $0x60] sm:$0xff] }
 0x669   :  { %3293 = vperm.xlu1 %11757, %v12880_v25  }
 0x6d1   :  { %v3250_v23 = vpop.xlane.xlu0 %3249 }
 0x6d2   :  { %v3253_v10 = vmul.f32 0.03125, %v3250_v23  ;;  %v13051_v23 = vld [vmem:[%s14897_s12 + $0x28] sm:$0xff] }
 0x6d3   :  { %v3247_v9 = vpop.xlane.xlu1 %3246 }
 0x6d4   :  { %v3252_v24 = vmul.f32 0.03125, %v3247_v9  ;;  %v3265_v29 = vmul.f32 %v3253_v10, %v3253_v10  ;;  %v3271_v37 = vsub.f32 %v3242_v6, %v3253_v10  ;;  %v12997_v6 = vld [vmem:[%s14897_s12 + $0xc8] sm:$0xff]  ;;  %v13057_v9 = vld [vmem:[%s14897_s12 + $0xa0] sm:$0xff] }
 0x6d5   :  { %v3258_v21 = vpop.xlane.xlu0 %3257  ;;  %v13063_v10 = vld [vmem:[%s14897_s12 + $0x20] sm:$0xff] }
 0x6d6   :  { %v3264_v25 = vmul.f32 %v3252_v24, %v3252_v24  ;;  %v3262_v26 = vmul.f32 0.03125, %v3258_v21  ;;  %v3270_v42 = vsub.f32 %v3237_v14, %v3252_v24  ;;  %v13009_v14 = vld [vmem:[%s14897_s12 + $0xc0] sm:$0xff]  ;;  %v13069_v24 = vld [vmem:[%s14897_s12 + $0x98] sm:$0xff] }
 0x6d7   :  { %v3261_v27 = vpop.xlane.xlu1 %3260  ;;  %v13075_v21 = vld [vmem:[%s14897_s12 + $0x18] sm:$0xff] }
 0x6d8   :  { %v3266_v31 = vsub.f32 %v3262_v26, %v3264_v25  ;;  %v3263_v32 = vmul.f32 0.03125, %v3261_v27  ;;  %v13081_v25 = vld [vmem:[%s14897_s12 + $0x90] sm:$0xff]  ;;  %v13091_v27 = vld [vmem:[%s14897_s12 + $0x88] sm:$0xff] }
 0x6d9   :  { %v13086_v26 = vld [vmem:[%s14897_s12 + $0x10] sm:$0xff] }
 0x6da   :  { %v3268_v39 = vmax.f32 %v3266_v31, 0.0  ;;  %v3267_v56 = vsub.f32 %v3263_v32, %v3265_v29  ;;  %v13097_v29 = vld [vmem:[%s14897_s12 + $0x8] sm:$0xff]  ;;  %v13103_v31 = vld [vmem:[%s14897_s12 + $0x80] sm:$0xff] }
 0x6db   :  { %v3290_v41 = vpop.permute.xlu1 %3289  ;;  %v13109_v32 = vld [vmem:[%s14897_s12] sm:$0xff]  ;;  %s14998_s12 = sld [smem:[#allocation17_spill]] }
 0x6dc   :  { %v3272_v22 = vadd.f32 1e-05, %v3268_v39  ;;  %v3269_v38 = vmax.f32 %v3267_v56, 0.0  ;;  %v13118_v56 = vld [vmem:[%s14894_s9] sm:$0xff] }
 0x6dd   :  { %v3280_v43 = vpop.permute.xlu0 %3279 }
 0x6de   :  { %11772 = vrsqrt.f32 %v3272_v22  ;;  %v3273_v40 = vadd.f32 1e-05, %v3269_v38  ;;  %v13123_v38 = vld [vmem:[%s14894_s9 + $0x10] sm:$0xff] }
 0x6df   :  { %v3284_v46 = vpop.permute.xlu1 %3283 }
 0x6e0   :  { %11774 = vrsqrt.f32 %v3273_v40  ;;  %v13128_v40 = vld [vmem:[%s14894_s9 + $0x8] sm:$0xff] }
 0x6e4   :  { %v3294_v47 = vpop.permute.xlu1 %3293 }
 0x6eb   :  { %v11773_v16 = vpop.eup %11772 }
 0x6ec   :  { %v3276_v44 = vmul.f32 %v11773_v16, %v3270_v42 }
 0x6ed   :  { %v11775_v45 = vpop.eup %11774 }
 0x6ee   :  { %v3286_v30 = vmul.f32 %v3280_v43, %v3276_v44  ;;  %v3277_v36 = vmul.f32 %v11775_v45, %v3271_v37 }
 0x6f0   :  { %v3296_v33 = vadd.f32 %v3290_v41, %v3286_v30  ;;  %v3287_v48 = vmul.f32 %v3284_v46, %v3277_v36 }
 0x6f2   :  { %v3297_v49 = vadd.f32 %v3294_v47, %v3287_v48  ;;  %vm3298_vm1 = vcmp.ge.f32.partialorder %v3296_v33, 0.0  ;;  %v3300_v58 = vmul.f32 0.01, %v3296_v33 }
 0x6f4   :  { %v3301_v50 = vmul.f32 0.01, %v3297_v49  ;;  %v3302_v34 = vsel %vm3298_vm1, %v3296_v33, %v3300_v58  ;;  %vm3299_vm9 = vcmp.ge.f32.partialorder %v3297_v49, 0.0  ;;  %vm14970_vm1 = vcmask 57344  }
 0x6f5   :  { %3743 = vrot.lane.b32.xlu1 %v3302_v34, %s14991_s16  ;;  %11089 = vmatmul.mubr.msk.f32.vlgmr.msra.gmra.mxu0 %vm766_vm7, %v3302_v34 }
 0x6f6   :  { %3456 = vmatprep.mubr.f32.mxu0 %v12826_v11  ;;  %11369 = vmatpush3.msra.mxu0 %v12926_v51  ;;  %v3303_v57 = vsel %vm3299_vm9, %v3297_v49, %v3301_v50  ;;  %vm4102_vm9 = vcmask 261248  }
 0x6f7   :  { %11370 = vmatprep.subr.mxu0 %v12931_v52 }
 0x6f8   :  { %11371 = vmatpush3.msra.mxu0 %v12938_v53 }
 0x6f9   :  { %3745 = vrot.lane.b32.xlu1 %v3303_v57, %s14991_s16  ;;  %11090 = vmatmul.mubr.msk.f32.gmra.mxu0 %vm766_vm7, %v3303_v57 }
 0x6fa   :  { %11372 = vmatprep.subr.mxu0 %v12946_v35 }
 0x6fb   :  { %11373 = vmatpush3.msra.mxu0 %v12952_v59 }
 0x6fc   :  { %11374 = vmatprep.subr.mxu0 %v12959_v63 }
 0x6fd   :  { %11375 = vmatpush3.msra.mxu0 %v12965_v0 }
 0x6fe   :  { %11376 = vmatprep.subr.mxu0 %v12973_v3 }
 0x6ff   :  { %11377 = vmatpush3.msra.mxu0 %v12978_v1 }
 0x700   :  { %11378 = vmatprep.subr.mxu0 %v12985_v4 }
 0x701   :  { %11379 = vmatpush3.msra.mxu0 %v12990_v5 }
 0x702   :  { %11380 = vmatprep.subr.mxu0 %v12997_v6 }
 0x703   :  { %11381 = vmatpush3.msra.mxu0 %v13003_v2 }
 0x704   :  { %11382 = vmatprep.subr.mxu0 %v13009_v14 }
 0x705   :  { %11383 = vmatpush3.msra.mxu0 %v13015_v15 }
 0x706   :  { %11384 = vmatprep.subr.mxu0 %v13021_v17 }
 0x707   :  { %11385 = vmatpush3.msra.mxu0 %v13027_v18 }
 0x708   :  { %11386 = vmatprep.subr.mxu0 %v13033_v19 }
 0x709   :  { %11387 = vmatpush3.msra.mxu0 %v13039_v54 }
 0x70a   :  { %11388 = vmatprep.subr.mxu0 %v13045_v55 }
 0x70b   :  { %11389 = vmatpush3.msra.mxu0 %v13051_v23 }
 0x70c   :  { %11390 = vmatprep.subr.mxu0 %v13057_v9 }
 0x70d   :  { %11391 = vmatpush3.msra.mxu0 %v13063_v10 }
 0x70e   :  { %11392 = vmatprep.subr.mxu0 %v13069_v24 }
 0x70f   :  { %11393 = vmatpush3.msra.mxu0 %v13075_v21 }
 0x710   :  { %11394 = vmatprep.subr.mxu0 %v13081_v25 }
 0x711   :  { %11395 = vmatpush3.msra.mxu0 %v13086_v26 }
 0x712   :  { %11396 = vmatprep.subr.mxu0 %v13091_v27 }
 0x713   :  { %11397 = vmatpush3.msra.mxu0 %v13097_v29 }
 0x714   :  { %11398 = vmatprep.subr.mxu0 %v13103_v31 }
 0x715   :  { %11399 = vmatpush3.msra.mxu0 %v13109_v32 }
 0x716   :  { %3779 = vmatprep.subr.mxu0 %v12896_v61  ;;  %v13133_v61 = vld [vmem:[%s14894_s9 + $0x18] sm:$0xff]  ;;  %s15027_s9 = smov 2  }
 0x7b5   :  { %v3452_v39 = vpop.f32.mrf.mxu0 }
 0x7b6   :  { %v3463_v46 = vmul.f32 %v3452_v39, %v13118_v56 }
 0x7b7   :  { %v3454_v22 = vpop.f32.mrf.mxu0 }
 0x7b8   :  { %v3464_v43 = vmul.f32 %v3454_v22, %v13128_v40  ;;  %v3322_v22 = vld [vmem:[%s14893_s8 + $0x70] sm:$0xff] }
 0x7b9   :  { %v3458_v41 = vpop.f32.mrf.mxu0 }
 0x7ba   :  { %v3465_v42 = vmul.f32 %v3458_v41, %v13123_v38  ;;  %v3744_v41 = vpop.permute.xlu1 %3743 }
 0x7bb   :  { %v3460_v16 = vpop.f32.mrf.mxu0 }
 0x7bc   :  { %v3467_v37 = vadd.f32 %v3465_v42, %v3463_v46  ;;  %v3466_v44 = vmul.f32 %v3460_v16, %v13133_v61  ;;  %v3337_v46 = vld [vmem:[%s14893_s8 + $0xe8] sm:$0xff]  ;;  %v3336_v16 = vld [vmem:[%s14893_s8 + $0xe0] sm:$0xff] }
 0x7bd   :  { %v3321_v42 = vld [vmem:[%s14893_s8 + $0x68] sm:$0xff] }
 0x7be   :  { %v3468_v45 = vrot.slane %v3467_v37, 4  ;;  %v3474_v30 = vadd.f32 %v3466_v44, %v3464_v43  ;;  %v3320_v43 = vld [vmem:[%s14893_s8 + $0x60] sm:$0xff]  ;;  %v3319_v44 = vld [vmem:[%s14893_s8 + $0x58] sm:$0xff] }
 0x7c0   :  { %v3469_v36 = vadd.f32 %v3468_v45, %v3467_v37  ;;  %v3475_v47 = vrot.slane %v3474_v30, 4  ;;  %v3335_v37 = vld [vmem:[%s14893_s8 + $0xd8] sm:$0xff]  ;;  %v3334_v45 = vld [vmem:[%s14893_s8 + $0xd0] sm:$0xff] }
 0x7c2   :  { %v3470_v33 = vrot.slane %v3469_v36, 2  ;;  %v3476_v48 = vadd.f32 %v3475_v47, %v3474_v30  ;;  %v3318_v30 = vld [vmem:[%s14893_s8 + $0x50] sm:$0xff]  ;;  %v3317_v47 = vld [vmem:[%s14893_s8 + $0x48] sm:$0xff] }
 0x7c4   :  { %v3471_v49 = vadd.f32 %v3470_v33, %v3469_v36  ;;  %v3477_v58 = vrot.slane %v3476_v48, 2  ;;  %v3333_v36 = vld [vmem:[%s14893_s8 + $0xc8] sm:$0xff]  ;;  %v3332_v33 = vld [vmem:[%s14893_s8 + $0xc0] sm:$0xff] }
 0x7c6   :  { %v3478_v50 = vadd.f32 %v3477_v58, %v3476_v48  ;;  %v3472_v34 = vrot.slane %v3471_v49, 1  ;;  %v3316_v48 = vld [vmem:[%s14893_s8 + $0x40] sm:$0xff]  ;;  %v3315_v58 = vld [vmem:[%s14893_s8 + $0x38] sm:$0xff] }
 0x7c8   :  { %v3479_v57 = vrot.slane %v3478_v50, 1  ;;  %v3473_v12 = vadd.f32 %v3472_v34, %v3471_v49  ;;  %v3331_v49 = vld [vmem:[%s14893_s8 + $0xb8] sm:$0xff]  ;;  %v3314_v34 = vld [vmem:[%s14893_s8 + $0x30] sm:$0xff] }
 0x7ca   :  { %v3480_v39 = vadd.f32 %v3479_v57, %v3478_v50  ;;  %v3330_v50 = vld [vmem:[%s14893_s8 + $0xb0] sm:$0xff]  ;;  %v3551_v57 = vld [vmem:[%s14998_s12] sm:$0x1] }
 0x7cc   :  { %3545 = vmatprep.mubr.f32.mxu0 %v3480_v39  ;;  %v3329_v39 = vld [vmem:[%s14893_s8 + $0xa8] sm:$0xff] }
 0x7cd   :  { %3546 = vmatmul.mubr.f32.vlgmr.msra.gmra.mxu0 %v3473_v12  ;;  %v3746_v12 = vpop.permute.xlu1 %3745 }
 0x7ce   :  { %3780 = vmatpush1.msra.mxu0 %v12902_v62  ;;  %3815 = vmatprep.mubr.f32.mxu0 %v12826_v11 }
 0x7cf   :  { %3781 = vmatprep.subr.mxu0 %v12908_v60  ;;  %v13181_v60 = vld [vmem:[%s14898_s13] sm:$0x1]  ;;  %s15030_s13 = smov 34  }
 0x7d0   :  { %3782 = vmatpush1.msra.mxu0 %v12913_v20 }
 0x7d1   :  { %11092 = vmatmul.mubr.msk.f32.vlgmr.msra.gmra.mxu0 %vm766_vm7, %v3744_v41  ;;  %11441 = vmatprep.subr.mxu0 %v12920_v28  ;;  %v3313_v41 = vld [vmem:[%s14893_s8 + $0x28] sm:$0xff] }
 0x7d2   :  { %3821 = vmatprep.mubr.f32.mxu0 %v12826_v11  ;;  %11442 = vmatpush3.msra.mxu0 %v12926_v51 }
 0x7d3   :  { %11443 = vmatprep.subr.mxu0 %v12931_v52 }
 0x7d4   :  { %11444 = vmatpush3.msra.mxu0 %v12938_v53 }
 0x7d5   :  { %11093 = vmatmul.mubr.msk.f32.gmra.mxu0 %vm766_vm7, %v3746_v12  ;;  %11445 = vmatprep.subr.mxu0 %v12946_v35 }
 0x7d6   :  { %11446 = vmatpush3.msra.mxu0 %v12952_v59 }
 0x7d7   :  { %11447 = vmatprep.subr.mxu0 %v12959_v63 }
 0x7d8   :  { %11448 = vmatpush3.msra.mxu0 %v12965_v0 }
 0x7d9   :  { %11449 = vmatprep.subr.mxu0 %v12973_v3 }
 0x7da   :  { %11450 = vmatpush3.msra.mxu0 %v12978_v1 }
 0x7db   :  { %11451 = vmatprep.subr.mxu0 %v12985_v4 }
 0x7dc   :  { %11452 = vmatpush3.msra.mxu0 %v12990_v5 }
 0x7dd   :  { %11453 = vmatprep.subr.mxu0 %v12997_v6 }
 0x7de   :  { %11454 = vmatpush3.msra.mxu0 %v13003_v2 }
 0x7df   :  { %11455 = vmatprep.subr.mxu0 %v13009_v14 }
 0x7e0   :  { %11456 = vmatpush3.msra.mxu0 %v13015_v15  ;;  %v13196_v15 = vld [vmem:[%s14899_s14 + $0x8] sm:$0xff] }
 0x7e1   :  { %11457 = vmatprep.subr.mxu0 %v13021_v17  ;;  %v13201_v17 = vld [vmem:[%s14899_s14] sm:$0xff]  ;;  %3613 = vmatprep.subr.mxu1 %v13196_v15 }
 0x7e2   :  { %11458 = vmatpush3.msra.mxu0 %v13027_v18  ;;  %3614 = vmatpush1.msra.mxu1 %v13201_v17 }
 0x7e3   :  { %11459 = vmatprep.subr.mxu0 %v13033_v19 }
 0x7e4   :  { %11460 = vmatpush3.msra.mxu0 %v13039_v54 }
 0x7e5   :  { %11461 = vmatprep.subr.mxu0 %v13045_v55 }
 0x7e6   :  { %11462 = vmatpush3.msra.mxu0 %v13051_v23 }
 0x7e7   :  { %11463 = vmatprep.subr.mxu0 %v13057_v9 }
 0x7e8   :  { %11464 = vmatpush3.msra.mxu0 %v13063_v10 }
 0x7e9   :  { %11465 = vmatprep.subr.mxu0 %v13069_v24 }
 0x7ea   :  { %11466 = vmatpush3.msra.mxu0 %v13075_v21 }
 0x7eb   :  { %11467 = vmatprep.subr.mxu0 %v13081_v25 }
 0x7ec   :  { %11468 = vmatpush3.msra.mxu0 %v13086_v26 }
 0x7ed   :  { %11469 = vmatprep.subr.mxu0 %v13091_v27 }
 0x7ee   :  { %11470 = vmatpush3.msra.mxu0 %v13097_v29  ;;  %v3339_v29 = vld [vmem:[%s14893_s8 + $0xf8] sm:$0xff] }
 0x7ef   :  { %11471 = vmatprep.subr.mxu0 %v13103_v31  ;;  %11403 = vmatprep.subr.mxu1 %v3339_v29  ;;  %v3323_v31 = vld [vmem:[%s14893_s8 + $0x78] sm:$0xff] }
 0x7f0   :  { %11472 = vmatpush3.msra.mxu0 %v13109_v32  ;;  %v3338_v32 = vld [vmem:[%s14893_s8 + $0xf0] sm:$0xff] }
 0x7f1   :  { %11476 = vmatprep.subr.mxu0 %v3339_v29 }
 0x88d   :  { %v11400_v62 = vpop.f32.mrf.mxu0 }
 0x88f   :  { %v11401_v20 = vpop.f32.mrf.mxu0 }
 0x890   :  { %v11402_v28 = vadd.f32 %v11401_v20, %v11400_v62 }
 0x891   :  { %v3817_v51 = vpop.f32.mrf.mxu0 }
 0x892   :  { %v13184_v52 = vadd.f32 %v11402_v28, %v13181_v60  ;;  %v3828_v0 = vmul.f32 %v3817_v51, %v13118_v56  ;;  %v3328_v28 = vld [vmem:[%s14893_s8 + $0xa0] sm:$0xff] }
 0x893   :  { %v3819_v53 = vpop.f32.mrf.mxu0  ;;  %v3312_v51 = vld [vmem:[%s14893_s8 + $0x20] sm:$0xff] }
 0x894   :  { %v3552_v35 = vmul.f32 0.5, %v13184_v52  ;;  %3562 = vst.msk [vmem:[#allocation9] sm:$0x1] %vm14970_vm1, %v13184_v52  ;;  %v3829_v4 = vmul.f32 %v3819_v53, %v13128_v40  ;;  %v3327_v53 = vld [vmem:[%s14893_s8 + $0x98] sm:$0xff] }
 0x895   :  { %v3823_v59 = vpop.f32.mrf.mxu0 }
 0x896   :  { %v3553_v63 = vmul.f32 1.442695, %v3552_v35  ;;  %v3830_v3 = vmul.f32 %v3823_v59, %v13123_v38  ;;  %v3311_v35 = vld [vmem:[%s14893_s8 + $0x18] sm:$0xff]  ;;  %v3326_v59 = vld [vmem:[%s14893_s8 + $0x90] sm:$0xff] }
 0x897   :  { %v3825_v1 = vpop.f32.mrf.mxu0 }
 0x898   :  { %11776 = vpow2.f32 %v3553_v63  ;;  %v3832_v5 = vadd.f32 %v3830_v3, %v3828_v0  ;;  %v3831_v6 = vmul.f32 %v3825_v1, %v13133_v61  ;;  %v3310_v63 = vld [vmem:[%s14893_s8 + $0x10] sm:$0xff]  ;;  %v3325_v0 = vld [vmem:[%s14893_s8 + $0x88] sm:$0xff]  ;;  %v3324_v1 = vld [vmem:[%s14893_s8 + $0x80] sm:$0xff] }
 0x899   :  { %v3309_v3 = vld [vmem:[%s14893_s8 + $0x8] sm:$0xff] }
 0x89a   :  { %v3833_v2 = vrot.slane %v3832_v5, 4  ;;  %v3839_v14 = vadd.f32 %v3831_v6, %v3829_v4  ;;  %v3308_v4 = vld [vmem:[%s14893_s8] sm:$0xff] }
 0x89c   :  { %v3834_v18 = vadd.f32 %v3833_v2, %v3832_v5  ;;  %v3840_v19 = vrot.slane %v3839_v14, 4 }
 0x89e   :  { %v3835_v54 = vrot.slane %v3834_v18, 2  ;;  %v3841_v55 = vadd.f32 %v3840_v19, %v3839_v14 }
 0x8a0   :  { %v3836_v23 = vadd.f32 %v3835_v54, %v3834_v18  ;;  %v3842_v9 = vrot.slane %v3841_v55, 2 }
 0x8a2   :  { %v3843_v10 = vadd.f32 %v3842_v9, %v3841_v55  ;;  %v3837_v24 = vrot.slane %v3836_v23, 1 }
 0x8a4   :  { %v3844_v21 = vrot.slane %v3843_v10, 1  ;;  %v3838_v27 = vadd.f32 %v3837_v24, %v3836_v23 }
 0x8a5   :  { %v11777_v25 = vpop.eup %11776 }
 0x8a6   :  { %3556 = vrot.lane.b32.xlu1 %v11777_v25, %s14997_s18  ;;  %v3845_v26 = vadd.f32 %v3844_v21, %v3843_v10 }
 0x8a8   :  { %3910 = vmatprep.mubr.f32.mxu0 %v3845_v26 }
 0x8a9   :  { %3911 = vmatmul.mubr.f32.vlgmr.msra.gmra.mxu0 %v3838_v27 }
 0x8aa   :  { %11477 = vmatpush3.msra.mxu0 %v3323_v31 }
 0x8ab   :  { %11478 = vmatprep.subr.mxu0 %v3338_v32 }
 0x8ac   :  { %11479 = vmatpush3.msra.mxu0 %v3322_v22 }
 0x8ad   :  { %11480 = vmatprep.subr.mxu0 %v3337_v46 }
 0x8ae   :  { %11481 = vmatpush3.msra.mxu0 %v3321_v42 }
 0x8af   :  { %11482 = vmatprep.subr.mxu0 %v3336_v16 }
 0x8b0   :  { %11483 = vmatpush3.msra.mxu0 %v3320_v43 }
 0x8b1   :  { %11484 = vmatprep.subr.mxu0 %v3335_v37 }
 0x8b2   :  { %11485 = vmatpush3.msra.mxu0 %v3319_v44 }
 0x8b3   :  { %11486 = vmatprep.subr.mxu0 %v3334_v45 }
 0x8b4   :  { %11487 = vmatpush3.msra.mxu0 %v3318_v30 }
 0x8b5   :  { %11488 = vmatprep.subr.mxu0 %v3333_v36 }
 0x8b6   :  { %11489 = vmatpush3.msra.mxu0 %v3317_v47 }
 0x8b7   :  { %11490 = vmatprep.subr.mxu0 %v3332_v33 }
 0x8b8   :  { %11491 = vmatpush3.msra.mxu0 %v3316_v48 }
 0x8b9   :  { %11492 = vmatprep.subr.mxu0 %v3331_v49 }
 0x8ba   :  { %11493 = vmatpush3.msra.mxu0 %v3315_v58 }
 0x8bb   :  { %11494 = vmatprep.subr.mxu0 %v3330_v50 }
 0x8bc   :  { %11495 = vmatpush3.msra.mxu0 %v3314_v34 }
 0x8bd   :  { %11496 = vmatprep.subr.mxu0 %v3329_v39 }
 0x8be   :  { %11497 = vmatpush3.msra.mxu0 %v3313_v41 }
 0x8bf   :  { %11498 = vmatprep.subr.mxu0 %v3328_v28 }
 0x8c0   :  { %11499 = vmatpush3.msra.mxu0 %v3312_v51 }
 0x8c1   :  { %11500 = vmatprep.subr.mxu0 %v3327_v53 }
 0x8c2   :  { %11501 = vmatpush3.msra.mxu0 %v3311_v35 }
 0x8c3   :  { %11502 = vmatprep.subr.mxu0 %v3326_v59 }
 0x8c4   :  { %11503 = vmatpush3.msra.mxu0 %v3310_v63 }
 0x8c5   :  { %11504 = vmatprep.subr.mxu0 %v3325_v0 }
 0x8c6   :  { %11505 = vmatpush3.msra.mxu0 %v3309_v3 }
 0x8c7   :  { %11506 = vmatprep.subr.mxu0 %v3324_v1 }
 0x8c8   :  { %11507 = vmatpush3.msra.mxu0 %v3308_v4 }
 0x8c9   :  { %11687 = vmatprep.subr.mxu0 %v12826_v11 }
 0x918   :  { %v3557_v12 = vpop.permute.xlu1 %3556 }
 0x919   :  { %v3559_v62 = vmul.f32 %v3557_v12, %v3551_v57  ;;  %v4110_v57 = vld [vmem:[%s14890_s5 + $0x18] sm:$0xff] }
 0x91b   :  { %v3560_v20 = vadd.f32 %v3559_v62, %v13184_v52  ;;  %v13357_v62 = vld [vmem:[#allocation3 + $0x10] sm:$0xff] }
 0x91d   :  { %11091 = vmatmul.mubr.msk.f32.vlgmr.msra.gmra.mxu1 %vm2283_vm12, %v3560_v20  ;;  %3568 = vst.msk [vmem:[#allocation8] sm:$0x1] %vm14970_vm1, %v3560_v20 }
 0x91e   :  { %11404 = vmatpush3.msra.mxu1 %v3323_v31 }
 0x91f   :  { %11405 = vmatprep.subr.mxu1 %v3338_v32  ;;  %v3916_v32 = vld [vmem:[%s14998_s12 + $0x1] sm:$0x1]  ;;  %s15029_s12 = smov 33  }
 0x920   :  { %11406 = vmatpush3.msra.mxu1 %v3322_v22 }
 0x921   :  { %11407 = vmatprep.subr.mxu1 %v3337_v46 }
 0x922   :  { %11408 = vmatpush3.msra.mxu1 %v3321_v42 }
 0x923   :  { %11409 = vmatprep.subr.mxu1 %v3336_v16 }
 0x924   :  { %11410 = vmatpush3.msra.mxu1 %v3320_v43 }
 0x925   :  { %11411 = vmatprep.subr.mxu1 %v3335_v37 }
 0x926   :  { %11412 = vmatpush3.msra.mxu1 %v3319_v44 }
 0x927   :  { %11413 = vmatprep.subr.mxu1 %v3334_v45 }
 0x928   :  { %11414 = vmatpush3.msra.mxu1 %v3318_v30 }
 0x929   :  { %11415 = vmatprep.subr.mxu1 %v3333_v36 }
 0x92a   :  { %11416 = vmatpush3.msra.mxu1 %v3317_v47 }
 0x92b   :  { %11417 = vmatprep.subr.mxu1 %v3332_v33 }
 0x92c   :  { %11418 = vmatpush3.msra.mxu1 %v3316_v48 }
 0x92d   :  { %11419 = vmatprep.subr.mxu1 %v3331_v49 }
 0x92e   :  { %11420 = vmatpush3.msra.mxu1 %v3315_v58 }
 0x92f   :  { %11421 = vmatprep.subr.mxu1 %v3330_v50 }
 0x930   :  { %11422 = vmatpush3.msra.mxu1 %v3314_v34 }
 0x931   :  { %11423 = vmatprep.subr.mxu1 %v3329_v39  ;;  %v4109_v39 = vld [vmem:[%s14890_s5 + $0x10] sm:$0xff] }
 0x932   :  { %11424 = vmatpush3.msra.mxu1 %v3313_v41 }
 0x933   :  { %11425 = vmatprep.subr.mxu1 %v3328_v28 }
 0x934   :  { %11426 = vmatpush3.msra.mxu1 %v3312_v51 }
 0x935   :  { %11427 = vmatprep.subr.mxu1 %v3327_v53 }
 0x936   :  { %11428 = vmatpush3.msra.mxu1 %v3311_v35 }
 0x937   :  { %11429 = vmatprep.subr.mxu1 %v3326_v59 }
 0x938   :  { %11430 = vmatpush3.msra.mxu1 %v3310_v63 }
 0x939   :  { %11431 = vmatprep.subr.mxu1 %v3325_v0 }
 0x93a   :  { %11432 = vmatpush3.msra.mxu1 %v3309_v3  ;;  %v4204_v3 = vld [vmem:[%s14895_s10 + $0x10] sm:$0xff] }
 0x93b   :  { %11433 = vmatprep.subr.mxu1 %v3324_v1  ;;  %v13376_v1 = vld [vmem:[%s14895_s10 + $0x18] sm:$0xff] }
 0x93c   :  { %11434 = vmatpush3.msra.mxu1 %v3308_v4 }
 0x93d   :  { %3966 = vmatprep.subr.mxu1 %v13196_v15  ;;  %v3379_v15 = vld [vmem:[%s14900_s15] sm:$0x3]  ;;  %s15001_s15 = smov 118  }
 0x93e   :  { %v3573_v55 = vrot.slane %v3379_v15, %v12052_v7  ;;  %v3577_v23 = vrot.slane %v3379_v15, %v12054_v8  ;;  %v11917_v15 = vmov 6  }
 0x93f   :  { %11758 = vset.pattern.permute.xlu0 %v11917_v15 }
 0x969   :  { %v11473_v5 = vpop.f32.mrf.mxu0 }
 0x96b   :  { %v11474_v6 = vpop.f32.mrf.mxu0 }
 0x96c   :  { %v11475_v2 = vadd.f32 %v11474_v6, %v11473_v5 }
 0x96e   :  { %v13311_v14 = vadd.f32 %v11475_v2, %v13181_v60 }
 0x970   :  { %v3917_v18 = vmul.f32 0.5, %v13311_v14  ;;  %3926 = vst.msk [vmem:[#allocation9 + $0x1] sm:$0x1] %vm14970_vm1, %v13311_v14 }
 0x972   :  { %v3918_v19 = vmul.f32 1.442695, %v3917_v18 }
 0x974   :  { %11778 = vpow2.f32 %v3918_v19 }
 0x981   :  { %v11779_v54 = vpop.eup %11778 }
 0x982   :  { %3921 = vrot.lane.b32.xlu1 %v11779_v54, %s14997_s18 }
 0x9dd   :  { %v3649_v60 = vpop.f32.mrf.mxu1 }
 0x9de   :  { %v3650_v9 = vadd.f32 %v3649_v60, %v3573_v55 }
 0x9df   :  { %v3651_v10 = vpop.f32.mrf.mxu1 }
 0x9e0   :  { %v3652_v24 = vadd.f32 %v3651_v10, %v3577_v23  ;;  %v3657_v21 = vrot.slane %v3650_v9, %v12052_v7 }
 0x9e2   :  { %v3661_v25 = vrot.slane %v3652_v24, %v12052_v7  ;;  %v3662_v27 = vmul.f32 %v3657_v21, %v13118_v56  ;;  %v3664_v31 = vmul.f32 %v3657_v21, %v13123_v38 }
 0x9e4   :  { %v3663_v26 = vmul.f32 %v3661_v25, %v13128_v40  ;;  %v3665_v29 = vmul.f32 %v3661_v25, %v13133_v61 }
 0x9e6   :  { %3730 = vmatprep.mubr.f32.mxu1 %v3663_v26 }
 0x9e7   :  { %3731 = vmatmul.mubr.f32.vlgmr.msra.gmra.mxu1 %v3662_v27 }
 0x9e8   :  { %3735 = vmatprep.mubr.f32.mxu1 %v3665_v29  ;;  %3967 = vmatpush1.msra.mxu1 %v13201_v17 }
 0x9e9   :  { %11627 = vmatprep.subr.mxu1 %v4110_v57 }
 0x9eb   :  { %3736 = vmatmul.mubr.f32.gmra.mxu1 %v3664_v31 }
 0x9ec   :  { %4000 = vmatprep.mubr.f32.mxu1 %v12826_v11 }
 0x9f4   :  { %v3922_v22 = vpop.permute.xlu1 %3921 }
 0x9f5   :  { %v3924_v46 = vmul.f32 %v3922_v22, %v3916_v32 }
 0x9f7   :  { %v3925_v42 = vadd.f32 %v3924_v46, %v13311_v14 }
 0x9f9   :  { %11094 = vmatmul.mubr.msk.f32.vlgmr.msra.gmra.mxu1 %vm2283_vm12, %v3925_v42  ;;  %3932 = vst.msk [vmem:[#allocation8 + $0x1] sm:$0x1] %vm14970_vm1, %v3925_v42 }
 0x9fa   :  { %11628 = vmatpush3.msra.mxu1 %v4110_v57 }
 0x9fb   :  { %11629 = vmatprep.subr.mxu1 %v4109_v39 }
 0x9fc   :  { %11630 = vmatpush3.msra.mxu1 %v4109_v39 }
 0xaa7   :  { %v11435_v16 = vpop.f32.mrf.mxu1 }
 0xaa9   :  { %v11436_v43 = vpop.f32.mrf.mxu1 }
 0xaaa   :  { %v11437_v17 = vadd.f32 %v11436_v43, %v11435_v16 }
 0xaab   :  { %v11438_v37 = vpop.f32.mrf.mxu1 }
 0xaac   :  { %3741 = vst.msk [vmem:[#allocation4] sm:$0xff] %vm766_vm7, %v11437_v17 }
 0xaad   :  { %v11439_v44 = vpop.f32.mrf.mxu1 }
 0xaae   :  { %v11440_v11 = vadd.f32 %v11439_v44, %v11438_v37 }
 0xab0   :  { %3742 = vst.msk [vmem:[#allocation4 + $0x8] sm:$0xff] %vm766_vm7, %v11440_v11 }
 0xab9   :  { %v4002_v45 = vpop.f32.mrf.mxu1 }
 0xaba   :  { %v4003_v30 = vadd.f32 %v4002_v45, %v3573_v55  ;;  %v13429_v55 = vld [vmem:[%s14896_s11] sm:$0xff] }
 0xabb   :  { %v4004_v36 = vpop.f32.mrf.mxu1 }
 0xabc   :  { %v4005_v47 = vadd.f32 %v4004_v36, %v3577_v23  ;;  %v4010_v33 = vrot.slane %v4003_v30, %v12052_v7 }
 0xabe   :  { %v4014_v48 = vrot.slane %v4005_v47, %v12052_v7  ;;  %v4015_v58 = vmul.f32 %v4010_v33, %v13118_v56  ;;  %v4017_v34 = vmul.f32 %v4010_v33, %v13123_v38  ;;  %v4108_v56 = vld [vmem:[%s14890_s5 + $0x8] sm:$0xff]  ;;  %v4107_v38 = vld [vmem:[%s14890_s5] sm:$0xff]  ;;  %s14999_s5 = smov 9  }
 0xabf   :  { %11631 = vmatprep.subr.mxu1 %v4108_v56 }
 0xac0   :  { %v4016_v49 = vmul.f32 %v4014_v48, %v13128_v40  ;;  %v4018_v50 = vmul.f32 %v4014_v48, %v13133_v61  ;;  %11632 = vmatpush3.msra.mxu1 %v4108_v56 }
 0xac1   :  { %11633 = vmatprep.subr.mxu1 %v4107_v38 }
 0xac2   :  { %4083 = vmatprep.mubr.f32.mxu0 %v4016_v49  ;;  %11634 = vmatpush3.msra.mxu1 %v4107_v38 }
 0xac3   :  { %4084 = vmatmul.mubr.f32.vlgmr.msra.gmra.mxu0 %v4015_v58  ;;  %11638 = vmatprep.subr.mxu1 %v13357_v62 }
 0xac4   :  { %4088 = vmatprep.mubr.f32.mxu0 %v4018_v50 }
 0xac7   :  { %4089 = vmatmul.mubr.f32.gmra.mxu0 %v4017_v34 }
 0xb83   :  { %v11508_v40 = vpop.f32.mrf.mxu0 }
 0xb85   :  { %v11509_v61 = vpop.f32.mrf.mxu0 }
 0xb86   :  { %v11510_v41 = vadd.f32 %v11509_v61, %v11508_v40 }
 0xb87   :  { %v11511_v12 = vpop.f32.mrf.mxu0 }
 0xb88   :  { %4096 = vrot.lane.b32.xlu0 %v11510_v41, %s14986_s0 }
 0xb89   :  { %v11512_v20 = vpop.f32.mrf.mxu0 }
 0xb8a   :  { %v11513_v28 = vadd.f32 %v11512_v20, %v11511_v12 }
 0xb8c   :  { %4098 = vrot.lane.b32.xlu1 %v11513_v28, %s14986_s0 }
 0xbfa   :  { %v4097_v51 = vpop.permute.xlu0 %4096 }
 0xbfb   :  { %4103 = vst.msk [vmem:[#allocation4] sm:$0xff] %vm4102_vm9, %v4097_v51 }
 0xbfe   :  { %v4099_v53 = vpop.permute.xlu1 %4098 }
 0xbff   :  { %4104 = vst.msk [vmem:[#allocation4 + $0x8] sm:$0xff] %vm4102_vm9, %v4099_v53  ;;  %vm11916_vm9 = vmmov 0  }
 0xc00   :  { %11691 = vmatprep.mubr.msk.f32.mxu0 %vm11916_vm9, %v13357_v62 }
 0xc02   :  { %v4105_v35 = vld [vmem:[#allocation4] sm:$0xff] }
 0xc03   :  { %11635 = vmatprep.mubr.msk.f32.mxu1 %vm1381_vm8, %v4105_v35 }
 0xc06   :  { %v4106_v59 = vld [vmem:[#allocation4 + $0x8] sm:$0xff] }
 0xc07   :  { %11636 = vmatmul.mubr.msk.f32.vlgmr.msra.gmra.mxu1 %vm1381_vm8, %v4106_v59 }
 0xc08   :  { %11642 = vmatprep.mubr.msk.f32.mxu1 %vm11916_vm9, %v13357_v62 }
 0xcc7   :  { %v11637_v63 = vpop.f32.mrf.mxu1 }
 0xcc8   :  { %4196 = vrot.lane.b32.xlu0 %v11637_v63, %s14999_s5 }
 0xcc9   :  { %v4183_v0 = vpop.f32.mrf.mxu1 }
 0xcca   :  { %4194 = vrot.lane.b32.xlu1 %v4183_v0, %s14999_s5 }
 0xccc   :  { %4209 = vrot.lane.b32.xlu0 %v4204_v3, %s14990_s28 }
 0xcce   :  { %4290 = vrot.lane.b32.xlu1 %v4204_v3, %s14992_s21 }
 0xcd0   :  { %4383 = vrot.lane.b32.xlu0 %v4204_v3, %s14983_s24 }
 0xcd2   :  { %4472 = vrot.lane.b32.xlu1 %v4204_v3, %s14984_s23 }
 0xcd4   :  { %4560 = vrot.lane.b32.xlu0 %v4204_v3, %s14985_s3 }
 0xcd6   :  { %4648 = vrot.lane.b32.xlu1 %v4204_v3, %s14986_s0 }
 0xcd8   :  { %4826 = vrot.lane.b32.xlu0 %v13376_v1, %s14991_s16 }
 0xd3a   :  { %v4197_v4 = vpop.permute.xlu0 %4196 }
 0xd3b   :  { %4202 = vst.msk [vmem:[#allocation3 + $0x10] sm:$0xff] %vm2252_vm5, %v4197_v4 }
 0xd3c   :  { %4203 = vst.msk [vmem:[#allocation3 + $0x18] sm:$0xff] %vm2254_vm4, %v4197_v4  ;;  %v4195_v5 = vpop.permute.xlu1 %4194 }
 0xd3d   :  { %4200 = vst.msk [vmem:[#allocation3] sm:$0xff] %vm2252_vm5, %v4195_v5  ;;  %vm15005_vm5 = vcmask 785408  }
 0xd3e   :  { %4201 = vst.msk [vmem:[#allocation3 + $0x8] sm:$0xff] %vm2254_vm4, %v4195_v5  ;;  %v4210_v18 = vpop.permute.xlu0 %4209  ;;  %vm5263_vm4 = vcmask 1047688  }
 0xd40   :  { %v4291_v60 = vpop.permute.xlu1 %4290 }
 0xd42   :  { %v4206_v2 = vld [vmem:[#allocation3 + $0x10] sm:$0xff]  ;;  %v4384_v23 = vpop.permute.xlu0 %4383 }
 0xd43   :  { %v4288_v6 = vld [vmem:[#allocation3 + $0x18] sm:$0xff]  ;;  %11639 = vmatpush3.msra.mxu1 %v4206_v2  ;;  %4300 = vrot.lane.b32.xlu1 %v4206_v2, %s14993_s20 }
 0xd44   :  { %4302 = vrot.lane.b32.xlu0 %v4288_v6, %s14993_s20  ;;  %11640 = vmatprep.subr.mxu1 %v13357_v62  ;;  %v4205_v19 = vld [vmem:[#allocation3] sm:$0xff]  ;;  %v4473_v10 = vpop.permute.xlu1 %4472 }
 0xd45   :  { %11641 = vmatpush3.msra.mxu1 %v4205_v19  ;;  %v4286_v54 = vld [vmem:[#allocation3 + $0x8] sm:$0xff] }
 0xd46   :  { %11643 = vmatmul.mubr.msk.f32.vlgmr.msra.gmra.mxu1 %vm766_vm7, %v4210_v18  ;;  %11645 = vmatprep.subr.mxu1 %v13357_v62  ;;  %v4561_v9 = vpop.permute.xlu0 %4560 }
 0xd47   :  { %11649 = vmatprep.mubr.msk.f32.mxu1 %vm11916_vm9, %v13357_v62  ;;  %4391 = vrot.lane.b32.xlu1 %v4288_v6, %s14994_s27 }
 0xd48   :  { %4389 = vrot.lane.b32.xlu0 %v4206_v2, %s14994_s27  ;;  %v13436_v21 = vpop.permute.xlu1 %4648 }
 0xd4a   :  { %v13434_v24 = vpop.permute.xlu0 %4826 }
 0xd4b   :  { %4478 = vrot.lane.b32.xlu1 %v4206_v2, %s14997_s18 }
 0xd4c   :  { %4480 = vrot.lane.b32.xlu0 %v4288_v6, %s14997_s18 }
 0xd4f   :  { %4568 = vrot.lane.b32.xlu1 %v4288_v6, %s15000_s25 }
 0xd50   :  { %4566 = vrot.lane.b32.xlu0 %v4206_v2, %s15000_s25 }
 0xd53   :  { %4654 = vrot.lane.b32.xlu1 %v4206_v2, %s15001_s15 }
 0xd54   :  { %4656 = vrot.lane.b32.xlu0 %v4288_v6, %s15001_s15 }
 0xd57   :  { %4744 = vrot.lane.b32.xlu1 %v4288_v6, %s14991_s16 }
 0xd58   :  { %4742 = vrot.lane.b32.xlu0 %v4206_v2, %s14991_s16 }
 0xd5b   :  { %4834 = vrot.lane.b32.xlu1 %v4288_v6, %s14995_s6 }
 0xd5c   :  { %4832 = vrot.lane.b32.xlu0 %v4206_v2, %s14995_s6 }
 0xd5f   :  { %4923 = vrot.lane.b32.xlu1 %v4288_v6, %s14996_s1 }
 0xd60   :  { %4921 = vrot.lane.b32.xlu0 %v4206_v2, %s14996_s1 }
 0xd63   :  { %4296 = vrot.lane.b32.xlu1 %v4205_v19, %s14993_s20 }
 0xd64   :  { %4298 = vrot.lane.b32.xlu0 %v4286_v54, %s14993_s20 }
 0xd67   :  { %4387 = vrot.lane.b32.xlu1 %v4286_v54, %s14994_s27 }
 0xd68   :  { %4385 = vrot.lane.b32.xlu0 %v4205_v19, %s14994_s27 }
 0xd6b   :  { %4474 = vrot.lane.b32.xlu1 %v4205_v19, %s14997_s18 }
 0xd6c   :  { %4476 = vrot.lane.b32.xlu0 %v4286_v54, %s14997_s18 }
 0xd6f   :  { %4564 = vrot.lane.b32.xlu1 %v4286_v54, %s15000_s25 }
 0xd70   :  { %4562 = vrot.lane.b32.xlu0 %v4205_v19, %s15000_s25 }
 0xd73   :  { %4650 = vrot.lane.b32.xlu1 %v4205_v19, %s15001_s15 }
 0xd74   :  { %4652 = vrot.lane.b32.xlu0 %v4286_v54, %s15001_s15 }
 0xd77   :  { %4740 = vrot.lane.b32.xlu1 %v4286_v54, %s14991_s16 }
 0xd78   :  { %4738 = vrot.lane.b32.xlu0 %v4205_v19, %s14991_s16 }
 0xd7b   :  { %4830 = vrot.lane.b32.xlu1 %v4286_v54, %s14995_s6 }
 0xd7c   :  { %4828 = vrot.lane.b32.xlu0 %v4205_v19, %s14995_s6 }
 0xd7f   :  { %4917 = vrot.lane.b32.xlu1 %v4205_v19, %s14996_s1 }
 0xd80   :  { %4919 = vrot.lane.b32.xlu0 %v4286_v54, %s14996_s1 }
 0xd83   :  { %4915 = vrot.lane.b32.xlu1 %v13376_v1, %s14990_s28 }
 0xd84   :  { %5006 = vperm.xlu0 %11758, %v13429_v55  }
 0xdb5   :  { %v4301_v26 = vpop.permute.xlu1 %4300 }
 0xdb6   :  { %v4303_v25 = vpop.permute.xlu0 %4302 }
 0xdb7   :  { %v4305_v27 = vsel %vm205_vm10, %v4301_v26, %v4303_v25  ;;  %v4289_v26 = vld [vmem:[%s14980_s29 + $0x21] ss:$0 sm:$0xff] }
 0xdb8   :  { %11646 = vmatpush3.msra.mxu1 %v4305_v27 }
 0xdb9   :  { %11647 = vmatprep.subr.mxu1 %v13357_v62  ;;  %v4392_v31 = vpop.permute.xlu1 %4391 }
 0xdba   :  { %v4390_v29 = vpop.permute.xlu0 %4389 }
 0xdbb   :  { %v4394_v49 = vsel %vm578_vm13, %v4390_v29, %v4392_v31  ;;  %v4207_v29 = vld [vmem:[%s14980_s29 + $0x20] ss:$0 sm:$0xff]  ;;  %v4382_v31 = vld [vmem:[%s14980_s29 + $0x22] ss:$0 sm:$0xff] }
 0xdbd   :  { %v4479_v22 = vpop.permute.xlu1 %4478 }
 0xdbe   :  { %v4481_v32 = vpop.permute.xlu0 %4480 }
 0xdbf   :  { %v4483_v57 = vsel %vm2563_vm11, %v4479_v22, %v4481_v32 }
 0xdc1   :  { %v4569_v42 = vpop.permute.xlu1 %4568 }
 0xdc2   :  { %v4567_v46 = vpop.permute.xlu0 %4566 }
 0xdc3   :  { %v4571_v38 = vsel %vm2657_vm2, %v4567_v46, %v4569_v42  ;;  %v4471_v46 = vld [vmem:[%s14980_s29 + $0x23] ss:$0 sm:$0xff] }
 0xdc5   :  { %v4655_v43 = vpop.permute.xlu1 %4654 }
 0xdc6   :  { %v4657_v16 = vpop.permute.xlu0 %4656 }
 0xdc7   :  { %v4659_v20 = vsel %vm2758_vm6, %v4655_v43, %v4657_v16 }
 0xdc9   :  { %v4745_v37 = vpop.permute.xlu1 %4744 }
 0xdca   :  { %v4743_v17 = vpop.permute.xlu0 %4742 }
 0xdcb   :  { %v4747_v35 = vsel %vm797_vm14, %v4743_v17, %v4745_v37 }
 0xdcd   :  { %v4835_v11 = vpop.permute.xlu1 %4834 }
 0xdce   :  { %v4833_v44 = vpop.permute.xlu0 %4832 }
 0xdcf   :  { %v4837_v45 = vsel %vm975_vm15, %v4833_v44, %v4835_v11 }
 0xdd0   :  { %11688 = vmatpush3.msra.mxu0 %v4837_v45 }
 0xdd1   :  { %11689 = vmatprep.subr.mxu0 %v13357_v62  ;;  %v4924_v36 = vpop.permute.xlu1 %4923 }
 0xdd2   :  { %v4922_v30 = vpop.permute.xlu0 %4921 }
 0xdd3   :  { %v4926_v3 = vsel %vm1193_vm0, %v4922_v30, %v4924_v36  ;;  %v4647_v30 = vld [vmem:[%s14980_s29 + $0x25] ss:$0 sm:$0xff] }
 0xdd5   :  { %v4297_v33 = vpop.permute.xlu1 %4296 }
 0xdd6   :  { %v4299_v47 = vpop.permute.xlu0 %4298 }
 0xdd7   :  { %v4304_v48 = vsel %vm205_vm10, %v4297_v33, %v4299_v47  ;;  %v4737_v33 = vld [vmem:[%s14980_s29 + $0x26] ss:$0 sm:$0xff] }
 0xdd8   :  { %11648 = vmatpush3.msra.mxu1 %v4304_v48 }
 0xdd9   :  { %11650 = vmatmul.mubr.msk.f32.vlgmr.msra.gmra.mxu1 %vm766_vm7, %v4291_v60  ;;  %11652 = vmatprep.subr.mxu1 %v13357_v62  ;;  %v4388_v50 = vpop.permute.xlu1 %4387  ;;  %v11919_v60 = vmov 8  }
 0xdda   :  { %v4386_v58 = vpop.permute.xlu0 %4385  ;;  %11653 = vmatpush3.msra.mxu1 %v4394_v49  ;;  %11656 = vmatprep.mubr.msk.f32.mxu1 %vm11916_vm9, %v13357_v62 }
 0xddb   :  { %v4393_v34 = vsel %vm578_vm13, %v4386_v58, %v4388_v50  ;;  %11654 = vmatprep.subr.mxu1 %v13357_v62  ;;  %11760 = vset.pattern.permute.xlu0 %v11919_v60  ;;  %v4825_v58 = vld [vmem:[%s14980_s29 + $0x27] ss:$0 sm:$0xff]  ;;  %v5088_v60 = vld [vmem:[#allocation5 + $0x198] sm:$0xff] }
 0xddc   :  { %11655 = vmatpush3.msra.mxu1 %v4393_v34 }
 0xddd   :  { %11657 = vmatmul.mubr.msk.f32.vlgmr.msra.gmra.mxu1 %vm766_vm7, %v4384_v23  ;;  %11659 = vmatprep.subr.mxu1 %v13357_v62  ;;  %v4475_v56 = vpop.permute.xlu1 %4474  ;;  %v11918_v23 = vmov 7  }
 0xdde   :  { %v4477_v39 = vpop.permute.xlu0 %4476  ;;  %11660 = vmatpush3.msra.mxu1 %v4483_v57  ;;  %11663 = vmatprep.mubr.msk.f32.mxu1 %vm11916_vm9, %v13357_v62 }
 0xddf   :  { %v4482_v40 = vsel %vm2563_vm11, %v4475_v56, %v4477_v39  ;;  %11661 = vmatprep.subr.mxu1 %v13357_v62  ;;  %11759 = vset.pattern.permute.xlu1 %v11918_v23  ;;  %v5086_v23 = vld [vmem:[#allocation5 + $0x188] sm:$0xff]  ;;  %vm15007_vm11 = vmmov %vm15005_vm5 }
 0xde0   :  { %11662 = vmatpush3.msra.mxu1 %v4482_v40 }
 0xde1   :  { %11664 = vmatmul.mubr.msk.f32.vlgmr.msra.gmra.mxu1 %vm766_vm7, %v4473_v10  ;;  %11666 = vmatprep.subr.mxu1 %v13357_v62  ;;  %v4565_v41 = vpop.permute.xlu1 %4564 }
 0xde2   :  { %v4563_v61 = vpop.permute.xlu0 %4562  ;;  %11667 = vmatpush3.msra.mxu1 %v4571_v38  ;;  %11670 = vmatprep.mubr.msk.f32.mxu1 %vm11916_vm9, %v13357_v62  ;;  %v4914_v38 = vld [vmem:[%s14980_s29 + $0x48] ss:$0 sm:$0xff] }
 0xde3   :  { %v4570_v12 = vsel %vm2657_vm2, %v4563_v61, %v4565_v41  ;;  %11668 = vmatprep.subr.mxu1 %v13357_v62 }
 0xde4   :  { %11669 = vmatpush3.msra.mxu1 %v4570_v12 }
 0xde5   :  { %11671 = vmatmul.mubr.msk.f32.vlgmr.msra.gmra.mxu1 %vm766_vm7, %v4561_v9  ;;  %11673 = vmatprep.subr.mxu1 %v13357_v62  ;;  %v4651_v51 = vpop.permute.xlu1 %4650 }
 0xde6   :  { %v4653_v28 = vpop.permute.xlu0 %4652  ;;  %11674 = vmatpush3.msra.mxu1 %v4659_v20  ;;  %11677 = vmatprep.mubr.msk.f32.mxu1 %vm11916_vm9, %v13357_v62 }
 0xde7   :  { %v4658_v53 = vsel %vm2758_vm6, %v4651_v51, %v4653_v28  ;;  %11675 = vmatprep.subr.mxu1 %v13357_v62  ;;  %vm15006_vm6 = vmmov %vm15005_vm5 }
 0xde8   :  { %11676 = vmatpush3.msra.mxu1 %v4658_v53 }
 0xde9   :  { %11678 = vmatmul.mubr.msk.f32.vlgmr.msra.gmra.mxu1 %vm766_vm7, %v13436_v21  ;;  %11680 = vmatprep.subr.mxu1 %v13357_v62  ;;  %v4741_v63 = vpop.permute.xlu1 %4740 }
 0xdea   :  { %v4739_v59 = vpop.permute.xlu0 %4738  ;;  %11681 = vmatpush3.msra.mxu1 %v4747_v35  ;;  %11684 = vmatprep.mubr.msk.f32.mxu1 %vm11916_vm9, %v13357_v62 }
 0xdeb   :  { %v4746_v0 = vsel %vm797_vm14, %v4739_v59, %v4741_v63  ;;  %11682 = vmatprep.subr.mxu1 %v13357_v62  ;;  %v5098_v63 = vld [vmem:[#allocation5 + $0x1e8] sm:$0xff] }
 0xdec   :  { %11683 = vmatpush3.msra.mxu1 %v4746_v0  ;;  %v5100_v0 = vld [vmem:[#allocation5 + $0x1f8] sm:$0xff] }
 0xded   :  { %11685 = vmatmul.mubr.msk.f32.vlgmr.msra.gmra.mxu1 %vm766_vm7, %v13376_v1  ;;  %11694 = vmatprep.subr.mxu1 %v13357_v62  ;;  %v4831_v5 = vpop.permute.xlu1 %4830 }
 0xdee   :  { %v4829_v4 = vpop.permute.xlu0 %4828  ;;  %11695 = vmatpush3.msra.mxu1 %v4926_v3  ;;  %11698 = vmatprep.mubr.msk.f32.mxu1 %vm11916_vm9, %v13357_v62  ;;  %v5097_v3 = vld [vmem:[#allocation5 + $0x1e0] sm:$0xff]  ;;  %vm15008_vm9 = vmmov %vm15005_vm5 }
 0xdef   :  { %v4836_v6 = vsel %vm975_vm15, %v4829_v4, %v4831_v5  ;;  %11696 = vmatprep.subr.mxu1 %v13357_v62  ;;  %v5099_v4 = vld [vmem:[#allocation5 + $0x1f0] sm:$0xff]  ;;  %v5094_v5 = vld [vmem:[#allocation5 + $0x1c8] sm:$0xff] }
 0xdf0   :  { %11690 = vmatpush3.msra.mxu0 %v4836_v6  ;;  %v5096_v6 = vld [vmem:[#allocation5 + $0x1d8] sm:$0xff] }
 0xdf1   :  { %11692 = vmatmul.mubr.msk.f32.vlgmr.msra.gmra.mxu0 %vm766_vm7, %v13434_v24  ;;  %v4918_v18 = vpop.permute.xlu1 %4917  ;;  %5101 = vmatprep.subr.mxu0 %v5098_v63  ;;  %v5044_v63 = vld [vmem:[#allocation5 + $0x38] sm:$0xff] }
 0xdf2   :  { %v4920_v2 = vpop.permute.xlu0 %4919  ;;  %5165 = vmatprep.mubr.f32.mxu0 %v13357_v62  ;;  %5102 = vmatpush1.msra.mxu0 %v5097_v3  ;;  %v5043_v3 = vld [vmem:[#allocation5 + $0x30] sm:$0xff] }
 0xdf3   :  { %v4925_v1 = vsel %vm1193_vm0, %v4918_v18, %v4920_v2  ;;  %5103 = vmatprep.subr.mxu0 %v5094_v5  ;;  %v5093_v2 = vld [vmem:[#allocation5 + $0x1c0] sm:$0xff]  ;;  %v5095_v18 = vld [vmem:[#allocation5 + $0x1d0] sm:$0xff]  ;;  %v5040_v5 = vld [vmem:[#allocation5 + $0x18] sm:$0xff] }
 0xdf4   :  { %11697 = vmatpush3.msra.mxu1 %v4925_v1  ;;  %5104 = vmatpush1.msra.mxu0 %v5093_v2  ;;  %v5090_v1 = vld [vmem:[#allocation5 + $0x1a8] sm:$0xff]  ;;  %v5039_v2 = vld [vmem:[#allocation5 + $0x10] sm:$0xff] }
 0xdf5   :  { %v4916_v19 = vpop.permute.xlu1 %4915  ;;  %5172 = vmatprep.subr.mxu1 %v5100_v0  ;;  %5105 = vmatprep.subr.mxu0 %v5090_v1  ;;  %v5041_v0 = vld [vmem:[#allocation5 + $0x20] sm:$0xff]  ;;  %v13532_v1 = vld [vmem:[%s14895_s10 + $0x20] sm:$0xf] }
 0xdf6   :  { %11699 = vmatmul.mubr.msk.f32.vlgmr.msra.gmra.mxu1 %vm766_vm7, %v4916_v19  ;;  %v5092_v19 = vld [vmem:[#allocation5 + $0x1b8] sm:$0xff] }
 0xdf7   :  { %5236 = vmatprep.mubr.f32.mxu1 %v13357_v62  ;;  %5173 = vmatpush1.msra.mxu1 %v5099_v4  ;;  %v5038_v4 = vld [vmem:[#allocation5 + $0x8] sm:$0xff] }
 0xdf8   :  { %5174 = vmatprep.subr.mxu1 %v5096_v6  ;;  %v5037_v6 = vld [vmem:[#allocation5] sm:$0xff] }
 0xdf9   :  { %5175 = vmatpush1.msra.mxu1 %v5095_v18  ;;  %v5269_v18 = vld [vmem:[%s14895_s10 + $0x18] sm:$0xf] }
 0xdfa   :  { %5176 = vmatprep.subr.mxu1 %v5092_v19 }
 0xdff   :  { %v5007_v51 = vpop.permute.xlu0 %5006 }
 0xe06   :  { %v4279_v54 = vpop.f32.mrf.mxu1 }
 0xe07   :  { %v4283_v16 = vmul.f32 %v4279_v54, %v4207_v29  ;;  %v5089_v54 = vld [vmem:[#allocation5 + $0x1a0] sm:$0xff]  ;;  %v5080_v29 = vld [vmem:[#allocation5 + $0x158] sm:$0xff] }
 0xe08   :  { %v11644_v15 = vpop.f32.mrf.mxu1  ;;  %5106 = vmatpush1.msra.mxu0 %v5089_v54 }
 0xe09   :  { %v5091_v15 = vld [vmem:[#allocation5 + $0x1b0] sm:$0xff]  ;;  %5107 = vmatprep.subr.mxu0 %v5086_v23 }
 0xe0a   :  { %5177 = vmatpush1.msra.mxu1 %v5091_v15 }
 0xe0b   :  { %5178 = vmatprep.subr.mxu1 %v5088_v60 }
 0xe99   :  { %v4376_v9 = vpop.f32.mrf.mxu1 }
 0xe9a   :  { %v4380_v22 = vmul.f32 %v4376_v9, %v4289_v26  ;;  %v5085_v9 = vld [vmem:[#allocation5 + $0x180] sm:$0xff]  ;;  %v5083_v26 = vld [vmem:[#allocation5 + $0x170] sm:$0xff] }
 0xe9b   :  { %v11651_v10 = vpop.f32.mrf.mxu1  ;;  %5108 = vmatpush1.msra.mxu0 %v5085_v9 }
 0xe9c   :  { %v4381_v37 = vadd.f32 %v4380_v22, %v4283_v16  ;;  %v5087_v10 = vld [vmem:[#allocation5 + $0x190] sm:$0xff]  ;;  %v5074_v22 = vld [vmem:[#allocation5 + $0x128] sm:$0xff] }
 0xe9d   :  { %v4465_v24 = vpop.f32.mrf.mxu1  ;;  %5179 = vmatpush1.msra.mxu1 %v5087_v10  ;;  %v5075_v16 = vld [vmem:[#allocation5 + $0x130] sm:$0xff] }
 0xe9e   :  { %v4469_v43 = vmul.f32 %v4465_v24, %v4382_v31  ;;  %v5082_v24 = vld [vmem:[#allocation5 + $0x168] sm:$0xff]  ;;  %v5077_v31 = vld [vmem:[#allocation5 + $0x140] sm:$0xff] }
 0xe9f   :  { %v11658_v21 = vpop.f32.mrf.mxu1  ;;  %5109 = vmatprep.subr.mxu0 %v5082_v24 }
 0xea0   :  { %v4470_v45 = vadd.f32 %v4469_v43, %v4381_v37  ;;  %v5084_v21 = vld [vmem:[#allocation5 + $0x178] sm:$0xff]  ;;  %v5070_v43 = vld [vmem:[#allocation5 + $0x108] sm:$0xff]  ;;  %v5069_v37 = vld [vmem:[#allocation5 + $0x100] sm:$0xff] }
 0xea1   :  { %v4554_v25 = vpop.f32.mrf.mxu1  ;;  %5180 = vmatprep.subr.mxu1 %v5084_v21 }
 0xea2   :  { %v4558_v44 = vmul.f32 %v4554_v25, %v4471_v46  ;;  %v5081_v25 = vld [vmem:[#allocation5 + $0x160] sm:$0xff]  ;;  %5181 = vmatpush1.msra.mxu1 %v5083_v26  ;;  %v5076_v46 = vld [vmem:[#allocation5 + $0x138] sm:$0xff] }
 0xea3   :  { %v11665_v27 = vpop.f32.mrf.mxu1  ;;  %5110 = vmatpush1.msra.mxu0 %v5081_v25  ;;  %5182 = vmatprep.subr.mxu1 %v5080_v29 }
 0xea4   :  { %v4559_v47 = vadd.f32 %v4558_v44, %v4470_v45  ;;  %v5078_v27 = vld [vmem:[#allocation5 + $0x148] sm:$0xff]  ;;  %v5071_v44 = vld [vmem:[#allocation5 + $0x110] sm:$0xff]  ;;  %v5068_v45 = vld [vmem:[#allocation5 + $0xf8] sm:$0xff] }
 0xea5   :  { %v4642_v32 = vpop.f32.mrf.mxu1  ;;  %5111 = vmatprep.subr.mxu0 %v5078_v27 }
 0xea6   :  { %v4646_v34 = vadd.f32 %v4642_v32, %v4559_v47  ;;  %v5079_v32 = vld [vmem:[#allocation5 + $0x150] sm:$0xff]  ;;  %5112 = vmatpush1.msra.mxu0 %v5077_v31  ;;  %v5062_v47 = vld [vmem:[#allocation5 + $0xc8] sm:$0xff] }
 0xea7   :  { %v11672_v42 = vpop.f32.mrf.mxu1  ;;  %5183 = vmatpush1.msra.mxu1 %v5079_v32  ;;  %5113 = vmatprep.subr.mxu0 %v5074_v22 }
 0xea8   :  { %v5073_v42 = vld [vmem:[#allocation5 + $0x120] sm:$0xff]  ;;  %5184 = vmatprep.subr.mxu1 %v5076_v46 }
 0xea9   :  { %v4730_v17 = vpop.f32.mrf.mxu1  ;;  %5114 = vmatpush1.msra.mxu0 %v5073_v42  ;;  %5185 = vmatpush1.msra.mxu1 %v5075_v16 }
 0xeaa   :  { %v4734_v49 = vmul.f32 %v4730_v17, %v4647_v30  ;;  %v5072_v17 = vld [vmem:[#allocation5 + $0x118] sm:$0xff]  ;;  %5115 = vmatprep.subr.mxu0 %v5070_v43  ;;  %v5065_v30 = vld [vmem:[#allocation5 + $0xe0] sm:$0xff] }
 0xeab   :  { %v11679_v11 = vpop.f32.mrf.mxu1  ;;  %5186 = vmatprep.subr.mxu1 %v5072_v17  ;;  %5116 = vmatpush1.msra.mxu0 %v5069_v37 }
 0xeac   :  { %v4735_v56 = vadd.f32 %v4734_v49, %v4646_v34  ;;  %v5066_v11 = vld [vmem:[#allocation5 + $0xe8] sm:$0xff]  ;;  %5187 = vmatpush1.msra.mxu1 %v5071_v44  ;;  %v5059_v34 = vld [vmem:[#allocation5 + $0xb0] sm:$0xff] }
 0xead   :  { %v4819_v36 = vpop.f32.mrf.mxu1  ;;  %5117 = vmatprep.subr.mxu0 %v5066_v11  ;;  %5188 = vmatprep.subr.mxu1 %v5068_v45  ;;  %v5058_v49 = vld [vmem:[#allocation5 + $0xa8] sm:$0xff] }
 0xeae   :  { %v4823_v57 = vmul.f32 %v4819_v36, %v4737_v33  ;;  %v5067_v36 = vld [vmem:[#allocation5 + $0xf0] sm:$0xff]  ;;  %v5064_v33 = vld [vmem:[#allocation5 + $0xd8] sm:$0xff]  ;;  %5118 = vmatpush1.msra.mxu0 %v5065_v30 }
 0xeaf   :  { %v11686_v48 = vpop.f32.mrf.mxu1  ;;  %5189 = vmatpush1.msra.mxu1 %v5067_v36  ;;  %5119 = vmatprep.subr.mxu0 %v5062_v47 }
 0xeb0   :  { %v4824_v61 = vadd.f32 %v4823_v57, %v4735_v56  ;;  %v5063_v48 = vld [vmem:[#allocation5 + $0xd0] sm:$0xff]  ;;  %5190 = vmatprep.subr.mxu1 %v5064_v33  ;;  %v5054_v57 = vld [vmem:[#allocation5 + $0x88] sm:$0xff]  ;;  %v5053_v56 = vld [vmem:[#allocation5 + $0x80] sm:$0xff] }
 0xeb1   :  { %v4908_v50 = vpop.f32.mrf.mxu0  ;;  %5191 = vmatpush1.msra.mxu1 %v5063_v48 }
 0xeb2   :  { %v4912_v40 = vmul.f32 %v4908_v50, %v4825_v58  ;;  %v5060_v58 = vld [vmem:[#allocation5 + $0xb8] sm:$0xff]  ;;  %v5057_v50 = vld [vmem:[#allocation5 + $0xa0] sm:$0xff] }
 0xeb3   :  { %v11693_v39 = vpop.f32.mrf.mxu0  ;;  %5192 = vmatprep.subr.mxu1 %v5060_v58  ;;  %v11920_v58 = vmov 9  }
 0xeb4   :  { %v4913_v12 = vadd.f32 %v4912_v40, %v4824_v61  ;;  %v5056_v39 = vld [vmem:[#allocation5 + $0x98] sm:$0xff]  ;;  %v5055_v40 = vld [vmem:[#allocation5 + $0x90] sm:$0xff]  ;;  %5193 = vmatpush1.msra.mxu1 %v5059_v34 }
 0xeb5   :  { %v5052_v61 = vld [vmem:[#allocation5 + $0x78] sm:$0xff]  ;;  %5194 = vmatprep.subr.mxu1 %v5056_v39 }
 0xeb6   :  { %v4997_v41 = vpop.f32.mrf.mxu1  ;;  %5195 = vmatpush1.msra.mxu1 %v5055_v40 }
 0xeb7   :  { %v5001_v20 = vmul.f32 %v4997_v41, %v4914_v38  ;;  %v5050_v38 = vld [vmem:[#allocation5 + $0x68] sm:$0xff]  ;;  %v5049_v41 = vld [vmem:[#allocation5 + $0x60] sm:$0xff]  ;;  %5196 = vmatprep.subr.mxu1 %v5052_v61 }
 0xeb8   :  { %v11700_v28 = vpop.f32.mrf.mxu1 }
 0xeb9   :  { %v5002_v53 = vadd.f32 %v5001_v20, %v4913_v12  ;;  %v5051_v12 = vld [vmem:[#allocation5 + $0x70] sm:$0xff]  ;;  %v5046_v20 = vld [vmem:[#allocation5 + $0x48] sm:$0xff]  ;;  %v5048_v28 = vld [vmem:[#allocation5 + $0x58] sm:$0xff] }
 0xeba   :  { %5197 = vmatpush1.msra.mxu1 %v5051_v12 }
 0xebb   :  { %v13517_v35 = vadd.f32 %v5007_v51, %v5002_v53  ;;  %v5045_v51 = vld [vmem:[#allocation5 + $0x40] sm:$0xff]  ;;  %v5047_v53 = vld [vmem:[#allocation5 + $0x50] sm:$0xff]  ;;  %5198 = vmatprep.subr.mxu1 %v5048_v28 }
 0xebc   :  { %5199 = vmatpush1.msra.mxu1 %v5047_v53 }
 0xebd   :  { %5010 = vadd.xlane.f32.xlu1 %v13517_v35  ;;  %v5013_v59 = vmul.f32 %v13517_v35, %v13517_v35  ;;  %5200 = vmatprep.subr.mxu1 %v5044_v63 }
 0xebe   :  { %5201 = vmatpush1.msra.mxu1 %v5043_v3 }
 0xebf   :  { %5014 = vadd.xlane.f32.xlu0 %v5013_v59  ;;  %v5042_v59 = vld [vmem:[#allocation5 + $0x28] sm:$0xff]  ;;  %5202 = vmatprep.subr.mxu1 %v5040_v5 }
 0xec0   :  { %5203 = vmatpush1.msra.mxu1 %v5039_v2 }
 0xece   :  { %5025 = vperm.xlu1 %11759, %v13429_v55  }
 0xed2   :  { %5276 = vrot.lane.b32.xlu1 %v5269_v18, %s14992_s21 }
 0xed5   :  { %5030 = vperm.xlu0 %11760, %v13429_v55   ;;  %v5061_v55 = vld [vmem:[#allocation5 + $0xc0] sm:$0xff] }
 0xed6   :  { %5120 = vmatpush1.msra.mxu0 %v5061_v55  ;;  %6406 = vrot.lane.b32.xlu1 %v13532_v1, %s14991_s16 }
 0xed7   :  { %5121 = vmatprep.subr.mxu0 %v5058_v49  ;;  %v13600_v49 = vld [vmem:[%s14896_s11] sm:$0xf] }
 0xed8   :  { %5122 = vmatpush1.msra.mxu0 %v5057_v50 }
 0xed9   :  { %5123 = vmatprep.subr.mxu0 %v5054_v57  ;;  %5457 = vrot.lane.b32.xlu0 %v5269_v18, %s14983_s24 }
 0xeda   :  { %5124 = vmatpush1.msra.mxu0 %v5053_v56  ;;  %11761 = vset.pattern.permute.xlu0 %v11920_v58 }
 0xedb   :  { %5125 = vmatprep.subr.mxu0 %v5050_v38 }
 0xedc   :  { %5126 = vmatpush1.msra.mxu0 %v5049_v41 }
 0xedd   :  { %5127 = vmatprep.subr.mxu0 %v5046_v20  ;;  %5656 = vrot.lane.b32.xlu0 %v5269_v18, %s14984_s23 }
 0xede   :  { %5128 = vmatpush1.msra.mxu0 %v5045_v51 }
 0xedf   :  { %5129 = vmatprep.subr.mxu0 %v5042_v59 }
 0xee0   :  { %5130 = vmatpush1.msra.mxu0 %v5041_v0 }
 0xee1   :  { %5131 = vmatprep.subr.mxu0 %v5038_v4  ;;  %5850 = vrot.lane.b32.xlu0 %v5269_v18, %s14985_s3 }
 0xee2   :  { %5132 = vmatpush1.msra.mxu0 %v5037_v6 }
 0xee5   :  { %6043 = vrot.lane.b32.xlu0 %v5269_v18, %s14986_s0 }
 0xf46   :  { %v5011_v19 = vpop.xlane.xlu1 %5010 }
 0xf47   :  { %v5012_v54 = vmul.f32 0.0078125, %v5011_v19 }
 0xf48   :  { %v5015_v15 = vpop.xlane.xlu0 %5014 }
 0xf49   :  { %v5017_v23 = vmul.f32 %v5012_v54, %v5012_v54  ;;  %v5016_v60 = vmul.f32 0.0078125, %v5015_v15  ;;  %v5020_v21 = vsub.f32 %v13517_v35, %v5012_v54 }
 0xf4a   :  { %v5026_v26 = vpop.permute.xlu1 %5025 }
 0xf4b   :  { %v5018_v9 = vsub.f32 %v5016_v60, %v5017_v23 }
 0xf4d   :  { %v5019_v10 = vmax.f32 %v5018_v9, 0.0 }
 0xf4e   :  { %v5277_v17 = vpop.permute.xlu1 %5276 }
 0xf4f   :  { %v5021_v24 = vadd.f32 1e-05, %v5019_v10 }
 0xf50   :  { %v5031_v29 = vpop.permute.xlu0 %5030 }
 0xf51   :  { %11780 = vrsqrt.f32 %v5021_v24 }
 0xf52   :  { %v13550_v37 = vpop.permute.xlu1 %6406 }
 0xf54   :  { %v5458_v50 = vpop.permute.xlu0 %5457 }
 0xf58   :  { %v5657_v34 = vpop.permute.xlu0 %5656 }
 0xf5c   :  { %v13606_v57 = vpop.permute.xlu0 %5850 }
 0xf5e   :  { %v11781_v25 = vpop.eup %11780 }
 0xf5f   :  { %v5023_v27 = vmul.f32 %v11781_v25, %v5020_v21 }
 0xf60   :  { %v13610_v56 = vpop.permute.xlu0 %6043 }
 0xf61   :  { %v5028_v31 = vmul.f32 %v5026_v26, %v5023_v27 }
 0xf63   :  { %v5033_v32 = vadd.f32 %v5031_v29, %v5028_v31 }
 0xf65   :  { %v5035_v22 = vmul.f32 0.01, %v5033_v32  ;;  %vm5034_vm2 = vcmp.ge.f32.partialorder %v5033_v32, 0.0 }
 0xf67   :  { %v5036_v46 = vsel %vm5034_vm2, %v5033_v32, %v5035_v22  ;;  %vm15009_vm2 = vcmask 777216  }
 0xf68   :  { %5166 = vmatmul.mubr.f32.vlgmr.msra.gmra.mxu0 %v5036_v46  ;;  %5237 = vmatmul.mubr.f32.vlgmr.msra.gmra.mxu1 %v5036_v46 }
 0xf69   :  { %5344 = vmatprep.mubr.f32.mxu0 %v13357_v62  ;;  %5415 = vmatprep.mubr.f32.mxu1 %v13357_v62 }
0x1028   :  { %v5167_v42 = vpop.f32.mrf.mxu0  ;;  %v5238_v16 = vpop.f32.mrf.mxu1 }
0x1029   :  { %5247 = vrot.lane.b32.xlu1 %v5167_v42, %s15002_s4 }
0x102a   :  { %v5169_v35 = vpop.f32.mrf.mxu0  ;;  %v5240_v43 = vpop.f32.mrf.mxu1 }
0x102d   :  { %5251 = vrot.lane.b32.xlu1 %v5238_v16, %s15002_s4 }
0x1031   :  { %5249 = vrot.lane.b32.xlu1 %v5169_v35, %s15002_s4 }
0x1035   :  { %5253 = vrot.lane.b32.xlu1 %v5240_v43, %s15002_s4 }
0x1039   :  { %6600 = vrot.lane.b32.xlu1 %v13532_v1, %s14990_s28 }
0x103d   :  { %6794 = vrot.lane.b32.xlu1 %v13532_v1, %s14992_s21 }
0x109b   :  { %v5248_v44 = vpop.permute.xlu1 %5247 }
0x109c   :  { %5264 = vst.msk [vmem:[#allocation2] sm:$0xff] %vm5263_vm4, %v5248_v44  ;;  %vm15010_vm4 = vmmov %vm15009_vm2 }
0x109f   :  { %v5252_v11 = vpop.permute.xlu1 %5251 }
0x10a3   :  { %v5250_v45 = vpop.permute.xlu1 %5249  ;;  %v5451_v30 = vld [vmem:[#allocation2] sm:$0xff] }
0x10a4   :  { %v5255_v36 = vsel %vm98_vm3, %v5248_v44, %v5250_v45  ;;  %v5256_v47 = vsel %vm98_vm3, %v5250_v45, %v5252_v11  ;;  %6408 = vrot.lane.b32.xlu0 %v5451_v30, %s14990_s28  ;;  %5464 = vrot.lane.b32.xlu1 %v5451_v30, %s14993_s20 }
0x10a5   :  { %5265 = vst [vmem:[#allocation2 + $0x8] sm:$0xff] %v5255_v36  ;;  %5266 = vst [vmem:[#allocation2 + $0x10] sm:$0xff] %v5256_v47  ;;  %5310 = vmatprep.subr.mxu0 %v5255_v36 }
0x10a6   :  { %5311 = vmatpush1.msra.mxu0 %v5451_v30 }
0x10a7   :  { %v5254_v33 = vpop.permute.xlu1 %5253  ;;  %11106 = vmatmul.mubr.msk.f32.vlgmr.msra.gmra.mxu0 %vm2283_vm12, %v5277_v17 }
0x10a8   :  { %v5257_v55 = vsel %vm98_vm3, %v5252_v11, %v5254_v33  ;;  %5268 = vst.msk [vmem:[#allocation2 + $0x20] sm:$0xff] %vm98_vm3, %v5254_v33  ;;  %6602 = vrot.lane.b32.xlu0 %v5451_v30, %s15003_s2  ;;  %5658 = vrot.lane.b32.xlu1 %v5451_v30, %s14994_s27 }
0x10a9   :  { %5267 = vst [vmem:[#allocation2 + $0x18] sm:$0xff] %v5257_v55  ;;  %5381 = vmatprep.subr.mxu1 %v5257_v55  ;;  %5548 = vmatprep.mubr.f32.mxu0 %v13357_v62 }
0x10aa   :  { %5382 = vmatpush1.msra.mxu1 %v5256_v47 }
0x10ab   :  { %11107 = vmatmul.mubr.msk.f32.vlgmr.msra.gmra.mxu1 %vm2283_vm12, %v5277_v17  ;;  %v13608_v39 = vpop.permute.xlu1 %6600 }
0x10ac   :  { %6796 = vrot.lane.b32.xlu0 %v5451_v30, %s15004_s30  ;;  %5852 = vrot.lane.b32.xlu1 %v5451_v30, %s14991_s16 }
0x10ad   :  { %5619 = vmatprep.mubr.f32.mxu1 %v13357_v62 }
0x10af   :  { %v5455_v48 = vld [vmem:[#allocation2 + $0x20] sm:$0xff]  ;;  %v13612_v40 = vpop.permute.xlu1 %6794 }
0x10b0   :  { %6045 = vrot.lane.b32.xlu1 %v5451_v30, %s14995_s6  ;;  %5472 = vrot.lane.b32.xlu0 %v5455_v48, %s14993_s20 }
0x10b4   :  { %6213 = vrot.lane.b32.xlu1 %v5451_v30, %s14996_s1  ;;  %5666 = vrot.lane.b32.xlu0 %v5455_v48, %s14994_s27 }
0x10b8   :  { %6221 = vrot.lane.b32.xlu1 %v5455_v48, %s14996_s1  ;;  %5860 = vrot.lane.b32.xlu0 %v5455_v48, %s14991_s16 }
0x10bc   :  { %6416 = vrot.lane.b32.xlu1 %v5455_v48, %s14990_s28  ;;  %6053 = vrot.lane.b32.xlu0 %v5455_v48, %s14995_s6 }
0x10c0   :  { %6610 = vrot.lane.b32.xlu1 %v5455_v48, %s15003_s2  ;;  %5662 = vrot.lane.b32.xlu0 %v5256_v47, %s14994_s27 }
0x10c4   :  { %5466 = vrot.lane.b32.xlu1 %v5255_v36, %s14993_s20  ;;  %5856 = vrot.lane.b32.xlu0 %v5256_v47, %s14991_s16 }
0x10c8   :  { %5468 = vrot.lane.b32.xlu1 %v5256_v47, %s14993_s20  ;;  %6049 = vrot.lane.b32.xlu0 %v5256_v47, %s14995_s6 }
0x10cc   :  { %6217 = vrot.lane.b32.xlu0 %v5256_v47, %s14996_s1  ;;  %5470 = vrot.lane.b32.xlu1 %v5257_v55, %s14993_s20 }
0x10d0   :  { %6219 = vrot.lane.b32.xlu0 %v5257_v55, %s14996_s1  ;;  %5660 = vrot.lane.b32.xlu1 %v5255_v36, %s14994_s27 }
0x10d4   :  { %6410 = vrot.lane.b32.xlu0 %v5255_v36, %s14990_s28  ;;  %5664 = vrot.lane.b32.xlu1 %v5257_v55, %s14994_s27 }
0x10d8   :  { %6414 = vrot.lane.b32.xlu0 %v5257_v55, %s14990_s28  ;;  %5854 = vrot.lane.b32.xlu1 %v5255_v36, %s14991_s16 }
0x10dc   :  { %6604 = vrot.lane.b32.xlu0 %v5255_v36, %s15003_s2  ;;  %5858 = vrot.lane.b32.xlu1 %v5257_v55, %s14991_s16 }
0x10e0   :  { %6608 = vrot.lane.b32.xlu0 %v5257_v55, %s15003_s2  ;;  %6047 = vrot.lane.b32.xlu1 %v5255_v36, %s14995_s6 }
0x10e4   :  { %6798 = vrot.lane.b32.xlu0 %v5255_v36, %s15004_s30  ;;  %6051 = vrot.lane.b32.xlu1 %v5257_v55, %s14995_s6 }
0x10e8   :  { %6802 = vrot.lane.b32.xlu0 %v5257_v55, %s15004_s30  ;;  %6215 = vrot.lane.b32.xlu1 %v5255_v36, %s14996_s1 }
0x10ec   :  { %6412 = vrot.lane.b32.xlu1 %v5256_v47, %s14990_s28  ;;  %6990 = vperm.xlu0 %11761, %v13600_v49  }
0x10f0   :  { %6606 = vrot.lane.b32.xlu1 %v5256_v47, %s15003_s2 }
0x10f4   :  { %6800 = vrot.lane.b32.xlu1 %v5256_v47, %s15004_s30 }
0x10f8   :  { %6804 = vrot.lane.b32.xlu1 %v5455_v48, %s15004_s30 }
0x1116   :  { %v13614_v38 = vpop.permute.xlu0 %6408  ;;  %v5465_v61 = vpop.permute.xlu1 %5464 }
0x111a   :  { %v13616_v41 = vpop.permute.xlu0 %6602  ;;  %v5659_v12 = vpop.permute.xlu1 %5658 }
0x111e   :  { %v13618_v20 = vpop.permute.xlu0 %6796  ;;  %v5853_v28 = vpop.permute.xlu1 %5852 }
0x1122   :  { %v5473_v51 = vpop.permute.xlu0 %5472  ;;  %v6046_v53 = vpop.permute.xlu1 %6045 }
0x1126   :  { %v5667_v59 = vpop.permute.xlu0 %5666  ;;  %v13620_v63 = vpop.permute.xlu1 %6213 }
0x112a   :  { %v5861_v0 = vpop.permute.xlu0 %5860  ;;  %v13622_v3 = vpop.permute.xlu1 %6221 }
0x112e   :  { %v6054_v4 = vpop.permute.xlu0 %6053  ;;  %v13624_v5 = vpop.permute.xlu1 %6416 }
0x1132   :  { %v5663_v6 = vpop.permute.xlu0 %5662  ;;  %v13626_v2 = vpop.permute.xlu1 %6610 }
0x1136   :  { %v5857_v18 = vpop.permute.xlu0 %5856  ;;  %v5467_v19 = vpop.permute.xlu1 %5466 }
0x1137   :  { %v5474_v60 = vsel %vm205_vm10, %v5465_v61, %v5467_v19 }
0x113a   :  { %v6050_v54 = vpop.permute.xlu0 %6049  ;;  %v5469_v15 = vpop.permute.xlu1 %5468 }
0x113b   :  { %v5475_v23 = vsel %vm205_vm10, %v5467_v19, %v5469_v15  ;;  %v11922_v19 = vmov 11  }
0x113c   :  { %5514 = vmatprep.subr.mxu0 %v5475_v23  ;;  %11763 = vset.pattern.permute.xlu0 %v11922_v19 }
0x113d   :  { %5515 = vmatpush1.msra.mxu0 %v5474_v60 }
0x113e   :  { %11109 = vmatmul.mubr.msk.f32.vlgmr.msra.gmra.mxu0 %vm2283_vm12, %v5458_v50  ;;  %v5471_v9 = vpop.permute.xlu1 %5470  ;;  %v6218_v10 = vpop.permute.xlu0 %6217 }
0x113f   :  { %v5477_v24 = vsel %vm205_vm10, %v5471_v9, %v5473_v51  ;;  %v5476_v21 = vsel %vm205_vm10, %v5469_v15, %v5471_v9  ;;  %5742 = vmatprep.mubr.f32.mxu0 %v13357_v62 }
0x1140   :  { %5585 = vmatprep.subr.mxu1 %v5477_v24 }
0x1141   :  { %5586 = vmatpush1.msra.mxu1 %v5476_v21 }
0x1142   :  { %11110 = vmatmul.mubr.msk.f32.vlgmr.msra.gmra.mxu1 %vm2283_vm12, %v5458_v50  ;;  %v5661_v25 = vpop.permute.xlu1 %5660  ;;  %v6220_v29 = vpop.permute.xlu0 %6219 }
0x1143   :  { %v5669_v26 = vsel %vm578_vm13, %v5661_v25, %v5663_v6  ;;  %v5668_v27 = vsel %vm578_vm13, %v5659_v12, %v5661_v25  ;;  %5813 = vmatprep.mubr.f32.mxu1 %v13357_v62  ;;  %v6226_v58 = vsel %vm1193_vm0, %v6220_v29, %v13622_v3 }
0x1144   :  { %5708 = vmatprep.subr.mxu0 %v5669_v26 }
0x1145   :  { %5709 = vmatpush1.msra.mxu0 %v5668_v27 }
0x1146   :  { %11112 = vmatmul.mubr.msk.f32.vlgmr.msra.gmra.mxu0 %vm2283_vm12, %v5657_v34  ;;  %v5665_v31 = vpop.permute.xlu1 %5664  ;;  %v6411_v42 = vpop.permute.xlu0 %6410 }
0x1147   :  { %v5671_v32 = vsel %vm578_vm13, %v5665_v31, %v5667_v59  ;;  %v5670_v22 = vsel %vm578_vm13, %v5663_v6, %v5665_v31  ;;  %5936 = vmatprep.mubr.f32.mxu0 %v13357_v62  ;;  %v6418_v59 = vsel %vm15008_vm9, %v13614_v38, %v6411_v42 }
0x1148   :  { %5779 = vmatprep.subr.mxu1 %v5671_v32  ;;  %v11108_v32 = vld [vmem:[%s14980_s29 + $0x1] ss:$8 sm:$0xf] }
0x1149   :  { %5780 = vmatpush1.msra.mxu1 %v5670_v22 }
0x114a   :  { %11113 = vmatmul.mubr.msk.f32.vlgmr.msra.gmra.mxu1 %vm2283_vm12, %v5657_v34  ;;  %v5855_v46 = vpop.permute.xlu1 %5854  ;;  %v6415_v11 = vpop.permute.xlu0 %6414  ;;  %v6225_v34 = vsel %vm1193_vm0, %v6218_v10, %v6220_v29 }
0x114b   :  { %v5863_v16 = vsel %vm797_vm14, %v5855_v46, %v5857_v18  ;;  %v5862_v35 = vsel %vm797_vm14, %v5853_v28, %v5855_v46  ;;  %6007 = vmatprep.mubr.f32.mxu1 %v13357_v62  ;;  %v6421_v61 = vsel %vm15005_vm5, %v6415_v11, %v13624_v5  ;;  %vm15011_vm5 = vmmov %vm15009_vm2 }
0x114c   :  { %5902 = vmatprep.subr.mxu0 %v5863_v16 }
0x114d   :  { %5903 = vmatpush1.msra.mxu0 %v5862_v35  ;;  %v15017_v35 = vld [vmem:[#allocation15_spill] sm:$0xff] }
0x114e   :  { %11115 = vmatmul.mubr.msk.f32.vlgmr.msra.gmra.mxu0 %vm2283_vm12, %v13606_v57  ;;  %v5859_v43 = vpop.permute.xlu1 %5858  ;;  %v6605_v33 = vpop.permute.xlu0 %6604 }
0x114f   :  { %v5865_v17 = vsel %vm797_vm14, %v5859_v43, %v5861_v0  ;;  %v5864_v44 = vsel %vm797_vm14, %v5857_v18, %v5859_v43  ;;  %6129 = vmatprep.mubr.f32.mxu0 %v13357_v62 }
0x1150   :  { %5973 = vmatprep.subr.mxu1 %v5865_v17  ;;  %v11111_v17 = vld [vmem:[%s14980_s29 + $0x2] ss:$8 sm:$0xf] }
0x1151   :  { %5974 = vmatpush1.msra.mxu1 %v5864_v44 }
0x1152   :  { %11116 = vmatmul.mubr.msk.f32.vlgmr.msra.gmra.mxu1 %vm2283_vm12, %v13606_v57  ;;  %v6048_v45 = vpop.permute.xlu1 %6047  ;;  %v6609_v28 = vpop.permute.xlu0 %6608 }
0x1153   :  { %v6056_v30 = vsel %vm975_vm15, %v6048_v45, %v6050_v54  ;;  %v6055_v36 = vsel %vm975_vm15, %v6046_v53, %v6048_v45  ;;  %6200 = vmatprep.mubr.f32.mxu1 %v13357_v62  ;;  %v13728_v45 = vld [vmem:[%s14980_s29 + $0x3] ss:$8 sm:$0xf] }
0x1154   :  { %6095 = vmatprep.subr.mxu0 %v6056_v30 }
0x1155   :  { %6096 = vmatpush1.msra.mxu0 %v6055_v36 }
0x1156   :  { %11117 = vmatmul.mubr.msk.f32.vlgmr.msra.gmra.mxu0 %vm2283_vm12, %v13610_v56  ;;  %v6052_v47 = vpop.permute.xlu1 %6051  ;;  %v6799_v38 = vpop.permute.xlu0 %6798 }
0x1157   :  { %v6058_v55 = vsel %vm975_vm15, %v6052_v47, %v6054_v4  ;;  %v6057_v48 = vsel %vm975_vm15, %v6050_v54, %v6052_v47  ;;  %6298 = vmatprep.mubr.f32.mxu0 %v13357_v62 }
0x1158   :  { %6166 = vmatprep.subr.mxu1 %v6058_v55  ;;  %v5634_v55 = vrot.slane %v11108_v32, %v12054_v8 }
0x1159   :  { %6167 = vmatpush1.msra.mxu1 %v6057_v48  ;;  %v5824_v48 = vrot.slane %v11111_v17, %v12052_v7 }
0x115a   :  { %11118 = vmatmul.mubr.msk.f32.vlgmr.msra.gmra.mxu1 %vm2283_vm12, %v13610_v56  ;;  %6335 = vmatprep.subr.mxu1 %v6226_v58  ;;  %v6216_v50 = vpop.permute.xlu1 %6215 }
0x115b   :  { %6336 = vmatpush1.msra.mxu1 %v6225_v34  ;;  %v6224_v57 = vsel %vm1193_vm0, %v6216_v50, %v6218_v10  ;;  %v6223_v12 = vsel %vm1193_vm0, %v13620_v63, %v6216_v50  ;;  %6369 = vmatprep.mubr.f32.mxu1 %v13357_v62  ;;  %v6615_v63 = vsel %vm15009_vm2, %v6609_v28, %v13626_v2 }
0x115c   :  { %6264 = vmatprep.subr.mxu0 %v6224_v57  ;;  %6529 = vmatprep.subr.mxu1 %v6421_v61  ;;  %v5638_v34 = vrot.slane %v11108_v32, %v12065_v13  ;;  %v5642_v57 = vrot.slane %v11108_v32, %v15017_v35 }
0x115d   :  { %6265 = vmatpush1.msra.mxu0 %v6223_v12  ;;  %v13741_v12 = vld [vmem:[%s14980_s29 + $0x5] ss:$8 sm:$0xf] }
0x115e   :  { %11120 = vmatmul.mubr.msk.f32.vlgmr.msra.gmra.mxu0 %vm2283_vm12, %v13532_v1  ;;  %11121 = vmatmul.mubr.msk.f32.vlgmr.msra.gmra.mxu1 %vm2283_vm12, %v13532_v1  ;;  %v6413_v56 = vpop.permute.xlu1 %6412  ;;  %v6392_v19 = vrot.slane %v13741_v12, %v15017_v35 }
0x115f   :  { %v6419_v51 = vsel %vm15006_vm6, %v6411_v42, %v6413_v56  ;;  %v6420_v53 = vsel %vm15007_vm11, %v6413_v56, %v6415_v11  ;;  %6492 = vmatprep.mubr.f32.mxu0 %v13357_v62  ;;  %6563 = vmatprep.mubr.f32.mxu1 %v13357_v62  ;;  %vm15012_vm6 = vmmov %vm15009_vm2  ;;  %vm15013_vm11 = vcmask 769024   ;;  %v5630_v11 = vrot.slane %v11108_v32, %v12052_v7 }
0x1160   :  { %6458 = vmatprep.subr.mxu0 %v6419_v51  ;;  %6530 = vmatpush1.msra.mxu1 %v6420_v53  ;;  %v6612_v4 = vsel %vm15012_vm6, %v13616_v41, %v6605_v33  ;;  %vm15014_vm9 = vmmov %vm15013_vm11  ;;  %v6803_v41 = vpop.permute.xlu0 %6802  ;;  %v5828_v56 = vrot.slane %v11111_v17, %v12054_v8  ;;  %v5832_v51 = vrot.slane %v11111_v17, %v12065_v13 }
0x1161   :  { %6459 = vmatpush1.msra.mxu0 %v6418_v59  ;;  %6723 = vmatprep.subr.mxu1 %v6615_v63  ;;  %v6806_v6 = vsel %vm15014_vm9, %v13618_v20, %v6799_v38  ;;  %vm15015_vm2 = vmmov %vm15014_vm9  ;;  %v11921_v20 = vmov 10   ;;  %v6018_v53 = vrot.slane %v13728_v45, %v12052_v7  ;;  %v13750_v59 = vld [vmem:[%s14980_s29 + $0x6] ss:$8 sm:$0xf]  ;;  %v5836_v63 = vrot.slane %v11111_v17, %v15017_v35 }
0x1162   :  { %11123 = vmatmul.mubr.msk.f32.vlgmr.msra.gmra.mxu0 %vm2283_vm12, %v13550_v37  ;;  %11124 = vmatmul.mubr.msk.f32.vlgmr.msra.gmra.mxu1 %vm2283_vm12, %v13550_v37  ;;  %v6607_v1 = vpop.permute.xlu1 %6606 }
0x1163   :  { %v6613_v0 = vsel %vm15010_vm4, %v6605_v33, %v6607_v1  ;;  %v6614_v3 = vsel %vm15011_vm5, %v6607_v1, %v6609_v28  ;;  %6686 = vmatprep.mubr.f32.mxu0 %v13357_v62  ;;  %6757 = vmatprep.mubr.f32.mxu1 %v13357_v62  ;;  %vm15016_vm4 = vmmov %vm15015_vm2  ;;  %v6022_v1 = vrot.slane %v13728_v45, %v12054_v8 }
0x1164   :  { %6652 = vmatprep.subr.mxu0 %v6613_v0  ;;  %6724 = vmatpush1.msra.mxu1 %v6614_v3  ;;  %v6026_v0 = vrot.slane %v13728_v45, %v12065_v13  ;;  %v6030_v3 = vrot.slane %v13728_v45, %v15017_v35 }
0x1165   :  { %6653 = vmatpush1.msra.mxu0 %v6612_v4  ;;  %11762 = vset.pattern.permute.xlu1 %v11921_v20  ;;  %v6384_v20 = vrot.slane %v13741_v12, %v12054_v8 }
0x1166   :  { %11126 = vmatmul.mubr.msk.f32.vlgmr.msra.gmra.mxu0 %vm2283_vm12, %v13608_v39  ;;  %11127 = vmatmul.mubr.msk.f32.vlgmr.msra.gmra.mxu1 %vm2283_vm12, %v13608_v39  ;;  %v6801_v37 = vpop.permute.xlu1 %6800 }
0x1167   :  { %v6807_v5 = vsel %vm15013_vm11, %v6799_v38, %v6801_v37  ;;  %6880 = vmatprep.mubr.f32.mxu0 %v13357_v62  ;;  %6951 = vmatprep.mubr.f32.mxu1 %v13357_v62  ;;  %v6808_v39 = vsel %vm15016_vm4, %v6801_v37, %v6803_v41  ;;  %v5346_v54 = vpop.f32.mrf.mxu0 }
0x1168   :  { %6846 = vmatprep.subr.mxu0 %v6807_v5 }
0x1169   :  { %6847 = vmatpush1.msra.mxu0 %v6806_v6  ;;  %v5348_v23 = vpop.f32.mrf.mxu0  ;;  %v6380_v6 = vrot.slane %v13741_v12, %v12052_v7 }
0x116a   :  { %11129 = vmatmul.mubr.msk.f32.vlgmr.msra.gmra.mxu0 %vm2283_vm12, %v13612_v40  ;;  %v6805_v2 = vpop.permute.xlu1 %6804 }
0x116b   :  { %v6809_v18 = vsel %vm15015_vm2, %v6803_v41, %v6805_v2  ;;  %7255 = vmatprep.mubr.f32.mxu0 %v13357_v62  ;;  %v5417_v15 = vpop.f32.mrf.mxu1  ;;  %v6388_v41 = vrot.slane %v13741_v12, %v12065_v13 }
0x116c   :  { %6917 = vmatprep.subr.mxu1 %v6809_v18 }
0x116d   :  { %6918 = vmatpush1.msra.mxu1 %v6808_v39  ;;  %v5419_v60 = vpop.f32.mrf.mxu1 }
0x116e   :  { %11130 = vmatmul.mubr.msk.f32.vlgmr.msra.gmra.mxu1 %vm2283_vm12, %v13612_v40  ;;  %v5274_v40 = vld [vmem:[%s14980_s29] ss:$8 sm:$0xf]  ;;  %vm15018_vm12 = vcmask 1043456  }
0x116f   :  { %7326 = vmatprep.mubr.f32.mxu1 %v13357_v62  ;;  %v5426_v46 = vrot.slane %v5274_v40, %v12052_v7  ;;  %v5430_v42 = vrot.slane %v5274_v40, %v12054_v8  ;;  %v5434_v16 = vrot.slane %v5274_v40, %v12065_v13  ;;  %v5438_v43 = vrot.slane %v5274_v40, %v15017_v35  ;;  %vm15019_vm5 = vmmov %vm15018_vm12 }
0x1170   :  { %vm15020_vm6 = vmmov %vm15019_vm5 }
0x1171   :  { %v5443_v47 = vmul.f32 %v5426_v46, %v5346_v54  ;;  %v5444_v33 = vmul.f32 %v5430_v42, %v5348_v23  ;;  %v5445_v58 = vmul.f32 %v5434_v16, %v5417_v15  ;;  %v5446_v50 = vmul.f32 %v5438_v43, %v5419_v60  ;;  %v13774_v15 = vld [vmem:[%s14980_s29 + $0x7] ss:$8 sm:$0xf]  ;;  %vm15021_vm11 = vmmov %vm15019_vm5 }
0x1172   :  { %v6574_v54 = vrot.slane %v13750_v59, %v12052_v7  ;;  %v6578_v46 = vrot.slane %v13750_v59, %v12054_v8  ;;  %v6586_v42 = vrot.slane %v13750_v59, %v15017_v35  ;;  %vm15022_vm9 = vmmov %vm15019_vm5 }
0x1173   :  { %vm15023_vm2 = vmmov %vm15019_vm5 }
0x1174   :  { %vm15024_vm4 = vmmov %vm15023_vm2 }
0x11fe   :  { %v5550_v9 = vpop.f32.mrf.mxu0 }
0x11ff   :  { %v5647_v28 = vmul.f32 %v5630_v11, %v5550_v9 }
0x1200   :  { %v5552_v24 = vpop.f32.mrf.mxu0 }
0x1201   :  { %v5648_v37 = vmul.f32 %v5634_v55, %v5552_v24  ;;  %v5651_v23 = vadd.f32 %v5647_v28, %v5443_v47  ;;  %v6780_v28 = vrot.slane %v13774_v15, %v15017_v35 }
0x1202   :  { %v5621_v10 = vpop.f32.mrf.mxu1 }
0x1203   :  { %v5649_v2 = vmul.f32 %v5638_v34, %v5621_v10  ;;  %v6582_v10 = vrot.slane %v13750_v59, %v12065_v13  ;;  %v5652_v16 = vadd.f32 %v5648_v37, %v5444_v33 }
0x1204   :  { %v5623_v21 = vpop.f32.mrf.mxu1 }
0x1205   :  { %v5650_v24 = vmul.f32 %v5642_v57, %v5623_v21  ;;  %v6772_v57 = vrot.slane %v13774_v15, %v12054_v8 }
0x1206   :  { %v5744_v25 = vpop.f32.mrf.mxu0 }
0x1207   :  { %v5841_v5 = vmul.f32 %v5824_v48, %v5744_v25  ;;  %v5654_v33 = vadd.f32 %v5650_v24, %v5446_v50 }
0x1208   :  { %v5746_v27 = vpop.f32.mrf.mxu0 }
0x1209   :  { %v5842_v60 = vmul.f32 %v5828_v56, %v5746_v27  ;;  %v5845_v43 = vadd.f32 %v5841_v5, %v5651_v23  ;;  %v6768_v27 = vrot.slane %v13774_v15, %v12052_v7 }
0x120a   :  { %v5815_v26 = vpop.f32.mrf.mxu1 }
0x120b   :  { %v5843_v25 = vmul.f32 %v5832_v51, %v5815_v26  ;;  %v6776_v26 = vrot.slane %v13774_v15, %v12065_v13  ;;  %v5846_v55 = vadd.f32 %v5842_v60, %v5652_v16 }
0x120c   :  { %v5817_v29 = vpop.f32.mrf.mxu1 }
0x120d   :  { %v5844_v11 = vmul.f32 %v5836_v63, %v5817_v29 }
0x120e   :  { %v5938_v31 = vpop.f32.mrf.mxu0 }
0x120f   :  { %v6035_v9 = vmul.f32 %v6018_v53, %v5938_v31  ;;  %v5653_v31 = vadd.f32 %v5649_v2, %v5445_v58  ;;  %v5848_v63 = vadd.f32 %v5844_v11, %v5654_v33 }
0x1210   :  { %v5940_v44 = vpop.f32.mrf.mxu0 }
0x1211   :  { %v6036_v17 = vmul.f32 %v6022_v1, %v5940_v44  ;;  %v6039_v48 = vadd.f32 %v6035_v9, %v5845_v43  ;;  %v11128_v44 = vld [vmem:[%s14980_s29 + $0x28] ss:$8 sm:$0xf]  ;;  %v5847_v12 = vadd.f32 %v5843_v25, %v5653_v31 }
0x1212   :  { %v6009_v22 = vpop.f32.mrf.mxu1  ;;  %v6966_v24 = vrot.slane %v11128_v44, %v12054_v8  ;;  %v6974_v31 = vrot.slane %v11128_v44, %v15017_v35 }
0x1213   :  { %v6037_v45 = vmul.f32 %v6026_v0, %v6009_v22  ;;  %v6040_v51 = vadd.f32 %v6036_v17, %v5846_v55 }
0x1214   :  { %v6011_v30 = vpop.f32.mrf.mxu1 }
0x1215   :  { %v6038_v58 = vmul.f32 %v6030_v3, %v6011_v30  ;;  %v6041_v1 = vadd.f32 %v6037_v45, %v5847_v12 }
0x1216   :  { %v13730_v36 = vpop.f32.mrf.mxu0 }
0x1217   :  { %v6207_v56 = vadd.f32 %v13730_v36, %v6039_v48  ;;  %v6042_v23 = vadd.f32 %v6038_v58, %v5848_v63 }
0x1218   :  { %v6133_v38 = vpop.f32.mrf.mxu0 }
0x1219   :  { %v6208_v50 = vadd.f32 %v6133_v38, %v6040_v51 }
0x121a   :  { %v13736_v61 = vpop.f32.mrf.mxu1 }
0x121c   :  { %v13759_v4 = vpop.f32.mrf.mxu1 }
0x121e   :  { %v6300_v18 = vpop.f32.mrf.mxu0  ;;  %v6371_v39 = vpop.f32.mrf.mxu1 }
0x121f   :  { %v6397_v34 = vmul.f32 %v6380_v6, %v6300_v18  ;;  %v6399_v0 = vmul.f32 %v6388_v41, %v6371_v39  ;;  %v6962_v6 = vrot.slane %v11128_v44, %v12052_v7  ;;  %v6209_v18 = vadd.f32 %v13736_v61, %v6041_v1 }
0x1220   :  { %v6302_v40 = vpop.f32.mrf.mxu0  ;;  %v6373_v32 = vpop.f32.mrf.mxu1  ;;  %v6210_v41 = vadd.f32 %v13759_v4, %v6042_v23 }
0x1221   :  { %v6398_v53 = vmul.f32 %v6384_v20, %v6302_v40  ;;  %v6401_v2 = vadd.f32 %v6397_v34, %v6207_v56  ;;  %v6400_v15 = vmul.f32 %v6392_v19, %v6373_v32  ;;  %v6403_v39 = vadd.f32 %v6399_v0, %v6209_v18 }
0x1222   :  { %v6494_v47 = vpop.f32.mrf.mxu0  ;;  %v6565_v21 = vpop.f32.mrf.mxu1 }
0x1223   :  { %v6591_v59 = vmul.f32 %v6574_v54, %v6494_v47  ;;  %v6593_v60 = vmul.f32 %v6582_v10, %v6565_v21  ;;  %v6402_v9 = vadd.f32 %v6398_v53, %v6208_v50  ;;  %v6404_v19 = vadd.f32 %v6400_v15, %v6210_v41  ;;  %v11144_v41 = vld [vmem:[%s14980_s29 + $0x2] ss:$8 sm:$0xf] }
0x1224   :  { %v6496_v29 = vpop.f32.mrf.mxu0  ;;  %v6567_v22 = vpop.f32.mrf.mxu1 }
0x1225   :  { %v6592_v30 = vmul.f32 %v6578_v46, %v6496_v29  ;;  %v6595_v20 = vadd.f32 %v6591_v59, %v6401_v2  ;;  %v6594_v25 = vmul.f32 %v6586_v42, %v6567_v22  ;;  %v6970_v46 = vrot.slane %v11128_v44, %v12065_v13 }
0x1226   :  { %v6688_v37 = vpop.f32.mrf.mxu0  ;;  %v6759_v5 = vpop.f32.mrf.mxu1  ;;  %v6597_v10 = vadd.f32 %v6593_v60, %v6403_v39  ;;  %v7500_v39 = vrot.slane %v11144_v41, %v12054_v8 }
0x1227   :  { %v6785_v3 = vmul.f32 %v6768_v27, %v6688_v37  ;;  %v6596_v16 = vadd.f32 %v6592_v30, %v6402_v9  ;;  %v6787_v61 = vmul.f32 %v6776_v26, %v6759_v5  ;;  %v6991_v27 = vpop.permute.xlu0 %6990  ;;  %v6598_v21 = vadd.f32 %v6594_v25, %v6404_v19 }
0x1228   :  { %v6690_v36 = vpop.f32.mrf.mxu0  ;;  %v6761_v40 = vpop.f32.mrf.mxu1  ;;  %v7496_v25 = vrot.slane %v11144_v41, %v12052_v7 }
0x1229   :  { %v6786_v54 = vmul.f32 %v6772_v57, %v6690_v36  ;;  %v6789_v43 = vadd.f32 %v6785_v3, %v6595_v20  ;;  %v6788_v45 = vmul.f32 %v6780_v28, %v6761_v40  ;;  %v6791_v55 = vadd.f32 %v6787_v61, %v6597_v10  ;;  %v11131_v36 = vld [vmem:[%s14980_s29 + $0x1] ss:$8 sm:$0xf] }
0x122a   :  { %v6882_v38 = vpop.f32.mrf.mxu0  ;;  %v7125_v9 = vrot.slane %v11131_v36, %v12052_v7  ;;  %v7129_v20 = vrot.slane %v11131_v36, %v12054_v8  ;;  %v7504_v40 = vrot.slane %v11144_v41, %v12065_v13 }
0x122b   :  { %v6979_v17 = vmul.f32 %v6962_v6, %v6882_v38  ;;  %v6790_v11 = vadd.f32 %v6786_v54, %v6596_v16  ;;  %v6792_v26 = vadd.f32 %v6788_v45, %v6598_v21  ;;  %v7137_v54 = vrot.slane %v11131_v36, %v15017_v35  ;;  %v11151_v38 = vld [vmem:[%s14980_s29 + $0x3] ss:$8 sm:$0xf]  ;;  %v11178_v21 = vld [vmem:[%s14980_s29 + $0x7] ss:$8 sm:$0xf] }
0x122c   :  { %v6884_v32 = vpop.f32.mrf.mxu0  ;;  %v7712_v16 = vrot.slane %v11151_v38, %v12052_v7  ;;  %v7720_v61 = vrot.slane %v11151_v38, %v12065_v13 }
0x122d   :  { %v6983_v47 = vadd.f32 %v6979_v17, %v6789_v43  ;;  %v6980_v4 = vmul.f32 %v6966_v24, %v6884_v32  ;;  %v7133_v24 = vrot.slane %v11131_v36, %v12065_v13  ;;  %v7724_v43 = vrot.slane %v11151_v38, %v15017_v35  ;;  %v11164_v17 = vld [vmem:[%s14980_s29 + $0x5] ss:$8 sm:$0xf] }
0x122e   :  { %v6953_v42 = vpop.f32.mrf.mxu1  ;;  %v8109_v19 = vrot.slane %v11164_v17, %v12054_v8  ;;  %v8105_v10 = vrot.slane %v11164_v17, %v12052_v7  ;;  %v8117_v32 = vrot.slane %v11164_v17, %v15017_v35 }
0x122f   :  { %v6984_v48 = vadd.f32 %v6980_v4, %v6790_v11  ;;  %v13800_v34 = vadd.f32 %v6991_v27, %v6983_v47  ;;  %v6981_v57 = vmul.f32 %v6970_v46, %v6953_v42  ;;  %v7716_v46 = vrot.slane %v11151_v38, %v12054_v8 }
0x1230   :  { %v6955_v33 = vpop.f32.mrf.mxu1  ;;  %v8541_v42 = vrot.slane %v11178_v21, %v12054_v8 }
0x1231   :  { %v13802_v12 = vadd.f32 %v6991_v27, %v6984_v48  ;;  %v6985_v58 = vadd.f32 %v6981_v57, %v6791_v55  ;;  %v6982_v29 = vmul.f32 %v6974_v31, %v6955_v33  ;;  %v6997_v44 = vsel %vm15018_vm12, %v13800_v34, 0.0  ;;  %vm15025_vm12 = vmmov %vm15023_vm2  ;;  %v11171_v31 = vld [vmem:[%s14980_s29 + $0x6] ss:$8 sm:$0xf] }
0x1232   :  { %v7008_v22 = vmul.f32 %v13800_v34, %v13800_v34  ;;  %v8325_v11 = vrot.slane %v11171_v31, %v12054_v8  ;;  %v8321_v45 = vrot.slane %v11171_v31, %v12052_v7  ;;  %v8333_v47 = vrot.slane %v11171_v31, %v15017_v35  ;;  %v11185_v33 = vld [vmem:[%s14980_s29 + $0x28] ss:$8 sm:$0xf] }
0x1233   :  { %v13808_v28 = vadd.f32 %v6991_v27, %v6985_v58  ;;  %v6986_v56 = vadd.f32 %v6982_v29, %v6792_v26  ;;  %v6998_v51 = vsel %vm15019_vm5, %v13802_v12, 0.0  ;;  %v7009_v53 = vmul.f32 %v13802_v12, %v13802_v12  ;;  %v7088_v29 = vld [vmem:[%s14895_s10 + $0x20] sm:$0xf] }
0x1234   :  { %v6999_v59 = vadd.f32 %v6998_v51, %v6997_v44  ;;  %v7012_v63 = vsel %vm15020_vm6, %v7008_v22, 0.0  ;;  %v8329_v4 = vrot.slane %v11171_v31, %v12065_v13  ;;  %v8537_v55 = vrot.slane %v11178_v21, %v12052_v7  ;;  %v13910_v44 = vld [vmem:[%s14895_s10 + $0x28] sm:$0xf] }
0x1235   :  { %v13815_v1 = vadd.f32 %v6991_v27, %v6986_v56  ;;  %v7000_v0 = vsel %vm15021_vm11, %v13808_v28, 0.0  ;;  %v7010_v37 = vmul.f32 %v13808_v28, %v13808_v28  ;;  %v7013_v5 = vsel %vm15022_vm9, %v7009_v53, 0.0 }
0x1236   :  { %v7001_v6 = vadd.f32 %v7000_v0, %v6999_v59  ;;  %v7014_v50 = vadd.f32 %v7013_v5, %v7012_v63  ;;  %v8113_v27 = vrot.slane %v11164_v17, %v12065_v13  ;;  %v8549_v48 = vrot.slane %v11178_v21, %v15017_v35 }
0x1237   :  { %v7002_v2 = vsel %vm15023_vm2, %v13815_v1, 0.0  ;;  %v7011_v30 = vmul.f32 %v13815_v1, %v13815_v1  ;;  %v7015_v3 = vsel %vm15024_vm4, %v7010_v37, 0.0  ;;  %v8545_v57 = vrot.slane %v11178_v21, %v12065_v13 }
0x1238   :  { %v7003_v18 = vadd.f32 %v7002_v2, %v7001_v6  ;;  %v7016_v23 = vadd.f32 %v7015_v3, %v7014_v50  ;;  %v8757_v26 = vrot.slane %v11185_v33, %v12054_v8  ;;  %v8765_v58 = vrot.slane %v11185_v33, %v15017_v35 }
0x1239   :  { %v7017_v15 = vsel %vm15025_vm12, %v7011_v30, 0.0  ;;  %vm15031_vm2 = vcmask 1043592   ;;  %vm15032_vm4 = vcmask 134144   ;;  %vm15033_vm12 = vcmask 7168  }
0x123a   :  { %7004 = vadd.xlane.f32.xlu1 %v7003_v18  ;;  %v7018_v60 = vadd.f32 %v7017_v15, %v7016_v23 }
0x123c   :  { %7019 = vadd.xlane.f32.xlu0 %v7018_v60 }
0x124b   :  { %7036 = vperm.xlu1 %11762, %v13600_v49  }
0x124f   :  { %7138 = vrot.lane.b32.xlu1 %v7125_v9, %s15026_s17 }
0x1252   :  { %7044 = vperm.xlu0 %11763, %v13600_v49   ;;  %v7508_v49 = vrot.slane %v11144_v41, %v15017_v35 }
0x1253   :  { %7140 = vrot.lane.b32.xlu1 %v7129_v20, %s15026_s17 }
0x1256   :  { %7144 = vrot.lane.b32.xlu0 %v7137_v54, %s15026_s17 }
0x1257   :  { %7142 = vrot.lane.b32.xlu1 %v7133_v24, %s15026_s17 }
0x125a   :  { %7511 = vrot.lane.b32.xlu0 %v7500_v39, %s15027_s9 }
0x125b   :  { %7509 = vrot.lane.b32.xlu1 %v7496_v25, %s15027_s9 }
0x125e   :  { %7515 = vrot.lane.b32.xlu0 %v7508_v49, %s15027_s9 }
0x125f   :  { %7513 = vrot.lane.b32.xlu1 %v7504_v40, %s15027_s9 }
0x1262   :  { %7727 = vrot.lane.b32.xlu0 %v7716_v46, %s14986_s0 }
0x1263   :  { %7725 = vrot.lane.b32.xlu1 %v7712_v16, %s14986_s0 }
0x1266   :  { %7731 = vrot.lane.b32.xlu0 %v7724_v43, %s14986_s0  ;;  %v8753_v43 = vrot.slane %v11185_v33, %v12052_v7 }
0x1267   :  { %7729 = vrot.lane.b32.xlu1 %v7720_v61, %s14986_s0  ;;  %v8761_v61 = vrot.slane %v11185_v33, %v12065_v13 }
0x126a   :  { %8120 = vrot.lane.b32.xlu0 %v8109_v19, %s15028_s26 }
0x126b   :  { %8118 = vrot.lane.b32.xlu1 %v8105_v10, %s15028_s26 }
0x126e   :  { %8124 = vrot.lane.b32.xlu0 %v8117_v32, %s15028_s26 }
0x126f   :  { %8122 = vrot.lane.b32.xlu1 %v8113_v27, %s15028_s26 }
0x1272   :  { %8336 = vrot.lane.b32.xlu0 %v8325_v11, %s14985_s3 }
0x1273   :  { %8334 = vrot.lane.b32.xlu1 %v8321_v45, %s14985_s3 }
0x1276   :  { %8340 = vrot.lane.b32.xlu0 %v8333_v47, %s14985_s3 }
0x1277   :  { %8338 = vrot.lane.b32.xlu1 %v8329_v4, %s14985_s3 }
0x127a   :  { %8552 = vrot.lane.b32.xlu0 %v8541_v42, %s15029_s12 }
0x127b   :  { %8550 = vrot.lane.b32.xlu1 %v8537_v55, %s15029_s12 }
0x127e   :  { %8556 = vrot.lane.b32.xlu0 %v8549_v48, %s15029_s12 }
0x127f   :  { %8554 = vrot.lane.b32.xlu1 %v8545_v57, %s15029_s12 }
0x1282   :  { %8768 = vrot.lane.b32.xlu0 %v8757_v26, %s15030_s13 }
0x1286   :  { %8772 = vrot.lane.b32.xlu0 %v8765_v58, %s15030_s13 }
0x128a   :  { %7160 = vrot.lane.b32.xlu0 %v7088_v29, %s14984_s23 }
0x128e   :  { %8139 = vrot.lane.b32.xlu0 %v13910_v44, %s14991_s16 }
0x1292   :  { %8355 = vrot.lane.b32.xlu0 %v13910_v44, %s14990_s28 }
0x1296   :  { %8571 = vrot.lane.b32.xlu0 %v13910_v44, %s14992_s21 }
0x129a   :  { %8787 = vrot.lane.b32.xlu0 %v13910_v44, %s14983_s24 }
0x12c3   :  { %v7005_v22 = vpop.xlane.xlu1 %7004 }
0x12c4   :  { %v7007_v56 = vmul.f32 0.001953125, %v7005_v22 }
0x12c5   :  { %v7020_v51 = vpop.xlane.xlu0 %7019 }
0x12c6   :  { %v7021_v53 = vmul.f32 0.001953125, %v7020_v51  ;;  %v7022_v59 = vmul.f32 %v7007_v56, %v7007_v56  ;;  %v7025_v5 = vsub.f32 %v13800_v34, %v7007_v56  ;;  %v7026_v6 = vsub.f32 %v13802_v12, %v7007_v56 }
0x12c7   :  { %v7027_v50 = vsub.f32 %v13808_v28, %v7007_v56  ;;  %v7037_v30 = vpop.permute.xlu1 %7036  ;;  %v7028_v60 = vsub.f32 %v13815_v1, %v7007_v56 }
0x12c8   :  { %v7023_v63 = vsub.f32 %v7021_v53, %v7022_v59 }
0x12ca   :  { %v7024_v0 = vmax.f32 %v7023_v63, 0.0 }
0x12cb   :  { %v13935_v17 = vpop.permute.xlu1 %7138 }
0x12cc   :  { %v7029_v37 = vadd.f32 1e-05, %v7024_v0 }
0x12cd   :  { %v7045_v15 = vpop.permute.xlu0 %7044 }
0x12ce   :  { %11782 = vrsqrt.f32 %v7029_v37 }
0x12cf   :  { %v13937_v19 = vpop.permute.xlu1 %7140 }
0x12d1   :  { %v13957_v42 = vpop.permute.xlu0 %7144 }
0x12d3   :  { %v13939_v10 = vpop.permute.xlu1 %7142 }
0x12d5   :  { %v13961_v48 = vpop.permute.xlu0 %7511 }
0x12d7   :  { %v13941_v32 = vpop.permute.xlu1 %7509 }
0x12d9   :  { %v13965_v33 = vpop.permute.xlu0 %7515 }
0x12db   :  { %v11783_v2 = vpop.eup %11782  ;;  %v13943_v27 = vpop.permute.xlu1 %7513 }
0x12dc   :  { %v7031_v3 = vmul.f32 %v11783_v2, %v7025_v5  ;;  %v7032_v18 = vmul.f32 %v11783_v2, %v7026_v6  ;;  %v7033_v23 = vmul.f32 %v11783_v2, %v7027_v50  ;;  %v7034_v20 = vmul.f32 %v11783_v2, %v7028_v60 }
0x12dd   :  { %v13968_v58 = vpop.permute.xlu0 %7727 }
0x12de   :  { %v7039_v36 = vmul.f32 %v7037_v30, %v7031_v3  ;;  %v7040_v9 = vmul.f32 %v7037_v30, %v7032_v18  ;;  %v7041_v54 = vmul.f32 %v7037_v30, %v7033_v23  ;;  %v7042_v39 = vmul.f32 %v7037_v30, %v7034_v20 }
0x12df   :  { %v13945_v31 = vpop.permute.xlu1 %7725 }
0x12e0   :  { %v7047_v24 = vadd.f32 %v7045_v15, %v7039_v36  ;;  %v7048_v41 = vadd.f32 %v7045_v15, %v7040_v9  ;;  %v7049_v28 = vadd.f32 %v7045_v15, %v7041_v54  ;;  %v7050_v38 = vadd.f32 %v7045_v15, %v7042_v39 }
0x12e1   :  { %v13976_v59 = vpop.permute.xlu0 %7731 }
0x12e2   :  { %vm7051_vm5 = vcmp.ge.f32.partialorder %v7047_v24, 0.0  ;;  %v7055_v34 = vmul.f32 0.01, %v7047_v24  ;;  %v7056_v25 = vmul.f32 0.01, %v7048_v41  ;;  %vm7052_vm6 = vcmp.ge.f32.partialorder %v7048_v41, 0.0 }
0x12e3   :  { %v7057_v40 = vmul.f32 0.01, %v7049_v28  ;;  %vm7053_vm11 = vcmp.ge.f32.partialorder %v7049_v28, 0.0  ;;  %v7058_v46 = vmul.f32 0.01, %v7050_v38  ;;  %vm7054_vm9 = vcmp.ge.f32.partialorder %v7050_v38, 0.0  ;;  %v13947_v11 = vpop.permute.xlu1 %7729 }
0x12e4   :  { %v7059_v12 = vsel %vm7051_vm5, %v7047_v24, %v7055_v34  ;;  %v7060_v49 = vsel %vm7052_vm6, %v7048_v41, %v7056_v25  ;;  %vm15034_vm5 = vmmov %vm15033_vm12  ;;  %vm15035_vm6 = vcmask 15360  }
0x12e5   :  { %7067 = vrot.lane.b32.xlu1 %v7059_v12, %s15002_s4  ;;  %v7061_v1 = vsel %vm7053_vm11, %v7049_v28, %v7057_v40  ;;  %v7062_v16 = vsel %vm7054_vm9, %v7050_v38, %v7058_v46  ;;  %v13980_v37 = vpop.permute.xlu0 %8120  ;;  %v7147_v38 = vsel %vm15033_vm12, %v13937_v19, %v13939_v10  ;;  %vm15036_vm11 = vmmov %vm15034_vm5 }
0x12e6   :  { %vm15037_vm9 = vmmov %vm15035_vm6 }
0x12e7   :  { %v13949_v45 = vpop.permute.xlu1 %8118 }
0x12e9   :  { %7069 = vrot.lane.b32.xlu1 %v7060_v49, %s15002_s4  ;;  %v13992_v2 = vpop.permute.xlu0 %8124 }
0x12eb   :  { %v13951_v47 = vpop.permute.xlu1 %8122 }
0x12ed   :  { %7071 = vrot.lane.b32.xlu1 %v7061_v1, %s15002_s4  ;;  %v14005_v23 = vpop.permute.xlu0 %8336  ;;  %v7146_v1 = vsel %vm15034_vm5, %v13935_v17, %v13937_v19  ;;  %v7519_v19 = vsel %vm15037_vm9, %v13943_v27, %v13965_v33 }
0x12ef   :  { %v13953_v4 = vpop.permute.xlu1 %8334 }
0x12f1   :  { %7073 = vrot.lane.b32.xlu1 %v7062_v16, %s15002_s4  ;;  %v14016_v9 = vpop.permute.xlu0 %8340 }
0x12f3   :  { %v13955_v21 = vpop.permute.xlu1 %8338 }
0x12f5   :  { %8766 = vrot.lane.b32.xlu1 %v8753_v43, %s15030_s13  ;;  %v14027_v41 = vpop.permute.xlu0 %8552  ;;  %v7517_v43 = vsel %vm15035_vm6, %v13941_v32, %v13961_v48 }
0x12f7   :  { %v13959_v55 = vpop.permute.xlu1 %8550 }
0x12f9   :  { %8770 = vrot.lane.b32.xlu1 %v8761_v61, %s15030_s13  ;;  %v14040_v28 = vpop.permute.xlu0 %8556  ;;  %v7148_v61 = vsel %vm15036_vm11, %v13939_v10, %v13957_v42  ;;  %vm15043_vm11 = vcmask 277504  }
0x12fb   :  { %v13963_v57 = vpop.permute.xlu1 %8554 }
0x12fd   :  { %7333 = vrot.lane.b32.xlu1 %v7088_v29, %s14983_s24 }
0x1301   :  { %7530 = vrot.lane.b32.xlu1 %v7088_v29, %s14985_s3 }
0x1305   :  { %7746 = vrot.lane.b32.xlu1 %v7088_v29, %s14986_s0 }
0x1357   :  { %v7068_v26 = vpop.permute.xlu1 %7067 }
0x1358   :  { %7083 = vst.msk [vmem:[#allocation2] sm:$0xf] %vm15031_vm2, %v7068_v26  ;;  %vm15038_vm2 = vmmov %vm15035_vm6  ;;  %vm15042_vm6 = vcmask 269312  }
0x1359   :  { %vm15044_vm9 = vmmov %vm15042_vm6 }
0x135b   :  { %v7070_v29 = vpop.permute.xlu1 %7069 }
0x135c   :  { %v7075_v22 = vsel %vm98_vm3, %v7068_v26, %v7070_v29 }
0x135d   :  { %7084 = vst [vmem:[#allocation2 + $0x8] sm:$0xf] %v7075_v22 }
0x135f   :  { %v7072_v56 = vpop.permute.xlu1 %7071  ;;  %v13971_v51 = vld [vmem:[#allocation2] sm:$0xf] }
0x1360   :  { %v7076_v53 = vsel %vm98_vm3, %v7070_v29, %v7072_v56  ;;  %7929 = vrot.lane.b32.xlu0 %v13971_v51, %s14995_s6  ;;  %v7154_v3 = vmul.f32 %v13935_v17, %v13971_v51  ;;  %v7525_v60 = vmul.f32 %v13941_v32, %v13971_v51  ;;  %v7741_v20 = vmul.f32 %v13945_v31, %v13971_v51 }
0x1361   :  { %7085 = vst [vmem:[#allocation2 + $0x10] sm:$0xf] %v7076_v53  ;;  %v8134_v54 = vmul.f32 %v13949_v45, %v13971_v51  ;;  %v8350_v34 = vmul.f32 %v13953_v4, %v13971_v51  ;;  %v8566_v12 = vmul.f32 %v13959_v55, %v13971_v51  ;;  %v7518_v32 = vsel %vm15038_vm2, %v13961_v48, %v13943_v27  ;;  %vm15045_vm2 = vmmov %vm15042_vm6 }
0x1362   :  { %v7735_v48 = vsel %vm766_vm7, %v13947_v11, %v13976_v59 }
0x1363   :  { %v7074_v63 = vpop.permute.xlu1 %7073 }
0x1364   :  { %v7077_v0 = vsel %vm98_vm3, %v7072_v56, %v7074_v63  ;;  %7087 = vst.msk [vmem:[#allocation2 + $0x20] sm:$0xf] %vm15032_vm4, %v7074_v63  ;;  %v13996_v30 = vld [vmem:[#allocation2 + $0x8] sm:$0xf]  ;;  %vm15039_vm4 = vcmask 146432   ;;  %v8343_v63 = vsel %vm1381_vm8, %v14005_v23, %v13955_v21 }
0x1365   :  { %7086 = vst [vmem:[#allocation2 + $0x18] sm:$0xf] %v7077_v0  ;;  %v7155_v16 = vmul.f32 %v7146_v1, %v13996_v30  ;;  %v7526_v26 = vmul.f32 %v7517_v43, %v13996_v30  ;;  %vm15040_vm12 = vmmov %vm15039_vm4  ;;  %v8342_v0 = vsel %vm1381_vm8, %v13953_v4, %v14005_v23 }
0x1366   :  { %v8127_v53 = vsel %vm15040_vm12, %v13980_v37, %v13951_v47  ;;  %vm15041_vm5 = vmmov %vm15039_vm4 }
0x1367   :  { %v14037_v25 = vpop.permute.xlu1 %8766 }
0x1368   :  { %v13982_v5 = vld [vmem:[#allocation2 + $0x10] sm:$0xf]  ;;  %v8782_v40 = vmul.f32 %v14037_v25, %v13971_v51 }
0x1369   :  { %7933 = vrot.lane.b32.xlu1 %v13982_v5, %s14995_s6  ;;  %v7156_v46 = vmul.f32 %v7147_v38, %v13982_v5  ;;  %v7527_v10 = vmul.f32 %v7518_v32, %v13982_v5 }
0x136b   :  { %v13986_v6 = vld [vmem:[#allocation2 + $0x20] sm:$0xf] }
0x136c   :  { %v13988_v50 = vld [vmem:[#allocation2 + $0x18] sm:$0xf]  ;;  %7937 = vrot.lane.b32.xlu0 %v13986_v6, %s14995_s6  ;;  %v7158_v18 = vmul.f32 %v13957_v42, %v13986_v6  ;;  %v7529_v15 = vmul.f32 %v13965_v33, %v13986_v6  ;;  %v7745_v36 = vmul.f32 %v13976_v59, %v13986_v6  ;;  %v8138_v24 = vmul.f32 %v13992_v2, %v13986_v6 }
0x136d   :  { %7935 = vrot.lane.b32.xlu1 %v13988_v50, %s14995_s6  ;;  %v8354_v39 = vmul.f32 %v14016_v9, %v13986_v6  ;;  %v8570_v49 = vmul.f32 %v14040_v28, %v13986_v6  ;;  %v7157_v17 = vmul.f32 %v7148_v61, %v13988_v50  ;;  %v7528_v29 = vmul.f32 %v7519_v19, %v13988_v50 }
0x136e   :  { %v7733_v42 = vsel %vm766_vm7, %v13945_v31, %v13968_v58  ;;  %v7734_v33 = vsel %vm766_vm7, %v13968_v58, %v13947_v11  ;;  %v8126_v31 = vsel %vm15039_vm4, %v13949_v45, %v13980_v37  ;;  %v7744_v56 = vmul.f32 %v7735_v48, %v13988_v50  ;;  %vm15046_vm4 = vmmov %vm15043_vm11 }
0x136f   :  { %v7742_v22 = vmul.f32 %v7733_v42, %v13996_v30  ;;  %v7743_v27 = vmul.f32 %v7734_v33, %v13982_v5  ;;  %v8135_v58 = vmul.f32 %v8126_v31, %v13996_v30  ;;  %v8128_v11 = vsel %vm15041_vm5, %v13951_v47, %v13992_v2  ;;  %v8771_v2 = vpop.permute.xlu1 %8770  ;;  %vm15047_vm12 = vmmov %vm15046_vm4 }
0x1370   :  { %7931 = vrot.lane.b32.xlu0 %v13996_v30, %s14995_s6  ;;  %v8136_v59 = vmul.f32 %v8127_v53, %v13982_v5  ;;  %v8137_v45 = vmul.f32 %v8128_v11, %v13988_v50  ;;  %v8352_v37 = vmul.f32 %v8343_v63, %v13982_v5  ;;  %v8351_v47 = vmul.f32 %v8342_v0, %v13996_v30 }
0x1371   :  { %7167 = vrot.lane.b32.xlu1 %v7154_v3, %s14993_s20  ;;  %v8559_v3 = vsel %vm15042_vm6, %v14027_v41, %v13963_v57  ;;  %vm15048_vm5 = vcmask 1043456  }
0x1372   :  { %v8568_v4 = vmul.f32 %v8559_v3, %v13982_v5  ;;  %vm15049_vm6 = vmmov %vm15048_vm5 }
0x1374   :  { %7175 = vrot.lane.b32.xlu0 %v7158_v18, %s14993_s20  ;;  %v8769_v18 = vpop.permute.xlu0 %8768 }
0x1375   :  { %7545 = vrot.lane.b32.xlu1 %v7529_v15, %s14994_s27  ;;  %v8344_v15 = vsel %vm1381_vm8, %v13955_v21, %v14016_v9  ;;  %v8775_v23 = vsel %vm15043_vm11, %v8769_v18, %v8771_v2  ;;  %v8560_v21 = vsel %vm15045_vm2, %v13963_v57, %v14040_v28  ;;  %vm15050_vm11 = vcmask 31744   ;;  %vm15052_vm2 = vmmov %vm15048_vm5 }
0x1378   :  { %7537 = vrot.lane.b32.xlu0 %v7525_v60, %s14994_s27  ;;  %v8353_v60 = vmul.f32 %v8344_v15, %v13988_v50 }
0x1379   :  { %7761 = vrot.lane.b32.xlu1 %v7745_v36, %s14991_s16  ;;  %v8558_v36 = vsel %vm15044_vm9, %v13959_v55, %v14027_v41  ;;  %v8774_v55 = vsel %vm15046_vm4, %v14037_v25, %v8769_v18  ;;  %v11923_v41 = vmov 12   ;;  %vm15051_vm9 = vmmov %vm15048_vm5 }
0x137a   :  { %11764 = vset.pattern.permute.xlu1 %v11923_v41  ;;  %vm15053_vm4 = vmmov %vm15052_vm2 }
0x137c   :  { %7753 = vrot.lane.b32.xlu0 %v7741_v20, %s14991_s16  ;;  %v8784_v20 = vmul.f32 %v8775_v23, %v13982_v5 }
0x137d   :  { %8146 = vrot.lane.b32.xlu1 %v8134_v54, %s14996_s1  ;;  %v8773_v54 = vpop.permute.xlu0 %8772 }
0x137e   :  { %v8786_v9 = vmul.f32 %v8773_v54, %v13986_v6  ;;  %v14154_v6 = vld [vmem:[%s14896_s11] sm:$0xf] }
0x1380   :  { %8154 = vrot.lane.b32.xlu0 %v8138_v24, %s14996_s1  ;;  %v8567_v24 = vmul.f32 %v8558_v36, %v13996_v30 }
0x1381   :  { %8362 = vrot.lane.b32.xlu1 %v8350_v34, %s14990_s28  ;;  %v8569_v34 = vmul.f32 %v8560_v21, %v13988_v50  ;;  %v7161_v25 = vpop.permute.xlu0 %7160 }
0x1384   :  { %8370 = vrot.lane.b32.xlu0 %v8354_v39, %s14990_s28  ;;  %v8783_v39 = vmul.f32 %v8774_v55, %v13996_v30 }
0x1385   :  { %8578 = vrot.lane.b32.xlu1 %v8566_v12, %s15003_s2  ;;  %v8776_v12 = vsel %vm15047_vm12, %v8771_v2, %v8773_v54  ;;  %v14157_v28 = vpop.permute.xlu0 %8139  ;;  %vm15054_vm12 = vmmov %vm15052_vm2 }
0x1386   :  { %v8785_v57 = vmul.f32 %v8776_v12, %v13988_v50 }
0x1388   :  { %8586 = vrot.lane.b32.xlu0 %v8570_v49, %s15003_s2 }
0x1389   :  { %8794 = vrot.lane.b32.xlu1 %v8782_v40, %s15004_s30  ;;  %v14159_v49 = vpop.permute.xlu0 %8355  ;;  %v14161_v40 = vpop.permute.xlu1 %7333 }
0x138c   :  { %7171 = vrot.lane.b32.xlu0 %v7156_v46, %s14993_s20 }
0x138d   :  { %7169 = vrot.lane.b32.xlu1 %v7155_v16, %s14993_s20  ;;  %v14163_v38 = vpop.permute.xlu0 %8571  ;;  %v14165_v1 = vpop.permute.xlu1 %7530 }
0x1390   :  { %7539 = vrot.lane.b32.xlu0 %v7526_v26, %s14994_s27 }
0x1391   :  { %7173 = vrot.lane.b32.xlu1 %v7157_v17, %s14993_s20  ;;  %v14167_v46 = vpop.permute.xlu0 %8787  ;;  %v14169_v16 = vpop.permute.xlu1 %7746 }
0x1394   :  { %7543 = vrot.lane.b32.xlu0 %v7528_v29, %s14994_s27 }
0x1395   :  { %7541 = vrot.lane.b32.xlu1 %v7527_v10, %s14994_s27 }
0x1398   :  { %7755 = vrot.lane.b32.xlu0 %v7742_v22, %s14991_s16 }
0x1399   :  { %7757 = vrot.lane.b32.xlu1 %v7743_v27, %s14991_s16 }
0x139c   :  { %7759 = vrot.lane.b32.xlu0 %v7744_v56, %s14991_s16 }
0x139d   :  { %8148 = vrot.lane.b32.xlu1 %v8135_v58, %s14996_s1 }
0x13a0   :  { %8150 = vrot.lane.b32.xlu0 %v8136_v59, %s14996_s1  ;;  %v7093_v59 = vld [vmem:[%s14980_s29] ss:$8 sm:$0xf] }
0x13a1   :  { %8152 = vrot.lane.b32.xlu1 %v8137_v45, %s14996_s1  ;;  %v7102_v45 = vrot.slane %v7093_v59, %v12054_v8  ;;  %v7098_v0 = vrot.slane %v7093_v59, %v12052_v7 }
0x13a3   :  { %v7116_v3 = vmul.f32 %v7102_v45, %v13996_v30  ;;  %v7115_v15 = vmul.f32 %v7098_v0, %v13971_v51 }
0x13a4   :  { %8366 = vrot.lane.b32.xlu0 %v8352_v37, %s14990_s28 }
0x13a5   :  { %8364 = vrot.lane.b32.xlu1 %v8351_v47, %s14990_s28 }
0x13a8   :  { %8582 = vrot.lane.b32.xlu0 %v8568_v4, %s15003_s2  ;;  %v7110_v4 = vrot.slane %v7093_v59, %v15017_v35 }
0x13a9   :  { %8368 = vrot.lane.b32.xlu1 %v8353_v60, %s14990_s28  ;;  %v7106_v60 = vrot.slane %v7093_v59, %v12065_v13 }
0x13ab   :  { %v7117_v21 = vmul.f32 %v7106_v60, %v13982_v5 }
0x13ac   :  { %8798 = vrot.lane.b32.xlu0 %v8784_v20, %s15004_s30  ;;  %v7118_v20 = vmul.f32 %v7110_v4, %v13988_v50 }
0x13ad   :  { %8580 = vrot.lane.b32.xlu1 %v8567_v24, %s15003_s2 }
0x13b0   :  { %8802 = vrot.lane.b32.xlu0 %v8786_v9, %s15004_s30 }
0x13b1   :  { %8584 = vrot.lane.b32.xlu1 %v8569_v34, %s15003_s2 }
0x13b5   :  { %8796 = vrot.lane.b32.xlu1 %v8783_v39, %s15004_s30 }
0x13b9   :  { %8800 = vrot.lane.b32.xlu1 %v8785_v57, %s15004_s30 }
0x13bd   :  { %8967 = vperm.xlu1 %11764, %v14154_v6  }
0x13d2   :  { %v14171_v43 = vpop.permute.xlu0 %7929 }
0x13db   :  { %v14173_v61 = vpop.permute.xlu1 %7933 }
0x13de   :  { %v14175_v26 = vpop.permute.xlu0 %7937 }
0x13df   :  { %v14177_v17 = vpop.permute.xlu1 %7935 }
0x13e2   :  { %v14179_v19 = vpop.permute.xlu0 %7931 }
0x13e3   :  { %v7168_v32 = vpop.permute.xlu1 %7167  ;;  %v7940_v57 = vsel %vm975_vm15, %v14179_v19, %v14173_v61 }
0x13e6   :  { %v7176_v29 = vpop.permute.xlu0 %7175 }
0x13e7   :  { %v7546_v10 = vpop.permute.xlu1 %7545 }
0x13ea   :  { %v7538_v42 = vpop.permute.xlu0 %7537 }
0x13eb   :  { %v14181_v33 = vpop.permute.xlu1 %7761 }
0x13ee   :  { %v7754_v22 = vpop.permute.xlu0 %7753 }
0x13ef   :  { %v14183_v27 = vpop.permute.xlu1 %8146 }
0x13f2   :  { %v14185_v48 = vpop.permute.xlu0 %8154 }
0x13f3   :  { %v14187_v31 = vpop.permute.xlu1 %8362 }
0x13f6   :  { %v14189_v56 = vpop.permute.xlu0 %8370 }
0x13f7   :  { %v14191_v58 = vpop.permute.xlu1 %8578 }
0x13fa   :  { %v14193_v53 = vpop.permute.xlu0 %8586 }
0x13fb   :  { %v14195_v11 = vpop.permute.xlu1 %8794 }
0x13fe   :  { %v7172_v63 = vpop.permute.xlu0 %7171 }
0x13ff   :  { %v7170_v37 = vpop.permute.xlu1 %7169 }
0x1400   :  { %v7177_v47 = vsel %vm205_vm10, %v7168_v32, %v7170_v37  ;;  %v7178_v2 = vsel %vm205_vm10, %v7170_v37, %v7172_v63 }
0x1401   :  { %11132 = vmatprep.subr.msk.mxu0 %vm15048_vm5, %v7178_v2  ;;  %vm15055_vm5 = vmmov %vm15050_vm11 }
0x1402   :  { %v7540_v18 = vpop.permute.xlu0 %7539  ;;  %11133 = vmatpush1.msk.msra.mxu0 %vm15049_vm6, %v7177_v47  ;;  %vm15056_vm6 = vmmov %vm15055_vm5 }
0x1403   :  { %11134 = vmatmul.mubr.msk.f32.vlgmr.msra.gmra.mxu0 %vm15050_vm11, %v7161_v25  ;;  %11138 = vmatprep.subr.msk.mxu0 %vm15051_vm9, %v7116_v3  ;;  %v7174_v23 = vpop.permute.xlu1 %7173  ;;  %vm15057_vm11 = vmmov %vm15052_vm2  ;;  %v7547_v34 = vsel %vm578_vm13, %v7538_v42, %v7540_v18 }
0x1404   :  { %v7179_v36 = vsel %vm205_vm10, %v7172_v63, %v7174_v23  ;;  %11139 = vmatpush1.msk.msra.mxu0 %vm15052_vm2, %v7115_v15  ;;  %v7180_v30 = vsel %vm205_vm10, %v7174_v23, %v7176_v29  ;;  %7413 = vmatprep.mubr.f32.mxu0 %v13357_v62  ;;  %vm15058_vm9 = vmmov %vm15052_vm2  ;;  %v7939_v29 = vsel %vm975_vm15, %v14171_v43, %v14179_v19  ;;  %v11925_v15 = vmov 14  }
0x1405   :  { %11135 = vmatprep.subr.msk.mxu1 %vm15053_vm4, %v7180_v30  ;;  %vm15059_vm4 = vmmov %vm15052_vm2  ;;  %v7941_v43 = vsel %vm975_vm15, %v14173_v61, %v14177_v17  ;;  %11766 = vset.pattern.permute.xlu1 %v11925_v15 }
0x1406   :  { %v7544_v51 = vpop.permute.xlu0 %7543  ;;  %11136 = vmatpush1.msk.msra.mxu1 %vm15054_vm12, %v7179_v36  ;;  %vm15060_vm12 = vmmov %vm15052_vm2 }
0x1407   :  { %v7550_v54 = vsel %vm578_vm13, %v7544_v51, %v7546_v10  ;;  %11137 = vmatmul.mubr.msk.f32.vlgmr.msra.gmra.mxu1 %vm15055_vm5, %v7161_v25  ;;  %11140 = vmatmul.mubr.msk.f32.vlgmr.msra.gmra.mxu0 %vm15056_vm6, %v14161_v40  ;;  %v7542_v24 = vpop.permute.xlu1 %7541  ;;  %vm15061_vm6 = vmmov %vm15055_vm5 }
0x1408   :  { %11141 = vmatprep.subr.msk.mxu1 %vm15057_vm11, %v7118_v20  ;;  %v7548_v9 = vsel %vm578_vm13, %v7540_v18, %v7542_v24  ;;  %7484 = vmatprep.mubr.f32.mxu1 %v13357_v62  ;;  %v7549_v55 = vsel %vm578_vm13, %v7542_v24, %v7544_v51  ;;  %vm15062_vm11 = vmmov %vm15052_vm2 }
0x1409   :  { %11142 = vmatpush1.msk.msra.mxu1 %vm15058_vm9, %v7117_v21  ;;  %11145 = vmatprep.subr.msk.mxu0 %vm15052_vm2, %v7548_v9  ;;  %vm15063_vm9 = vmmov %vm15052_vm2 }
0x140a   :  { %11148 = vmatprep.subr.msk.mxu1 %vm15059_vm4, %v7550_v54  ;;  %v7756_v50 = vpop.permute.xlu0 %7755  ;;  %11146 = vmatpush1.msk.msra.mxu0 %vm15060_vm12, %v7547_v34  ;;  %vm15064_vm4 = vmmov %vm15055_vm5 }
0x140b   :  { %7625 = vmatprep.mubr.f32.mxu0 %v13357_v62  ;;  %11143 = vmatmul.mubr.msk.f32.vlgmr.msra.gmra.mxu1 %vm15055_vm5, %v14161_v40  ;;  %v7758_v5 = vpop.permute.xlu1 %7757  ;;  %v7763_v39 = vsel %vm797_vm14, %v7754_v22, %v7756_v50  ;;  %vm15065_vm12 = vmmov %vm15052_vm2 }
0x140c   :  { %11147 = vmatmul.mubr.msk.f32.vlgmr.msra.gmra.mxu0 %vm15061_vm6, %v14165_v1  ;;  %11149 = vmatpush1.msk.msra.mxu1 %vm15062_vm11, %v7549_v55  ;;  %v7764_v41 = vsel %vm797_vm14, %v7756_v50, %v7758_v5  ;;  %vm15066_vm5 = vmmov %vm15064_vm4 }
0x140d   :  { %11152 = vmatprep.subr.msk.mxu0 %vm15063_vm9, %v7764_v41  ;;  %7696 = vmatprep.mubr.f32.mxu1 %v13357_v62  ;;  %vm15067_vm6 = vmmov %vm15052_vm2 }
0x140e   :  { %v7760_v12 = vpop.permute.xlu0 %7759  ;;  %11153 = vmatpush1.msk.msra.mxu0 %vm15052_vm2, %v7763_v39  ;;  %7841 = vmatprep.mubr.f32.mxu0 %v13357_v62  ;;  %vm15068_vm11 = vmmov %vm15052_vm2 }
0x140f   :  { %v7765_v25 = vsel %vm797_vm14, %v7758_v5, %v7760_v12  ;;  %v7766_v40 = vsel %vm797_vm14, %v7760_v12, %v14181_v33  ;;  %11150 = vmatmul.mubr.msk.f32.vlgmr.msra.gmra.mxu1 %vm15064_vm4, %v14165_v1  ;;  %11158 = vmatprep.subr.msk.mxu0 %vm15065_vm12, %v7940_v57  ;;  %v8149_v32 = vpop.permute.xlu1 %8148  ;;  %vm15069_vm9 = vmmov %vm15052_vm2  ;;  %v7942_v1 = vsel %vm975_vm15, %v14177_v17, %v14175_v26 }
0x1410   :  { %11154 = vmatmul.mubr.msk.f32.vlgmr.msra.gmra.mxu0 %vm15066_vm5, %v14169_v16  ;;  %11155 = vmatprep.subr.msk.mxu1 %vm15067_vm6, %v7766_v40  ;;  %vm15070_vm12 = vmmov %vm15064_vm4  ;;  %v8156_v33 = vsel %vm1193_vm0, %v14183_v27, %v8149_v32 }
0x1411   :  { %11159 = vmatpush1.msk.msra.mxu0 %vm15068_vm11, %v7939_v29  ;;  %11156 = vmatpush1.msk.msra.mxu1 %vm15069_vm9, %v7765_v25  ;;  %vm15071_vm5 = vmmov %vm15052_vm2 }
0x1412   :  { %v8151_v10 = vpop.permute.xlu0 %8150  ;;  %7912 = vmatprep.mubr.f32.mxu1 %v13357_v62  ;;  %8018 = vmatprep.mubr.f32.mxu0 %v13357_v62  ;;  %vm15072_vm6 = vmmov %vm15052_vm2 }
0x1413   :  { %v8157_v19 = vsel %vm1193_vm0, %v8149_v32, %v8151_v10  ;;  %11161 = vmatprep.subr.msk.mxu1 %vm15052_vm2, %v7942_v1  ;;  %11157 = vmatmul.mubr.msk.f32.vlgmr.msra.gmra.mxu1 %vm15064_vm4, %v14169_v16  ;;  %v8153_v42 = vpop.permute.xlu1 %8152  ;;  %vm15073_vm11 = vmmov %vm15052_vm2 }
0x1414   :  { %11160 = vmatmul.mubr.msk.f32.vlgmr.msra.gmra.mxu0 %vm15070_vm12, %v13910_v44  ;;  %11162 = vmatpush1.msk.msra.mxu1 %vm15071_vm5, %v7941_v43  ;;  %v8159_v26 = vsel %vm1193_vm0, %v8153_v42, %v14185_v48  ;;  %vm15074_vm9 = vmmov %vm15052_vm2  ;;  %v8158_v16 = vsel %vm1193_vm0, %v8151_v10, %v8153_v42 }
0x1415   :  { %11165 = vmatprep.subr.msk.mxu0 %vm15072_vm6, %v8157_v19  ;;  %11168 = vmatprep.subr.msk.mxu1 %vm15073_vm11, %v8159_v26  ;;  %vm15075_vm2 = vmmov %vm15064_vm4 }
0x1416   :  { %11166 = vmatpush1.msk.msra.mxu0 %vm15074_vm9, %v8156_v33  ;;  %v8367_v61 = vpop.permute.xlu0 %8366  ;;  %8089 = vmatprep.mubr.f32.mxu1 %v13357_v62  ;;  %vm15076_vm4 = vmmov %vm15075_vm2 }
0x1417   :  { %8234 = vmatprep.mubr.f32.mxu0 %v13357_v62  ;;  %11163 = vmatmul.mubr.msk.f32.vlgmr.msra.gmra.mxu1 %vm15075_vm2, %v13910_v44  ;;  %v8365_v17 = vpop.permute.xlu1 %8364  ;;  %vm15077_vm12 = vmmov %vm15071_vm5  ;;  %vm15078_vm5 = vcmask 785408  }
0x1418   :  { %11167 = vmatmul.mubr.msk.f32.vlgmr.msra.gmra.mxu0 %vm15076_vm4, %v14157_v28  ;;  %11169 = vmatpush1.msk.msra.mxu1 %vm15077_vm12, %v8158_v16  ;;  %v8372_v22 = vsel %vm15078_vm5, %v14187_v31, %v8365_v17  ;;  %vm15079_vm6 = vmmov %vm15078_vm5 }
0x1419   :  { %v8373_v27 = vsel %vm15079_vm6, %v8365_v17, %v8367_v61  ;;  %vm15080_vm11 = vmmov %vm15074_vm9  ;;  %8305 = vmatprep.mubr.f32.mxu1 %v13357_v62  ;;  %8450 = vmatprep.mubr.f32.mxu0 %v13357_v62 }
0x141a   :  { %11172 = vmatprep.subr.msk.mxu0 %vm15080_vm11, %v8373_v27  ;;  %vm15081_vm4 = vmmov %vm15075_vm2  ;;  %v8583_v59 = vpop.permute.xlu0 %8582 }
0x141b   :  { %11173 = vmatpush1.msk.msra.mxu0 %vm15074_vm9, %v8372_v22  ;;  %11170 = vmatmul.mubr.msk.f32.vlgmr.msra.gmra.mxu1 %vm15075_vm2, %v14157_v28  ;;  %v8369_v44 = vpop.permute.xlu1 %8368  ;;  %vm15082_vm12 = vmmov %vm15078_vm5 }
0x141c   :  { %11174 = vmatmul.mubr.msk.f32.vlgmr.msra.gmra.mxu0 %vm15081_vm4, %v14159_v49  ;;  %v8374_v48 = vsel %vm15082_vm12, %v8367_v61, %v8369_v44  ;;  %v8375_v31 = vsel %vm15078_vm5, %v8369_v44, %v14189_v56  ;;  %8521 = vmatprep.mubr.f32.mxu1 %v13357_v62  ;;  %vm15083_vm6 = vmmov %vm15074_vm9 }
0x141d   :  { %11175 = vmatprep.subr.msk.mxu1 %vm15083_vm6, %v8375_v31  ;;  %8666 = vmatprep.mubr.f32.mxu0 %v13357_v62  ;;  %vm15084_vm11 = vmmov %vm15083_vm6 }
0x141e   :  { %11176 = vmatpush1.msk.msra.mxu1 %vm15084_vm11, %v8374_v48  ;;  %vm15085_vm9 = vmmov %vm15075_vm2  ;;  %vm15086_vm2 = vcmask 777216  }
0x141f   :  { %11177 = vmatmul.mubr.msk.f32.vlgmr.msra.gmra.mxu1 %vm15085_vm9, %v14159_v49  ;;  %v8581_v28 = vpop.permute.xlu1 %8580  ;;  %vm15087_vm4 = vmmov %vm15086_vm2 }
0x1420   :  { %v8588_v45 = vsel %vm15086_vm2, %v14191_v58, %v8581_v28  ;;  %v8589_v63 = vsel %vm15087_vm4, %v8581_v28, %v8583_v59  ;;  %8737 = vmatprep.mubr.f32.mxu1 %v13357_v62  ;;  %vm15088_vm12 = vmmov %vm15083_vm6  ;;  %v8799_v58 = vpop.permute.xlu0 %8798 }
0x1421   :  { %11179 = vmatprep.subr.msk.mxu0 %vm15088_vm12, %v8589_v63  ;;  %vm15089_vm5 = vmmov %vm15083_vm6 }
0x1422   :  { %11180 = vmatpush1.msk.msra.mxu0 %vm15089_vm5, %v8588_v45  ;;  %vm15090_vm6 = vmmov %vm15085_vm9 }
0x1423   :  { %11181 = vmatmul.mubr.msk.f32.vlgmr.msra.gmra.mxu0 %vm15090_vm6, %v14163_v38  ;;  %v8585_v56 = vpop.permute.xlu1 %8584  ;;  %vm15091_vm11 = vmmov %vm15086_vm2 }
0x1424   :  { %v8590_v0 = vsel %vm15091_vm11, %v8583_v59, %v8585_v56  ;;  %vm15092_vm9 = vmmov %vm15086_vm2  ;;  %8882 = vmatprep.mubr.f32.mxu0 %v13357_v62 }
0x1425   :  { %v8591_v49 = vsel %vm15092_vm9, %v8585_v56, %v14193_v53  ;;  %vm15093_vm2 = vmmov %vm15089_vm5  ;;  %vm15096_vm5 = vcmask 769024   ;;  %v8803_v53 = vpop.permute.xlu0 %8802 }
0x1426   :  { %11182 = vmatprep.subr.msk.mxu1 %vm15093_vm2, %v8591_v49  ;;  %vm15094_vm4 = vmmov %vm15093_vm2 }
0x1427   :  { %11183 = vmatpush1.msk.msra.mxu1 %vm15094_vm4, %v8590_v0  ;;  %vm15095_vm12 = vmmov %vm15090_vm6  ;;  %v8797_v37 = vpop.permute.xlu1 %8796 }
0x1428   :  { %11184 = vmatmul.mubr.msk.f32.vlgmr.msra.gmra.mxu1 %vm15095_vm12, %v14163_v38  ;;  %v8804_v47 = vsel %vm15096_vm5, %v14195_v11, %v8797_v37  ;;  %vm15097_vm6 = vmmov %vm15096_vm5  ;;  %v11924_v11 = vmov 13  }
0x1429   :  { %v8805_v2 = vsel %vm15097_vm6, %v8797_v37, %v8799_v58  ;;  %8953 = vmatprep.mubr.f32.mxu1 %v13357_v62  ;;  %vm15098_vm11 = vmmov %vm15093_vm2  ;;  %11765 = vset.pattern.permute.xlu0 %v11924_v11 }
0x142a   :  { %11186 = vmatprep.subr.msk.mxu0 %vm15098_vm11, %v8805_v2  ;;  %vm15099_vm9 = vmmov %vm15093_vm2 }
0x142b   :  { %11187 = vmatpush1.msk.msra.mxu0 %vm15099_vm9, %v8804_v47  ;;  %vm15100_vm2 = vmmov %vm15095_vm12  ;;  %v8801_v3 = vpop.permute.xlu1 %8800 }
0x142c   :  { %11188 = vmatmul.mubr.msk.f32.vlgmr.msra.gmra.mxu0 %vm15100_vm2, %v14167_v46  ;;  %vm15101_vm4 = vmmov %vm15096_vm5 }
0x142d   :  { %v8806_v18 = vsel %vm15101_vm4, %v8799_v58, %v8801_v3  ;;  %vm15102_vm12 = vmmov %vm15101_vm4  ;;  %9231 = vmatprep.mubr.f32.mxu0 %v13357_v62 }
0x142e   :  { %v8807_v38 = vsel %vm15102_vm12, %v8801_v3, %v8803_v53  ;;  %vm15103_vm5 = vmmov %vm15099_vm9 }
0x142f   :  { %11189 = vmatprep.subr.msk.mxu1 %vm15103_vm5, %v8807_v38  ;;  %vm15104_vm6 = vmmov %vm15103_vm5 }
0x1430   :  { %11190 = vmatpush1.msk.msra.mxu1 %vm15104_vm6, %v8806_v18  ;;  %vm15105_vm1 = vmmov %vm15100_vm2 }
0x1431   :  { %11191 = vmatmul.mubr.msk.f32.vlgmr.msra.gmra.mxu1 %vm15105_vm1, %v14167_v46  ;;  %vm15106_vm1 = vmmov %vm15103_vm5 }
0x1432   :  { %9302 = vmatprep.mubr.f32.mxu1 %v13357_v62  ;;  %vm15107_vm11 = vmmov %vm15106_vm1 }
0x1433   :  { %vm15108_vm9 = vmmov %vm15106_vm1 }
0x1434   :  { %vm15109_vm2 = vmmov %vm15106_vm1 }
0x1435   :  { %vm15110_vm4 = vmmov %vm15106_vm1 }
0x1436   :  { %vm15111_vm12 = vmmov %vm15106_vm1 }
0x1437   :  { %vm15112_vm5 = vmmov %vm15106_vm1 }
0x1438   :  { %v8968_v11 = vpop.permute.xlu1 %8967  ;;  %vm15113_vm6 = vmmov %vm15106_vm1 }
0x14c3   :  { %v7257_v4 = vpop.f32.mrf.mxu0 }
0x14c5   :  { %v7259_v23 = vpop.f32.mrf.mxu0 }
0x14c7   :  { %v7328_v60 = vpop.f32.mrf.mxu1  ;;  %v7415_v36 = vpop.f32.mrf.mxu0 }
0x14c8   :  { %v7416_v29 = vadd.f32 %v7415_v36, %v7257_v4 }
0x14c9   :  { %v7330_v30 = vpop.f32.mrf.mxu1  ;;  %v7417_v51 = vpop.f32.mrf.mxu0 }
0x14ca   :  { %v7418_v43 = vadd.f32 %v7417_v51, %v7259_v23 }
0x14cb   :  { %v7486_v20 = vpop.f32.mrf.mxu1 }
0x14cc   :  { %v7627_v54 = vpop.f32.mrf.mxu0  ;;  %v7487_v42 = vadd.f32 %v7486_v20, %v7328_v60 }
0x14cd   :  { %v7488_v24 = vpop.f32.mrf.mxu1  ;;  %v7703_v19 = vadd.f32 %v7627_v54, %v7416_v29 }
0x14ce   :  { %v7629_v21 = vpop.f32.mrf.mxu0  ;;  %v7489_v17 = vadd.f32 %v7488_v24, %v7330_v30 }
0x14cf   :  { %v7698_v9 = vpop.f32.mrf.mxu1  ;;  %v7704_v26 = vadd.f32 %v7629_v21, %v7418_v43 }
0x14d0   :  { %v7843_v34 = vpop.f32.mrf.mxu0  ;;  %v7705_v22 = vadd.f32 %v7698_v9, %v7487_v42 }
0x14d1   :  { %v7700_v50 = vpop.f32.mrf.mxu1  ;;  %v7919_v33 = vadd.f32 %v7843_v34, %v7703_v19 }
0x14d2   :  { %v7845_v46 = vpop.f32.mrf.mxu0  ;;  %v7706_v31 = vadd.f32 %v7700_v50, %v7489_v17 }
0x14d3   :  { %v7914_v55 = vpop.f32.mrf.mxu1  ;;  %v7920_v27 = vadd.f32 %v7845_v46, %v7704_v26 }
0x14d4   :  { %v8020_v5 = vpop.f32.mrf.mxu0  ;;  %v7921_v59 = vadd.f32 %v7914_v55, %v7705_v22 }
0x14d5   :  { %v7916_v41 = vpop.f32.mrf.mxu1  ;;  %v8096_v44 = vadd.f32 %v8020_v5, %v7919_v33 }
0x14d6   :  { %v8022_v39 = vpop.f32.mrf.mxu0  ;;  %v7922_v56 = vadd.f32 %v7916_v41, %v7706_v31 }
0x14d7   :  { %v8091_v12 = vpop.f32.mrf.mxu1  ;;  %v8097_v28 = vadd.f32 %v8022_v39, %v7920_v27  ;;  %v11192_v27 = vld [vmem:[%s14980_s29 + $0x1] ss:$8 sm:$0xf] }
0x14d8   :  { %v8236_v57 = vpop.f32.mrf.mxu0  ;;  %v8098_v0 = vadd.f32 %v8091_v12, %v7921_v59  ;;  %v9105_v31 = vrot.slane %v11192_v27, %v12054_v8  ;;  %v11205_v59 = vld [vmem:[%s14980_s29 + $0x2] ss:$8 sm:$0xf] }
0x14d9   :  { %v8093_v25 = vpop.f32.mrf.mxu1  ;;  %v8312_v45 = vadd.f32 %v8236_v57, %v8096_v44  ;;  %v9101_v44 = vrot.slane %v11192_v27, %v12052_v7 }
0x14da   :  { %v8238_v40 = vpop.f32.mrf.mxu0  ;;  %v8099_v2 = vadd.f32 %v8093_v25, %v7922_v56  ;;  %v11212_v56 = vld [vmem:[%s14980_s29 + $0x3] ss:$8 sm:$0xf] }
0x14db   :  { %v8307_v32 = vpop.f32.mrf.mxu1  ;;  %v8313_v49 = vadd.f32 %v8238_v40, %v8097_v28  ;;  %v9472_v28 = vrot.slane %v11205_v59, %v12052_v7 }
0x14dc   :  { %v8452_v10 = vpop.f32.mrf.mxu0  ;;  %v8314_v53 = vadd.f32 %v8307_v32, %v8098_v0  ;;  %v9689_v0 = vrot.slane %v11212_v56, %v12052_v7 }
0x14dd   :  { %v8309_v1 = vpop.f32.mrf.mxu1  ;;  %v8528_v58 = vadd.f32 %v8452_v10, %v8312_v45  ;;  %v9113_v45 = vrot.slane %v11192_v27, %v15017_v35 }
0x14de   :  { %v8454_v61 = vpop.f32.mrf.mxu0  ;;  %v8315_v15 = vadd.f32 %v8309_v1, %v8099_v2 }
0x14df   :  { %v8523_v16 = vpop.f32.mrf.mxu1  ;;  %v8529_v3 = vadd.f32 %v8454_v61, %v8313_v49  ;;  %v9484_v49 = vrot.slane %v11205_v59, %v15017_v35 }
0x14e0   :  { %v8530_v4 = vadd.f32 %v8523_v16, %v8314_v53  ;;  %v9701_v53 = vrot.slane %v11212_v56, %v15017_v35 }
0x14e1   :  { %v8525_v63 = vpop.f32.mrf.mxu1 }
0x14e2   :  { %v8531_v51 = vadd.f32 %v8525_v63, %v8315_v15  ;;  %v9476_v63 = vrot.slane %v11205_v59, %v12054_v8 }
0x14e3   :  { %v8668_v48 = vpop.f32.mrf.mxu0 }
0x14e4   :  { %v8744_v18 = vadd.f32 %v8668_v48, %v8528_v58  ;;  %v9109_v48 = vrot.slane %v11192_v27, %v12065_v13  ;;  %v9697_v58 = vrot.slane %v11212_v56, %v12065_v13 }
0x14e5   :  { %v8670_v37 = vpop.f32.mrf.mxu0 }
0x14e6   :  { %v8745_v23 = vadd.f32 %v8670_v37, %v8529_v3  ;;  %v9693_v37 = vrot.slane %v11212_v56, %v12054_v8 }
0x14e8   :  { %v8739_v47 = vpop.f32.mrf.mxu1 }
0x14e9   :  { %v8746_v20 = vadd.f32 %v8739_v47, %v8530_v4  ;;  %v11225_v47 = vld [vmem:[%s14980_s29 + $0x5] ss:$8 sm:$0xf] }
0x14ea   :  { %v8741_v36 = vpop.f32.mrf.mxu1  ;;  %v10081_v2 = vrot.slane %v11225_v47, %v12052_v7  ;;  %v10089_v3 = vrot.slane %v11225_v47, %v12065_v13  ;;  %v10093_v15 = vrot.slane %v11225_v47, %v15017_v35 }
0x14eb   :  { %v8747_v9 = vadd.f32 %v8741_v36, %v8531_v51 }
0x14ec   :  { %v8884_v38 = vpop.f32.mrf.mxu0 }
0x14ed   :  { %v8960_v60 = vadd.f32 %v8884_v38, %v8744_v18  ;;  %v10085_v18 = vrot.slane %v11225_v47, %v12054_v8  ;;  %v11232_v38 = vld [vmem:[%s14980_s29 + $0x6] ss:$8 sm:$0xf]  ;;  %v14468_v47 = vld [vmem:[%s14895_s10 + $0x30] sm:$0xf] }
0x14ee   :  { %v8886_v30 = vpop.f32.mrf.mxu0  ;;  %v10305_v4 = vrot.slane %v11232_v38, %v12065_v13 }
0x14ef   :  { %v8961_v54 = vadd.f32 %v8886_v30, %v8745_v23  ;;  %v14344_v24 = vadd.f32 %v8968_v11, %v8960_v60  ;;  %v10301_v23 = vrot.slane %v11232_v38, %v12054_v8  ;;  %v11239_v60 = vld [vmem:[%s14980_s29 + $0x7] ss:$8 sm:$0xf]  ;;  %v10309_v30 = vrot.slane %v11232_v38, %v15017_v35 }
0x14f0   :  { %v10513_v36 = vrot.slane %v11239_v60, %v12052_v7  ;;  %v10521_v51 = vrot.slane %v11239_v60, %v12065_v13 }
0x14f1   :  { %v8955_v21 = vpop.f32.mrf.mxu1  ;;  %v14346_v34 = vadd.f32 %v8968_v11, %v8961_v54  ;;  %v8984_v50 = vmul.f32 %v14344_v24, %v14344_v24  ;;  %v8974_v5 = vsel %vm15106_vm1, %v14344_v24, 0.0  ;;  %v11246_v54 = vld [vmem:[%s14980_s29 + $0x28] ss:$8 sm:$0xf] }
0x14f2   :  { %v8962_v46 = vadd.f32 %v8955_v21, %v8746_v20  ;;  %v10517_v20 = vrot.slane %v11239_v60, %v12054_v8  ;;  %v10729_v21 = vrot.slane %v11246_v54, %v12052_v7 }
0x14f3   :  { %v8957_v55 = vpop.f32.mrf.mxu1  ;;  %v8985_v41 = vmul.f32 %v14346_v34, %v14346_v34  ;;  %v8975_v57 = vsel %vm15107_vm11, %v14346_v34, 0.0  ;;  %v8988_v40 = vsel %vm15108_vm9, %v8984_v50, 0.0  ;;  %v10737_v50 = vrot.slane %v11246_v54, %v12065_v13 }
0x14f4   :  { %v14354_v39 = vadd.f32 %v8968_v11, %v8962_v46  ;;  %v8963_v12 = vadd.f32 %v8957_v55, %v8747_v9  ;;  %v8976_v25 = vadd.f32 %v8975_v57, %v8974_v5  ;;  %v10525_v9 = vrot.slane %v11239_v60, %v15017_v35 }
0x14f5   :  { %v8989_v1 = vsel %vm15110_vm4, %v8985_v41, 0.0  ;;  %vm15114_vm4 = vcmask 1043592  }
0x14f6   :  { %v8986_v32 = vmul.f32 %v14354_v39, %v14354_v39  ;;  %v14361_v29 = vadd.f32 %v8968_v11, %v8963_v12  ;;  %v8977_v10 = vsel %vm15109_vm2, %v14354_v39, 0.0  ;;  %v8990_v19 = vadd.f32 %v8989_v1, %v8988_v40 }
0x14f7   :  { %v8978_v43 = vadd.f32 %v8977_v10, %v8976_v25  ;;  %v10297_v11 = vrot.slane %v11232_v38, %v12052_v7 }
0x14f8   :  { %v8979_v42 = vsel %vm15111_vm12, %v14361_v29, 0.0  ;;  %v8987_v26 = vmul.f32 %v14361_v29, %v14361_v29  ;;  %v8991_v33 = vsel %vm15112_vm5, %v8986_v32, 0.0  ;;  %v9064_v32 = vld [vmem:[%s14895_s10 + $0x28] sm:$0xf]  ;;  %vm15115_vm12 = vcmask 134144  }
0x14f9   :  { %v8980_v61 = vadd.f32 %v8979_v42, %v8978_v43  ;;  %v8992_v16 = vadd.f32 %v8991_v33, %v8990_v19  ;;  %vm15116_vm5 = vcmask 269312  }
0x14fa   :  { %v8993_v17 = vsel %vm15113_vm6, %v8987_v26, 0.0 }
0x14fb   :  { %8981 = vadd.xlane.f32.xlu0 %v8980_v61  ;;  %v8994_v22 = vadd.f32 %v8993_v17, %v8992_v16 }
0x14fd   :  { %8995 = vadd.xlane.f32.xlu1 %v8994_v22 }
0x150e   :  { %9020 = vperm.xlu1 %11766, %v14154_v6  }
0x1511   :  { %9012 = vperm.xlu0 %11765, %v14154_v6   ;;  %v9480_v6 = vrot.slane %v11205_v59, %v12065_v13 }
0x1512   :  { %9114 = vrot.lane.b32.xlu1 %v9101_v44, %s15026_s17 }
0x1515   :  { %9118 = vrot.lane.b32.xlu0 %v9109_v48, %s15026_s17 }
0x1516   :  { %9116 = vrot.lane.b32.xlu1 %v9105_v31, %s15026_s17 }
0x1519   :  { %9485 = vrot.lane.b32.xlu0 %v9472_v28, %s15027_s9 }
0x151a   :  { %9120 = vrot.lane.b32.xlu1 %v9113_v45, %s15026_s17 }
0x151d   :  { %9489 = vrot.lane.b32.xlu0 %v9480_v6, %s15027_s9 }
0x151e   :  { %9487 = vrot.lane.b32.xlu1 %v9476_v63, %s15027_s9 }
0x1521   :  { %9702 = vrot.lane.b32.xlu0 %v9689_v0, %s14986_s0 }
0x1522   :  { %9491 = vrot.lane.b32.xlu1 %v9484_v49, %s15027_s9 }
0x1525   :  { %9706 = vrot.lane.b32.xlu0 %v9697_v58, %s14986_s0  ;;  %v10733_v58 = vrot.slane %v11246_v54, %v12054_v8 }
0x1526   :  { %9704 = vrot.lane.b32.xlu1 %v9693_v37, %s14986_s0  ;;  %v10741_v37 = vrot.slane %v11246_v54, %v15017_v35 }
0x1529   :  { %10094 = vrot.lane.b32.xlu0 %v10081_v2, %s15028_s26 }
0x152a   :  { %9708 = vrot.lane.b32.xlu1 %v9701_v53, %s14986_s0 }
0x152d   :  { %10098 = vrot.lane.b32.xlu0 %v10089_v3, %s15028_s26 }
0x152e   :  { %10096 = vrot.lane.b32.xlu1 %v10085_v18, %s15028_s26 }
0x1531   :  { %10310 = vrot.lane.b32.xlu0 %v10297_v11, %s14985_s3 }
0x1532   :  { %10100 = vrot.lane.b32.xlu1 %v10093_v15, %s15028_s26 }
0x1535   :  { %10314 = vrot.lane.b32.xlu0 %v10305_v4, %s14985_s3 }
0x1536   :  { %10312 = vrot.lane.b32.xlu1 %v10301_v23, %s14985_s3 }
0x1539   :  { %10526 = vrot.lane.b32.xlu0 %v10513_v36, %s15029_s12 }
0x153a   :  { %10316 = vrot.lane.b32.xlu1 %v10309_v30, %s14985_s3 }
0x153d   :  { %10530 = vrot.lane.b32.xlu0 %v10521_v51, %s15029_s12 }
0x153e   :  { %10528 = vrot.lane.b32.xlu1 %v10517_v20, %s15029_s12 }
0x1541   :  { %10742 = vrot.lane.b32.xlu0 %v10729_v21, %s15030_s13 }
0x1542   :  { %10532 = vrot.lane.b32.xlu1 %v10525_v9, %s15029_s12 }
0x1545   :  { %10746 = vrot.lane.b32.xlu0 %v10737_v50, %s15030_s13 }
0x1549   :  { %9309 = vrot.lane.b32.xlu0 %v9064_v32, %s14984_s23 }
0x154d   :  { %9506 = vrot.lane.b32.xlu0 %v9064_v32, %s14986_s0 }
0x1584   :  { %v8982_v46 = vpop.xlane.xlu0 %8981 }
0x1585   :  { %v8983_v55 = vmul.f32 0.001953125, %v8982_v46 }
0x1586   :  { %v8996_v5 = vpop.xlane.xlu1 %8995 }
0x1587   :  { %v8997_v41 = vmul.f32 0.001953125, %v8996_v5  ;;  %v8998_v12 = vmul.f32 %v8983_v55, %v8983_v55  ;;  %v9001_v10 = vsub.f32 %v14344_v24, %v8983_v55  ;;  %v9002_v1 = vsub.f32 %v14346_v34, %v8983_v55 }
0x1588   :  { %v9003_v43 = vsub.f32 %v14354_v39, %v8983_v55  ;;  %v9004_v17 = vsub.f32 %v14361_v29, %v8983_v55 }
0x1589   :  { %v8999_v57 = vsub.f32 %v8997_v41, %v8998_v12 }
0x158a   :  { %v9021_v16 = vpop.permute.xlu1 %9020 }
0x158b   :  { %v9000_v25 = vmax.f32 %v8999_v57, 0.0 }
0x158c   :  { %v9013_v42 = vpop.permute.xlu0 %9012 }
0x158d   :  { %v9005_v40 = vadd.f32 1e-05, %v9000_v25 }
0x158e   :  { %v14476_v2 = vpop.permute.xlu1 %9114 }
0x158f   :  { %11784 = vrsqrt.f32 %v9005_v40 }
0x1590   :  { %v14492_v4 = vpop.permute.xlu0 %9118 }
0x1592   :  { %v14480_v53 = vpop.permute.xlu1 %9116 }
0x1594   :  { %v14496_v60 = vpop.permute.xlu0 %9485 }
0x1596   :  { %v14482_v3 = vpop.permute.xlu1 %9120 }
0x1598   :  { %v14500_v30 = vpop.permute.xlu0 %9489 }
0x159a   :  { %v14484_v18 = vpop.permute.xlu1 %9487 }
0x159c   :  { %v11785_v19 = vpop.eup %11784  ;;  %v14504_v20 = vpop.permute.xlu0 %9702 }
0x159d   :  { %v9007_v26 = vmul.f32 %v11785_v19, %v9001_v10  ;;  %v9008_v33 = vmul.f32 %v11785_v19, %v9002_v1  ;;  %v9009_v61 = vmul.f32 %v11785_v19, %v9003_v43  ;;  %v9010_v44 = vmul.f32 %v11785_v19, %v9004_v17 }
0x159e   :  { %v14486_v38 = vpop.permute.xlu1 %9491 }
0x159f   :  { %v9015_v22 = vmul.f32 %v9013_v42, %v9007_v26  ;;  %v9016_v27 = vmul.f32 %v9013_v42, %v9008_v33  ;;  %v9017_v48 = vmul.f32 %v9013_v42, %v9009_v61  ;;  %v9018_v59 = vmul.f32 %v9013_v42, %v9010_v44 }
0x15a0   :  { %v14508_v21 = vpop.permute.xlu0 %9706 }
0x15a1   :  { %v9023_v31 = vadd.f32 %v9021_v16, %v9015_v22  ;;  %v9024_v24 = vadd.f32 %v9021_v16, %v9016_v27  ;;  %v9025_v39 = vadd.f32 %v9021_v16, %v9017_v48  ;;  %v9026_v6 = vadd.f32 %v9021_v16, %v9018_v59 }
0x15a2   :  { %v14488_v11 = vpop.permute.xlu1 %9704 }
0x15a3   :  { %vm9027_vm1 = vcmp.ge.f32.partialorder %v9023_v31, 0.0  ;;  %v9031_v34 = vmul.f32 0.01, %v9023_v31  ;;  %v9032_v45 = vmul.f32 0.01, %v9024_v24  ;;  %vm9028_vm11 = vcmp.ge.f32.partialorder %v9024_v24, 0.0 }
0x15a4   :  { %v9033_v56 = vmul.f32 0.01, %v9025_v39  ;;  %vm9029_vm9 = vcmp.ge.f32.partialorder %v9025_v39, 0.0  ;;  %v9034_v0 = vmul.f32 0.01, %v9026_v6  ;;  %vm9030_vm2 = vcmp.ge.f32.partialorder %v9026_v6, 0.0  ;;  %v14512_v50 = vpop.permute.xlu0 %10094 }
0x15a5   :  { %v9035_v28 = vsel %vm9027_vm1, %v9023_v31, %v9031_v34  ;;  %v9036_v63 = vsel %vm9028_vm11, %v9024_v24, %v9032_v45  ;;  %vm15120_vm11 = vcmask 15360  }
0x15a6   :  { %9043 = vrot.lane.b32.xlu1 %v9035_v28, %s15002_s4  ;;  %v9037_v29 = vsel %vm9029_vm9, %v9025_v39, %v9033_v56  ;;  %v9038_v49 = vsel %vm9030_vm2, %v9026_v6, %v9034_v0  ;;  %v14490_v15 = vpop.permute.xlu1 %9708  ;;  %vm15121_vm9 = vmmov %vm15120_vm11 }
0x15a7   :  { %vm15122_vm2 = vmmov %vm15121_vm9 }
0x15a8   :  { %v14516_v55 = vpop.permute.xlu0 %10098 }
0x15aa   :  { %9045 = vrot.lane.b32.xlu1 %v9036_v63, %s15002_s4  ;;  %v14494_v23 = vpop.permute.xlu1 %10096 }
0x15ac   :  { %v14518_v41 = vpop.permute.xlu0 %10310 }
0x15ae   :  { %9047 = vrot.lane.b32.xlu1 %v9037_v29, %s15002_s4  ;;  %v14498_v36 = vpop.permute.xlu1 %10100 }
0x15b0   :  { %v14522_v25 = vpop.permute.xlu0 %10314 }
0x15b2   :  { %9049 = vrot.lane.b32.xlu1 %v9038_v49, %s15002_s4  ;;  %v14502_v51 = vpop.permute.xlu1 %10312 }
0x15b4   :  { %v10527_v43 = vpop.permute.xlu0 %10526 }
0x15b6   :  { %10744 = vrot.lane.b32.xlu1 %v10733_v58, %s15030_s13  ;;  %v14506_v54 = vpop.permute.xlu1 %10316 }
0x15ba   :  { %10748 = vrot.lane.b32.xlu1 %v10741_v37, %s15030_s13  ;;  %v14510_v9 = vpop.permute.xlu1 %10528  ;;  %v9493_v37 = vsel %vm15120_vm11, %v14496_v60, %v14484_v18  ;;  %vm15130_vm11 = vcmask 1043456  }
0x15bb   :  { %v10534_v26 = vsel %vm15116_vm5, %v10527_v43, %v14510_v9 }
0x15be   :  { %9136 = vrot.lane.b32.xlu1 %v9064_v32, %s14985_s3  ;;  %v14514_v46 = vpop.permute.xlu1 %10532 }
0x15c2   :  { %9899 = vrot.lane.b32.xlu1 %v14468_v47, %s14991_s16 }
0x15c6   :  { %10115 = vrot.lane.b32.xlu1 %v14468_v47, %s14990_s28 }
0x15ca   :  { %10331 = vrot.lane.b32.xlu1 %v14468_v47, %s14992_s21 }
0x15ce   :  { %10547 = vrot.lane.b32.xlu1 %v14468_v47, %s14983_s24 }
0x1618   :  { %v9044_v5 = vpop.permute.xlu1 %9043 }
0x1619   :  { %9059 = vst.msk [vmem:[#allocation2] sm:$0xf] %vm15114_vm4, %v9044_v5  ;;  %vm15123_vm4 = vcmask 146432  }
0x161c   :  { %v9046_v12 = vpop.permute.xlu1 %9045 }
0x161d   :  { %v9051_v57 = vsel %vm98_vm3, %v9044_v5, %v9046_v12 }
0x161e   :  { %9060 = vst [vmem:[#allocation2 + $0x8] sm:$0xf] %v9051_v57 }
0x1620   :  { %v9048_v40 = vpop.permute.xlu1 %9047  ;;  %v14524_v32 = vld [vmem:[#allocation2] sm:$0xf] }
0x1621   :  { %v9052_v10 = vsel %vm98_vm3, %v9046_v12, %v9048_v40  ;;  %9906 = vrot.lane.b32.xlu0 %v14524_v32, %s14995_s6  ;;  %v9130_v22 = vmul.f32 %v14476_v2, %v14524_v32  ;;  %v9501_v48 = vmul.f32 %v14496_v60, %v14524_v32  ;;  %v9718_v24 = vmul.f32 %v14504_v20, %v14524_v32 }
0x1622   :  { %9061 = vst [vmem:[#allocation2 + $0x10] sm:$0xf] %v9052_v10  ;;  %v10110_v34 = vmul.f32 %v14512_v50, %v14524_v32  ;;  %v10326_v39 = vmul.f32 %v14518_v41, %v14524_v32  ;;  %v10542_v45 = vmul.f32 %v10527_v43, %v14524_v32  ;;  %v9711_v60 = vsel %vm766_vm7, %v14488_v11, %v14508_v21 }
0x1623   :  { %v9710_v12 = vsel %vm766_vm7, %v14504_v20, %v14488_v11  ;;  %v9712_v10 = vsel %vm766_vm7, %v14508_v21, %v14490_v15  ;;  %v10318_v43 = vsel %vm1381_vm8, %v14518_v41, %v14502_v51  ;;  %vm15125_vm7 = vmmov %vm15123_vm4 }
0x1624   :  { %v9050_v1 = vpop.permute.xlu1 %9049 }
0x1625   :  { %v9053_v19 = vsel %vm98_vm3, %v9048_v40, %v9050_v1  ;;  %9063 = vst.msk [vmem:[#allocation2 + $0x20] sm:$0xf] %vm15115_vm12, %v9050_v1  ;;  %v14531_v42 = vld [vmem:[#allocation2 + $0x8] sm:$0xf]  ;;  %vm15117_vm3 = vcmask 7168   ;;  %vm15124_vm12 = vmmov %vm15123_vm4 }
0x1626   :  { %9062 = vst [vmem:[#allocation2 + $0x18] sm:$0xf] %v9053_v19  ;;  %9908 = vrot.lane.b32.xlu0 %v14531_v42, %s14995_s6  ;;  %v14538_v33 = vmul.f32 %v10534_v26, %v14531_v42  ;;  %v9122_v6 = vsel %vm15117_vm3, %v14476_v2, %v14480_v53  ;;  %vm15118_vm6 = vmmov %vm15117_vm3  ;;  %v9494_v2 = vsel %vm15121_vm9, %v14484_v18, %v14500_v30  ;;  %v10531_v19 = vpop.permute.xlu0 %10530 }
0x1627   :  { %v9131_v56 = vmul.f32 %v9122_v6, %v14531_v42  ;;  %v9123_v29 = vsel %vm15118_vm6, %v14480_v53, %v14492_v4  ;;  %vm15119_vm1 = vmmov %vm15117_vm3  ;;  %v9502_v53 = vmul.f32 %v9493_v37, %v14531_v42  ;;  %v10104_v11 = vsel %vm15124_vm12, %v14516_v55, %v14498_v36 }
0x1628   :  { %v9124_v0 = vsel %vm15119_vm1, %v14492_v4, %v14482_v3  ;;  %v9495_v4 = vsel %vm15122_vm2, %v14500_v30, %v14486_v38  ;;  %v10745_v57 = vpop.permute.xlu1 %10744  ;;  %v9719_v30 = vmul.f32 %v9710_v12, %v14531_v42  ;;  %v10327_v21 = vmul.f32 %v10318_v43, %v14531_v42  ;;  %vm15126_vm3 = vmmov %vm15116_vm5 }
0x1629   :  { %v14548_v17 = vld [vmem:[#allocation2 + $0x10] sm:$0xf]  ;;  %v10320_v26 = vsel %vm1381_vm8, %v14522_v25, %v14506_v54  ;;  %vm15127_vm6 = vcmask 277504   ;;  %vm15131_vm9 = vmmov %vm15130_vm11 }
0x162a   :  { %v9132_v49 = vmul.f32 %v9123_v29, %v14548_v17  ;;  %v9720_v18 = vmul.f32 %v9711_v60, %v14548_v17  ;;  %vm15129_vm1 = vmmov %vm15127_vm6 }
0x162b   :  { %vm15132_vm2 = vmmov %vm15131_vm9 }
0x162c   :  { %v14540_v61 = vld [vmem:[#allocation2 + $0x20] sm:$0xf]  ;;  %v10749_v1 = vpop.permute.xlu1 %10748  ;;  %vm15134_vm12 = vmmov %vm15132_vm2 }
0x162d   :  { %v14542_v16 = vld [vmem:[#allocation2 + $0x18] sm:$0xf]  ;;  %9914 = vrot.lane.b32.xlu1 %v14540_v61, %s14995_s6  ;;  %v9134_v27 = vmul.f32 %v14482_v3, %v14540_v61  ;;  %v9505_v44 = vmul.f32 %v14486_v38, %v14540_v61  ;;  %v9722_v31 = vmul.f32 %v14490_v15, %v14540_v61  ;;  %v10114_v59 = vmul.f32 %v14498_v36, %v14540_v61 }
0x162e   :  { %9912 = vrot.lane.b32.xlu0 %v14542_v16, %s14995_s6  ;;  %v10330_v28 = vmul.f32 %v14506_v54, %v14540_v61  ;;  %v10546_v63 = vmul.f32 %v14514_v46, %v14540_v61  ;;  %v9133_v58 = vmul.f32 %v9124_v0, %v14542_v16  ;;  %v9503_v3 = vmul.f32 %v9494_v2, %v14548_v17 }
0x162f   :  { %v9504_v5 = vmul.f32 %v9495_v4, %v14542_v16  ;;  %v10102_v38 = vsel %vm15123_vm4, %v14512_v50, %v14494_v23  ;;  %v9721_v20 = vmul.f32 %v9712_v10, %v14542_v16  ;;  %v10113_v50 = vmul.f32 %v10104_v11, %v14542_v16  ;;  %v9069_v11 = vld [vmem:[%s14980_s29] ss:$8 sm:$0xf]  ;;  %s11927_s29 = smov [#allocation9]  }
0x1630   :  { %v10111_v40 = vmul.f32 %v10102_v38, %v14531_v42  ;;  %v10762_v15 = vmul.f32 %v10749_v1, %v14540_v61  ;;  %v10103_v36 = vsel %vm15125_vm7, %v14494_v23, %v14516_v55  ;;  %v10329_v41 = vmul.f32 %v10320_v26, %v14542_v16  ;;  %v10743_v61 = vpop.permute.xlu0 %10742  ;;  %vm15135_vm7 = vmmov %vm15132_vm2  ;;  %s10982_s3 = sshll.u32 %s11927_s29, 4  ;;  %s10983_s3 = int_to_ptr.vmem [resolvable:$true] %s10982_s3 }
0x1631   :  { %9910 = vrot.lane.b32.xlu1 %v14548_v17, %s14995_s6  ;;  %v10535_v54 = vsel %vm15116_vm5, %v14510_v9, %v10531_v19  ;;  %v9086_v43 = vrot.slane %v9069_v11, %v15017_v35  ;;  %vm15133_vm4 = vcmask 31744   ;;  %vm15137_vm5 = vmmov %vm15132_vm2  ;;  %s11816_s21 = scalar_lea.vmem %s10983_s3, 32  ;;  %p11821_p6 = scmp.lt.s32.totalorder %s10983_s3, %s10983_s3 }
0x1632   :  { %9143 = vrot.lane.b32.xlu0 %v9130_v22, %s14993_s20  ;;  %v10112_v22 = vmul.f32 %v10103_v36, %v14548_v17  ;;  %p11817_p5 = scmp.ne.s32.totalorder %s10983_s3, %s11816_s21  ;;  %p11822_p7 = scmp.lt.s32.totalorder %s11816_s21, %s11816_s21 }
0x1633   :  { %v9094_v35 = vmul.f32 %v9086_v43, %v14542_v16 }
0x1634   :  { %v10747_v55 = vpop.permute.xlu0 %10746  ;;  %p11823_p8 = por %p11822_p7, %p11821_p6 }
0x1635   :  { %9151 = vrot.lane.b32.xlu1 %v9134_v27, %s14993_s20  ;;  %v10319_v27 = vsel %vm1381_vm8, %v14502_v51, %v14522_v25  ;;  %v10751_v51 = vsel %vm15127_vm6, %v10745_v57, %v10747_v55  ;;  %vm15128_vm8 = vmmov %vm15127_vm6 }
0x1636   :  { %9521 = vrot.lane.b32.xlu0 %v9505_v44, %s14994_s27  ;;  %v10328_v23 = vmul.f32 %v10319_v27, %v14548_v17  ;;  %v10536_v44 = vsel %vm15126_vm3, %v10531_v19, %v14514_v46  ;;  %v10760_v9 = vmul.f32 %v10751_v51, %v14548_v17  ;;  %v11926_v46 = vmov 15   ;;  %vm15138_vm3 = vmmov %vm15132_vm2  ;;  %p11824_p9 = pnand %p11823_p8, %p11817_p5 }
0x1637   :  { %v10545_v25 = vmul.f32 %v10536_v44, %v14542_v16  ;;  %11767 = vset.pattern.permute.xlu0 %v11926_v46  ;;  %v9082_v19 = vrot.slane %v9069_v11, %v12065_v13  ;;  %vm15139_vm6 = vmmov %vm15132_vm2 }
0x1638   :  { %v9310_v6 = vpop.permute.xlu0 %9309 }
0x1639   :  { %9513 = vrot.lane.b32.xlu1 %v9501_v48, %s14994_s27  ;;  %v10544_v48 = vmul.f32 %v10535_v54, %v14548_v17 }
0x163a   :  { %9736 = vrot.lane.b32.xlu0 %v9722_v31, %s14991_s16  ;;  %v10750_v31 = vsel %vm15128_vm8, %v10743_v61, %v10745_v57  ;;  %vm15140_vm8 = vmmov %vm15132_vm2 }
0x163d   :  { %9728 = vrot.lane.b32.xlu1 %v9718_v24, %s14991_s16  ;;  %v10759_v24 = vmul.f32 %v10750_v31, %v14531_v42 }
0x163e   :  { %10122 = vrot.lane.b32.xlu0 %v10110_v34, %s14996_s1 }
0x1641   :  { %10130 = vrot.lane.b32.xlu1 %v10114_v59, %s14996_s1  ;;  %v10758_v59 = vmul.f32 %v10743_v61, %v14524_v32  ;;  %v9093_v61 = vmul.f32 %v9082_v19, %v14548_v17 }
0x1642   :  { %10338 = vrot.lane.b32.xlu0 %v10326_v39, %s14990_s28  ;;  %v10940_v39 = vld [vmem:[%s14896_s11] sm:$0xf] }
0x1645   :  { %10346 = vrot.lane.b32.xlu1 %v10330_v28, %s14990_s28  ;;  %v9137_v28 = vpop.permute.xlu1 %9136 }
0x1646   :  { %10554 = vrot.lane.b32.xlu0 %v10542_v45, %s15003_s2 }
0x1649   :  { %10562 = vrot.lane.b32.xlu1 %v10546_v63, %s15003_s2  ;;  %v14694_v45 = vpop.permute.xlu1 %9899 }
0x164a   :  { %9145 = vrot.lane.b32.xlu0 %v9131_v56, %s14993_s20  ;;  %v14698_v56 = vpop.permute.xlu0 %9506 }
0x164d   :  { %9147 = vrot.lane.b32.xlu1 %v9132_v49, %s14993_s20  ;;  %v14696_v63 = vpop.permute.xlu1 %10115 }
0x164e   :  { %9149 = vrot.lane.b32.xlu0 %v9133_v58, %s14993_s20 }
0x1651   :  { %9515 = vrot.lane.b32.xlu1 %v9502_v53, %s14994_s27  ;;  %v14700_v29 = vpop.permute.xlu1 %10331 }
0x1652   :  { %9517 = vrot.lane.b32.xlu0 %v9503_v3, %s14994_s27 }
0x1655   :  { %9519 = vrot.lane.b32.xlu1 %v9504_v5, %s14994_s27  ;;  %v14704_v0 = vpop.permute.xlu1 %10547 }
0x1656   :  { %9732 = vrot.lane.b32.xlu0 %v9720_v18, %s14991_s16 }
0x1659   :  { %9730 = vrot.lane.b32.xlu1 %v9719_v30, %s14991_s16 }
0x165a   :  { %10124 = vrot.lane.b32.xlu0 %v10111_v40, %s14996_s1 }
0x165d   :  { %9734 = vrot.lane.b32.xlu1 %v9721_v20, %s14991_s16  ;;  %v9078_v20 = vrot.slane %v9069_v11, %v12054_v8 }
0x165e   :  { %10128 = vrot.lane.b32.xlu0 %v10113_v50, %s14996_s1  ;;  %v9074_v50 = vrot.slane %v9069_v11, %v12052_v7 }
0x165f   :  { %v9092_v7 = vmul.f32 %v9078_v20, %v14531_v42 }
0x1660   :  { %v9091_v13 = vmul.f32 %v9074_v50, %v14524_v32 }
0x1661   :  { %10778 = vrot.lane.b32.xlu1 %v10762_v15, %s15004_s30 }
0x1662   :  { %10340 = vrot.lane.b32.xlu0 %v10327_v21, %s14990_s28 }
0x1665   :  { %10126 = vrot.lane.b32.xlu1 %v10112_v22, %s14996_s1 }
0x1666   :  { %10344 = vrot.lane.b32.xlu0 %v10329_v41, %s14990_s28 }
0x1669   :  { %10342 = vrot.lane.b32.xlu1 %v10328_v23, %s14990_s28  ;;  %s11928_s28 = smov [#allocation8]  }
0x166a   :  { %10556 = vrot.lane.b32.xlu0 %v14538_v33, %s15003_s2  ;;  %v10752_v33 = vsel %vm15129_vm1, %v10747_v55, %v10749_v1  ;;  %vm15141_vm1 = vmmov %vm15133_vm4  ;;  %s10972_s16 = sshll.u32 %s11928_s28, 4  ;;  %s10973_s16 = int_to_ptr.vmem [resolvable:$true] %s10972_s16 }
0x166b   :  { %v10761_v34 = vmul.f32 %v10752_v33, %v14542_v16 }
0x166d   :  { %10558 = vrot.lane.b32.xlu1 %v10544_v48, %s15003_s2 }
0x166e   :  { %10560 = vrot.lane.b32.xlu0 %v10545_v25, %s15003_s2 }
0x1671   :  { %10774 = vrot.lane.b32.xlu1 %v10760_v9, %s15004_s30 }
0x1672   :  { %10772 = vrot.lane.b32.xlu0 %v10759_v24, %s15004_s30 }
0x1675   :  { %10763 = vrot.lane.b32.xlu1 %v14468_v47, %s14984_s23 }
0x1676   :  { %10776 = vrot.lane.b32.xlu0 %v10761_v34, %s15004_s30 }
0x1679   :  { %3564 = vrot.lane.b32.xlu1 %v13184_v52, %s14997_s18 }
0x167a   :  { %10770 = vrot.lane.b32.xlu0 %v10758_v59, %s15004_s30 }
0x167d   :  { %3928 = vrot.lane.b32.xlu1 %v13311_v14, %s14997_s18 }
0x167e   :  { %10943 = vperm.xlu0 %11767, %v10940_v39  }
0x1693   :  { %v14702_v52 = vpop.permute.xlu0 %9906 }
0x1698   :  { %v14706_v49 = vpop.permute.xlu0 %9908 }
0x1699   :  { %v9916_v25 = vsel %vm975_vm15, %v14702_v52, %v14706_v49 }
0x169f   :  { %v14708_v58 = vpop.permute.xlu1 %9914 }
0x16a0   :  { %v14710_v14 = vpop.permute.xlu0 %9912 }
0x16a1   :  { %v9919_v46 = vsel %vm975_vm15, %v14710_v14, %v14708_v58 }
0x16a3   :  { %v14712_v37 = vpop.permute.xlu1 %9910 }
0x16a4   :  { %v9144_v2 = vpop.permute.xlu0 %9143  ;;  %v9917_v51 = vsel %vm975_vm15, %v14706_v49, %v14712_v37  ;;  %v9918_v59 = vsel %vm975_vm15, %v14712_v37, %v14710_v14  ;;  %vm15160_vm15 = vcmask 785408  }
0x16a7   :  { %v9152_v53 = vpop.permute.xlu1 %9151 }
0x16a8   :  { %v9522_v3 = vpop.permute.xlu0 %9521 }
0x16ab   :  { %v9514_v4 = vpop.permute.xlu1 %9513 }
0x16ac   :  { %v14714_v60 = vpop.permute.xlu0 %9736 }
0x16af   :  { %v9729_v5 = vpop.permute.xlu1 %9728 }
0x16b0   :  { %v14716_v18 = vpop.permute.xlu0 %10122 }
0x16b3   :  { %v14718_v12 = vpop.permute.xlu1 %10130 }
0x16b4   :  { %v14720_v57 = vpop.permute.xlu0 %10338 }
0x16b7   :  { %v14722_v38 = vpop.permute.xlu1 %10346 }
0x16b8   :  { %v14724_v30 = vpop.permute.xlu0 %10554 }
0x16bb   :  { %v14726_v40 = vpop.permute.xlu1 %10562 }
0x16bc   :  { %v9146_v10 = vpop.permute.xlu0 %9145 }
0x16bd   :  { %v9153_v36 = vsel %vm205_vm10, %v9144_v2, %v9146_v10 }
0x16bf   :  { %v9148_v1 = vpop.permute.xlu1 %9147 }
0x16c0   :  { %v9154_v15 = vsel %vm205_vm10, %v9146_v10, %v9148_v1  ;;  %v9150_v21 = vpop.permute.xlu0 %9149 }
0x16c1   :  { %v9155_v26 = vsel %vm205_vm10, %v9148_v1, %v9150_v21  ;;  %v9156_v22 = vsel %vm205_vm10, %v9150_v21, %v9152_v53  ;;  %11193 = vmatprep.subr.msk.mxu0 %vm15130_vm11, %v9154_v15  ;;  %vm15136_vm10 = vmmov %vm15133_vm4 }
0x16c2   :  { %11194 = vmatpush1.msk.msra.mxu0 %vm15131_vm9, %v9153_v36  ;;  %11196 = vmatprep.subr.msk.mxu1 %vm15132_vm2, %v9156_v22  ;;  %vm15142_vm11 = vmmov %vm15132_vm2 }
0x16c3   :  { %v9516_v8 = vpop.permute.xlu1 %9515  ;;  %11195 = vmatmul.mubr.msk.f32.vlgmr.msra.gmra.mxu0 %vm15133_vm4, %v9137_v28  ;;  %11197 = vmatpush1.msk.msra.mxu1 %vm15134_vm12, %v9155_v26  ;;  %vm15143_vm9 = vmmov %vm15141_vm1 }
0x16c4   :  { %11199 = vmatprep.subr.msk.mxu0 %vm15135_vm7, %v9092_v7  ;;  %11198 = vmatmul.mubr.msk.f32.vlgmr.msra.gmra.mxu1 %vm15136_vm10, %v9137_v28  ;;  %v9518_v41 = vpop.permute.xlu0 %9517  ;;  %v9523_v32 = vsel %vm578_vm13, %v9514_v4, %v9516_v8  ;;  %vm15144_vm4 = vmmov %vm15132_vm2 }
0x16c5   :  { %11200 = vmatpush1.msk.msra.mxu0 %vm15137_vm5, %v9091_v13  ;;  %11202 = vmatprep.subr.msk.mxu1 %vm15138_vm3, %v9094_v35  ;;  %v9524_v42 = vsel %vm578_vm13, %v9516_v8, %v9518_v41  ;;  %vm15145_vm12 = vmmov %vm15141_vm1 }
0x16c6   :  { %11203 = vmatpush1.msk.msra.mxu1 %vm15139_vm6, %v9093_v61  ;;  %9389 = vmatprep.mubr.f32.mxu0 %v13357_v62  ;;  %vm15147_vm7 = vmmov %vm15132_vm2 }
0x16c7   :  { %11206 = vmatprep.subr.msk.mxu0 %vm15140_vm8, %v9524_v42  ;;  %v9520_v16 = vpop.permute.xlu1 %9519  ;;  %11201 = vmatmul.mubr.msk.f32.vlgmr.msra.gmra.mxu0 %vm15141_vm1, %v9310_v6  ;;  %vm15148_vm10 = vmmov %vm15132_vm2 }
0x16c8   :  { %v9525_v27 = vsel %vm578_vm13, %v9518_v41, %v9520_v16  ;;  %v9526_v17 = vsel %vm578_vm13, %v9520_v16, %v9522_v3  ;;  %9460 = vmatprep.mubr.f32.mxu1 %v13357_v62  ;;  %11207 = vmatpush1.msk.msra.mxu0 %vm15142_vm11, %v9523_v32  ;;  %v9733_v23 = vpop.permute.xlu0 %9732  ;;  %vm15146_vm13 = vmmov %vm15141_vm1 }
0x16c9   :  { %11204 = vmatmul.mubr.msk.f32.vlgmr.msra.gmra.mxu1 %vm15143_vm9, %v9310_v6  ;;  %11209 = vmatprep.subr.msk.mxu1 %vm15132_vm2, %v9526_v17  ;;  %vm15149_vm5 = vmmov %vm15141_vm1 }
0x16ca   :  { %9601 = vmatprep.mubr.f32.mxu0 %v13357_v62  ;;  %11210 = vmatpush1.msk.msra.mxu1 %vm15144_vm4, %v9525_v27  ;;  %vm15150_vm3 = vmmov %vm15132_vm2 }
0x16cb   :  { %v9731_v55 = vpop.permute.xlu1 %9730  ;;  %11208 = vmatmul.mubr.msk.f32.vlgmr.msra.gmra.mxu0 %vm15145_vm12, %v14698_v56  ;;  %9672 = vmatprep.mubr.f32.mxu1 %v13357_v62  ;;  %vm15151_vm6 = vmmov %vm15132_vm2 }
0x16cc   :  { %v9738_v54 = vsel %vm797_vm14, %v9729_v5, %v9731_v55  ;;  %v9739_v44 = vsel %vm797_vm14, %v9731_v55, %v9733_v23  ;;  %v10125_v48 = vpop.permute.xlu0 %10124  ;;  %9817 = vmatprep.mubr.f32.mxu0 %v13357_v62  ;;  %vm15152_vm8 = vmmov %vm15132_vm2 }
0x16cd   :  { %11211 = vmatmul.mubr.msk.f32.vlgmr.msra.gmra.mxu1 %vm15146_vm13, %v14698_v56  ;;  %11213 = vmatprep.subr.msk.mxu0 %vm15147_vm7, %v9739_v44  ;;  %vm15153_vm1 = vmmov %vm15132_vm2  ;;  %v10132_v49 = vsel %vm1193_vm0, %v14716_v18, %v10125_v48 }
0x16ce   :  { %11214 = vmatpush1.msk.msra.mxu0 %vm15148_vm10, %v9738_v54  ;;  %9888 = vmatprep.mubr.f32.mxu1 %v13357_v62  ;;  %vm15154_vm11 = vmmov %vm15149_vm5 }
0x16cf   :  { %v9735_v31 = vpop.permute.xlu1 %9734  ;;  %11215 = vmatmul.mubr.msk.f32.vlgmr.msra.gmra.mxu0 %vm15149_vm5, %v14468_v47  ;;  %11219 = vmatprep.subr.msk.mxu0 %vm15150_vm3, %v9917_v51  ;;  %vm15155_vm9 = vmmov %vm15149_vm5 }
0x16d0   :  { %v9740_v9 = vsel %vm797_vm14, %v9733_v23, %v9735_v31  ;;  %v9741_v24 = vsel %vm797_vm14, %v9735_v31, %v14714_v60  ;;  %11220 = vmatpush1.msk.msra.mxu0 %vm15151_vm6, %v9916_v25  ;;  %v10129_v33 = vpop.permute.xlu0 %10128  ;;  %9994 = vmatprep.mubr.f32.mxu0 %v13357_v62  ;;  %vm15156_vm14 = vmmov %vm15153_vm1 }
0x16d1   :  { %11216 = vmatprep.subr.msk.mxu1 %vm15152_vm8, %v9741_v24  ;;  %v10135_v28 = vsel %vm1193_vm0, %v10129_v33, %v14718_v12  ;;  %vm15157_vm2 = vmmov %vm15153_vm1 }
0x16d2   :  { %11217 = vmatpush1.msk.msra.mxu1 %vm15153_vm1, %v9740_v9  ;;  %vm15158_vm4 = vmmov %vm15153_vm1 }
0x16d3   :  { %v10779_v34 = vpop.permute.xlu1 %10778  ;;  %11218 = vmatmul.mubr.msk.f32.vlgmr.msra.gmra.mxu1 %vm15154_vm11, %v14468_v47  ;;  %11221 = vmatmul.mubr.msk.f32.vlgmr.msra.gmra.mxu0 %vm15155_vm9, %v14694_v45  ;;  %vm15159_vm12 = vmmov %vm15149_vm5 }
0x16d4   :  { %11222 = vmatprep.subr.msk.mxu1 %vm15156_vm14, %v9919_v46  ;;  %v10341_v39 = vpop.permute.xlu0 %10340  ;;  %10065 = vmatprep.mubr.f32.mxu1 %v13357_v62  ;;  %vm15161_vm13 = vmmov %vm15153_vm1 }
0x16d5   :  { %11223 = vmatpush1.msk.msra.mxu1 %vm15157_vm2, %v9918_v59  ;;  %10210 = vmatprep.mubr.f32.mxu0 %v13357_v62  ;;  %vm15162_vm7 = vmmov %vm15153_vm1 }
0x16d6   :  { %11229 = vmatprep.subr.msk.mxu1 %vm15158_vm4, %v10135_v28  ;;  %vm15163_vm10 = vmmov %vm15153_vm1 }
0x16d7   :  { %v10127_v47 = vpop.permute.xlu1 %10126  ;;  %11224 = vmatmul.mubr.msk.f32.vlgmr.msra.gmra.mxu1 %vm15159_vm12, %v14694_v45  ;;  %vm15164_vm5 = vmmov %vm15153_vm1  ;;  %vm15175_vm12 = vcmask 777216  }
0x16d8   :  { %v10133_v6 = vsel %vm1193_vm0, %v10125_v48, %v10127_v47  ;;  %v10134_v56 = vsel %vm1193_vm0, %v10127_v47, %v10129_v33  ;;  %v10345_v52 = vpop.permute.xlu0 %10344  ;;  %10281 = vmatprep.mubr.f32.mxu1 %v13357_v62  ;;  %vm15165_vm3 = vmmov %vm15155_vm9 }
0x16d9   :  { %v10351_v58 = vsel %vm15160_vm15, %v10345_v52, %v14722_v38  ;;  %11226 = vmatprep.subr.msk.mxu0 %vm15161_vm13, %v10133_v6  ;;  %11230 = vmatpush1.msk.msra.mxu1 %vm15162_vm7, %v10134_v56  ;;  %vm15166_vm6 = vmmov %vm15165_vm3 }
0x16da   :  { %11227 = vmatpush1.msk.msra.mxu0 %vm15163_vm10, %v10132_v49  ;;  %11236 = vmatprep.subr.msk.mxu1 %vm15164_vm5, %v10351_v58  ;;  %vm15167_vm8 = vmmov %vm15160_vm15 }
0x16db   :  { %v10343_v45 = vpop.permute.xlu1 %10342  ;;  %11228 = vmatmul.mubr.msk.f32.vlgmr.msra.gmra.mxu0 %vm15165_vm3, %v14696_v63  ;;  %11231 = vmatmul.mubr.msk.f32.vlgmr.msra.gmra.mxu1 %vm15166_vm6, %v14696_v63  ;;  %vm15168_vm0 = vmmov %vm15167_vm8 }
0x16dc   :  { %v10349_v14 = vsel %vm15167_vm8, %v10341_v39, %v10343_v45  ;;  %v10350_v37 = vsel %vm15168_vm0, %v10343_v45, %v10345_v52  ;;  %v10557_v2 = vpop.permute.xlu0 %10556  ;;  %10426 = vmatprep.mubr.f32.mxu0 %v13357_v62  ;;  %10497 = vmatprep.mubr.f32.mxu1 %v13357_v62  ;;  %vm15169_vm1 = vmmov %vm15168_vm0 }
0x16dd   :  { %v10348_v53 = vsel %vm15169_vm1, %v14720_v57, %v10341_v39  ;;  %vm15170_vm11 = vmmov %vm15157_vm2  ;;  %vm15184_vm1 = vcmask 769024  }
0x16de   :  { %11233 = vmatprep.subr.msk.mxu0 %vm15170_vm11, %v10349_v14  ;;  %vm15171_vm9 = vmmov %vm15157_vm2 }
0x16df   :  { %11237 = vmatpush1.msk.msra.mxu1 %vm15171_vm9, %v10350_v37  ;;  %vm15172_vm14 = vmmov %vm15157_vm2  ;;  %v10559_v3 = vpop.permute.xlu1 %10558 }
0x16e0   :  { %11234 = vmatpush1.msk.msra.mxu0 %vm15172_vm14, %v10348_v53  ;;  %vm15173_vm2 = vmmov %vm15165_vm3  ;;  %v10565_v63 = vsel %vm15175_vm12, %v10557_v2, %v10559_v3  ;;  %v10561_v4 = vpop.permute.xlu0 %10560 }
0x16e1   :  { %11235 = vmatmul.mubr.msk.f32.vlgmr.msra.gmra.mxu0 %vm15173_vm2, %v14700_v29  ;;  %vm15174_vm4 = vmmov %vm15173_vm2 }
0x16e2   :  { %11238 = vmatmul.mubr.msk.f32.vlgmr.msra.gmra.mxu1 %vm15174_vm4, %v14700_v29  ;;  %10642 = vmatprep.mubr.f32.mxu0 %v13357_v62  ;;  %vm15176_vm15 = vmmov %vm15175_vm12 }
0x16e3   :  { %10713 = vmatprep.mubr.f32.mxu1 %v13357_v62  ;;  %v10564_v60 = vsel %vm15176_vm15, %v14724_v30, %v10557_v2  ;;  %vm15177_vm13 = vmmov %vm15175_vm12  ;;  %v10775_v29 = vpop.permute.xlu1 %10774 }
0x16e4   :  { %v10566_v5 = vsel %vm15177_vm13, %v10559_v3, %v10561_v4  ;;  %vm15178_vm7 = vmmov %vm15175_vm12  ;;  %v10773_v12 = vpop.permute.xlu0 %10772  ;;  %vm15190_vm12 = vcmask 57344  }
0x16e5   :  { %v10567_v18 = vsel %vm15178_vm7, %v10561_v4, %v14726_v40  ;;  %vm15179_vm10 = vmmov %vm15164_vm5  ;;  %v10781_v57 = vsel %vm15184_vm1, %v10773_v12, %v10775_v29 }
0x16e6   :  { %11240 = vmatprep.subr.msk.mxu0 %vm15179_vm10, %v10565_v63  ;;  %vm15180_vm3 = vmmov %vm15164_vm5 }
0x16e7   :  { %11241 = vmatpush1.msk.msra.mxu0 %vm15164_vm5, %v10564_v60  ;;  %11243 = vmatprep.subr.msk.mxu1 %vm15180_vm3, %v10567_v18  ;;  %vm15181_vm6 = vmmov %vm15173_vm2  ;;  %v10764_v38 = vpop.permute.xlu1 %10763 }
0x16e8   :  { %11242 = vmatmul.mubr.msk.f32.vlgmr.msra.gmra.mxu0 %vm15181_vm6, %v14704_v0  ;;  %vm15182_vm8 = vmmov %vm15180_vm3  ;;  %v10777_v30 = vpop.permute.xlu0 %10776 }
0x16e9   :  { %11244 = vmatpush1.msk.msra.mxu1 %vm15182_vm8, %v10566_v5  ;;  %vm15183_vm0 = vmmov %vm15173_vm2  ;;  %10858 = vmatprep.mubr.f32.mxu0 %v13357_v62 }
0x16ea   :  { %11245 = vmatmul.mubr.msk.f32.vlgmr.msra.gmra.mxu1 %vm15183_vm0, %v14704_v0  ;;  %vm15185_vm11 = vmmov %vm15180_vm3 }
0x16eb   :  { %10929 = vmatprep.mubr.f32.mxu1 %v13357_v62  ;;  %11247 = vmatprep.subr.msk.mxu0 %vm15185_vm11, %v10781_v57  ;;  %vm15186_vm9 = vmmov %vm15184_vm1  ;;  %v3565_v11 = vpop.permute.xlu1 %3564 }
0x16ec   :  { %v10782_v40 = vsel %vm15186_vm9, %v10775_v29, %v10777_v30  ;;  %vm15187_vm14 = vmmov %vm15184_vm1  ;;  %3567 = vst.msk [vmem:[#allocation11] sm:$0x1] %vm15190_vm12, %v3565_v11  ;;  %v10771_v0 = vpop.permute.xlu0 %10770 }
0x16ed   :  { %v10783_v10 = vsel %vm15187_vm14, %v10777_v30, %v10779_v34  ;;  %vm15188_vm2 = vmmov %vm15180_vm3 }
0x16ee   :  { %11250 = vmatprep.subr.msk.mxu1 %vm15188_vm2, %v10783_v10  ;;  %vm15189_vm4 = vmmov %vm15188_vm2 }
0x16ef   :  { %11251 = vmatpush1.msk.msra.mxu1 %vm15189_vm4, %v10782_v40  ;;  %vm15191_vm15 = vmmov %vm15183_vm0  ;;  %v3929_v20 = vpop.permute.xlu1 %3928 }
0x16f0   :  { %11252 = vmatmul.mubr.msk.f32.vlgmr.msra.gmra.mxu1 %vm15191_vm15, %v10764_v38  ;;  %vm15192_vm13 = vmmov %vm15184_vm1 }
0x16f1   :  { %v10780_v62 = vsel %vm15192_vm13, %v10771_v0, %v10773_v12  ;;  %vm15193_vm7 = vmmov %vm15188_vm2 }
0x16f2   :  { %11248 = vmatpush1.msk.msra.mxu0 %vm15193_vm7, %v10780_v62  ;;  %vm15194_vm10 = vmmov %vm15183_vm0 }
0x16f3   :  { %11249 = vmatmul.mubr.msk.f32.vlgmr.msra.gmra.mxu0 %vm15194_vm10, %v10764_v38  ;;  %vm15195_vm5 = vmmov %vm15190_vm12 }
0x16f4   :  { %3931 = vst.msk [vmem:[#allocation11 + $0x1] sm:$0x1] %vm15195_vm5, %v3929_v20 }
0x16f5   :  { %11827 = shalt.err (!%p11824_p9)
}
0x16f6   :  { %s15196_s1 = sld [smem:[#allocation22_spill]]  ;;  %s11836_s6 = scalar_lea.vmem %s10973_s16, 32 }
0x16f7   :  { %p11837_p10 = scmp.ne.s32.totalorder %s10973_s16, %s11836_s6  ;;  %p11841_p11 = scmp.lt.s32.totalorder %s10973_s16, %s10973_s16 }
0x16f8   :  { %p11842_p12 = scmp.lt.s32.totalorder %s11836_s6, %s11836_s6 }
0x16fa   :  { %p11843_p13 = por %p11842_p12, %p11841_p11 }
0x16fc   :  { %10985 = dma.vmem_to_hbm [thread:$0]  %s10983_s3, 32, %s15196_s1, [#allocation10]  }
0x16fd   :  { %p11844_p0 = pnand %p11843_p13, %p11837_p10 }
0x16ff   :  { %11847 = shalt.err (!%p11844_p0)
}
0x1700   :  { %s15197_s2 = sld [smem:[#allocation21_spill]]  ;;  %s11929_s30 = smov [#allocation11]  }
0x1701   :  { %s10992_s13 = sshll.u32 %s11929_s30, 4  ;;  %s10993_s13 = int_to_ptr.vmem [resolvable:$true] %s10992_s13 }
0x1702   :  { %s11856_s15 = scalar_lea.vmem %s10993_s13, 32  ;;  %p11861_p2 = scmp.lt.s32.totalorder %s10993_s13, %s10993_s13 }
0x1703   :  { %p11857_p1 = scmp.ne.s32.totalorder %s10993_s13, %s11856_s15  ;;  %p11862_p3 = scmp.lt.s32.totalorder %s11856_s15, %s11856_s15 }
0x1705   :  { %p11863_p4 = por %p11862_p3, %p11861_p2 }
0x1706   :  { %10975 = dma.vmem_to_hbm [thread:$0]  %s10973_s16, 32, %s15197_s2, [#allocation7]  }
0x1707   :  { %p11864_p5 = pnand %p11863_p4, %p11857_p1 }
0x1709   :  { %11867 = shalt.err (!%p11864_p5)
}
0x170a   :  { %s15198_s9 = sld [smem:[#allocation23_spill]]  ;;  %v10944_v38 = vpop.permute.xlu0 %10943 }
0x170b   :  { %s15199_s14 = sld [smem:[#allocation20_spill]] }
0x1710   :  { %10995 = dma.vmem_to_hbm [thread:$0]  %s10993_s13, 32, %s15198_s9, [#allocation10]  }
0x1783   :  { %v9233_v1 = vpop.f32.mrf.mxu0 }
0x1784   :  { %v9304_v50 = vpop.f32.mrf.mxu1 }
0x1785   :  { %v9235_v43 = vpop.f32.mrf.mxu0 }
0x1786   :  { %v9306_v15 = vpop.f32.mrf.mxu1 }
0x1787   :  { %v9391_v21 = vpop.f32.mrf.mxu0 }
0x1788   :  { %v9392_v24 = vadd.f32 %v9391_v21, %v9233_v1 }
0x1789   :  { %v9462_v19 = vpop.f32.mrf.mxu1  ;;  %v9393_v36 = vpop.f32.mrf.mxu0 }
0x178a   :  { %v9463_v48 = vadd.f32 %v9462_v19, %v9304_v50  ;;  %v9394_v59 = vadd.f32 %v9393_v36, %v9235_v43 }
0x178b   :  { %v9464_v26 = vpop.f32.mrf.mxu1  ;;  %v9603_v22 = vpop.f32.mrf.mxu0 }
0x178c   :  { %v9465_v25 = vadd.f32 %v9464_v26, %v9306_v15  ;;  %v9679_v39 = vadd.f32 %v9603_v22, %v9392_v24 }
0x178d   :  { %v9674_v7 = vpop.f32.mrf.mxu1  ;;  %v9605_v8 = vpop.f32.mrf.mxu0 }
0x178e   :  { %v9681_v31 = vadd.f32 %v9674_v7, %v9463_v48  ;;  %v9680_v56 = vadd.f32 %v9605_v8, %v9394_v59 }
0x178f   :  { %v9819_v13 = vpop.f32.mrf.mxu0  ;;  %v9676_v35 = vpop.f32.mrf.mxu1 }
0x1790   :  { %v9682_v46 = vadd.f32 %v9676_v35, %v9465_v25  ;;  %v9895_v52 = vadd.f32 %v9819_v13, %v9679_v39 }
0x1791   :  { %v9821_v41 = vpop.f32.mrf.mxu0 }
0x1792   :  { %v9896_v14 = vadd.f32 %v9821_v41, %v9680_v56 }
0x1793   :  { %v9890_v61 = vpop.f32.mrf.mxu1  ;;  %v9996_v42 = vpop.f32.mrf.mxu0 }
0x1794   :  { %v9897_v34 = vadd.f32 %v9890_v61, %v9681_v31  ;;  %v10072_v37 = vadd.f32 %v9996_v42, %v9895_v52 }
0x1795   :  { %v9892_v32 = vpop.f32.mrf.mxu1  ;;  %v9998_v27 = vpop.f32.mrf.mxu0 }
0x1796   :  { %v9898_v28 = vadd.f32 %v9892_v32, %v9682_v46  ;;  %v10073_v63 = vadd.f32 %v9998_v27, %v9896_v14 }
0x1797   :  { %v10067_v16 = vpop.f32.mrf.mxu1 }
0x1798   :  { %v10074_v47 = vadd.f32 %v10067_v16, %v9897_v34 }
0x1799   :  { %v10069_v17 = vpop.f32.mrf.mxu1 }
0x179a   :  { %v10075_v58 = vadd.f32 %v10069_v17, %v9898_v28 }
0x179b   :  { %v10212_v23 = vpop.f32.mrf.mxu0  ;;  %v10283_v55 = vpop.f32.mrf.mxu1 }
0x179c   :  { %v10290_v45 = vadd.f32 %v10283_v55, %v10074_v47  ;;  %v10288_v4 = vadd.f32 %v10212_v23, %v10072_v37 }
0x179d   :  { %v10214_v54 = vpop.f32.mrf.mxu0  ;;  %v10285_v44 = vpop.f32.mrf.mxu1 }
0x179e   :  { %v10291_v2 = vadd.f32 %v10285_v44, %v10075_v58  ;;  %v10289_v29 = vadd.f32 %v10214_v54, %v10073_v63 }
0x17a1   :  { %v10428_v9 = vpop.f32.mrf.mxu0 }
0x17a2   :  { %v10499_v51 = vpop.f32.mrf.mxu1  ;;  %v10504_v12 = vadd.f32 %v10428_v9, %v10288_v4 }
0x17a3   :  { %v10430_v6 = vpop.f32.mrf.mxu0  ;;  %v10506_v53 = vadd.f32 %v10499_v51, %v10290_v45 }
0x17a4   :  { %v10501_v33 = vpop.f32.mrf.mxu1  ;;  %v10505_v11 = vadd.f32 %v10430_v6, %v10289_v29 }
0x17a5   :  { %v10507_v5 = vadd.f32 %v10501_v33, %v10291_v2 }
0x17a8   :  { %v10644_v3 = vpop.f32.mrf.mxu0 }
0x17a9   :  { %v10720_v0 = vadd.f32 %v10644_v3, %v10504_v12 }
0x17aa   :  { %v10715_v49 = vpop.f32.mrf.mxu1  ;;  %v10646_v30 = vpop.f32.mrf.mxu0 }
0x17ab   :  { %v10722_v18 = vadd.f32 %v10715_v49, %v10506_v53  ;;  %v10721_v43 = vadd.f32 %v10646_v30, %v10505_v11 }
0x17ac   :  { %v10717_v60 = vpop.f32.mrf.mxu1 }
0x17ad   :  { %v10723_v40 = vadd.f32 %v10717_v60, %v10507_v5 }
0x17b0   :  { %v10931_v57 = vpop.f32.mrf.mxu1 }
0x17b1   :  { %v10938_v10 = vadd.f32 %v10931_v57, %v10722_v18 }
0x17b2   :  { %v10933_v62 = vpop.f32.mrf.mxu1 }
0x17b3   :  { %v10939_v20 = vadd.f32 %v10933_v62, %v10723_v40  ;;  %v10948_v1 = vadd.f32 %v10944_v38, %v10938_v10  ;;  %v10860_v50 = vpop.f32.mrf.mxu0 }
0x17b4   :  { %v10936_v15 = vadd.f32 %v10860_v50, %v10720_v0 }
0x17b5   :  { %v10949_v21 = vadd.f32 %v10944_v38, %v10939_v20  ;;  %v10862_v19 = vpop.f32.mrf.mxu0  ;;  %11786 = vtanh.f32 %v10948_v1 }
0x17b6   :  { %v10946_v36 = vadd.f32 %v10944_v38, %v10936_v15  ;;  %v10937_v26 = vadd.f32 %v10862_v19, %v10721_v43 }
0x17b7   :  { %11788 = vtanh.f32 %v10949_v21 }
0x17b8   :  { %v10947_v22 = vadd.f32 %v10944_v38, %v10937_v26  ;;  %11790 = vtanh.f32 %v10946_v36 }
0x17ba   :  { %11792 = vtanh.f32 %v10947_v22 }
0x17c2   :  { %v11787_v7 = vpop.eup %11786 }
0x17c4   :  { %v11789_v8 = vpop.eup %11788 }
0x17c5   :  { %v10959_v13 = vcombine.low %v11787_v7, %v11789_v8  ;;  %v11791_v35 = vpop.eup %11790 }
0x17c7   :  { %v11793_v41 = vpop.eup %11792  ;;  %10963 = vst [vmem:[%s15199_s14 + $0x8] sm:$0xff] %v10959_v13 }
0x17c8   :  { %v10958_v61 = vcombine.low %v11791_v35, %v11793_v41 }
0x17ca   :  { %10962 = vst [vmem:[%s15199_s14] sm:$0xff] %v10958_v61 }
0x17cb   :  { %11878 = dma.done.wait [#allocation7], 32  }
0x17cc   :  { %11879 = vsyncadd [#allocation7], 4294967264 }
0x17cd   :  { %11880 = dma.done.wait [#allocation10], 64  }
0x17ce   :  { %11881 = vsyncadd [#allocation10], 4294967232 }
0x17cf   :  { %11007 = vsyncpa [#allocation6], 1 }
0x17d0   :  { %11008 = vsyncpa [#allocation7], 1 }
0x17d1   :  { %11009 = vsyncpa [#allocation10], 1 }

</bundles_post_ra>
